<compile_context>
chip_gen: v7x
topology: tpu7x:2x2x1
jax: 0.10.0
libtpu: 0.0.40
codegen_flags: <defaults>
</compile_context>

<pallas_src>
import math

import jax
import jax.numpy as jnp
from jax import lax
from jax.experimental import pallas as pl
from jax.experimental.pallas import tpu as pltpu

LN_EPS = 1e-5
# MXU input dtype for the conv matmuls (accumulation is always f32). The pure-JAX reference
# applies the same input casts, so the correctness check stays tight regardless of this flag.
CONV_MATMUL_DTYPE = jnp.bfloat16

# ---- model hyperparameters (small demo sizes; structure matches CNN_LSTM_InnerModel) ----
PIANO_RANGE = (60, 68)                 # 8 pitches -> 2*8 = 16 input channels
N_FRAMES_PER_DATAPOINT = 16            # sequence length L
ENTRANCE_N_CHANNEL = 32
RES_BLOCKS_HPARAM = [[(1, 48), (2, 32)]]   # one CNNResidualBlock: (radius, n_channel) pairs
LSTM_HIDDEN_SIZE = 32
LSTM_N_LAYERS = 2
LAST_CONV_N_CHANNEL = 16
LAST_CONV_KERNEL_RADIUS = 2

_LSTM_UNROLL_MAX_L = 64                # statically unroll the recurrence up to this L


# ======================================================================================
# Fused kernel: ConvBlock stack -> stacked LSTM -> last ConvBlock
# ======================================================================================

def _make_fused_kernel(cnn_meta, cnn_segments, lstm_cins, H, last_meta, b_blk, L):
    """cnn_meta[i] = (radius, cin, cout) for entrance + residual-block conv layers.
       cnn_segments = tuple of (start, end, residual) ranges over cnn_meta.
       lstm_cins[l] = input width of LSTM layer l.  last_meta = (radius, cin, cout)."""
    n_cnn = len(cnn_meta)
    n_lstm = len(lstm_cins)

    def kernel(*refs):
        pos = 0
        x_ref = refs[pos]; pos += 1
        cnn_p = refs[pos:pos + 4 * n_cnn]; pos += 4 * n_cnn
        lstm_p = refs[pos:pos + 3 * n_lstm]; pos += 3 * n_lstm
        last_p = refs[pos:pos + 4]; pos += 4
        out_ref = refs[pos]; pos += 1
        gates_scr = refs[pos]; pos += 1          # VMEM (b_blk, L, 4H) f32
        seq_scr = refs[pos]                      # VMEM (b_blk, L, H)  f32

        def conv_ln_relu(h, p4, r, cin, cout):
            """Conv1d 'same' (im2col + ONE MXU matmul, batch folded into M)
               -> channel LayerNorm with fused affine -> ReLU."""
            w = p4[0][...]                        # (K*cin, cout)  bf16
            bias = p4[1][...]                     # (1, cout)      f32
            gamma = p4[2][...]
            beta = p4[3][...]
            K = 2 * r + 1
            if r > 0:
                # value-space 'same' padding + im2col window (no scratch round-trip)
                z = jnp.zeros((b_blk, r, cin), jnp.float32)
                hp = jnp.concatenate([z, h, z], axis=1)               # (b_blk, L+2r, cin)
                win = jnp.concatenate(
                    [hp[:, k:k + L, :] for k in range(K)], axis=-1)   # (b_blk, L, K*cin)
            else:
                win = h
            a = win.reshape(b_blk * L, K * cin).astype(CONV_MATMUL_DTYPE)
            acc = jnp.dot(a, w, preferred_element_type=jnp.float32) + bias
            mean = jnp.mean(acc, axis=-1, keepdims=True)
            var = jnp.mean(jnp.square(acc - mean), axis=-1, keepdims=True)
            scale = gamma * lax.rsqrt(var + LN_EPS)
            shift = beta - mean * scale
            return jnp.maximum(acc * scale + shift, 0.0).reshape(b_blk, L, cout)

        # ---- entrance ConvBlock + CNNResidualBlocks ----
        h = x_ref[...].astype(jnp.float32)                            # (b_blk, L, C0)
        for (start, end, residual) in cnn_segments:
            seg_in = h
            for li in range(start, end):
                r, cin, cout = cnn_meta[li]
                h = conv_ln_relu(h, cnn_p[4 * li:4 * li + 4], r, cin, cout)
            if residual:
                h = seg_in + h

        # ---- stacked unidirectional LSTM (batch_first; PyTorch gate order i,f,g,o) ----
        for layer in range(n_lstm):
            cin = lstm_cins[layer]
            wih = lstm_p[3 * layer][...]                              # (cin, 4H) f32
            whh = lstm_p[3 * layer + 1][...]                          # (H, 4H)   f32
            bias = lstm_p[3 * layer + 2][...]                         # (1, 4H)   f32

            # Hoisted input projection for all timesteps: one (b_blk*L, cin)x(cin, 4H) matmul.
            gates_scr[...] = (
                jnp.dot(h.reshape(b_blk * L, cin), wih,
                        preferred_element_type=jnp.float32) + bias
            ).reshape(b_blk, L, 4 * H)

            def cell(t_slice, h_st, c_st, whh=whh):
                g = gates_scr[:, t_slice, :].reshape(b_blk, 4 * H)
                g = g + jnp.dot(h_st, whh, preferred_element_type=jnp.float32)
                i_g = 1.0 / (1.0 + jnp.exp(-g[:, 0:H]))
                f_g = 1.0 / (1.0 + jnp.exp(-g[:, H:2 * H]))
                g_g = jnp.tanh(g[:, 2 * H:3 * H])
                o_g = 1.0 / (1.0 + jnp.exp(-g[:, 3 * H:4 * H]))
                c_st = f_g * c_st + i_g * g_g
                h_st = o_g * jnp.tanh(c_st)
                seq_scr[:, t_slice, :] = h_st.reshape(b_blk, 1, H)
                return h_st, c_st

            h_st = jnp.zeros((b_blk, H), jnp.float32)
            c_st = jnp.zeros((b_blk, H), jnp.float32)
            if L <= _LSTM_UNROLL_MAX_L:
                # Static unroll: fixed small L -> static aligned slices, full LLO visibility.
                for t in range(L):
                    h_st, c_st = cell(pl.ds(t, 1), h_st, c_st)
            else:
                def body(t, carry):
                    return cell(pl.ds(t, 1), carry[0], carry[1])
                lax.fori_loop(0, L, body, (h_st, c_st))
            h = seq_scr[...]                                          # (b_blk, L, H)

        # ---- last ConvBlock ----
        r, cin, cout = last_meta
        h = conv_ln_relu(h, last_p, r, cin, cout)
        out_ref[...] = h.astype(out_ref.dtype)

    return kernel


def _const_spec(shape):
    zeros = (0,) * len(shape)
    return pl.BlockSpec(shape, lambda i, _z=zeros: _z)


def _choose_batch_block(B, L):
    """Keep the whole batch in one grid step while the fused matmul M dim stays small;
    split evenly (parallel across cores) only when b_blk*L would exceed ~512 rows."""
    if B * L <= 512:
        return B
    b_blk = max(1, min(B, 512 // max(L, 1)))
    while B % b_blk != 0:
        b_blk -= 1
    return max(b_blk, 1)


def cnn_lstm_inner_model(x, params):
    """x: (B, 2, n_pitches, n_frames). Returns (B, n_frames, last_conv_n_channel),
    matching CNN_LSTM_InnerModel.forward in eval mode."""
    entrance, res_blocks, lstm_params, last_conv = params
    B, n_ch, n_pitch, n_frames = x.shape
    assert n_ch == 2
    assert n_pitch == PIANO_RANGE[1] - PIANO_RANGE[0]
    assert n_frames == N_FRAMES_PER_DATAPOINT
    L = n_frames

    h = x.reshape(B, 2 * n_pitch, L)             # (B, C, L)  (PyTorch .view)
    h = jnp.transpose(h, (0, 2, 1))              # (B, L, C)  NLC
    c0 = h.shape[2]

    b_blk = _choose_batch_block(B, L)
    grid = (B // b_blk,)

    flat_args = []
    in_specs = [pl.BlockSpec((b_blk, L, c0), lambda i: (i, 0, 0))]

    # entrance ConvBlock + residual blocks
    cnn_meta, cnn_segments = [], []
    segments = [[entrance]] + [list(blk) for blk in res_blocks]
    residuals = [False] + [True] * len(res_blocks)
    cin = c0
    for layers, residual in zip(segments, residuals):
        start = len(cnn_meta)
        seg_cin = cin
        for (w, bias, gamma, beta) in layers:
            K, w_cin, cout = w.shape
            assert w_cin == cin
            r = (K - 1) // 2
            cnn_meta.append((r, cin, cout))
            flat_args += [w.reshape(K * cin, cout).astype(CONV_MATMUL_DTYPE),
                          bias, gamma, beta]
            in_specs += [_const_spec((K * cin, cout)), _const_spec((1, cout)),
                         _const_spec((1, cout)), _const_spec((1, cout))]
            cin = cout
        if residual:
            assert cin == seg_cin, "residual block requires out_n_channel == in_n_channel"
        cnn_segments.append((start, len(cnn_meta), residual))

    # LSTM layers
    H = lstm_params[0][1].shape[0]
    lstm_cins = []
    for (wih, whh, b) in lstm_params:
        assert wih.shape[0] == cin and whh.shape == (H, 4 * H)
        lstm_cins.append(cin)
        flat_args += [wih, whh, b]
        in_specs += [_const_spec(wih.shape), _const_spec(whh.shape), _const_spec(b.shape)]
        cin = H

    # last ConvBlock
    wl, bl, gl, bel = last_conv
    Kl, wl_cin, c_last = wl.shape
    assert wl_cin == cin
    last_meta = ((Kl - 1) // 2, cin, c_last)
    flat_args += [wl.reshape(Kl * cin, c_last).astype(CONV_MATMUL_DTYPE), bl, gl, bel]
    in_specs += [_const_spec((Kl * cin, c_last)), _const_spec((1, c_last)),
                 _const_spec((1, c_last)), _const_spec((1, c_last))]

    kernel = _make_fused_kernel(tuple(cnn_meta), tuple(cnn_segments),
                                tuple(lstm_cins), H, last_meta, b_blk, L)

    return pl.pallas_call(
        kernel,
        out_shape=jax.ShapeDtypeStruct((B, L, c_last), x.dtype),
        grid_spec=pltpu.PrefetchScalarGridSpec(
            num_scalar_prefetch=0,
            grid=grid,
            in_specs=in_specs,
            out_specs=pl.BlockSpec((b_blk, L, c_last), lambda i: (i, 0, 0)),
            scratch_shapes=[pltpu.VMEM((b_blk, L, 4 * H), jnp.float32),
                            pltpu.VMEM((b_blk, L, H), jnp.float32)],
        ),
        compiler_params=pltpu.CompilerParams(
            dimension_semantics=("parallel",)),
    )(h, *flat_args)


# ======================================================================================
# Pure-JAX reference (structurally independent; same math & same matmul-input casts)
# ======================================================================================

def _ref_conv_block(h, w, bias, gamma, beta):
    K, cin, cout = w.shape
    r = (K - 1) // 2
    L = h.shape[1]
    hp = jnp.pad(h, ((0, 0), (r, r), (0, 0)))
    acc = sum(
        jnp.einsum("blc,cd->bld",
                   hp[:, k:k + L, :].astype(CONV_MATMUL_DTYPE),
                   w[k].astype(CONV_MATMUL_DTYPE),
                   preferred_element_type=jnp.float32)
        for k in range(K)) + bias
    mean = jnp.mean(acc, axis=-1, keepdims=True)
    var = jnp.mean(jnp.square(acc - mean), axis=-1, keepdims=True)
    out = (acc - mean) * lax.rsqrt(var + LN_EPS) * gamma + beta
    return jnp.maximum(out, 0.0)


def _ref_lstm(h_blc, lstm_params):
    out = h_blc
    for (wih, whh, b) in lstm_params:
        B, L, _ = out.shape
        H = whh.shape[0]

        def step(carry, x_t, wih=wih, whh=whh, b=b, H=H):
            hh, cc = carry
            g = x_t @ wih + hh @ whh + b
            i_g = jax.nn.sigmoid(g[:, 0:H])
            f_g = jax.nn.sigmoid(g[:, H:2 * H])
            g_g = jnp.tanh(g[:, 2 * H:3 * H])
            o_g = jax.nn.sigmoid(g[:, 3 * H:4 * H])
            cc = f_g * cc + i_g * g_g
            hh = o_g * jnp.tanh(cc)
            return (hh, cc), hh

        init = (jnp.zeros((B, H), jnp.float32), jnp.zeros((B, H), jnp.float32))
        _, ys = lax.scan(step, init, jnp.transpose(out, (1, 0, 2)))
        out = jnp.transpose(ys, (1, 0, 2))
    return out


def ref_cnn_lstm_inner_model(x, params):
    entrance, res_blocks, lstm_params, last_conv = params
    B, _, n_pitch, n_frames = x.shape
    h = jnp.transpose(x.reshape(B, 2 * n_pitch, n_frames), (0, 2, 1))  # (B, L, C)
    h = _ref_conv_block(h, *entrance)
    for layers in res_blocks:
        r_in = h
        for lay in layers:
            h = _ref_conv_block(h, *lay)
        h = r_in + h
    h = _ref_lstm(h, lstm_params)
    return _ref_conv_block(h, *last_conv)


# ======================================================================================
# Parameter init + demo
# ======================================================================================

def _init_conv_layer(key, cin, cout, radius):
    K = 2 * radius + 1
    kw, kb, kg, kbe = jax.random.split(key, 4)
    w = 0.1 * jax.random.normal(kw, (K, cin, cout), jnp.float32)
    bias = 0.1 * jax.random.normal(kb, (1, cout), jnp.float32)
    gamma = 1.0 + 0.05 * jax.random.normal(kg, (1, cout), jnp.float32)
    beta = 0.05 * jax.random.normal(kbe, (1, cout), jnp.float32)
    return (w, bias, gamma, beta)


def init_params(key):
    n_pitch = PIANO_RANGE[1] - PIANO_RANGE[0]
    cin = 2 * n_pitch
    ki = iter(jax.random.split(key, 64))

    entrance = _init_conv_layer(next(ki), cin, ENTRANCE_N_CHANNEL, 0)
    cin = ENTRANCE_N_CHANNEL

    res_blocks = []
    for block_hp in RES_BLOCKS_HPARAM:
        layers = []
        block_in = cin
        for (radius, n_channel) in block_hp:
            layers.append(_init_conv_layer(next(ki), cin, n_channel, radius))
            cin = n_channel
        assert cin == block_in, "CNNResidualBlock requires out_n_channel == in_n_channel"
        res_blocks.append(layers)

    H = LSTM_HIDDEN_SIZE
    bound = 1.0 / math.sqrt(H)
    lstm_params = []
    for _ in range(LSTM_N_LAYERS):
        k1, k2, k3, k4 = jax.random.split(next(ki), 4)
        wih = jax.random.uniform(k1, (cin, 4 * H), jnp.float32, -bound, bound)
        whh = jax.random.uniform(k2, (H, 4 * H), jnp.float32, -bound, bound)
        b = (jax.random.uniform(k3, (1, 4 * H), jnp.float32, -bound, bound)
             + jax.random.uniform(k4, (1, 4 * H), jnp.float32, -bound, bound))
        lstm_params.append((wih, whh, b))
        cin = H

    last_conv = _init_conv_layer(next(ki), cin, LAST_CONV_N_CHANNEL, LAST_CONV_KERNEL_RADIUS)
    return entrance, res_blocks, lstm_params, last_conv


if __name__ == "__main__":
    key = jax.random.PRNGKey(0)
    key, kx = jax.random.split(key)

    B = 2
    n_pitch = PIANO_RANGE[1] - PIANO_RANGE[0]
    x = jax.random.normal(kx, (B, 2, n_pitch, N_FRAMES_PER_DATAPOINT), jnp.float32)
    params = init_params(key)

    out = jax.block_until_ready(jax.jit(cnn_lstm_inner_model)(x, params))
    ref = jax.block_until_ready(jax.jit(ref_cnn_lstm_inner_model)(x, params))

    assert out.shape == (B, N_FRAMES_PER_DATAPOINT, LAST_CONV_N_CHANNEL), out.shape
    assert out.dtype == jnp.float32
    # Reference applies the same bf16 matmul-input casts (f32 accumulation), so only
    # accumulation-order / transcendental-approximation differences remain.
    assert jnp.allclose(out, ref, atol=1e-2, rtol=1e-2), float(jnp.max(jnp.abs(out - ref)))

    print("KERNEL_OK")
</pallas_src>

<mosaic_0001>
module attributes {stable_mosaic.version = 11 : i64} {
  func.func @kernel(%arg0: i32, %arg1: memref<2x16x16xf32, #tpu.memory_space<vmem>>, %arg2: memref<16x32xbf16, #tpu.memory_space<vmem>>, %arg3: memref<1x32xf32, #tpu.memory_space<vmem>>, %arg4: memref<1x32xf32, #tpu.memory_space<vmem>>, %arg5: memref<1x32xf32, #tpu.memory_space<vmem>>, %arg6: memref<96x48xbf16, #tpu.memory_space<vmem>>, %arg7: memref<1x48xf32, #tpu.memory_space<vmem>>, %arg8: memref<1x48xf32, #tpu.memory_space<vmem>>, %arg9: memref<1x48xf32, #tpu.memory_space<vmem>>, %arg10: memref<240x32xbf16, #tpu.memory_space<vmem>>, %arg11: memref<1x32xf32, #tpu.memory_space<vmem>>, %arg12: memref<1x32xf32, #tpu.memory_space<vmem>>, %arg13: memref<1x32xf32, #tpu.memory_space<vmem>>, %arg14: memref<32x128xf32, #tpu.memory_space<vmem>>, %arg15: memref<32x128xf32, #tpu.memory_space<vmem>>, %arg16: memref<1x128xf32, #tpu.memory_space<vmem>>, %arg17: memref<32x128xf32, #tpu.memory_space<vmem>>, %arg18: memref<32x128xf32, #tpu.memory_space<vmem>>, %arg19: memref<1x128xf32, #tpu.memory_space<vmem>>, %arg20: memref<160x16xbf16, #tpu.memory_space<vmem>>, %arg21: memref<1x16xf32, #tpu.memory_space<vmem>>, %arg22: memref<1x16xf32, #tpu.memory_space<vmem>>, %arg23: memref<1x16xf32, #tpu.memory_space<vmem>>, %arg24: memref<2x16x16xf32, #tpu.memory_space<vmem>>, %arg25: memref<2x16x128xf32, #tpu.memory_space<vmem>>, %arg26: memref<2x16x32xf32, #tpu.memory_space<vmem>>) attributes {dimension_semantics = [#tpu.dimension_semantics<parallel>], iteration_bounds = array<i64: 1>, scalar_prefetch = 0 : i64, scratch_operands = 2 : i64, tpu.core_type = #tpu.core_type<tc>, window_params = [{transform_indices = @transform_0, window_bounds = array<i64: 2, 16, 16>}, {pipeline_mode = #tpu.pipeline_mode<synchronous>, transform_indices = @transform_1, window_bounds = array<i64: 16, 32>}, {pipeline_mode = #tpu.pipeline_mode<synchronous>, transform_indices = @transform_2, window_bounds = array<i64: 1, 32>}, {pipeline_mode = #tpu.pipeline_mode<synchronous>, transform_indices = @transform_3, window_bounds = array<i64: 1, 32>}, {pipeline_mode = #tpu.pipeline_mode<synchronous>, transform_indices = @transform_4, window_bounds = array<i64: 1, 32>}, {pipeline_mode = #tpu.pipeline_mode<synchronous>, transform_indices = @transform_5, window_bounds = array<i64: 96, 48>}, {pipeline_mode = #tpu.pipeline_mode<synchronous>, transform_indices = @transform_6, window_bounds = array<i64: 1, 48>}, {pipeline_mode = #tpu.pipeline_mode<synchronous>, transform_indices = @transform_7, window_bounds = array<i64: 1, 48>}, {pipeline_mode = #tpu.pipeline_mode<synchronous>, transform_indices = @transform_8, window_bounds = array<i64: 1, 48>}, {pipeline_mode = #tpu.pipeline_mode<synchronous>, transform_indices = @transform_9, window_bounds = array<i64: 240, 32>}, {pipeline_mode = #tpu.pipeline_mode<synchronous>, transform_indices = @transform_10, window_bounds = array<i64: 1, 32>}, {pipeline_mode = #tpu.pipeline_mode<synchronous>, transform_indices = @transform_11, window_bounds = array<i64: 1, 32>}, {pipeline_mode = #tpu.pipeline_mode<synchronous>, transform_indices = @transform_12, window_bounds = array<i64: 1, 32>}, {pipeline_mode = #tpu.pipeline_mode<synchronous>, transform_indices = @transform_13, window_bounds = array<i64: 32, 128>}, {pipeline_mode = #tpu.pipeline_mode<synchronous>, transform_indices = @transform_14, window_bounds = array<i64: 32, 128>}, {pipeline_mode = #tpu.pipeline_mode<synchronous>, transform_indices = @transform_15, window_bounds = array<i64: 1, 128>}, {pipeline_mode = #tpu.pipeline_mode<synchronous>, transform_indices = @transform_16, window_bounds = array<i64: 32, 128>}, {pipeline_mode = #tpu.pipeline_mode<synchronous>, transform_indices = @transform_17, window_bounds = array<i64: 32, 128>}, {pipeline_mode = #tpu.pipeline_mode<synchronous>, transform_indices = @transform_18, window_bounds = array<i64: 1, 128>}, {pipeline_mode = #tpu.pipeline_mode<synchronous>, transform_indices = @transform_19, window_bounds = array<i64: 160, 16>}, {pipeline_mode = #tpu.pipeline_mode<synchronous>, transform_indices = @transform_20, window_bounds = array<i64: 1, 16>}, {pipeline_mode = #tpu.pipeline_mode<synchronous>, transform_indices = @transform_21, window_bounds = array<i64: 1, 16>}, {pipeline_mode = #tpu.pipeline_mode<synchronous>, transform_indices = @transform_22, window_bounds = array<i64: 1, 16>}, {transform_indices = @transform_23, window_bounds = array<i64: 2, 16, 16>}]} {
    %c0 = arith.constant 0 : index
    %c0_0 = arith.constant 0 : index
    %c0_1 = arith.constant 0 : index
    %0 = vector.load %arg1[%c0, %c0_0, %c0_1] : memref<2x16x16xf32, #tpu.memory_space<vmem>>, vector<2x16x16xf32>
    %c0_2 = arith.constant 0 : index
    %c0_3 = arith.constant 0 : index
    %1 = vector.load %arg2[%c0_2, %c0_3] : memref<16x32xbf16, #tpu.memory_space<vmem>>, vector<16x32xbf16>
    %c0_4 = arith.constant 0 : index
    %c0_5 = arith.constant 0 : index
    %2 = vector.load %arg3[%c0_4, %c0_5] : memref<1x32xf32, #tpu.memory_space<vmem>>, vector<1x32xf32>
    %c0_6 = arith.constant 0 : index
    %c0_7 = arith.constant 0 : index
    %3 = vector.load %arg4[%c0_6, %c0_7] : memref<1x32xf32, #tpu.memory_space<vmem>>, vector<1x32xf32>
    %c0_8 = arith.constant 0 : index
    %c0_9 = arith.constant 0 : index
    %4 = vector.load %arg5[%c0_8, %c0_9] : memref<1x32xf32, #tpu.memory_space<vmem>>, vector<1x32xf32>
    %5 = vector.shape_cast %0 : vector<2x16x16xf32> to vector<32x16xf32>
    %6 = arith.truncf %5 : vector<32x16xf32> to vector<32x16xbf16>
    %cst = arith.constant dense<0.000000e+00> : vector<32x32xf32>
    %7 = tpu.matmul %6, %1, %cst {dimension_numbers = #tpu.dot_dimension_numbers<[1], [0], [0], [1], [0, 0, 1, 1], [], []>} : vector<32x16xbf16>, vector<16x32xbf16>, vector<32x32xf32> -> vector<32x32xf32>
    %8 = vector.broadcast %2 : vector<1x32xf32> to vector<32x32xf32>
    %9 = arith.addf %7, %8 : vector<32x32xf32>
    %cst_10 = arith.constant dense<0.000000e+00> : vector<32xf32>
    %10 = vector.multi_reduction <add>, %9, %cst_10 [1] : vector<32x32xf32> to vector<32xf32>
    %11 = vector.shape_cast %10 : vector<32xf32> to vector<32x1xf32>
    %cst_11 = arith.constant 3.200000e+01 : f32
    %12 = vector.broadcast %cst_11 : f32 to vector<32x1xf32>
    %13 = arith.divf %11, %12 : vector<32x1xf32>
    %14 = vector.broadcast %13 : vector<32x1xf32> to vector<32x32xf32>
    %15 = arith.subf %9, %14 : vector<32x32xf32>
    %16 = arith.mulf %15, %15 : vector<32x32xf32>
    %cst_12 = arith.constant dense<0.000000e+00> : vector<32xf32>
    %17 = vector.multi_reduction <add>, %16, %cst_12 [1] : vector<32x32xf32> to vector<32xf32>
    %18 = vector.shape_cast %17 : vector<32xf32> to vector<32x1xf32>
    %cst_13 = arith.constant 3.200000e+01 : f32
    %19 = vector.broadcast %cst_13 : f32 to vector<32x1xf32>
    %20 = arith.divf %18, %19 : vector<32x1xf32>
    %cst_14 = arith.constant 9.99999974E-6 : f32
    %21 = vector.broadcast %cst_14 : f32 to vector<32x1xf32>
    %22 = arith.addf %20, %21 : vector<32x1xf32>
    %23 = math.rsqrt %22 : vector<32x1xf32>
    %24 = vector.broadcast %3 : vector<1x32xf32> to vector<32x32xf32>
    %25 = vector.broadcast %23 : vector<32x1xf32> to vector<32x32xf32>
    %26 = arith.mulf %24, %25 : vector<32x32xf32>
    %27 = vector.broadcast %13 : vector<32x1xf32> to vector<32x32xf32>
    %28 = arith.mulf %27, %26 : vector<32x32xf32>
    %29 = vector.broadcast %4 : vector<1x32xf32> to vector<32x32xf32>
    %30 = arith.subf %29, %28 : vector<32x32xf32>
    %31 = arith.mulf %9, %26 : vector<32x32xf32>
    %32 = arith.addf %31, %30 : vector<32x32xf32>
    %cst_15 = arith.constant 0.000000e+00 : f32
    %33 = vector.broadcast %cst_15 : f32 to vector<32x32xf32>
    %34 = arith.maximumf %32, %33 : vector<32x32xf32>
    %35 = vector.shape_cast %34 : vector<32x32xf32> to vector<2x16x32xf32>
    %c0_16 = arith.constant 0 : index
    %c0_17 = arith.constant 0 : index
    %36 = vector.load %arg6[%c0_16, %c0_17] : memref<96x48xbf16, #tpu.memory_space<vmem>>, vector<96x48xbf16>
    %c0_18 = arith.constant 0 : index
    %c0_19 = arith.constant 0 : index
    %37 = vector.load %arg7[%c0_18, %c0_19] : memref<1x48xf32, #tpu.memory_space<vmem>>, vector<1x48xf32>
    %c0_20 = arith.constant 0 : index
    %c0_21 = arith.constant 0 : index
    %38 = vector.load %arg8[%c0_20, %c0_21] : memref<1x48xf32, #tpu.memory_space<vmem>>, vector<1x48xf32>
    %c0_22 = arith.constant 0 : index
    %c0_23 = arith.constant 0 : index
    %39 = vector.load %arg9[%c0_22, %c0_23] : memref<1x48xf32, #tpu.memory_space<vmem>>, vector<1x48xf32>
    %cst_24 = arith.constant 0.000000e+00 : f32
    %40 = vector.broadcast %cst_24 : f32 to vector<2x1x32xf32>
    %41 = tpu.concatenate %40, %35, %40 in 1 : vector<2x1x32xf32>, vector<2x16x32xf32>, vector<2x1x32xf32> -> vector<2x18x32xf32>
    %42 = vector.extract_strided_slice %41 {offsets = [0, 0, 0], sizes = [2, 16, 32], strides = [1, 1, 1]} : vector<2x18x32xf32> to vector<2x16x32xf32>
    %43 = vector.extract_strided_slice %41 {offsets = [0, 1, 0], sizes = [2, 16, 32], strides = [1, 1, 1]} : vector<2x18x32xf32> to vector<2x16x32xf32>
    %44 = vector.extract_strided_slice %41 {offsets = [0, 2, 0], sizes = [2, 16, 32], strides = [1, 1, 1]} : vector<2x18x32xf32> to vector<2x16x32xf32>
    %45 = tpu.concatenate %42, %43, %44 in 2 : vector<2x16x32xf32>, vector<2x16x32xf32>, vector<2x16x32xf32> -> vector<2x16x96xf32>
    %46 = vector.shape_cast %45 : vector<2x16x96xf32> to vector<32x96xf32>
    %47 = arith.truncf %46 : vector<32x96xf32> to vector<32x96xbf16>
    %cst_25 = arith.constant dense<0.000000e+00> : vector<32x48xf32>
    %48 = tpu.matmul %47, %36, %cst_25 {dimension_numbers = #tpu.dot_dimension_numbers<[1], [0], [0], [1], [0, 0, 1, 1], [], []>} : vector<32x96xbf16>, vector<96x48xbf16>, vector<32x48xf32> -> vector<32x48xf32>
    %49 = vector.broadcast %37 : vector<1x48xf32> to vector<32x48xf32>
    %50 = arith.addf %48, %49 : vector<32x48xf32>
    %cst_26 = arith.constant dense<0.000000e+00> : vector<32xf32>
    %51 = vector.multi_reduction <add>, %50, %cst_26 [1] : vector<32x48xf32> to vector<32xf32>
    %52 = vector.shape_cast %51 : vector<32xf32> to vector<32x1xf32>
    %cst_27 = arith.constant 4.800000e+01 : f32
    %53 = vector.broadcast %cst_27 : f32 to vector<32x1xf32>
    %54 = arith.divf %52, %53 : vector<32x1xf32>
    %55 = vector.broadcast %54 : vector<32x1xf32> to vector<32x48xf32>
    %56 = arith.subf %50, %55 : vector<32x48xf32>
    %57 = arith.mulf %56, %56 : vector<32x48xf32>
    %cst_28 = arith.constant dense<0.000000e+00> : vector<32xf32>
    %58 = vector.multi_reduction <add>, %57, %cst_28 [1] : vector<32x48xf32> to vector<32xf32>
    %59 = vector.shape_cast %58 : vector<32xf32> to vector<32x1xf32>
    %cst_29 = arith.constant 4.800000e+01 : f32
    %60 = vector.broadcast %cst_29 : f32 to vector<32x1xf32>
    %61 = arith.divf %59, %60 : vector<32x1xf32>
    %cst_30 = arith.constant 9.99999974E-6 : f32
    %62 = vector.broadcast %cst_30 : f32 to vector<32x1xf32>
    %63 = arith.addf %61, %62 : vector<32x1xf32>
    %64 = math.rsqrt %63 : vector<32x1xf32>
    %65 = vector.broadcast %38 : vector<1x48xf32> to vector<32x48xf32>
    %66 = vector.broadcast %64 : vector<32x1xf32> to vector<32x48xf32>
    %67 = arith.mulf %65, %66 : vector<32x48xf32>
    %68 = vector.broadcast %54 : vector<32x1xf32> to vector<32x48xf32>
    %69 = arith.mulf %68, %67 : vector<32x48xf32>
    %70 = vector.broadcast %39 : vector<1x48xf32> to vector<32x48xf32>
    %71 = arith.subf %70, %69 : vector<32x48xf32>
    %72 = arith.mulf %50, %67 : vector<32x48xf32>
    %73 = arith.addf %72, %71 : vector<32x48xf32>
    %cst_31 = arith.constant 0.000000e+00 : f32
    %74 = vector.broadcast %cst_31 : f32 to vector<32x48xf32>
    %75 = arith.maximumf %73, %74 : vector<32x48xf32>
    %76 = vector.shape_cast %75 : vector<32x48xf32> to vector<2x16x48xf32>
    %c0_32 = arith.constant 0 : index
    %c0_33 = arith.constant 0 : index
    %77 = vector.load %arg10[%c0_32, %c0_33] : memref<240x32xbf16, #tpu.memory_space<vmem>>, vector<240x32xbf16>
    %c0_34 = arith.constant 0 : index
    %c0_35 = arith.constant 0 : index
    %78 = vector.load %arg11[%c0_34, %c0_35] : memref<1x32xf32, #tpu.memory_space<vmem>>, vector<1x32xf32>
    %c0_36 = arith.constant 0 : index
    %c0_37 = arith.constant 0 : index
    %79 = vector.load %arg12[%c0_36, %c0_37] : memref<1x32xf32, #tpu.memory_space<vmem>>, vector<1x32xf32>
    %c0_38 = arith.constant 0 : index
    %c0_39 = arith.constant 0 : index
    %80 = vector.load %arg13[%c0_38, %c0_39] : memref<1x32xf32, #tpu.memory_space<vmem>>, vector<1x32xf32>
    %cst_40 = arith.constant 0.000000e+00 : f32
    %81 = vector.broadcast %cst_40 : f32 to vector<2x2x48xf32>
    %82 = tpu.concatenate %81, %76, %81 in 1 : vector<2x2x48xf32>, vector<2x16x48xf32>, vector<2x2x48xf32> -> vector<2x20x48xf32>
    %83 = vector.extract_strided_slice %82 {offsets = [0, 0, 0], sizes = [2, 16, 48], strides = [1, 1, 1]} : vector<2x20x48xf32> to vector<2x16x48xf32>
    %84 = vector.extract_strided_slice %82 {offsets = [0, 1, 0], sizes = [2, 16, 48], strides = [1, 1, 1]} : vector<2x20x48xf32> to vector<2x16x48xf32>
    %85 = vector.extract_strided_slice %82 {offsets = [0, 2, 0], sizes = [2, 16, 48], strides = [1, 1, 1]} : vector<2x20x48xf32> to vector<2x16x48xf32>
    %86 = vector.extract_strided_slice %82 {offsets = [0, 3, 0], sizes = [2, 16, 48], strides = [1, 1, 1]} : vector<2x20x48xf32> to vector<2x16x48xf32>
    %87 = vector.extract_strided_slice %82 {offsets = [0, 4, 0], sizes = [2, 16, 48], strides = [1, 1, 1]} : vector<2x20x48xf32> to vector<2x16x48xf32>
    %88 = tpu.concatenate %83, %84, %85, %86, %87 in 2 : vector<2x16x48xf32>, vector<2x16x48xf32>, vector<2x16x48xf32>, vector<2x16x48xf32>, vector<2x16x48xf32> -> vector<2x16x240xf32>
    %89 = vector.shape_cast %88 : vector<2x16x240xf32> to vector<32x240xf32>
    %90 = arith.truncf %89 : vector<32x240xf32> to vector<32x240xbf16>
    %cst_41 = arith.constant dense<0.000000e+00> : vector<32x32xf32>
    %91 = tpu.matmul %90, %77, %cst_41 {dimension_numbers = #tpu.dot_dimension_numbers<[1], [0], [0], [1], [0, 0, 1, 1], [], []>} : vector<32x240xbf16>, vector<240x32xbf16>, vector<32x32xf32> -> vector<32x32xf32>
    %92 = vector.broadcast %78 : vector<1x32xf32> to vector<32x32xf32>
    %93 = arith.addf %91, %92 : vector<32x32xf32>
    %cst_42 = arith.constant dense<0.000000e+00> : vector<32xf32>
    %94 = vector.multi_reduction <add>, %93, %cst_42 [1] : vector<32x32xf32> to vector<32xf32>
    %95 = vector.shape_cast %94 : vector<32xf32> to vector<32x1xf32>
    %cst_43 = arith.constant 3.200000e+01 : f32
    %96 = vector.broadcast %cst_43 : f32 to vector<32x1xf32>
    %97 = arith.divf %95, %96 : vector<32x1xf32>
    %98 = vector.broadcast %97 : vector<32x1xf32> to vector<32x32xf32>
    %99 = arith.subf %93, %98 : vector<32x32xf32>
    %100 = arith.mulf %99, %99 : vector<32x32xf32>
    %cst_44 = arith.constant dense<0.000000e+00> : vector<32xf32>
    %101 = vector.multi_reduction <add>, %100, %cst_44 [1] : vector<32x32xf32> to vector<32xf32>
    %102 = vector.shape_cast %101 : vector<32xf32> to vector<32x1xf32>
    %cst_45 = arith.constant 3.200000e+01 : f32
    %103 = vector.broadcast %cst_45 : f32 to vector<32x1xf32>
    %104 = arith.divf %102, %103 : vector<32x1xf32>
    %cst_46 = arith.constant 9.99999974E-6 : f32
    %105 = vector.broadcast %cst_46 : f32 to vector<32x1xf32>
    %106 = arith.addf %104, %105 : vector<32x1xf32>
    %107 = math.rsqrt %106 : vector<32x1xf32>
    %108 = vector.broadcast %79 : vector<1x32xf32> to vector<32x32xf32>
    %109 = vector.broadcast %107 : vector<32x1xf32> to vector<32x32xf32>
    %110 = arith.mulf %108, %109 : vector<32x32xf32>
    %111 = vector.broadcast %97 : vector<32x1xf32> to vector<32x32xf32>
    %112 = arith.mulf %111, %110 : vector<32x32xf32>
    %113 = vector.broadcast %80 : vector<1x32xf32> to vector<32x32xf32>
    %114 = arith.subf %113, %112 : vector<32x32xf32>
    %115 = arith.mulf %93, %110 : vector<32x32xf32>
    %116 = arith.addf %115, %114 : vector<32x32xf32>
    %cst_47 = arith.constant 0.000000e+00 : f32
    %117 = vector.broadcast %cst_47 : f32 to vector<32x32xf32>
    %118 = arith.maximumf %116, %117 : vector<32x32xf32>
    %119 = vector.shape_cast %118 : vector<32x32xf32> to vector<2x16x32xf32>
    %120 = arith.addf %35, %119 : vector<2x16x32xf32>
    %c0_48 = arith.constant 0 : index
    %c0_49 = arith.constant 0 : index
    %121 = vector.load %arg14[%c0_48, %c0_49] : memref<32x128xf32, #tpu.memory_space<vmem>>, vector<32x128xf32>
    %c0_50 = arith.constant 0 : index
    %c0_51 = arith.constant 0 : index
    %122 = vector.load %arg15[%c0_50, %c0_51] : memref<32x128xf32, #tpu.memory_space<vmem>>, vector<32x128xf32>
    %c0_52 = arith.constant 0 : index
    %c0_53 = arith.constant 0 : index
    %123 = vector.load %arg16[%c0_52, %c0_53] : memref<1x128xf32, #tpu.memory_space<vmem>>, vector<1x128xf32>
    %124 = vector.shape_cast %120 : vector<2x16x32xf32> to vector<32x32xf32>
    %cst_54 = arith.constant dense<0.000000e+00> : vector<32x128xf32>
    %125 = tpu.matmul %124, %121, %cst_54 {dimension_numbers = #tpu.dot_dimension_numbers<[1], [0], [0], [1], [0, 0, 1, 1], [], []>} : vector<32x32xf32>, vector<32x128xf32>, vector<32x128xf32> -> vector<32x128xf32>
    %126 = vector.broadcast %123 : vector<1x128xf32> to vector<32x128xf32>
    %127 = arith.addf %125, %126 : vector<32x128xf32>
    %128 = vector.shape_cast %127 : vector<32x128xf32> to vector<2x16x128xf32>
    %c0_55 = arith.constant 0 : index
    %c0_56 = arith.constant 0 : index
    %c0_57 = arith.constant 0 : index
    %129 = vector.load %arg25[%c0_55, %c0_56, %c0_57] : memref<2x16x128xf32, #tpu.memory_space<vmem>>, vector<2x16x128xf32>
    tpu.vector_store %arg25[%c0_55, %c0_56, %c0_57], %128 {strides = array<i32>} : memref<2x16x128xf32, #tpu.memory_space<vmem>>, vector<2x16x128xf32>,
    %cst_58 = arith.constant 0.000000e+00 : f32
    %130 = vector.broadcast %cst_58 : f32 to vector<2x32xf32>
    %cst_59 = arith.constant 0.000000e+00 : f32
    %131 = vector.broadcast %cst_59 : f32 to vector<2x32xf32>
    %c0_60 = arith.constant 0 : index
    %c0_61 = arith.constant 0 : index
    %c0_62 = arith.constant 0 : index
    %132 = vector.load %arg25[%c0_60, %c0_61, %c0_62] : memref<2x16x128xf32, #tpu.memory_space<vmem>>, vector<2x1x128xf32>
    %133 = vector.shape_cast %132 : vector<2x1x128xf32> to vector<2x128xf32>
    %cst_63 = arith.constant dense<0.000000e+00> : vector<2x128xf32>
    %134 = tpu.matmul %130, %122, %cst_63 {dimension_numbers = #tpu.dot_dimension_numbers<[1], [0], [0], [1], [0, 0, 1, 1], [], []>} : vector<2x32xf32>, vector<32x128xf32>, vector<2x128xf32> -> vector<2x128xf32>
    %135 = arith.addf %133, %134 : vector<2x128xf32>
    %136 = vector.extract_strided_slice %135 {offsets = [0, 0], sizes = [2, 32], strides = [1, 1]} : vector<2x128xf32> to vector<2x32xf32>
    %cst_64 = arith.constant 0.000000e+00 : f32
    %137 = vector.broadcast %cst_64 : f32 to vector<2x32xf32>
    %138 = arith.subf %137, %136 : vector<2x32xf32>
    %139 = math.exp %138 : vector<2x32xf32>
    %cst_65 = arith.constant 1.000000e+00 : f32
    %140 = vector.broadcast %cst_65 : f32 to vector<2x32xf32>
    %141 = arith.addf %140, %139 : vector<2x32xf32>
    %cst_66 = arith.constant 1.000000e+00 : f32
    %142 = vector.broadcast %cst_66 : f32 to vector<2x32xf32>
    %143 = arith.divf %142, %141 : vector<2x32xf32>
    %144 = vector.extract_strided_slice %135 {offsets = [0, 32], sizes = [2, 32], strides = [1, 1]} : vector<2x128xf32> to vector<2x32xf32>
    %cst_67 = arith.constant 0.000000e+00 : f32
    %145 = vector.broadcast %cst_67 : f32 to vector<2x32xf32>
    %146 = arith.subf %145, %144 : vector<2x32xf32>
    %147 = math.exp %146 : vector<2x32xf32>
    %cst_68 = arith.constant 1.000000e+00 : f32
    %148 = vector.broadcast %cst_68 : f32 to vector<2x32xf32>
    %149 = arith.addf %148, %147 : vector<2x32xf32>
    %cst_69 = arith.constant 1.000000e+00 : f32
    %150 = vector.broadcast %cst_69 : f32 to vector<2x32xf32>
    %151 = arith.divf %150, %149 : vector<2x32xf32>
    %152 = vector.extract_strided_slice %135 {offsets = [0, 64], sizes = [2, 32], strides = [1, 1]} : vector<2x128xf32> to vector<2x32xf32>
    %153 = math.tanh %152 : vector<2x32xf32>
    %154 = vector.extract_strided_slice %135 {offsets = [0, 96], sizes = [2, 32], strides = [1, 1]} : vector<2x128xf32> to vector<2x32xf32>
    %cst_70 = arith.constant 0.000000e+00 : f32
    %155 = vector.broadcast %cst_70 : f32 to vector<2x32xf32>
    %156 = arith.subf %155, %154 : vector<2x32xf32>
    %157 = math.exp %156 : vector<2x32xf32>
    %cst_71 = arith.constant 1.000000e+00 : f32
    %158 = vector.broadcast %cst_71 : f32 to vector<2x32xf32>
    %159 = arith.addf %158, %157 : vector<2x32xf32>
    %cst_72 = arith.constant 1.000000e+00 : f32
    %160 = vector.broadcast %cst_72 : f32 to vector<2x32xf32>
    %161 = arith.divf %160, %159 : vector<2x32xf32>
    %162 = arith.mulf %151, %131 : vector<2x32xf32>
    %163 = arith.mulf %143, %153 : vector<2x32xf32>
    %164 = arith.addf %162, %163 : vector<2x32xf32>
    %165 = math.tanh %164 : vector<2x32xf32>
    %166 = arith.mulf %161, %165 : vector<2x32xf32>
    %167 = vector.shape_cast %166 : vector<2x32xf32> to vector<2x1x32xf32>
    %c0_73 = arith.constant 0 : index
    %c0_74 = arith.constant 0 : index
    %c0_75 = arith.constant 0 : index
    %168 = vector.load %arg26[%c0_73, %c0_74, %c0_75] : memref<2x16x32xf32, #tpu.memory_space<vmem>>, vector<2x1x32xf32>
    tpu.vector_store %arg26[%c0_73, %c0_74, %c0_75], %167 {strides = array<i32>} : memref<2x16x32xf32, #tpu.memory_space<vmem>>, vector<2x1x32xf32>,
    %c0_76 = arith.constant 0 : index
    %c1 = arith.constant 1 : index
    %c0_77 = arith.constant 0 : index
    %169 = vector.load %arg25[%c0_76, %c1, %c0_77] : memref<2x16x128xf32, #tpu.memory_space<vmem>>, vector<2x1x128xf32>
    %170 = vector.shape_cast %169 : vector<2x1x128xf32> to vector<2x128xf32>
    %cst_78 = arith.constant dense<0.000000e+00> : vector<2x128xf32>
    %171 = tpu.matmul %166, %122, %cst_78 {dimension_numbers = #tpu.dot_dimension_numbers<[1], [0], [0], [1], [0, 0, 1, 1], [], []>} : vector<2x32xf32>, vector<32x128xf32>, vector<2x128xf32> -> vector<2x128xf32>
    %172 = arith.addf %170, %171 : vector<2x128xf32>
    %173 = vector.extract_strided_slice %172 {offsets = [0, 0], sizes = [2, 32], strides = [1, 1]} : vector<2x128xf32> to vector<2x32xf32>
    %cst_79 = arith.constant 0.000000e+00 : f32
    %174 = vector.broadcast %cst_79 : f32 to vector<2x32xf32>
    %175 = arith.subf %174, %173 : vector<2x32xf32>
    %176 = math.exp %175 : vector<2x32xf32>
    %cst_80 = arith.constant 1.000000e+00 : f32
    %177 = vector.broadcast %cst_80 : f32 to vector<2x32xf32>
    %178 = arith.addf %177, %176 : vector<2x32xf32>
    %cst_81 = arith.constant 1.000000e+00 : f32
    %179 = vector.broadcast %cst_81 : f32 to vector<2x32xf32>
    %180 = arith.divf %179, %178 : vector<2x32xf32>
    %181 = vector.extract_strided_slice %172 {offsets = [0, 32], sizes = [2, 32], strides = [1, 1]} : vector<2x128xf32> to vector<2x32xf32>
    %cst_82 = arith.constant 0.000000e+00 : f32
    %182 = vector.broadcast %cst_82 : f32 to vector<2x32xf32>
    %183 = arith.subf %182, %181 : vector<2x32xf32>
    %184 = math.exp %183 : vector<2x32xf32>
    %cst_83 = arith.constant 1.000000e+00 : f32
    %185 = vector.broadcast %cst_83 : f32 to vector<2x32xf32>
    %186 = arith.addf %185, %184 : vector<2x32xf32>
    %cst_84 = arith.constant 1.000000e+00 : f32
    %187 = vector.broadcast %cst_84 : f32 to vector<2x32xf32>
    %188 = arith.divf %187, %186 : vector<2x32xf32>
    %189 = vector.extract_strided_slice %172 {offsets = [0, 64], sizes = [2, 32], strides = [1, 1]} : vector<2x128xf32> to vector<2x32xf32>
    %190 = math.tanh %189 : vector<2x32xf32>
    %191 = vector.extract_strided_slice %172 {offsets = [0, 96], sizes = [2, 32], strides = [1, 1]} : vector<2x128xf32> to vector<2x32xf32>
    %cst_85 = arith.constant 0.000000e+00 : f32
    %192 = vector.broadcast %cst_85 : f32 to vector<2x32xf32>
    %193 = arith.subf %192, %191 : vector<2x32xf32>
    %194 = math.exp %193 : vector<2x32xf32>
    %cst_86 = arith.constant 1.000000e+00 : f32
    %195 = vector.broadcast %cst_86 : f32 to vector<2x32xf32>
    %196 = arith.addf %195, %194 : vector<2x32xf32>
    %cst_87 = arith.constant 1.000000e+00 : f32
    %197 = vector.broadcast %cst_87 : f32 to vector<2x32xf32>
    %198 = arith.divf %197, %196 : vector<2x32xf32>
    %199 = arith.mulf %188, %164 : vector<2x32xf32>
    %200 = arith.mulf %180, %190 : vector<2x32xf32>
    %201 = arith.addf %199, %200 : vector<2x32xf32>
    %202 = math.tanh %201 : vector<2x32xf32>
    %203 = arith.mulf %198, %202 : vector<2x32xf32>
    %204 = vector.shape_cast %203 : vector<2x32xf32> to vector<2x1x32xf32>
    %c0_88 = arith.constant 0 : index
    %c1_89 = arith.constant 1 : index
    %c0_90 = arith.constant 0 : index
    %205 = vector.load %arg26[%c0_88, %c1_89, %c0_90] : memref<2x16x32xf32, #tpu.memory_space<vmem>>, vector<2x1x32xf32>
    tpu.vector_store %arg26[%c0_88, %c1_89, %c0_90], %204 {strides = array<i32>} : memref<2x16x32xf32, #tpu.memory_space<vmem>>, vector<2x1x32xf32>,
    %c0_91 = arith.constant 0 : index
    %c2 = arith.constant 2 : index
    %c0_92 = arith.constant 0 : index
    %206 = vector.load %arg25[%c0_91, %c2, %c0_92] : memref<2x16x128xf32, #tpu.memory_space<vmem>>, vector<2x1x128xf32>
    %207 = vector.shape_cast %206 : vector<2x1x128xf32> to vector<2x128xf32>
    %cst_93 = arith.constant dense<0.000000e+00> : vector<2x128xf32>
    %208 = tpu.matmul %203, %122, %cst_93 {dimension_numbers = #tpu.dot_dimension_numbers<[1], [0], [0], [1], [0, 0, 1, 1], [], []>} : vector<2x32xf32>, vector<32x128xf32>, vector<2x128xf32> -> vector<2x128xf32>
    %209 = arith.addf %207, %208 : vector<2x128xf32>
    %210 = vector.extract_strided_slice %209 {offsets = [0, 0], sizes = [2, 32], strides = [1, 1]} : vector<2x128xf32> to vector<2x32xf32>
    %cst_94 = arith.constant 0.000000e+00 : f32
    %211 = vector.broadcast %cst_94 : f32 to vector<2x32xf32>
    %212 = arith.subf %211, %210 : vector<2x32xf32>
    %213 = math.exp %212 : vector<2x32xf32>
    %cst_95 = arith.constant 1.000000e+00 : f32
    %214 = vector.broadcast %cst_95 : f32 to vector<2x32xf32>
    %215 = arith.addf %214, %213 : vector<2x32xf32>
    %cst_96 = arith.constant 1.000000e+00 : f32
    %216 = vector.broadcast %cst_96 : f32 to vector<2x32xf32>
    %217 = arith.divf %216, %215 : vector<2x32xf32>
    %218 = vector.extract_strided_slice %209 {offsets = [0, 32], sizes = [2, 32], strides = [1, 1]} : vector<2x128xf32> to vector<2x32xf32>
    %cst_97 = arith.constant 0.000000e+00 : f32
    %219 = vector.broadcast %cst_97 : f32 to vector<2x32xf32>
    %220 = arith.subf %219, %218 : vector<2x32xf32>
    %221 = math.exp %220 : vector<2x32xf32>
    %cst_98 = arith.constant 1.000000e+00 : f32
    %222 = vector.broadcast %cst_98 : f32 to vector<2x32xf32>
    %223 = arith.addf %222, %221 : vector<2x32xf32>
    %cst_99 = arith.constant 1.000000e+00 : f32
    %224 = vector.broadcast %cst_99 : f32 to vector<2x32xf32>
    %225 = arith.divf %224, %223 : vector<2x32xf32>
    %226 = vector.extract_strided_slice %209 {offsets = [0, 64], sizes = [2, 32], strides = [1, 1]} : vector<2x128xf32> to vector<2x32xf32>
    %227 = math.tanh %226 : vector<2x32xf32>
    %228 = vector.extract_strided_slice %209 {offsets = [0, 96], sizes = [2, 32], strides = [1, 1]} : vector<2x128xf32> to vector<2x32xf32>
    %cst_100 = arith.constant 0.000000e+00 : f32
    %229 = vector.broadcast %cst_100 : f32 to vector<2x32xf32>
    %230 = arith.subf %229, %228 : vector<2x32xf32>
    %231 = math.exp %230 : vector<2x32xf32>
    %cst_101 = arith.constant 1.000000e+00 : f32
    %232 = vector.broadcast %cst_101 : f32 to vector<2x32xf32>
    %233 = arith.addf %232, %231 : vector<2x32xf32>
    %cst_102 = arith.constant 1.000000e+00 : f32
    %234 = vector.broadcast %cst_102 : f32 to vector<2x32xf32>
    %235 = arith.divf %234, %233 : vector<2x32xf32>
    %236 = arith.mulf %225, %201 : vector<2x32xf32>
    %237 = arith.mulf %217, %227 : vector<2x32xf32>
    %238 = arith.addf %236, %237 : vector<2x32xf32>
    %239 = math.tanh %238 : vector<2x32xf32>
    %240 = arith.mulf %235, %239 : vector<2x32xf32>
    %241 = vector.shape_cast %240 : vector<2x32xf32> to vector<2x1x32xf32>
    %c0_103 = arith.constant 0 : index
    %c2_104 = arith.constant 2 : index
    %c0_105 = arith.constant 0 : index
    %242 = vector.load %arg26[%c0_103, %c2_104, %c0_105] : memref<2x16x32xf32, #tpu.memory_space<vmem>>, vector<2x1x32xf32>
    tpu.vector_store %arg26[%c0_103, %c2_104, %c0_105], %241 {strides = array<i32>} : memref<2x16x32xf32, #tpu.memory_space<vmem>>, vector<2x1x32xf32>,
    %c0_106 = arith.constant 0 : index
    %c3 = arith.constant 3 : index
    %c0_107 = arith.constant 0 : index
    %243 = vector.load %arg25[%c0_106, %c3, %c0_107] : memref<2x16x128xf32, #tpu.memory_space<vmem>>, vector<2x1x128xf32>
    %244 = vector.shape_cast %243 : vector<2x1x128xf32> to vector<2x128xf32>
    %cst_108 = arith.constant dense<0.000000e+00> : vector<2x128xf32>
    %245 = tpu.matmul %240, %122, %cst_108 {dimension_numbers = #tpu.dot_dimension_numbers<[1], [0], [0], [1], [0, 0, 1, 1], [], []>} : vector<2x32xf32>, vector<32x128xf32>, vector<2x128xf32> -> vector<2x128xf32>
    %246 = arith.addf %244, %245 : vector<2x128xf32>
    %247 = vector.extract_strided_slice %246 {offsets = [0, 0], sizes = [2, 32], strides = [1, 1]} : vector<2x128xf32> to vector<2x32xf32>
    %cst_109 = arith.constant 0.000000e+00 : f32
    %248 = vector.broadcast %cst_109 : f32 to vector<2x32xf32>
    %249 = arith.subf %248, %247 : vector<2x32xf32>
    %250 = math.exp %249 : vector<2x32xf32>
    %cst_110 = arith.constant 1.000000e+00 : f32
    %251 = vector.broadcast %cst_110 : f32 to vector<2x32xf32>
    %252 = arith.addf %251, %250 : vector<2x32xf32>
    %cst_111 = arith.constant 1.000000e+00 : f32
    %253 = vector.broadcast %cst_111 : f32 to vector<2x32xf32>
    %254 = arith.divf %253, %252 : vector<2x32xf32>
    %255 = vector.extract_strided_slice %246 {offsets = [0, 32], sizes = [2, 32], strides = [1, 1]} : vector<2x128xf32> to vector<2x32xf32>
    %cst_112 = arith.constant 0.000000e+00 : f32
    %256 = vector.broadcast %cst_112 : f32 to vector<2x32xf32>
    %257 = arith.subf %256, %255 : vector<2x32xf32>
    %258 = math.exp %257 : vector<2x32xf32>
    %cst_113 = arith.constant 1.000000e+00 : f32
    %259 = vector.broadcast %cst_113 : f32 to vector<2x32xf32>
    %260 = arith.addf %259, %258 : vector<2x32xf32>
    %cst_114 = arith.constant 1.000000e+00 : f32
    %261 = vector.broadcast %cst_114 : f32 to vector<2x32xf32>
    %262 = arith.divf %261, %260 : vector<2x32xf32>
    %263 = vector.extract_strided_slice %246 {offsets = [0, 64], sizes = [2, 32], strides = [1, 1]} : vector<2x128xf32> to vector<2x32xf32>
    %264 = math.tanh %263 : vector<2x32xf32>
    %265 = vector.extract_strided_slice %246 {offsets = [0, 96], sizes = [2, 32], strides = [1, 1]} : vector<2x128xf32> to vector<2x32xf32>
    %cst_115 = arith.constant 0.000000e+00 : f32
    %266 = vector.broadcast %cst_115 : f32 to vector<2x32xf32>
    %267 = arith.subf %266, %265 : vector<2x32xf32>
    %268 = math.exp %267 : vector<2x32xf32>
    %cst_116 = arith.constant 1.000000e+00 : f32
    %269 = vector.broadcast %cst_116 : f32 to vector<2x32xf32>
    %270 = arith.addf %269, %268 : vector<2x32xf32>
    %cst_117 = arith.constant 1.000000e+00 : f32
    %271 = vector.broadcast %cst_117 : f32 to vector<2x32xf32>
    %272 = arith.divf %271, %270 : vector<2x32xf32>
    %273 = arith.mulf %262, %238 : vector<2x32xf32>
    %274 = arith.mulf %254, %264 : vector<2x32xf32>
    %275 = arith.addf %273, %274 : vector<2x32xf32>
    %276 = math.tanh %275 : vector<2x32xf32>
    %277 = arith.mulf %272, %276 : vector<2x32xf32>
    %278 = vector.shape_cast %277 : vector<2x32xf32> to vector<2x1x32xf32>
    %c0_118 = arith.constant 0 : index
    %c3_119 = arith.constant 3 : index
    %c0_120 = arith.constant 0 : index
    %279 = vector.load %arg26[%c0_118, %c3_119, %c0_120] : memref<2x16x32xf32, #tpu.memory_space<vmem>>, vector<2x1x32xf32>
    tpu.vector_store %arg26[%c0_118, %c3_119, %c0_120], %278 {strides = array<i32>} : memref<2x16x32xf32, #tpu.memory_space<vmem>>, vector<2x1x32xf32>,
    %c0_121 = arith.constant 0 : index
    %c4 = arith.constant 4 : index
    %c0_122 = arith.constant 0 : index
    %280 = vector.load %arg25[%c0_121, %c4, %c0_122] : memref<2x16x128xf32, #tpu.memory_space<vmem>>, vector<2x1x128xf32>
    %281 = vector.shape_cast %280 : vector<2x1x128xf32> to vector<2x128xf32>
    %cst_123 = arith.constant dense<0.000000e+00> : vector<2x128xf32>
    %282 = tpu.matmul %277, %122, %cst_123 {dimension_numbers = #tpu.dot_dimension_numbers<[1], [0], [0], [1], [0, 0, 1, 1], [], []>} : vector<2x32xf32>, vector<32x128xf32>, vector<2x128xf32> -> vector<2x128xf32>
    %283 = arith.addf %281, %282 : vector<2x128xf32>
    %284 = vector.extract_strided_slice %283 {offsets = [0, 0], sizes = [2, 32], strides = [1, 1]} : vector<2x128xf32> to vector<2x32xf32>
    %cst_124 = arith.constant 0.000000e+00 : f32
    %285 = vector.broadcast %cst_124 : f32 to vector<2x32xf32>
    %286 = arith.subf %285, %284 : vector<2x32xf32>
    %287 = math.exp %286 : vector<2x32xf32>
    %cst_125 = arith.constant 1.000000e+00 : f32
    %288 = vector.broadcast %cst_125 : f32 to vector<2x32xf32>
    %289 = arith.addf %288, %287 : vector<2x32xf32>
    %cst_126 = arith.constant 1.000000e+00 : f32
    %290 = vector.broadcast %cst_126 : f32 to vector<2x32xf32>
    %291 = arith.divf %290, %289 : vector<2x32xf32>
    %292 = vector.extract_strided_slice %283 {offsets = [0, 32], sizes = [2, 32], strides = [1, 1]} : vector<2x128xf32> to vector<2x32xf32>
    %cst_127 = arith.constant 0.000000e+00 : f32
    %293 = vector.broadcast %cst_127 : f32 to vector<2x32xf32>
    %294 = arith.subf %293, %292 : vector<2x32xf32>
    %295 = math.exp %294 : vector<2x32xf32>
    %cst_128 = arith.constant 1.000000e+00 : f32
    %296 = vector.broadcast %cst_128 : f32 to vector<2x32xf32>
    %297 = arith.addf %296, %295 : vector<2x32xf32>
    %cst_129 = arith.constant 1.000000e+00 : f32
    %298 = vector.broadcast %cst_129 : f32 to vector<2x32xf32>
    %299 = arith.divf %298, %297 : vector<2x32xf32>
    %300 = vector.extract_strided_slice %283 {offsets = [0, 64], sizes = [2, 32], strides = [1, 1]} : vector<2x128xf32> to vector<2x32xf32>
    %301 = math.tanh %300 : vector<2x32xf32>
    %302 = vector.extract_strided_slice %283 {offsets = [0, 96], sizes = [2, 32], strides = [1, 1]} : vector<2x128xf32> to vector<2x32xf32>
    %cst_130 = arith.constant 0.000000e+00 : f32
    %303 = vector.broadcast %cst_130 : f32 to vector<2x32xf32>
    %304 = arith.subf %303, %302 : vector<2x32xf32>
    %305 = math.exp %304 : vector<2x32xf32>
    %cst_131 = arith.constant 1.000000e+00 : f32
    %306 = vector.broadcast %cst_131 : f32 to vector<2x32xf32>
    %307 = arith.addf %306, %305 : vector<2x32xf32>
    %cst_132 = arith.constant 1.000000e+00 : f32
    %308 = vector.broadcast %cst_132 : f32 to vector<2x32xf32>
    %309 = arith.divf %308, %307 : vector<2x32xf32>
    %310 = arith.mulf %299, %275 : vector<2x32xf32>
    %311 = arith.mulf %291, %301 : vector<2x32xf32>
    %312 = arith.addf %310, %311 : vector<2x32xf32>
    %313 = math.tanh %312 : vector<2x32xf32>
    %314 = arith.mulf %309, %313 : vector<2x32xf32>
    %315 = vector.shape_cast %314 : vector<2x32xf32> to vector<2x1x32xf32>
    %c0_133 = arith.constant 0 : index
    %c4_134 = arith.constant 4 : index
    %c0_135 = arith.constant 0 : index
    %316 = vector.load %arg26[%c0_133, %c4_134, %c0_135] : memref<2x16x32xf32, #tpu.memory_space<vmem>>, vector<2x1x32xf32>
    tpu.vector_store %arg26[%c0_133, %c4_134, %c0_135], %315 {strides = array<i32>} : memref<2x16x32xf32, #tpu.memory_space<vmem>>, vector<2x1x32xf32>,
    %c0_136 = arith.constant 0 : index
    %c5 = arith.constant 5 : index
    %c0_137 = arith.constant 0 : index
    %317 = vector.load %arg25[%c0_136, %c5, %c0_137] : memref<2x16x128xf32, #tpu.memory_space<vmem>>, vector<2x1x128xf32>
    %318 = vector.shape_cast %317 : vector<2x1x128xf32> to vector<2x128xf32>
    %cst_138 = arith.constant dense<0.000000e+00> : vector<2x128xf32>
    %319 = tpu.matmul %314, %122, %cst_138 {dimension_numbers = #tpu.dot_dimension_numbers<[1], [0], [0], [1], [0, 0, 1, 1], [], []>} : vector<2x32xf32>, vector<32x128xf32>, vector<2x128xf32> -> vector<2x128xf32>
    %320 = arith.addf %318, %319 : vector<2x128xf32>
    %321 = vector.extract_strided_slice %320 {offsets = [0, 0], sizes = [2, 32], strides = [1, 1]} : vector<2x128xf32> to vector<2x32xf32>
    %cst_139 = arith.constant 0.000000e+00 : f32
    %322 = vector.broadcast %cst_139 : f32 to vector<2x32xf32>
    %323 = arith.subf %322, %321 : vector<2x32xf32>
    %324 = math.exp %323 : vector<2x32xf32>
    %cst_140 = arith.constant 1.000000e+00 : f32
    %325 = vector.broadcast %cst_140 : f32 to vector<2x32xf32>
    %326 = arith.addf %325, %324 : vector<2x32xf32>
    %cst_141 = arith.constant 1.000000e+00 : f32
    %327 = vector.broadcast %cst_141 : f32 to vector<2x32xf32>
    %328 = arith.divf %327, %326 : vector<2x32xf32>
    %329 = vector.extract_strided_slice %320 {offsets = [0, 32], sizes = [2, 32], strides = [1, 1]} : vector<2x128xf32> to vector<2x32xf32>
    %cst_142 = arith.constant 0.000000e+00 : f32
    %330 = vector.broadcast %cst_142 : f32 to vector<2x32xf32>
    %331 = arith.subf %330, %329 : vector<2x32xf32>
    %332 = math.exp %331 : vector<2x32xf32>
    %cst_143 = arith.constant 1.000000e+00 : f32
    %333 = vector.broadcast %cst_143 : f32 to vector<2x32xf32>
    %334 = arith.addf %333, %332 : vector<2x32xf32>
    %cst_144 = arith.constant 1.000000e+00 : f32
    %335 = vector.broadcast %cst_144 : f32 to vector<2x32xf32>
    %336 = arith.divf %335, %334 : vector<2x32xf32>
    %337 = vector.extract_strided_slice %320 {offsets = [0, 64], sizes = [2, 32], strides = [1, 1]} : vector<2x128xf32> to vector<2x32xf32>
    %338 = math.tanh %337 : vector<2x32xf32>
    %339 = vector.extract_strided_slice %320 {offsets = [0, 96], sizes = [2, 32], strides = [1, 1]} : vector<2x128xf32> to vector<2x32xf32>
    %cst_145 = arith.constant 0.000000e+00 : f32
    %340 = vector.broadcast %cst_145 : f32 to vector<2x32xf32>
    %341 = arith.subf %340, %339 : vector<2x32xf32>
    %342 = math.exp %341 : vector<2x32xf32>
    %cst_146 = arith.constant 1.000000e+00 : f32
    %343 = vector.broadcast %cst_146 : f32 to vector<2x32xf32>
    %344 = arith.addf %343, %342 : vector<2x32xf32>
    %cst_147 = arith.constant 1.000000e+00 : f32
    %345 = vector.broadcast %cst_147 : f32 to vector<2x32xf32>
    %346 = arith.divf %345, %344 : vector<2x32xf32>
    %347 = arith.mulf %336, %312 : vector<2x32xf32>
    %348 = arith.mulf %328, %338 : vector<2x32xf32>
    %349 = arith.addf %347, %348 : vector<2x32xf32>
    %350 = math.tanh %349 : vector<2x32xf32>
    %351 = arith.mulf %346, %350 : vector<2x32xf32>
    %352 = vector.shape_cast %351 : vector<2x32xf32> to vector<2x1x32xf32>
    %c0_148 = arith.constant 0 : index
    %c5_149 = arith.constant 5 : index
    %c0_150 = arith.constant 0 : index
    %353 = vector.load %arg26[%c0_148, %c5_149, %c0_150] : memref<2x16x32xf32, #tpu.memory_space<vmem>>, vector<2x1x32xf32>
    tpu.vector_store %arg26[%c0_148, %c5_149, %c0_150], %352 {strides = array<i32>} : memref<2x16x32xf32, #tpu.memory_space<vmem>>, vector<2x1x32xf32>,
    %c0_151 = arith.constant 0 : index
    %c6 = arith.constant 6 : index
    %c0_152 = arith.constant 0 : index
    %354 = vector.load %arg25[%c0_151, %c6, %c0_152] : memref<2x16x128xf32, #tpu.memory_space<vmem>>, vector<2x1x128xf32>
    %355 = vector.shape_cast %354 : vector<2x1x128xf32> to vector<2x128xf32>
    %cst_153 = arith.constant dense<0.000000e+00> : vector<2x128xf32>
    %356 = tpu.matmul %351, %122, %cst_153 {dimension_numbers = #tpu.dot_dimension_numbers<[1], [0], [0], [1], [0, 0, 1, 1], [], []>} : vector<2x32xf32>, vector<32x128xf32>, vector<2x128xf32> -> vector<2x128xf32>
    %357 = arith.addf %355, %356 : vector<2x128xf32>
    %358 = vector.extract_strided_slice %357 {offsets = [0, 0], sizes = [2, 32], strides = [1, 1]} : vector<2x128xf32> to vector<2x32xf32>
    %cst_154 = arith.constant 0.000000e+00 : f32
    %359 = vector.broadcast %cst_154 : f32 to vector<2x32xf32>
    %360 = arith.subf %359, %358 : vector<2x32xf32>
    %361 = math.exp %360 : vector<2x32xf32>
    %cst_155 = arith.constant 1.000000e+00 : f32
    %362 = vector.broadcast %cst_155 : f32 to vector<2x32xf32>
    %363 = arith.addf %362, %361 : vector<2x32xf32>
    %cst_156 = arith.constant 1.000000e+00 : f32
    %364 = vector.broadcast %cst_156 : f32 to vector<2x32xf32>
    %365 = arith.divf %364, %363 : vector<2x32xf32>
    %366 = vector.extract_strided_slice %357 {offsets = [0, 32], sizes = [2, 32], strides = [1, 1]} : vector<2x128xf32> to vector<2x32xf32>
    %cst_157 = arith.constant 0.000000e+00 : f32
    %367 = vector.broadcast %cst_157 : f32 to vector<2x32xf32>
    %368 = arith.subf %367, %366 : vector<2x32xf32>
    %369 = math.exp %368 : vector<2x32xf32>
    %cst_158 = arith.constant 1.000000e+00 : f32
    %370 = vector.broadcast %cst_158 : f32 to vector<2x32xf32>
    %371 = arith.addf %370, %369 : vector<2x32xf32>
    %cst_159 = arith.constant 1.000000e+00 : f32
    %372 = vector.broadcast %cst_159 : f32 to vector<2x32xf32>
    %373 = arith.divf %372, %371 : vector<2x32xf32>
    %374 = vector.extract_strided_slice %357 {offsets = [0, 64], sizes = [2, 32], strides = [1, 1]} : vector<2x128xf32> to vector<2x32xf32>
    %375 = math.tanh %374 : vector<2x32xf32>
    %376 = vector.extract_strided_slice %357 {offsets = [0, 96], sizes = [2, 32], strides = [1, 1]} : vector<2x128xf32> to vector<2x32xf32>
    %cst_160 = arith.constant 0.000000e+00 : f32
    %377 = vector.broadcast %cst_160 : f32 to vector<2x32xf32>
    %378 = arith.subf %377, %376 : vector<2x32xf32>
    %379 = math.exp %378 : vector<2x32xf32>
    %cst_161 = arith.constant 1.000000e+00 : f32
    %380 = vector.broadcast %cst_161 : f32 to vector<2x32xf32>
    %381 = arith.addf %380, %379 : vector<2x32xf32>
    %cst_162 = arith.constant 1.000000e+00 : f32
    %382 = vector.broadcast %cst_162 : f32 to vector<2x32xf32>
    %383 = arith.divf %382, %381 : vector<2x32xf32>
    %384 = arith.mulf %373, %349 : vector<2x32xf32>
    %385 = arith.mulf %365, %375 : vector<2x32xf32>
    %386 = arith.addf %384, %385 : vector<2x32xf32>
    %387 = math.tanh %386 : vector<2x32xf32>
    %388 = arith.mulf %383, %387 : vector<2x32xf32>
    %389 = vector.shape_cast %388 : vector<2x32xf32> to vector<2x1x32xf32>
    %c0_163 = arith.constant 0 : index
    %c6_164 = arith.constant 6 : index
    %c0_165 = arith.constant 0 : index
    %390 = vector.load %arg26[%c0_163, %c6_164, %c0_165] : memref<2x16x32xf32, #tpu.memory_space<vmem>>, vector<2x1x32xf32>
    tpu.vector_store %arg26[%c0_163, %c6_164, %c0_165], %389 {strides = array<i32>} : memref<2x16x32xf32, #tpu.memory_space<vmem>>, vector<2x1x32xf32>,
    %c0_166 = arith.constant 0 : index
    %c7 = arith.constant 7 : index
    %c0_167 = arith.constant 0 : index
    %391 = vector.load %arg25[%c0_166, %c7, %c0_167] : memref<2x16x128xf32, #tpu.memory_space<vmem>>, vector<2x1x128xf32>
    %392 = vector.shape_cast %391 : vector<2x1x128xf32> to vector<2x128xf32>
    %cst_168 = arith.constant dense<0.000000e+00> : vector<2x128xf32>
    %393 = tpu.matmul %388, %122, %cst_168 {dimension_numbers = #tpu.dot_dimension_numbers<[1], [0], [0], [1], [0, 0, 1, 1], [], []>} : vector<2x32xf32>, vector<32x128xf32>, vector<2x128xf32> -> vector<2x128xf32>
    %394 = arith.addf %392, %393 : vector<2x128xf32>
    %395 = vector.extract_strided_slice %394 {offsets = [0, 0], sizes = [2, 32], strides = [1, 1]} : vector<2x128xf32> to vector<2x32xf32>
    %cst_169 = arith.constant 0.000000e+00 : f32
    %396 = vector.broadcast %cst_169 : f32 to vector<2x32xf32>
    %397 = arith.subf %396, %395 : vector<2x32xf32>
    %398 = math.exp %397 : vector<2x32xf32>
    %cst_170 = arith.constant 1.000000e+00 : f32
    %399 = vector.broadcast %cst_170 : f32 to vector<2x32xf32>
    %400 = arith.addf %399, %398 : vector<2x32xf32>
    %cst_171 = arith.constant 1.000000e+00 : f32
    %401 = vector.broadcast %cst_171 : f32 to vector<2x32xf32>
    %402 = arith.divf %401, %400 : vector<2x32xf32>
    %403 = vector.extract_strided_slice %394 {offsets = [0, 32], sizes = [2, 32], strides = [1, 1]} : vector<2x128xf32> to vector<2x32xf32>
    %cst_172 = arith.constant 0.000000e+00 : f32
    %404 = vector.broadcast %cst_172 : f32 to vector<2x32xf32>
    %405 = arith.subf %404, %403 : vector<2x32xf32>
    %406 = math.exp %405 : vector<2x32xf32>
    %cst_173 = arith.constant 1.000000e+00 : f32
    %407 = vector.broadcast %cst_173 : f32 to vector<2x32xf32>
    %408 = arith.addf %407, %406 : vector<2x32xf32>
    %cst_174 = arith.constant 1.000000e+00 : f32
    %409 = vector.broadcast %cst_174 : f32 to vector<2x32xf32>
    %410 = arith.divf %409, %408 : vector<2x32xf32>
    %411 = vector.extract_strided_slice %394 {offsets = [0, 64], sizes = [2, 32], strides = [1, 1]} : vector<2x128xf32> to vector<2x32xf32>
    %412 = math.tanh %411 : vector<2x32xf32>
    %413 = vector.extract_strided_slice %394 {offsets = [0, 96], sizes = [2, 32], strides = [1, 1]} : vector<2x128xf32> to vector<2x32xf32>
    %cst_175 = arith.constant 0.000000e+00 : f32
    %414 = vector.broadcast %cst_175 : f32 to vector<2x32xf32>
    %415 = arith.subf %414, %413 : vector<2x32xf32>
    %416 = math.exp %415 : vector<2x32xf32>
    %cst_176 = arith.constant 1.000000e+00 : f32
    %417 = vector.broadcast %cst_176 : f32 to vector<2x32xf32>
    %418 = arith.addf %417, %416 : vector<2x32xf32>
    %cst_177 = arith.constant 1.000000e+00 : f32
    %419 = vector.broadcast %cst_177 : f32 to vector<2x32xf32>
    %420 = arith.divf %419, %418 : vector<2x32xf32>
    %421 = arith.mulf %410, %386 : vector<2x32xf32>
    %422 = arith.mulf %402, %412 : vector<2x32xf32>
    %423 = arith.addf %421, %422 : vector<2x32xf32>
    %424 = math.tanh %423 : vector<2x32xf32>
    %425 = arith.mulf %420, %424 : vector<2x32xf32>
    %426 = vector.shape_cast %425 : vector<2x32xf32> to vector<2x1x32xf32>
    %c0_178 = arith.constant 0 : index
    %c7_179 = arith.constant 7 : index
    %c0_180 = arith.constant 0 : index
    %427 = vector.load %arg26[%c0_178, %c7_179, %c0_180] : memref<2x16x32xf32, #tpu.memory_space<vmem>>, vector<2x1x32xf32>
    tpu.vector_store %arg26[%c0_178, %c7_179, %c0_180], %426 {strides = array<i32>} : memref<2x16x32xf32, #tpu.memory_space<vmem>>, vector<2x1x32xf32>,
    %c0_181 = arith.constant 0 : index
    %c8 = arith.constant 8 : index
    %c0_182 = arith.constant 0 : index
    %428 = vector.load %arg25[%c0_181, %c8, %c0_182] : memref<2x16x128xf32, #tpu.memory_space<vmem>>, vector<2x1x128xf32>
    %429 = vector.shape_cast %428 : vector<2x1x128xf32> to vector<2x128xf32>
    %cst_183 = arith.constant dense<0.000000e+00> : vector<2x128xf32>
    %430 = tpu.matmul %425, %122, %cst_183 {dimension_numbers = #tpu.dot_dimension_numbers<[1], [0], [0], [1], [0, 0, 1, 1], [], []>} : vector<2x32xf32>, vector<32x128xf32>, vector<2x128xf32> -> vector<2x128xf32>
    %431 = arith.addf %429, %430 : vector<2x128xf32>
    %432 = vector.extract_strided_slice %431 {offsets = [0, 0], sizes = [2, 32], strides = [1, 1]} : vector<2x128xf32> to vector<2x32xf32>
    %cst_184 = arith.constant 0.000000e+00 : f32
    %433 = vector.broadcast %cst_184 : f32 to vector<2x32xf32>
    %434 = arith.subf %433, %432 : vector<2x32xf32>
    %435 = math.exp %434 : vector<2x32xf32>
    %cst_185 = arith.constant 1.000000e+00 : f32
    %436 = vector.broadcast %cst_185 : f32 to vector<2x32xf32>
    %437 = arith.addf %436, %435 : vector<2x32xf32>
    %cst_186 = arith.constant 1.000000e+00 : f32
    %438 = vector.broadcast %cst_186 : f32 to vector<2x32xf32>
    %439 = arith.divf %438, %437 : vector<2x32xf32>
    %440 = vector.extract_strided_slice %431 {offsets = [0, 32], sizes = [2, 32], strides = [1, 1]} : vector<2x128xf32> to vector<2x32xf32>
    %cst_187 = arith.constant 0.000000e+00 : f32
    %441 = vector.broadcast %cst_187 : f32 to vector<2x32xf32>
    %442 = arith.subf %441, %440 : vector<2x32xf32>
    %443 = math.exp %442 : vector<2x32xf32>
    %cst_188 = arith.constant 1.000000e+00 : f32
    %444 = vector.broadcast %cst_188 : f32 to vector<2x32xf32>
    %445 = arith.addf %444, %443 : vector<2x32xf32>
    %cst_189 = arith.constant 1.000000e+00 : f32
    %446 = vector.broadcast %cst_189 : f32 to vector<2x32xf32>
    %447 = arith.divf %446, %445 : vector<2x32xf32>
    %448 = vector.extract_strided_slice %431 {offsets = [0, 64], sizes = [2, 32], strides = [1, 1]} : vector<2x128xf32> to vector<2x32xf32>
    %449 = math.tanh %448 : vector<2x32xf32>
    %450 = vector.extract_strided_slice %431 {offsets = [0, 96], sizes = [2, 32], strides = [1, 1]} : vector<2x128xf32> to vector<2x32xf32>
    %cst_190 = arith.constant 0.000000e+00 : f32
    %451 = vector.broadcast %cst_190 : f32 to vector<2x32xf32>
    %452 = arith.subf %451, %450 : vector<2x32xf32>
    %453 = math.exp %452 : vector<2x32xf32>
    %cst_191 = arith.constant 1.000000e+00 : f32
    %454 = vector.broadcast %cst_191 : f32 to vector<2x32xf32>
    %455 = arith.addf %454, %453 : vector<2x32xf32>
    %cst_192 = arith.constant 1.000000e+00 : f32
    %456 = vector.broadcast %cst_192 : f32 to vector<2x32xf32>
    %457 = arith.divf %456, %455 : vector<2x32xf32>
    %458 = arith.mulf %447, %423 : vector<2x32xf32>
    %459 = arith.mulf %439, %449 : vector<2x32xf32>
    %460 = arith.addf %458, %459 : vector<2x32xf32>
    %461 = math.tanh %460 : vector<2x32xf32>
    %462 = arith.mulf %457, %461 : vector<2x32xf32>
    %463 = vector.shape_cast %462 : vector<2x32xf32> to vector<2x1x32xf32>
    %c0_193 = arith.constant 0 : index
    %c8_194 = arith.constant 8 : index
    %c0_195 = arith.constant 0 : index
    %464 = vector.load %arg26[%c0_193, %c8_194, %c0_195] : memref<2x16x32xf32, #tpu.memory_space<vmem>>, vector<2x1x32xf32>
    tpu.vector_store %arg26[%c0_193, %c8_194, %c0_195], %463 {strides = array<i32>} : memref<2x16x32xf32, #tpu.memory_space<vmem>>, vector<2x1x32xf32>,
    %c0_196 = arith.constant 0 : index
    %c9 = arith.constant 9 : index
    %c0_197 = arith.constant 0 : index
    %465 = vector.load %arg25[%c0_196, %c9, %c0_197] : memref<2x16x128xf32, #tpu.memory_space<vmem>>, vector<2x1x128xf32>
    %466 = vector.shape_cast %465 : vector<2x1x128xf32> to vector<2x128xf32>
    %cst_198 = arith.constant dense<0.000000e+00> : vector<2x128xf32>
    %467 = tpu.matmul %462, %122, %cst_198 {dimension_numbers = #tpu.dot_dimension_numbers<[1], [0], [0], [1], [0, 0, 1, 1], [], []>} : vector<2x32xf32>, vector<32x128xf32>, vector<2x128xf32> -> vector<2x128xf32>
    %468 = arith.addf %466, %467 : vector<2x128xf32>
    %469 = vector.extract_strided_slice %468 {offsets = [0, 0], sizes = [2, 32], strides = [1, 1]} : vector<2x128xf32> to vector<2x32xf32>
    %cst_199 = arith.constant 0.000000e+00 : f32
    %470 = vector.broadcast %cst_199 : f32 to vector<2x32xf32>
    %471 = arith.subf %470, %469 : vector<2x32xf32>
    %472 = math.exp %471 : vector<2x32xf32>
    %cst_200 = arith.constant 1.000000e+00 : f32
    %473 = vector.broadcast %cst_200 : f32 to vector<2x32xf32>
    %474 = arith.addf %473, %472 : vector<2x32xf32>
    %cst_201 = arith.constant 1.000000e+00 : f32
    %475 = vector.broadcast %cst_201 : f32 to vector<2x32xf32>
    %476 = arith.divf %475, %474 : vector<2x32xf32>
    %477 = vector.extract_strided_slice %468 {offsets = [0, 32], sizes = [2, 32], strides = [1, 1]} : vector<2x128xf32> to vector<2x32xf32>
    %cst_202 = arith.constant 0.000000e+00 : f32
    %478 = vector.broadcast %cst_202 : f32 to vector<2x32xf32>
    %479 = arith.subf %478, %477 : vector<2x32xf32>
    %480 = math.exp %479 : vector<2x32xf32>
    %cst_203 = arith.constant 1.000000e+00 : f32
    %481 = vector.broadcast %cst_203 : f32 to vector<2x32xf32>
    %482 = arith.addf %481, %480 : vector<2x32xf32>
    %cst_204 = arith.constant 1.000000e+00 : f32
    %483 = vector.broadcast %cst_204 : f32 to vector<2x32xf32>
    %484 = arith.divf %483, %482 : vector<2x32xf32>
    %485 = vector.extract_strided_slice %468 {offsets = [0, 64], sizes = [2, 32], strides = [1, 1]} : vector<2x128xf32> to vector<2x32xf32>
    %486 = math.tanh %485 : vector<2x32xf32>
    %487 = vector.extract_strided_slice %468 {offsets = [0, 96], sizes = [2, 32], strides = [1, 1]} : vector<2x128xf32> to vector<2x32xf32>
    %cst_205 = arith.constant 0.000000e+00 : f32
    %488 = vector.broadcast %cst_205 : f32 to vector<2x32xf32>
    %489 = arith.subf %488, %487 : vector<2x32xf32>
    %490 = math.exp %489 : vector<2x32xf32>
    %cst_206 = arith.constant 1.000000e+00 : f32
    %491 = vector.broadcast %cst_206 : f32 to vector<2x32xf32>
    %492 = arith.addf %491, %490 : vector<2x32xf32>
    %cst_207 = arith.constant 1.000000e+00 : f32
    %493 = vector.broadcast %cst_207 : f32 to vector<2x32xf32>
    %494 = arith.divf %493, %492 : vector<2x32xf32>
    %495 = arith.mulf %484, %460 : vector<2x32xf32>
    %496 = arith.mulf %476, %486 : vector<2x32xf32>
    %497 = arith.addf %495, %496 : vector<2x32xf32>
    %498 = math.tanh %497 : vector<2x32xf32>
    %499 = arith.mulf %494, %498 : vector<2x32xf32>
    %500 = vector.shape_cast %499 : vector<2x32xf32> to vector<2x1x32xf32>
    %c0_208 = arith.constant 0 : index
    %c9_209 = arith.constant 9 : index
    %c0_210 = arith.constant 0 : index
    %501 = vector.load %arg26[%c0_208, %c9_209, %c0_210] : memref<2x16x32xf32, #tpu.memory_space<vmem>>, vector<2x1x32xf32>
    tpu.vector_store %arg26[%c0_208, %c9_209, %c0_210], %500 {strides = array<i32>} : memref<2x16x32xf32, #tpu.memory_space<vmem>>, vector<2x1x32xf32>,
    %c0_211 = arith.constant 0 : index
    %c10 = arith.constant 10 : index
    %c0_212 = arith.constant 0 : index
    %502 = vector.load %arg25[%c0_211, %c10, %c0_212] : memref<2x16x128xf32, #tpu.memory_space<vmem>>, vector<2x1x128xf32>
    %503 = vector.shape_cast %502 : vector<2x1x128xf32> to vector<2x128xf32>
    %cst_213 = arith.constant dense<0.000000e+00> : vector<2x128xf32>
    %504 = tpu.matmul %499, %122, %cst_213 {dimension_numbers = #tpu.dot_dimension_numbers<[1], [0], [0], [1], [0, 0, 1, 1], [], []>} : vector<2x32xf32>, vector<32x128xf32>, vector<2x128xf32> -> vector<2x128xf32>
    %505 = arith.addf %503, %504 : vector<2x128xf32>
    %506 = vector.extract_strided_slice %505 {offsets = [0, 0], sizes = [2, 32], strides = [1, 1]} : vector<2x128xf32> to vector<2x32xf32>
    %cst_214 = arith.constant 0.000000e+00 : f32
    %507 = vector.broadcast %cst_214 : f32 to vector<2x32xf32>
    %508 = arith.subf %507, %506 : vector<2x32xf32>
    %509 = math.exp %508 : vector<2x32xf32>
    %cst_215 = arith.constant 1.000000e+00 : f32
    %510 = vector.broadcast %cst_215 : f32 to vector<2x32xf32>
    %511 = arith.addf %510, %509 : vector<2x32xf32>
    %cst_216 = arith.constant 1.000000e+00 : f32
    %512 = vector.broadcast %cst_216 : f32 to vector<2x32xf32>
    %513 = arith.divf %512, %511 : vector<2x32xf32>
    %514 = vector.extract_strided_slice %505 {offsets = [0, 32], sizes = [2, 32], strides = [1, 1]} : vector<2x128xf32> to vector<2x32xf32>
    %cst_217 = arith.constant 0.000000e+00 : f32
    %515 = vector.broadcast %cst_217 : f32 to vector<2x32xf32>
    %516 = arith.subf %515, %514 : vector<2x32xf32>
    %517 = math.exp %516 : vector<2x32xf32>
    %cst_218 = arith.constant 1.000000e+00 : f32
    %518 = vector.broadcast %cst_218 : f32 to vector<2x32xf32>
    %519 = arith.addf %518, %517 : vector<2x32xf32>
    %cst_219 = arith.constant 1.000000e+00 : f32
    %520 = vector.broadcast %cst_219 : f32 to vector<2x32xf32>
    %521 = arith.divf %520, %519 : vector<2x32xf32>
    %522 = vector.extract_strided_slice %505 {offsets = [0, 64], sizes = [2, 32], strides = [1, 1]} : vector<2x128xf32> to vector<2x32xf32>
    %523 = math.tanh %522 : vector<2x32xf32>
    %524 = vector.extract_strided_slice %505 {offsets = [0, 96], sizes = [2, 32], strides = [1, 1]} : vector<2x128xf32> to vector<2x32xf32>
    %cst_220 = arith.constant 0.000000e+00 : f32
    %525 = vector.broadcast %cst_220 : f32 to vector<2x32xf32>
    %526 = arith.subf %525, %524 : vector<2x32xf32>
    %527 = math.exp %526 : vector<2x32xf32>
    %cst_221 = arith.constant 1.000000e+00 : f32
    %528 = vector.broadcast %cst_221 : f32 to vector<2x32xf32>
    %529 = arith.addf %528, %527 : vector<2x32xf32>
    %cst_222 = arith.constant 1.000000e+00 : f32
    %530 = vector.broadcast %cst_222 : f32 to vector<2x32xf32>
    %531 = arith.divf %530, %529 : vector<2x32xf32>
    %532 = arith.mulf %521, %497 : vector<2x32xf32>
    %533 = arith.mulf %513, %523 : vector<2x32xf32>
    %534 = arith.addf %532, %533 : vector<2x32xf32>
    %535 = math.tanh %534 : vector<2x32xf32>
    %536 = arith.mulf %531, %535 : vector<2x32xf32>
    %537 = vector.shape_cast %536 : vector<2x32xf32> to vector<2x1x32xf32>
    %c0_223 = arith.constant 0 : index
    %c10_224 = arith.constant 10 : index
    %c0_225 = arith.constant 0 : index
    %538 = vector.load %arg26[%c0_223, %c10_224, %c0_225] : memref<2x16x32xf32, #tpu.memory_space<vmem>>, vector<2x1x32xf32>
    tpu.vector_store %arg26[%c0_223, %c10_224, %c0_225], %537 {strides = array<i32>} : memref<2x16x32xf32, #tpu.memory_space<vmem>>, vector<2x1x32xf32>,
    %c0_226 = arith.constant 0 : index
    %c11 = arith.constant 11 : index
    %c0_227 = arith.constant 0 : index
    %539 = vector.load %arg25[%c0_226, %c11, %c0_227] : memref<2x16x128xf32, #tpu.memory_space<vmem>>, vector<2x1x128xf32>
    %540 = vector.shape_cast %539 : vector<2x1x128xf32> to vector<2x128xf32>
    %cst_228 = arith.constant dense<0.000000e+00> : vector<2x128xf32>
    %541 = tpu.matmul %536, %122, %cst_228 {dimension_numbers = #tpu.dot_dimension_numbers<[1], [0], [0], [1], [0, 0, 1, 1], [], []>} : vector<2x32xf32>, vector<32x128xf32>, vector<2x128xf32> -> vector<2x128xf32>
    %542 = arith.addf %540, %541 : vector<2x128xf32>
    %543 = vector.extract_strided_slice %542 {offsets = [0, 0], sizes = [2, 32], strides = [1, 1]} : vector<2x128xf32> to vector<2x32xf32>
    %cst_229 = arith.constant 0.000000e+00 : f32
    %544 = vector.broadcast %cst_229 : f32 to vector<2x32xf32>
    %545 = arith.subf %544, %543 : vector<2x32xf32>
    %546 = math.exp %545 : vector<2x32xf32>
    %cst_230 = arith.constant 1.000000e+00 : f32
    %547 = vector.broadcast %cst_230 : f32 to vector<2x32xf32>
    %548 = arith.addf %547, %546 : vector<2x32xf32>
    %cst_231 = arith.constant 1.000000e+00 : f32
    %549 = vector.broadcast %cst_231 : f32 to vector<2x32xf32>
    %550 = arith.divf %549, %548 : vector<2x32xf32>
    %551 = vector.extract_strided_slice %542 {offsets = [0, 32], sizes = [2, 32], strides = [1, 1]} : vector<2x128xf32> to vector<2x32xf32>
    %cst_232 = arith.constant 0.000000e+00 : f32
    %552 = vector.broadcast %cst_232 : f32 to vector<2x32xf32>
    %553 = arith.subf %552, %551 : vector<2x32xf32>
    %554 = math.exp %553 : vector<2x32xf32>
    %cst_233 = arith.constant 1.000000e+00 : f32
    %555 = vector.broadcast %cst_233 : f32 to vector<2x32xf32>
    %556 = arith.addf %555, %554 : vector<2x32xf32>
    %cst_234 = arith.constant 1.000000e+00 : f32
    %557 = vector.broadcast %cst_234 : f32 to vector<2x32xf32>
    %558 = arith.divf %557, %556 : vector<2x32xf32>
    %559 = vector.extract_strided_slice %542 {offsets = [0, 64], sizes = [2, 32], strides = [1, 1]} : vector<2x128xf32> to vector<2x32xf32>
    %560 = math.tanh %559 : vector<2x32xf32>
    %561 = vector.extract_strided_slice %542 {offsets = [0, 96], sizes = [2, 32], strides = [1, 1]} : vector<2x128xf32> to vector<2x32xf32>
    %cst_235 = arith.constant 0.000000e+00 : f32
    %562 = vector.broadcast %cst_235 : f32 to vector<2x32xf32>
    %563 = arith.subf %562, %561 : vector<2x32xf32>
    %564 = math.exp %563 : vector<2x32xf32>
    %cst_236 = arith.constant 1.000000e+00 : f32
    %565 = vector.broadcast %cst_236 : f32 to vector<2x32xf32>
    %566 = arith.addf %565, %564 : vector<2x32xf32>
    %cst_237 = arith.constant 1.000000e+00 : f32
    %567 = vector.broadcast %cst_237 : f32 to vector<2x32xf32>
    %568 = arith.divf %567, %566 : vector<2x32xf32>
    %569 = arith.mulf %558, %534 : vector<2x32xf32>
    %570 = arith.mulf %550, %560 : vector<2x32xf32>
    %571 = arith.addf %569, %570 : vector<2x32xf32>
    %572 = math.tanh %571 : vector<2x32xf32>
    %573 = arith.mulf %568, %572 : vector<2x32xf32>
    %574 = vector.shape_cast %573 : vector<2x32xf32> to vector<2x1x32xf32>
    %c0_238 = arith.constant 0 : index
    %c11_239 = arith.constant 11 : index
    %c0_240 = arith.constant 0 : index
    %575 = vector.load %arg26[%c0_238, %c11_239, %c0_240] : memref<2x16x32xf32, #tpu.memory_space<vmem>>, vector<2x1x32xf32>
    tpu.vector_store %arg26[%c0_238, %c11_239, %c0_240], %574 {strides = array<i32>} : memref<2x16x32xf32, #tpu.memory_space<vmem>>, vector<2x1x32xf32>,
    %c0_241 = arith.constant 0 : index
    %c12 = arith.constant 12 : index
    %c0_242 = arith.constant 0 : index
    %576 = vector.load %arg25[%c0_241, %c12, %c0_242] : memref<2x16x128xf32, #tpu.memory_space<vmem>>, vector<2x1x128xf32>
    %577 = vector.shape_cast %576 : vector<2x1x128xf32> to vector<2x128xf32>
    %cst_243 = arith.constant dense<0.000000e+00> : vector<2x128xf32>
    %578 = tpu.matmul %573, %122, %cst_243 {dimension_numbers = #tpu.dot_dimension_numbers<[1], [0], [0], [1], [0, 0, 1, 1], [], []>} : vector<2x32xf32>, vector<32x128xf32>, vector<2x128xf32> -> vector<2x128xf32>
    %579 = arith.addf %577, %578 : vector<2x128xf32>
    %580 = vector.extract_strided_slice %579 {offsets = [0, 0], sizes = [2, 32], strides = [1, 1]} : vector<2x128xf32> to vector<2x32xf32>
    %cst_244 = arith.constant 0.000000e+00 : f32
    %581 = vector.broadcast %cst_244 : f32 to vector<2x32xf32>
    %582 = arith.subf %581, %580 : vector<2x32xf32>
    %583 = math.exp %582 : vector<2x32xf32>
    %cst_245 = arith.constant 1.000000e+00 : f32
    %584 = vector.broadcast %cst_245 : f32 to vector<2x32xf32>
    %585 = arith.addf %584, %583 : vector<2x32xf32>
    %cst_246 = arith.constant 1.000000e+00 : f32
    %586 = vector.broadcast %cst_246 : f32 to vector<2x32xf32>
    %587 = arith.divf %586, %585 : vector<2x32xf32>
    %588 = vector.extract_strided_slice %579 {offsets = [0, 32], sizes = [2, 32], strides = [1, 1]} : vector<2x128xf32> to vector<2x32xf32>
    %cst_247 = arith.constant 0.000000e+00 : f32
    %589 = vector.broadcast %cst_247 : f32 to vector<2x32xf32>
    %590 = arith.subf %589, %588 : vector<2x32xf32>
    %591 = math.exp %590 : vector<2x32xf32>
    %cst_248 = arith.constant 1.000000e+00 : f32
    %592 = vector.broadcast %cst_248 : f32 to vector<2x32xf32>
    %593 = arith.addf %592, %591 : vector<2x32xf32>
    %cst_249 = arith.constant 1.000000e+00 : f32
    %594 = vector.broadcast %cst_249 : f32 to vector<2x32xf32>
    %595 = arith.divf %594, %593 : vector<2x32xf32>
    %596 = vector.extract_strided_slice %579 {offsets = [0, 64], sizes = [2, 32], strides = [1, 1]} : vector<2x128xf32> to vector<2x32xf32>
    %597 = math.tanh %596 : vector<2x32xf32>
    %598 = vector.extract_strided_slice %579 {offsets = [0, 96], sizes = [2, 32], strides = [1, 1]} : vector<2x128xf32> to vector<2x32xf32>
    %cst_250 = arith.constant 0.000000e+00 : f32
    %599 = vector.broadcast %cst_250 : f32 to vector<2x32xf32>
    %600 = arith.subf %599, %598 : vector<2x32xf32>
    %601 = math.exp %600 : vector<2x32xf32>
    %cst_251 = arith.constant 1.000000e+00 : f32
    %602 = vector.broadcast %cst_251 : f32 to vector<2x32xf32>
    %603 = arith.addf %602, %601 : vector<2x32xf32>
    %cst_252 = arith.constant 1.000000e+00 : f32
    %604 = vector.broadcast %cst_252 : f32 to vector<2x32xf32>
    %605 = arith.divf %604, %603 : vector<2x32xf32>
    %606 = arith.mulf %595, %571 : vector<2x32xf32>
    %607 = arith.mulf %587, %597 : vector<2x32xf32>
    %608 = arith.addf %606, %607 : vector<2x32xf32>
    %609 = math.tanh %608 : vector<2x32xf32>
    %610 = arith.mulf %605, %609 : vector<2x32xf32>
    %611 = vector.shape_cast %610 : vector<2x32xf32> to vector<2x1x32xf32>
    %c0_253 = arith.constant 0 : index
    %c12_254 = arith.constant 12 : index
    %c0_255 = arith.constant 0 : index
    %612 = vector.load %arg26[%c0_253, %c12_254, %c0_255] : memref<2x16x32xf32, #tpu.memory_space<vmem>>, vector<2x1x32xf32>
    tpu.vector_store %arg26[%c0_253, %c12_254, %c0_255], %611 {strides = array<i32>} : memref<2x16x32xf32, #tpu.memory_space<vmem>>, vector<2x1x32xf32>,
    %c0_256 = arith.constant 0 : index
    %c13 = arith.constant 13 : index
    %c0_257 = arith.constant 0 : index
    %613 = vector.load %arg25[%c0_256, %c13, %c0_257] : memref<2x16x128xf32, #tpu.memory_space<vmem>>, vector<2x1x128xf32>
    %614 = vector.shape_cast %613 : vector<2x1x128xf32> to vector<2x128xf32>
    %cst_258 = arith.constant dense<0.000000e+00> : vector<2x128xf32>
    %615 = tpu.matmul %610, %122, %cst_258 {dimension_numbers = #tpu.dot_dimension_numbers<[1], [0], [0], [1], [0, 0, 1, 1], [], []>} : vector<2x32xf32>, vector<32x128xf32>, vector<2x128xf32> -> vector<2x128xf32>
    %616 = arith.addf %614, %615 : vector<2x128xf32>
    %617 = vector.extract_strided_slice %616 {offsets = [0, 0], sizes = [2, 32], strides = [1, 1]} : vector<2x128xf32> to vector<2x32xf32>
    %cst_259 = arith.constant 0.000000e+00 : f32
    %618 = vector.broadcast %cst_259 : f32 to vector<2x32xf32>
    %619 = arith.subf %618, %617 : vector<2x32xf32>
    %620 = math.exp %619 : vector<2x32xf32>
    %cst_260 = arith.constant 1.000000e+00 : f32
    %621 = vector.broadcast %cst_260 : f32 to vector<2x32xf32>
    %622 = arith.addf %621, %620 : vector<2x32xf32>
    %cst_261 = arith.constant 1.000000e+00 : f32
    %623 = vector.broadcast %cst_261 : f32 to vector<2x32xf32>
    %624 = arith.divf %623, %622 : vector<2x32xf32>
    %625 = vector.extract_strided_slice %616 {offsets = [0, 32], sizes = [2, 32], strides = [1, 1]} : vector<2x128xf32> to vector<2x32xf32>
    %cst_262 = arith.constant 0.000000e+00 : f32
    %626 = vector.broadcast %cst_262 : f32 to vector<2x32xf32>
    %627 = arith.subf %626, %625 : vector<2x32xf32>
    %628 = math.exp %627 : vector<2x32xf32>
    %cst_263 = arith.constant 1.000000e+00 : f32
    %629 = vector.broadcast %cst_263 : f32 to vector<2x32xf32>
    %630 = arith.addf %629, %628 : vector<2x32xf32>
    %cst_264 = arith.constant 1.000000e+00 : f32
    %631 = vector.broadcast %cst_264 : f32 to vector<2x32xf32>
    %632 = arith.divf %631, %630 : vector<2x32xf32>
    %633 = vector.extract_strided_slice %616 {offsets = [0, 64], sizes = [2, 32], strides = [1, 1]} : vector<2x128xf32> to vector<2x32xf32>
    %634 = math.tanh %633 : vector<2x32xf32>
    %635 = vector.extract_strided_slice %616 {offsets = [0, 96], sizes = [2, 32], strides = [1, 1]} : vector<2x128xf32> to vector<2x32xf32>
    %cst_265 = arith.constant 0.000000e+00 : f32
    %636 = vector.broadcast %cst_265 : f32 to vector<2x32xf32>
    %637 = arith.subf %636, %635 : vector<2x32xf32>
    %638 = math.exp %637 : vector<2x32xf32>
    %cst_266 = arith.constant 1.000000e+00 : f32
    %639 = vector.broadcast %cst_266 : f32 to vector<2x32xf32>
    %640 = arith.addf %639, %638 : vector<2x32xf32>
    %cst_267 = arith.constant 1.000000e+00 : f32
    %641 = vector.broadcast %cst_267 : f32 to vector<2x32xf32>
    %642 = arith.divf %641, %640 : vector<2x32xf32>
    %643 = arith.mulf %632, %608 : vector<2x32xf32>
    %644 = arith.mulf %624, %634 : vector<2x32xf32>
    %645 = arith.addf %643, %644 : vector<2x32xf32>
    %646 = math.tanh %645 : vector<2x32xf32>
    %647 = arith.mulf %642, %646 : vector<2x32xf32>
    %648 = vector.shape_cast %647 : vector<2x32xf32> to vector<2x1x32xf32>
    %c0_268 = arith.constant 0 : index
    %c13_269 = arith.constant 13 : index
    %c0_270 = arith.constant 0 : index
    %649 = vector.load %arg26[%c0_268, %c13_269, %c0_270] : memref<2x16x32xf32, #tpu.memory_space<vmem>>, vector<2x1x32xf32>
    tpu.vector_store %arg26[%c0_268, %c13_269, %c0_270], %648 {strides = array<i32>} : memref<2x16x32xf32, #tpu.memory_space<vmem>>, vector<2x1x32xf32>,
    %c0_271 = arith.constant 0 : index
    %c14 = arith.constant 14 : index
    %c0_272 = arith.constant 0 : index
    %650 = vector.load %arg25[%c0_271, %c14, %c0_272] : memref<2x16x128xf32, #tpu.memory_space<vmem>>, vector<2x1x128xf32>
    %651 = vector.shape_cast %650 : vector<2x1x128xf32> to vector<2x128xf32>
    %cst_273 = arith.constant dense<0.000000e+00> : vector<2x128xf32>
    %652 = tpu.matmul %647, %122, %cst_273 {dimension_numbers = #tpu.dot_dimension_numbers<[1], [0], [0], [1], [0, 0, 1, 1], [], []>} : vector<2x32xf32>, vector<32x128xf32>, vector<2x128xf32> -> vector<2x128xf32>
    %653 = arith.addf %651, %652 : vector<2x128xf32>
    %654 = vector.extract_strided_slice %653 {offsets = [0, 0], sizes = [2, 32], strides = [1, 1]} : vector<2x128xf32> to vector<2x32xf32>
    %cst_274 = arith.constant 0.000000e+00 : f32
    %655 = vector.broadcast %cst_274 : f32 to vector<2x32xf32>
    %656 = arith.subf %655, %654 : vector<2x32xf32>
    %657 = math.exp %656 : vector<2x32xf32>
    %cst_275 = arith.constant 1.000000e+00 : f32
    %658 = vector.broadcast %cst_275 : f32 to vector<2x32xf32>
    %659 = arith.addf %658, %657 : vector<2x32xf32>
    %cst_276 = arith.constant 1.000000e+00 : f32
    %660 = vector.broadcast %cst_276 : f32 to vector<2x32xf32>
    %661 = arith.divf %660, %659 : vector<2x32xf32>
    %662 = vector.extract_strided_slice %653 {offsets = [0, 32], sizes = [2, 32], strides = [1, 1]} : vector<2x128xf32> to vector<2x32xf32>
    %cst_277 = arith.constant 0.000000e+00 : f32
    %663 = vector.broadcast %cst_277 : f32 to vector<2x32xf32>
    %664 = arith.subf %663, %662 : vector<2x32xf32>
    %665 = math.exp %664 : vector<2x32xf32>
    %cst_278 = arith.constant 1.000000e+00 : f32
    %666 = vector.broadcast %cst_278 : f32 to vector<2x32xf32>
    %667 = arith.addf %666, %665 : vector<2x32xf32>
    %cst_279 = arith.constant 1.000000e+00 : f32
    %668 = vector.broadcast %cst_279 : f32 to vector<2x32xf32>
    %669 = arith.divf %668, %667 : vector<2x32xf32>
    %670 = vector.extract_strided_slice %653 {offsets = [0, 64], sizes = [2, 32], strides = [1, 1]} : vector<2x128xf32> to vector<2x32xf32>
    %671 = math.tanh %670 : vector<2x32xf32>
    %672 = vector.extract_strided_slice %653 {offsets = [0, 96], sizes = [2, 32], strides = [1, 1]} : vector<2x128xf32> to vector<2x32xf32>
    %cst_280 = arith.constant 0.000000e+00 : f32
    %673 = vector.broadcast %cst_280 : f32 to vector<2x32xf32>
    %674 = arith.subf %673, %672 : vector<2x32xf32>
    %675 = math.exp %674 : vector<2x32xf32>
    %cst_281 = arith.constant 1.000000e+00 : f32
    %676 = vector.broadcast %cst_281 : f32 to vector<2x32xf32>
    %677 = arith.addf %676, %675 : vector<2x32xf32>
    %cst_282 = arith.constant 1.000000e+00 : f32
    %678 = vector.broadcast %cst_282 : f32 to vector<2x32xf32>
    %679 = arith.divf %678, %677 : vector<2x32xf32>
    %680 = arith.mulf %669, %645 : vector<2x32xf32>
    %681 = arith.mulf %661, %671 : vector<2x32xf32>
    %682 = arith.addf %680, %681 : vector<2x32xf32>
    %683 = math.tanh %682 : vector<2x32xf32>
    %684 = arith.mulf %679, %683 : vector<2x32xf32>
    %685 = vector.shape_cast %684 : vector<2x32xf32> to vector<2x1x32xf32>
    %c0_283 = arith.constant 0 : index
    %c14_284 = arith.constant 14 : index
    %c0_285 = arith.constant 0 : index
    %686 = vector.load %arg26[%c0_283, %c14_284, %c0_285] : memref<2x16x32xf32, #tpu.memory_space<vmem>>, vector<2x1x32xf32>
    tpu.vector_store %arg26[%c0_283, %c14_284, %c0_285], %685 {strides = array<i32>} : memref<2x16x32xf32, #tpu.memory_space<vmem>>, vector<2x1x32xf32>,
    %c0_286 = arith.constant 0 : index
    %c15 = arith.constant 15 : index
    %c0_287 = arith.constant 0 : index
    %687 = vector.load %arg25[%c0_286, %c15, %c0_287] : memref<2x16x128xf32, #tpu.memory_space<vmem>>, vector<2x1x128xf32>
    %688 = vector.shape_cast %687 : vector<2x1x128xf32> to vector<2x128xf32>
    %cst_288 = arith.constant dense<0.000000e+00> : vector<2x128xf32>
    %689 = tpu.matmul %684, %122, %cst_288 {dimension_numbers = #tpu.dot_dimension_numbers<[1], [0], [0], [1], [0, 0, 1, 1], [], []>} : vector<2x32xf32>, vector<32x128xf32>, vector<2x128xf32> -> vector<2x128xf32>
    %690 = arith.addf %688, %689 : vector<2x128xf32>
    %691 = vector.extract_strided_slice %690 {offsets = [0, 0], sizes = [2, 32], strides = [1, 1]} : vector<2x128xf32> to vector<2x32xf32>
    %cst_289 = arith.constant 0.000000e+00 : f32
    %692 = vector.broadcast %cst_289 : f32 to vector<2x32xf32>
    %693 = arith.subf %692, %691 : vector<2x32xf32>
    %694 = math.exp %693 : vector<2x32xf32>
    %cst_290 = arith.constant 1.000000e+00 : f32
    %695 = vector.broadcast %cst_290 : f32 to vector<2x32xf32>
    %696 = arith.addf %695, %694 : vector<2x32xf32>
    %cst_291 = arith.constant 1.000000e+00 : f32
    %697 = vector.broadcast %cst_291 : f32 to vector<2x32xf32>
    %698 = arith.divf %697, %696 : vector<2x32xf32>
    %699 = vector.extract_strided_slice %690 {offsets = [0, 32], sizes = [2, 32], strides = [1, 1]} : vector<2x128xf32> to vector<2x32xf32>
    %cst_292 = arith.constant 0.000000e+00 : f32
    %700 = vector.broadcast %cst_292 : f32 to vector<2x32xf32>
    %701 = arith.subf %700, %699 : vector<2x32xf32>
    %702 = math.exp %701 : vector<2x32xf32>
    %cst_293 = arith.constant 1.000000e+00 : f32
    %703 = vector.broadcast %cst_293 : f32 to vector<2x32xf32>
    %704 = arith.addf %703, %702 : vector<2x32xf32>
    %cst_294 = arith.constant 1.000000e+00 : f32
    %705 = vector.broadcast %cst_294 : f32 to vector<2x32xf32>
    %706 = arith.divf %705, %704 : vector<2x32xf32>
    %707 = vector.extract_strided_slice %690 {offsets = [0, 64], sizes = [2, 32], strides = [1, 1]} : vector<2x128xf32> to vector<2x32xf32>
    %708 = math.tanh %707 : vector<2x32xf32>
    %709 = vector.extract_strided_slice %690 {offsets = [0, 96], sizes = [2, 32], strides = [1, 1]} : vector<2x128xf32> to vector<2x32xf32>
    %cst_295 = arith.constant 0.000000e+00 : f32
    %710 = vector.broadcast %cst_295 : f32 to vector<2x32xf32>
    %711 = arith.subf %710, %709 : vector<2x32xf32>
    %712 = math.exp %711 : vector<2x32xf32>
    %cst_296 = arith.constant 1.000000e+00 : f32
    %713 = vector.broadcast %cst_296 : f32 to vector<2x32xf32>
    %714 = arith.addf %713, %712 : vector<2x32xf32>
    %cst_297 = arith.constant 1.000000e+00 : f32
    %715 = vector.broadcast %cst_297 : f32 to vector<2x32xf32>
    %716 = arith.divf %715, %714 : vector<2x32xf32>
    %717 = arith.mulf %706, %682 : vector<2x32xf32>
    %718 = arith.mulf %698, %708 : vector<2x32xf32>
    %719 = arith.addf %717, %718 : vector<2x32xf32>
    %720 = math.tanh %719 : vector<2x32xf32>
    %721 = arith.mulf %716, %720 : vector<2x32xf32>
    %722 = vector.shape_cast %721 : vector<2x32xf32> to vector<2x1x32xf32>
    %c0_298 = arith.constant 0 : index
    %c15_299 = arith.constant 15 : index
    %c0_300 = arith.constant 0 : index
    %723 = vector.load %arg26[%c0_298, %c15_299, %c0_300] : memref<2x16x32xf32, #tpu.memory_space<vmem>>, vector<2x1x32xf32>
    tpu.vector_store %arg26[%c0_298, %c15_299, %c0_300], %722 {strides = array<i32>} : memref<2x16x32xf32, #tpu.memory_space<vmem>>, vector<2x1x32xf32>,
    %c0_301 = arith.constant 0 : index
    %c0_302 = arith.constant 0 : index
    %c0_303 = arith.constant 0 : index
    %724 = vector.load %arg26[%c0_301, %c0_302, %c0_303] : memref<2x16x32xf32, #tpu.memory_space<vmem>>, vector<2x16x32xf32>
    %c0_304 = arith.constant 0 : index
    %c0_305 = arith.constant 0 : index
    %725 = vector.load %arg17[%c0_304, %c0_305] : memref<32x128xf32, #tpu.memory_space<vmem>>, vector<32x128xf32>
    %c0_306 = arith.constant 0 : index
    %c0_307 = arith.constant 0 : index
    %726 = vector.load %arg18[%c0_306, %c0_307] : memref<32x128xf32, #tpu.memory_space<vmem>>, vector<32x128xf32>
    %c0_308 = arith.constant 0 : index
    %c0_309 = arith.constant 0 : index
    %727 = vector.load %arg19[%c0_308, %c0_309] : memref<1x128xf32, #tpu.memory_space<vmem>>, vector<1x128xf32>
    %728 = vector.shape_cast %724 : vector<2x16x32xf32> to vector<32x32xf32>
    %cst_310 = arith.constant dense<0.000000e+00> : vector<32x128xf32>
    %729 = tpu.matmul %728, %725, %cst_310 {dimension_numbers = #tpu.dot_dimension_numbers<[1], [0], [0], [1], [0, 0, 1, 1], [], []>} : vector<32x32xf32>, vector<32x128xf32>, vector<32x128xf32> -> vector<32x128xf32>
    %730 = vector.broadcast %727 : vector<1x128xf32> to vector<32x128xf32>
    %731 = arith.addf %729, %730 : vector<32x128xf32>
    %732 = vector.shape_cast %731 : vector<32x128xf32> to vector<2x16x128xf32>
    %c0_311 = arith.constant 0 : index
    %c0_312 = arith.constant 0 : index
    %c0_313 = arith.constant 0 : index
    %733 = vector.load %arg25[%c0_311, %c0_312, %c0_313] : memref<2x16x128xf32, #tpu.memory_space<vmem>>, vector<2x16x128xf32>
    tpu.vector_store %arg25[%c0_311, %c0_312, %c0_313], %732 {strides = array<i32>} : memref<2x16x128xf32, #tpu.memory_space<vmem>>, vector<2x16x128xf32>,
    %cst_314 = arith.constant 0.000000e+00 : f32
    %734 = vector.broadcast %cst_314 : f32 to vector<2x32xf32>
    %cst_315 = arith.constant 0.000000e+00 : f32
    %735 = vector.broadcast %cst_315 : f32 to vector<2x32xf32>
    %c0_316 = arith.constant 0 : index
    %c0_317 = arith.constant 0 : index
    %c0_318 = arith.constant 0 : index
    %736 = vector.load %arg25[%c0_316, %c0_317, %c0_318] : memref<2x16x128xf32, #tpu.memory_space<vmem>>, vector<2x1x128xf32>
    %737 = vector.shape_cast %736 : vector<2x1x128xf32> to vector<2x128xf32>
    %cst_319 = arith.constant dense<0.000000e+00> : vector<2x128xf32>
    %738 = tpu.matmul %734, %726, %cst_319 {dimension_numbers = #tpu.dot_dimension_numbers<[1], [0], [0], [1], [0, 0, 1, 1], [], []>} : vector<2x32xf32>, vector<32x128xf32>, vector<2x128xf32> -> vector<2x128xf32>
    %739 = arith.addf %737, %738 : vector<2x128xf32>
    %740 = vector.extract_strided_slice %739 {offsets = [0, 0], sizes = [2, 32], strides = [1, 1]} : vector<2x128xf32> to vector<2x32xf32>
    %cst_320 = arith.constant 0.000000e+00 : f32
    %741 = vector.broadcast %cst_320 : f32 to vector<2x32xf32>
    %742 = arith.subf %741, %740 : vector<2x32xf32>
    %743 = math.exp %742 : vector<2x32xf32>
    %cst_321 = arith.constant 1.000000e+00 : f32
    %744 = vector.broadcast %cst_321 : f32 to vector<2x32xf32>
    %745 = arith.addf %744, %743 : vector<2x32xf32>
    %cst_322 = arith.constant 1.000000e+00 : f32
    %746 = vector.broadcast %cst_322 : f32 to vector<2x32xf32>
    %747 = arith.divf %746, %745 : vector<2x32xf32>
    %748 = vector.extract_strided_slice %739 {offsets = [0, 32], sizes = [2, 32], strides = [1, 1]} : vector<2x128xf32> to vector<2x32xf32>
    %cst_323 = arith.constant 0.000000e+00 : f32
    %749 = vector.broadcast %cst_323 : f32 to vector<2x32xf32>
    %750 = arith.subf %749, %748 : vector<2x32xf32>
    %751 = math.exp %750 : vector<2x32xf32>
    %cst_324 = arith.constant 1.000000e+00 : f32
    %752 = vector.broadcast %cst_324 : f32 to vector<2x32xf32>
    %753 = arith.addf %752, %751 : vector<2x32xf32>
    %cst_325 = arith.constant 1.000000e+00 : f32
    %754 = vector.broadcast %cst_325 : f32 to vector<2x32xf32>
    %755 = arith.divf %754, %753 : vector<2x32xf32>
    %756 = vector.extract_strided_slice %739 {offsets = [0, 64], sizes = [2, 32], strides = [1, 1]} : vector<2x128xf32> to vector<2x32xf32>
    %757 = math.tanh %756 : vector<2x32xf32>
    %758 = vector.extract_strided_slice %739 {offsets = [0, 96], sizes = [2, 32], strides = [1, 1]} : vector<2x128xf32> to vector<2x32xf32>
    %cst_326 = arith.constant 0.000000e+00 : f32
    %759 = vector.broadcast %cst_326 : f32 to vector<2x32xf32>
    %760 = arith.subf %759, %758 : vector<2x32xf32>
    %761 = math.exp %760 : vector<2x32xf32>
    %cst_327 = arith.constant 1.000000e+00 : f32
    %762 = vector.broadcast %cst_327 : f32 to vector<2x32xf32>
    %763 = arith.addf %762, %761 : vector<2x32xf32>
    %cst_328 = arith.constant 1.000000e+00 : f32
    %764 = vector.broadcast %cst_328 : f32 to vector<2x32xf32>
    %765 = arith.divf %764, %763 : vector<2x32xf32>
    %766 = arith.mulf %755, %735 : vector<2x32xf32>
    %767 = arith.mulf %747, %757 : vector<2x32xf32>
    %768 = arith.addf %766, %767 : vector<2x32xf32>
    %769 = math.tanh %768 : vector<2x32xf32>
    %770 = arith.mulf %765, %769 : vector<2x32xf32>
    %771 = vector.shape_cast %770 : vector<2x32xf32> to vector<2x1x32xf32>
    %c0_329 = arith.constant 0 : index
    %c0_330 = arith.constant 0 : index
    %c0_331 = arith.constant 0 : index
    %772 = vector.load %arg26[%c0_329, %c0_330, %c0_331] : memref<2x16x32xf32, #tpu.memory_space<vmem>>, vector<2x1x32xf32>
    tpu.vector_store %arg26[%c0_329, %c0_330, %c0_331], %771 {strides = array<i32>} : memref<2x16x32xf32, #tpu.memory_space<vmem>>, vector<2x1x32xf32>,
    %c0_332 = arith.constant 0 : index
    %c1_333 = arith.constant 1 : index
    %c0_334 = arith.constant 0 : index
    %773 = vector.load %arg25[%c0_332, %c1_333, %c0_334] : memref<2x16x128xf32, #tpu.memory_space<vmem>>, vector<2x1x128xf32>
    %774 = vector.shape_cast %773 : vector<2x1x128xf32> to vector<2x128xf32>
    %cst_335 = arith.constant dense<0.000000e+00> : vector<2x128xf32>
    %775 = tpu.matmul %770, %726, %cst_335 {dimension_numbers = #tpu.dot_dimension_numbers<[1], [0], [0], [1], [0, 0, 1, 1], [], []>} : vector<2x32xf32>, vector<32x128xf32>, vector<2x128xf32> -> vector<2x128xf32>
    %776 = arith.addf %774, %775 : vector<2x128xf32>
    %777 = vector.extract_strided_slice %776 {offsets = [0, 0], sizes = [2, 32], strides = [1, 1]} : vector<2x128xf32> to vector<2x32xf32>
    %cst_336 = arith.constant 0.000000e+00 : f32
    %778 = vector.broadcast %cst_336 : f32 to vector<2x32xf32>
    %779 = arith.subf %778, %777 : vector<2x32xf32>
    %780 = math.exp %779 : vector<2x32xf32>
    %cst_337 = arith.constant 1.000000e+00 : f32
    %781 = vector.broadcast %cst_337 : f32 to vector<2x32xf32>
    %782 = arith.addf %781, %780 : vector<2x32xf32>
    %cst_338 = arith.constant 1.000000e+00 : f32
    %783 = vector.broadcast %cst_338 : f32 to vector<2x32xf32>
    %784 = arith.divf %783, %782 : vector<2x32xf32>
    %785 = vector.extract_strided_slice %776 {offsets = [0, 32], sizes = [2, 32], strides = [1, 1]} : vector<2x128xf32> to vector<2x32xf32>
    %cst_339 = arith.constant 0.000000e+00 : f32
    %786 = vector.broadcast %cst_339 : f32 to vector<2x32xf32>
    %787 = arith.subf %786, %785 : vector<2x32xf32>
    %788 = math.exp %787 : vector<2x32xf32>
    %cst_340 = arith.constant 1.000000e+00 : f32
    %789 = vector.broadcast %cst_340 : f32 to vector<2x32xf32>
    %790 = arith.addf %789, %788 : vector<2x32xf32>
    %cst_341 = arith.constant 1.000000e+00 : f32
    %791 = vector.broadcast %cst_341 : f32 to vector<2x32xf32>
    %792 = arith.divf %791, %790 : vector<2x32xf32>
    %793 = vector.extract_strided_slice %776 {offsets = [0, 64], sizes = [2, 32], strides = [1, 1]} : vector<2x128xf32> to vector<2x32xf32>
    %794 = math.tanh %793 : vector<2x32xf32>
    %795 = vector.extract_strided_slice %776 {offsets = [0, 96], sizes = [2, 32], strides = [1, 1]} : vector<2x128xf32> to vector<2x32xf32>
    %cst_342 = arith.constant 0.000000e+00 : f32
    %796 = vector.broadcast %cst_342 : f32 to vector<2x32xf32>
    %797 = arith.subf %796, %795 : vector<2x32xf32>
    %798 = math.exp %797 : vector<2x32xf32>
    %cst_343 = arith.constant 1.000000e+00 : f32
    %799 = vector.broadcast %cst_343 : f32 to vector<2x32xf32>
    %800 = arith.addf %799, %798 : vector<2x32xf32>
    %cst_344 = arith.constant 1.000000e+00 : f32
    %801 = vector.broadcast %cst_344 : f32 to vector<2x32xf32>
    %802 = arith.divf %801, %800 : vector<2x32xf32>
    %803 = arith.mulf %792, %768 : vector<2x32xf32>
    %804 = arith.mulf %784, %794 : vector<2x32xf32>
    %805 = arith.addf %803, %804 : vector<2x32xf32>
    %806 = math.tanh %805 : vector<2x32xf32>
    %807 = arith.mulf %802, %806 : vector<2x32xf32>
    %808 = vector.shape_cast %807 : vector<2x32xf32> to vector<2x1x32xf32>
    %c0_345 = arith.constant 0 : index
    %c1_346 = arith.constant 1 : index
    %c0_347 = arith.constant 0 : index
    %809 = vector.load %arg26[%c0_345, %c1_346, %c0_347] : memref<2x16x32xf32, #tpu.memory_space<vmem>>, vector<2x1x32xf32>
    tpu.vector_store %arg26[%c0_345, %c1_346, %c0_347], %808 {strides = array<i32>} : memref<2x16x32xf32, #tpu.memory_space<vmem>>, vector<2x1x32xf32>,
    %c0_348 = arith.constant 0 : index
    %c2_349 = arith.constant 2 : index
    %c0_350 = arith.constant 0 : index
    %810 = vector.load %arg25[%c0_348, %c2_349, %c0_350] : memref<2x16x128xf32, #tpu.memory_space<vmem>>, vector<2x1x128xf32>
    %811 = vector.shape_cast %810 : vector<2x1x128xf32> to vector<2x128xf32>
    %cst_351 = arith.constant dense<0.000000e+00> : vector<2x128xf32>
    %812 = tpu.matmul %807, %726, %cst_351 {dimension_numbers = #tpu.dot_dimension_numbers<[1], [0], [0], [1], [0, 0, 1, 1], [], []>} : vector<2x32xf32>, vector<32x128xf32>, vector<2x128xf32> -> vector<2x128xf32>
    %813 = arith.addf %811, %812 : vector<2x128xf32>
    %814 = vector.extract_strided_slice %813 {offsets = [0, 0], sizes = [2, 32], strides = [1, 1]} : vector<2x128xf32> to vector<2x32xf32>
    %cst_352 = arith.constant 0.000000e+00 : f32
    %815 = vector.broadcast %cst_352 : f32 to vector<2x32xf32>
    %816 = arith.subf %815, %814 : vector<2x32xf32>
    %817 = math.exp %816 : vector<2x32xf32>
    %cst_353 = arith.constant 1.000000e+00 : f32
    %818 = vector.broadcast %cst_353 : f32 to vector<2x32xf32>
    %819 = arith.addf %818, %817 : vector<2x32xf32>
    %cst_354 = arith.constant 1.000000e+00 : f32
    %820 = vector.broadcast %cst_354 : f32 to vector<2x32xf32>
    %821 = arith.divf %820, %819 : vector<2x32xf32>
    %822 = vector.extract_strided_slice %813 {offsets = [0, 32], sizes = [2, 32], strides = [1, 1]} : vector<2x128xf32> to vector<2x32xf32>
    %cst_355 = arith.constant 0.000000e+00 : f32
    %823 = vector.broadcast %cst_355 : f32 to vector<2x32xf32>
    %824 = arith.subf %823, %822 : vector<2x32xf32>
    %825 = math.exp %824 : vector<2x32xf32>
    %cst_356 = arith.constant 1.000000e+00 : f32
    %826 = vector.broadcast %cst_356 : f32 to vector<2x32xf32>
    %827 = arith.addf %826, %825 : vector<2x32xf32>
    %cst_357 = arith.constant 1.000000e+00 : f32
    %828 = vector.broadcast %cst_357 : f32 to vector<2x32xf32>
    %829 = arith.divf %828, %827 : vector<2x32xf32>
    %830 = vector.extract_strided_slice %813 {offsets = [0, 64], sizes = [2, 32], strides = [1, 1]} : vector<2x128xf32> to vector<2x32xf32>
    %831 = math.tanh %830 : vector<2x32xf32>
    %832 = vector.extract_strided_slice %813 {offsets = [0, 96], sizes = [2, 32], strides = [1, 1]} : vector<2x128xf32> to vector<2x32xf32>
    %cst_358 = arith.constant 0.000000e+00 : f32
    %833 = vector.broadcast %cst_358 : f32 to vector<2x32xf32>
    %834 = arith.subf %833, %832 : vector<2x32xf32>
    %835 = math.exp %834 : vector<2x32xf32>
    %cst_359 = arith.constant 1.000000e+00 : f32
    %836 = vector.broadcast %cst_359 : f32 to vector<2x32xf32>
    %837 = arith.addf %836, %835 : vector<2x32xf32>
    %cst_360 = arith.constant 1.000000e+00 : f32
    %838 = vector.broadcast %cst_360 : f32 to vector<2x32xf32>
    %839 = arith.divf %838, %837 : vector<2x32xf32>
    %840 = arith.mulf %829, %805 : vector<2x32xf32>
    %841 = arith.mulf %821, %831 : vector<2x32xf32>
    %842 = arith.addf %840, %841 : vector<2x32xf32>
    %843 = math.tanh %842 : vector<2x32xf32>
    %844 = arith.mulf %839, %843 : vector<2x32xf32>
    %845 = vector.shape_cast %844 : vector<2x32xf32> to vector<2x1x32xf32>
    %c0_361 = arith.constant 0 : index
    %c2_362 = arith.constant 2 : index
    %c0_363 = arith.constant 0 : index
    %846 = vector.load %arg26[%c0_361, %c2_362, %c0_363] : memref<2x16x32xf32, #tpu.memory_space<vmem>>, vector<2x1x32xf32>
    tpu.vector_store %arg26[%c0_361, %c2_362, %c0_363], %845 {strides = array<i32>} : memref<2x16x32xf32, #tpu.memory_space<vmem>>, vector<2x1x32xf32>,
    %c0_364 = arith.constant 0 : index
    %c3_365 = arith.constant 3 : index
    %c0_366 = arith.constant 0 : index
    %847 = vector.load %arg25[%c0_364, %c3_365, %c0_366] : memref<2x16x128xf32, #tpu.memory_space<vmem>>, vector<2x1x128xf32>
    %848 = vector.shape_cast %847 : vector<2x1x128xf32> to vector<2x128xf32>
    %cst_367 = arith.constant dense<0.000000e+00> : vector<2x128xf32>
    %849 = tpu.matmul %844, %726, %cst_367 {dimension_numbers = #tpu.dot_dimension_numbers<[1], [0], [0], [1], [0, 0, 1, 1], [], []>} : vector<2x32xf32>, vector<32x128xf32>, vector<2x128xf32> -> vector<2x128xf32>
    %850 = arith.addf %848, %849 : vector<2x128xf32>
    %851 = vector.extract_strided_slice %850 {offsets = [0, 0], sizes = [2, 32], strides = [1, 1]} : vector<2x128xf32> to vector<2x32xf32>
    %cst_368 = arith.constant 0.000000e+00 : f32
    %852 = vector.broadcast %cst_368 : f32 to vector<2x32xf32>
    %853 = arith.subf %852, %851 : vector<2x32xf32>
    %854 = math.exp %853 : vector<2x32xf32>
    %cst_369 = arith.constant 1.000000e+00 : f32
    %855 = vector.broadcast %cst_369 : f32 to vector<2x32xf32>
    %856 = arith.addf %855, %854 : vector<2x32xf32>
    %cst_370 = arith.constant 1.000000e+00 : f32
    %857 = vector.broadcast %cst_370 : f32 to vector<2x32xf32>
    %858 = arith.divf %857, %856 : vector<2x32xf32>
    %859 = vector.extract_strided_slice %850 {offsets = [0, 32], sizes = [2, 32], strides = [1, 1]} : vector<2x128xf32> to vector<2x32xf32>
    %cst_371 = arith.constant 0.000000e+00 : f32
    %860 = vector.broadcast %cst_371 : f32 to vector<2x32xf32>
    %861 = arith.subf %860, %859 : vector<2x32xf32>
    %862 = math.exp %861 : vector<2x32xf32>
    %cst_372 = arith.constant 1.000000e+00 : f32
    %863 = vector.broadcast %cst_372 : f32 to vector<2x32xf32>
    %864 = arith.addf %863, %862 : vector<2x32xf32>
    %cst_373 = arith.constant 1.000000e+00 : f32
    %865 = vector.broadcast %cst_373 : f32 to vector<2x32xf32>
    %866 = arith.divf %865, %864 : vector<2x32xf32>
    %867 = vector.extract_strided_slice %850 {offsets = [0, 64], sizes = [2, 32], strides = [1, 1]} : vector<2x128xf32> to vector<2x32xf32>
    %868 = math.tanh %867 : vector<2x32xf32>
    %869 = vector.extract_strided_slice %850 {offsets = [0, 96], sizes = [2, 32], strides = [1, 1]} : vector<2x128xf32> to vector<2x32xf32>
    %cst_374 = arith.constant 0.000000e+00 : f32
    %870 = vector.broadcast %cst_374 : f32 to vector<2x32xf32>
    %871 = arith.subf %870, %869 : vector<2x32xf32>
    %872 = math.exp %871 : vector<2x32xf32>
    %cst_375 = arith.constant 1.000000e+00 : f32
    %873 = vector.broadcast %cst_375 : f32 to vector<2x32xf32>
    %874 = arith.addf %873, %872 : vector<2x32xf32>
    %cst_376 = arith.constant 1.000000e+00 : f32
    %875 = vector.broadcast %cst_376 : f32 to vector<2x32xf32>
    %876 = arith.divf %875, %874 : vector<2x32xf32>
    %877 = arith.mulf %866, %842 : vector<2x32xf32>
    %878 = arith.mulf %858, %868 : vector<2x32xf32>
    %879 = arith.addf %877, %878 : vector<2x32xf32>
    %880 = math.tanh %879 : vector<2x32xf32>
    %881 = arith.mulf %876, %880 : vector<2x32xf32>
    %882 = vector.shape_cast %881 : vector<2x32xf32> to vector<2x1x32xf32>
    %c0_377 = arith.constant 0 : index
    %c3_378 = arith.constant 3 : index
    %c0_379 = arith.constant 0 : index
    %883 = vector.load %arg26[%c0_377, %c3_378, %c0_379] : memref<2x16x32xf32, #tpu.memory_space<vmem>>, vector<2x1x32xf32>
    tpu.vector_store %arg26[%c0_377, %c3_378, %c0_379], %882 {strides = array<i32>} : memref<2x16x32xf32, #tpu.memory_space<vmem>>, vector<2x1x32xf32>,
    %c0_380 = arith.constant 0 : index
    %c4_381 = arith.constant 4 : index
    %c0_382 = arith.constant 0 : index
    %884 = vector.load %arg25[%c0_380, %c4_381, %c0_382] : memref<2x16x128xf32, #tpu.memory_space<vmem>>, vector<2x1x128xf32>
    %885 = vector.shape_cast %884 : vector<2x1x128xf32> to vector<2x128xf32>
    %cst_383 = arith.constant dense<0.000000e+00> : vector<2x128xf32>
    %886 = tpu.matmul %881, %726, %cst_383 {dimension_numbers = #tpu.dot_dimension_numbers<[1], [0], [0], [1], [0, 0, 1, 1], [], []>} : vector<2x32xf32>, vector<32x128xf32>, vector<2x128xf32> -> vector<2x128xf32>
    %887 = arith.addf %885, %886 : vector<2x128xf32>
    %888 = vector.extract_strided_slice %887 {offsets = [0, 0], sizes = [2, 32], strides = [1, 1]} : vector<2x128xf32> to vector<2x32xf32>
    %cst_384 = arith.constant 0.000000e+00 : f32
    %889 = vector.broadcast %cst_384 : f32 to vector<2x32xf32>
    %890 = arith.subf %889, %888 : vector<2x32xf32>
    %891 = math.exp %890 : vector<2x32xf32>
    %cst_385 = arith.constant 1.000000e+00 : f32
    %892 = vector.broadcast %cst_385 : f32 to vector<2x32xf32>
    %893 = arith.addf %892, %891 : vector<2x32xf32>
    %cst_386 = arith.constant 1.000000e+00 : f32
    %894 = vector.broadcast %cst_386 : f32 to vector<2x32xf32>
    %895 = arith.divf %894, %893 : vector<2x32xf32>
    %896 = vector.extract_strided_slice %887 {offsets = [0, 32], sizes = [2, 32], strides = [1, 1]} : vector<2x128xf32> to vector<2x32xf32>
    %cst_387 = arith.constant 0.000000e+00 : f32
    %897 = vector.broadcast %cst_387 : f32 to vector<2x32xf32>
    %898 = arith.subf %897, %896 : vector<2x32xf32>
    %899 = math.exp %898 : vector<2x32xf32>
    %cst_388 = arith.constant 1.000000e+00 : f32
    %900 = vector.broadcast %cst_388 : f32 to vector<2x32xf32>
    %901 = arith.addf %900, %899 : vector<2x32xf32>
    %cst_389 = arith.constant 1.000000e+00 : f32
    %902 = vector.broadcast %cst_389 : f32 to vector<2x32xf32>
    %903 = arith.divf %902, %901 : vector<2x32xf32>
    %904 = vector.extract_strided_slice %887 {offsets = [0, 64], sizes = [2, 32], strides = [1, 1]} : vector<2x128xf32> to vector<2x32xf32>
    %905 = math.tanh %904 : vector<2x32xf32>
    %906 = vector.extract_strided_slice %887 {offsets = [0, 96], sizes = [2, 32], strides = [1, 1]} : vector<2x128xf32> to vector<2x32xf32>
    %cst_390 = arith.constant 0.000000e+00 : f32
    %907 = vector.broadcast %cst_390 : f32 to vector<2x32xf32>
    %908 = arith.subf %907, %906 : vector<2x32xf32>
    %909 = math.exp %908 : vector<2x32xf32>
    %cst_391 = arith.constant 1.000000e+00 : f32
    %910 = vector.broadcast %cst_391 : f32 to vector<2x32xf32>
    %911 = arith.addf %910, %909 : vector<2x32xf32>
    %cst_392 = arith.constant 1.000000e+00 : f32
    %912 = vector.broadcast %cst_392 : f32 to vector<2x32xf32>
    %913 = arith.divf %912, %911 : vector<2x32xf32>
    %914 = arith.mulf %903, %879 : vector<2x32xf32>
    %915 = arith.mulf %895, %905 : vector<2x32xf32>
    %916 = arith.addf %914, %915 : vector<2x32xf32>
    %917 = math.tanh %916 : vector<2x32xf32>
    %918 = arith.mulf %913, %917 : vector<2x32xf32>
    %919 = vector.shape_cast %918 : vector<2x32xf32> to vector<2x1x32xf32>
    %c0_393 = arith.constant 0 : index
    %c4_394 = arith.constant 4 : index
    %c0_395 = arith.constant 0 : index
    %920 = vector.load %arg26[%c0_393, %c4_394, %c0_395] : memref<2x16x32xf32, #tpu.memory_space<vmem>>, vector<2x1x32xf32>
    tpu.vector_store %arg26[%c0_393, %c4_394, %c0_395], %919 {strides = array<i32>} : memref<2x16x32xf32, #tpu.memory_space<vmem>>, vector<2x1x32xf32>,
    %c0_396 = arith.constant 0 : index
    %c5_397 = arith.constant 5 : index
    %c0_398 = arith.constant 0 : index
    %921 = vector.load %arg25[%c0_396, %c5_397, %c0_398] : memref<2x16x128xf32, #tpu.memory_space<vmem>>, vector<2x1x128xf32>
    %922 = vector.shape_cast %921 : vector<2x1x128xf32> to vector<2x128xf32>
    %cst_399 = arith.constant dense<0.000000e+00> : vector<2x128xf32>
    %923 = tpu.matmul %918, %726, %cst_399 {dimension_numbers = #tpu.dot_dimension_numbers<[1], [0], [0], [1], [0, 0, 1, 1], [], []>} : vector<2x32xf32>, vector<32x128xf32>, vector<2x128xf32> -> vector<2x128xf32>
    %924 = arith.addf %922, %923 : vector<2x128xf32>
    %925 = vector.extract_strided_slice %924 {offsets = [0, 0], sizes = [2, 32], strides = [1, 1]} : vector<2x128xf32> to vector<2x32xf32>
    %cst_400 = arith.constant 0.000000e+00 : f32
    %926 = vector.broadcast %cst_400 : f32 to vector<2x32xf32>
    %927 = arith.subf %926, %925 : vector<2x32xf32>
    %928 = math.exp %927 : vector<2x32xf32>
    %cst_401 = arith.constant 1.000000e+00 : f32
    %929 = vector.broadcast %cst_401 : f32 to vector<2x32xf32>
    %930 = arith.addf %929, %928 : vector<2x32xf32>
    %cst_402 = arith.constant 1.000000e+00 : f32
    %931 = vector.broadcast %cst_402 : f32 to vector<2x32xf32>
    %932 = arith.divf %931, %930 : vector<2x32xf32>
    %933 = vector.extract_strided_slice %924 {offsets = [0, 32], sizes = [2, 32], strides = [1, 1]} : vector<2x128xf32> to vector<2x32xf32>
    %cst_403 = arith.constant 0.000000e+00 : f32
    %934 = vector.broadcast %cst_403 : f32 to vector<2x32xf32>
    %935 = arith.subf %934, %933 : vector<2x32xf32>
    %936 = math.exp %935 : vector<2x32xf32>
    %cst_404 = arith.constant 1.000000e+00 : f32
    %937 = vector.broadcast %cst_404 : f32 to vector<2x32xf32>
    %938 = arith.addf %937, %936 : vector<2x32xf32>
    %cst_405 = arith.constant 1.000000e+00 : f32
    %939 = vector.broadcast %cst_405 : f32 to vector<2x32xf32>
    %940 = arith.divf %939, %938 : vector<2x32xf32>
    %941 = vector.extract_strided_slice %924 {offsets = [0, 64], sizes = [2, 32], strides = [1, 1]} : vector<2x128xf32> to vector<2x32xf32>
    %942 = math.tanh %941 : vector<2x32xf32>
    %943 = vector.extract_strided_slice %924 {offsets = [0, 96], sizes = [2, 32], strides = [1, 1]} : vector<2x128xf32> to vector<2x32xf32>
    %cst_406 = arith.constant 0.000000e+00 : f32
    %944 = vector.broadcast %cst_406 : f32 to vector<2x32xf32>
    %945 = arith.subf %944, %943 : vector<2x32xf32>
    %946 = math.exp %945 : vector<2x32xf32>
    %cst_407 = arith.constant 1.000000e+00 : f32
    %947 = vector.broadcast %cst_407 : f32 to vector<2x32xf32>
    %948 = arith.addf %947, %946 : vector<2x32xf32>
    %cst_408 = arith.constant 1.000000e+00 : f32
    %949 = vector.broadcast %cst_408 : f32 to vector<2x32xf32>
    %950 = arith.divf %949, %948 : vector<2x32xf32>
    %951 = arith.mulf %940, %916 : vector<2x32xf32>
    %952 = arith.mulf %932, %942 : vector<2x32xf32>
    %953 = arith.addf %951, %952 : vector<2x32xf32>
    %954 = math.tanh %953 : vector<2x32xf32>
    %955 = arith.mulf %950, %954 : vector<2x32xf32>
    %956 = vector.shape_cast %955 : vector<2x32xf32> to vector<2x1x32xf32>
    %c0_409 = arith.constant 0 : index
    %c5_410 = arith.constant 5 : index
    %c0_411 = arith.constant 0 : index
    %957 = vector.load %arg26[%c0_409, %c5_410, %c0_411] : memref<2x16x32xf32, #tpu.memory_space<vmem>>, vector<2x1x32xf32>
    tpu.vector_store %arg26[%c0_409, %c5_410, %c0_411], %956 {strides = array<i32>} : memref<2x16x32xf32, #tpu.memory_space<vmem>>, vector<2x1x32xf32>,
    %c0_412 = arith.constant 0 : index
    %c6_413 = arith.constant 6 : index
    %c0_414 = arith.constant 0 : index
    %958 = vector.load %arg25[%c0_412, %c6_413, %c0_414] : memref<2x16x128xf32, #tpu.memory_space<vmem>>, vector<2x1x128xf32>
    %959 = vector.shape_cast %958 : vector<2x1x128xf32> to vector<2x128xf32>
    %cst_415 = arith.constant dense<0.000000e+00> : vector<2x128xf32>
    %960 = tpu.matmul %955, %726, %cst_415 {dimension_numbers = #tpu.dot_dimension_numbers<[1], [0], [0], [1], [0, 0, 1, 1], [], []>} : vector<2x32xf32>, vector<32x128xf32>, vector<2x128xf32> -> vector<2x128xf32>
    %961 = arith.addf %959, %960 : vector<2x128xf32>
    %962 = vector.extract_strided_slice %961 {offsets = [0, 0], sizes = [2, 32], strides = [1, 1]} : vector<2x128xf32> to vector<2x32xf32>
    %cst_416 = arith.constant 0.000000e+00 : f32
    %963 = vector.broadcast %cst_416 : f32 to vector<2x32xf32>
    %964 = arith.subf %963, %962 : vector<2x32xf32>
    %965 = math.exp %964 : vector<2x32xf32>
    %cst_417 = arith.constant 1.000000e+00 : f32
    %966 = vector.broadcast %cst_417 : f32 to vector<2x32xf32>
    %967 = arith.addf %966, %965 : vector<2x32xf32>
    %cst_418 = arith.constant 1.000000e+00 : f32
    %968 = vector.broadcast %cst_418 : f32 to vector<2x32xf32>
    %969 = arith.divf %968, %967 : vector<2x32xf32>
    %970 = vector.extract_strided_slice %961 {offsets = [0, 32], sizes = [2, 32], strides = [1, 1]} : vector<2x128xf32> to vector<2x32xf32>
    %cst_419 = arith.constant 0.000000e+00 : f32
    %971 = vector.broadcast %cst_419 : f32 to vector<2x32xf32>
    %972 = arith.subf %971, %970 : vector<2x32xf32>
    %973 = math.exp %972 : vector<2x32xf32>
    %cst_420 = arith.constant 1.000000e+00 : f32
    %974 = vector.broadcast %cst_420 : f32 to vector<2x32xf32>
    %975 = arith.addf %974, %973 : vector<2x32xf32>
    %cst_421 = arith.constant 1.000000e+00 : f32
    %976 = vector.broadcast %cst_421 : f32 to vector<2x32xf32>
    %977 = arith.divf %976, %975 : vector<2x32xf32>
    %978 = vector.extract_strided_slice %961 {offsets = [0, 64], sizes = [2, 32], strides = [1, 1]} : vector<2x128xf32> to vector<2x32xf32>
    %979 = math.tanh %978 : vector<2x32xf32>
    %980 = vector.extract_strided_slice %961 {offsets = [0, 96], sizes = [2, 32], strides = [1, 1]} : vector<2x128xf32> to vector<2x32xf32>
    %cst_422 = arith.constant 0.000000e+00 : f32
    %981 = vector.broadcast %cst_422 : f32 to vector<2x32xf32>
    %982 = arith.subf %981, %980 : vector<2x32xf32>
    %983 = math.exp %982 : vector<2x32xf32>
    %cst_423 = arith.constant 1.000000e+00 : f32
    %984 = vector.broadcast %cst_423 : f32 to vector<2x32xf32>
    %985 = arith.addf %984, %983 : vector<2x32xf32>
    %cst_424 = arith.constant 1.000000e+00 : f32
    %986 = vector.broadcast %cst_424 : f32 to vector<2x32xf32>
    %987 = arith.divf %986, %985 : vector<2x32xf32>
    %988 = arith.mulf %977, %953 : vector<2x32xf32>
    %989 = arith.mulf %969, %979 : vector<2x32xf32>
    %990 = arith.addf %988, %989 : vector<2x32xf32>
    %991 = math.tanh %990 : vector<2x32xf32>
    %992 = arith.mulf %987, %991 : vector<2x32xf32>
    %993 = vector.shape_cast %992 : vector<2x32xf32> to vector<2x1x32xf32>
    %c0_425 = arith.constant 0 : index
    %c6_426 = arith.constant 6 : index
    %c0_427 = arith.constant 0 : index
    %994 = vector.load %arg26[%c0_425, %c6_426, %c0_427] : memref<2x16x32xf32, #tpu.memory_space<vmem>>, vector<2x1x32xf32>
    tpu.vector_store %arg26[%c0_425, %c6_426, %c0_427], %993 {strides = array<i32>} : memref<2x16x32xf32, #tpu.memory_space<vmem>>, vector<2x1x32xf32>,
    %c0_428 = arith.constant 0 : index
    %c7_429 = arith.constant 7 : index
    %c0_430 = arith.constant 0 : index
    %995 = vector.load %arg25[%c0_428, %c7_429, %c0_430] : memref<2x16x128xf32, #tpu.memory_space<vmem>>, vector<2x1x128xf32>
    %996 = vector.shape_cast %995 : vector<2x1x128xf32> to vector<2x128xf32>
    %cst_431 = arith.constant dense<0.000000e+00> : vector<2x128xf32>
    %997 = tpu.matmul %992, %726, %cst_431 {dimension_numbers = #tpu.dot_dimension_numbers<[1], [0], [0], [1], [0, 0, 1, 1], [], []>} : vector<2x32xf32>, vector<32x128xf32>, vector<2x128xf32> -> vector<2x128xf32>
    %998 = arith.addf %996, %997 : vector<2x128xf32>
    %999 = vector.extract_strided_slice %998 {offsets = [0, 0], sizes = [2, 32], strides = [1, 1]} : vector<2x128xf32> to vector<2x32xf32>
    %cst_432 = arith.constant 0.000000e+00 : f32
    %1000 = vector.broadcast %cst_432 : f32 to vector<2x32xf32>
    %1001 = arith.subf %1000, %999 : vector<2x32xf32>
    %1002 = math.exp %1001 : vector<2x32xf32>
    %cst_433 = arith.constant 1.000000e+00 : f32
    %1003 = vector.broadcast %cst_433 : f32 to vector<2x32xf32>
    %1004 = arith.addf %1003, %1002 : vector<2x32xf32>
    %cst_434 = arith.constant 1.000000e+00 : f32
    %1005 = vector.broadcast %cst_434 : f32 to vector<2x32xf32>
    %1006 = arith.divf %1005, %1004 : vector<2x32xf32>
    %1007 = vector.extract_strided_slice %998 {offsets = [0, 32], sizes = [2, 32], strides = [1, 1]} : vector<2x128xf32> to vector<2x32xf32>
    %cst_435 = arith.constant 0.000000e+00 : f32
    %1008 = vector.broadcast %cst_435 : f32 to vector<2x32xf32>
    %1009 = arith.subf %1008, %1007 : vector<2x32xf32>
    %1010 = math.exp %1009 : vector<2x32xf32>
    %cst_436 = arith.constant 1.000000e+00 : f32
    %1011 = vector.broadcast %cst_436 : f32 to vector<2x32xf32>
    %1012 = arith.addf %1011, %1010 : vector<2x32xf32>
    %cst_437 = arith.constant 1.000000e+00 : f32
    %1013 = vector.broadcast %cst_437 : f32 to vector<2x32xf32>
    %1014 = arith.divf %1013, %1012 : vector<2x32xf32>
    %1015 = vector.extract_strided_slice %998 {offsets = [0, 64], sizes = [2, 32], strides = [1, 1]} : vector<2x128xf32> to vector<2x32xf32>
    %1016 = math.tanh %1015 : vector<2x32xf32>
    %1017 = vector.extract_strided_slice %998 {offsets = [0, 96], sizes = [2, 32], strides = [1, 1]} : vector<2x128xf32> to vector<2x32xf32>
    %cst_438 = arith.constant 0.000000e+00 : f32
    %1018 = vector.broadcast %cst_438 : f32 to vector<2x32xf32>
    %1019 = arith.subf %1018, %1017 : vector<2x32xf32>
    %1020 = math.exp %1019 : vector<2x32xf32>
    %cst_439 = arith.constant 1.000000e+00 : f32
    %1021 = vector.broadcast %cst_439 : f32 to vector<2x32xf32>
    %1022 = arith.addf %1021, %1020 : vector<2x32xf32>
    %cst_440 = arith.constant 1.000000e+00 : f32
    %1023 = vector.broadcast %cst_440 : f32 to vector<2x32xf32>
    %1024 = arith.divf %1023, %1022 : vector<2x32xf32>
    %1025 = arith.mulf %1014, %990 : vector<2x32xf32>
    %1026 = arith.mulf %1006, %1016 : vector<2x32xf32>
    %1027 = arith.addf %1025, %1026 : vector<2x32xf32>
    %1028 = math.tanh %1027 : vector<2x32xf32>
    %1029 = arith.mulf %1024, %1028 : vector<2x32xf32>
    %1030 = vector.shape_cast %1029 : vector<2x32xf32> to vector<2x1x32xf32>
    %c0_441 = arith.constant 0 : index
    %c7_442 = arith.constant 7 : index
    %c0_443 = arith.constant 0 : index
    %1031 = vector.load %arg26[%c0_441, %c7_442, %c0_443] : memref<2x16x32xf32, #tpu.memory_space<vmem>>, vector<2x1x32xf32>
    tpu.vector_store %arg26[%c0_441, %c7_442, %c0_443], %1030 {strides = array<i32>} : memref<2x16x32xf32, #tpu.memory_space<vmem>>, vector<2x1x32xf32>,
    %c0_444 = arith.constant 0 : index
    %c8_445 = arith.constant 8 : index
    %c0_446 = arith.constant 0 : index
    %1032 = vector.load %arg25[%c0_444, %c8_445, %c0_446] : memref<2x16x128xf32, #tpu.memory_space<vmem>>, vector<2x1x128xf32>
    %1033 = vector.shape_cast %1032 : vector<2x1x128xf32> to vector<2x128xf32>
    %cst_447 = arith.constant dense<0.000000e+00> : vector<2x128xf32>
    %1034 = tpu.matmul %1029, %726, %cst_447 {dimension_numbers = #tpu.dot_dimension_numbers<[1], [0], [0], [1], [0, 0, 1, 1], [], []>} : vector<2x32xf32>, vector<32x128xf32>, vector<2x128xf32> -> vector<2x128xf32>
    %1035 = arith.addf %1033, %1034 : vector<2x128xf32>
    %1036 = vector.extract_strided_slice %1035 {offsets = [0, 0], sizes = [2, 32], strides = [1, 1]} : vector<2x128xf32> to vector<2x32xf32>
    %cst_448 = arith.constant 0.000000e+00 : f32
    %1037 = vector.broadcast %cst_448 : f32 to vector<2x32xf32>
    %1038 = arith.subf %1037, %1036 : vector<2x32xf32>
    %1039 = math.exp %1038 : vector<2x32xf32>
    %cst_449 = arith.constant 1.000000e+00 : f32
    %1040 = vector.broadcast %cst_449 : f32 to vector<2x32xf32>
    %1041 = arith.addf %1040, %1039 : vector<2x32xf32>
    %cst_450 = arith.constant 1.000000e+00 : f32
    %1042 = vector.broadcast %cst_450 : f32 to vector<2x32xf32>
    %1043 = arith.divf %1042, %1041 : vector<2x32xf32>
    %1044 = vector.extract_strided_slice %1035 {offsets = [0, 32], sizes = [2, 32], strides = [1, 1]} : vector<2x128xf32> to vector<2x32xf32>
    %cst_451 = arith.constant 0.000000e+00 : f32
    %1045 = vector.broadcast %cst_451 : f32 to vector<2x32xf32>
    %1046 = arith.subf %1045, %1044 : vector<2x32xf32>
    %1047 = math.exp %1046 : vector<2x32xf32>
    %cst_452 = arith.constant 1.000000e+00 : f32
    %1048 = vector.broadcast %cst_452 : f32 to vector<2x32xf32>
    %1049 = arith.addf %1048, %1047 : vector<2x32xf32>
    %cst_453 = arith.constant 1.000000e+00 : f32
    %1050 = vector.broadcast %cst_453 : f32 to vector<2x32xf32>
    %1051 = arith.divf %1050, %1049 : vector<2x32xf32>
    %1052 = vector.extract_strided_slice %1035 {offsets = [0, 64], sizes = [2, 32], strides = [1, 1]} : vector<2x128xf32> to vector<2x32xf32>
    %1053 = math.tanh %1052 : vector<2x32xf32>
    %1054 = vector.extract_strided_slice %1035 {offsets = [0, 96], sizes = [2, 32], strides = [1, 1]} : vector<2x128xf32> to vector<2x32xf32>
    %cst_454 = arith.constant 0.000000e+00 : f32
    %1055 = vector.broadcast %cst_454 : f32 to vector<2x32xf32>
    %1056 = arith.subf %1055, %1054 : vector<2x32xf32>
    %1057 = math.exp %1056 : vector<2x32xf32>
    %cst_455 = arith.constant 1.000000e+00 : f32
    %1058 = vector.broadcast %cst_455 : f32 to vector<2x32xf32>
    %1059 = arith.addf %1058, %1057 : vector<2x32xf32>
    %cst_456 = arith.constant 1.000000e+00 : f32
    %1060 = vector.broadcast %cst_456 : f32 to vector<2x32xf32>
    %1061 = arith.divf %1060, %1059 : vector<2x32xf32>
    %1062 = arith.mulf %1051, %1027 : vector<2x32xf32>
    %1063 = arith.mulf %1043, %1053 : vector<2x32xf32>
    %1064 = arith.addf %1062, %1063 : vector<2x32xf32>
    %1065 = math.tanh %1064 : vector<2x32xf32>
    %1066 = arith.mulf %1061, %1065 : vector<2x32xf32>
    %1067 = vector.shape_cast %1066 : vector<2x32xf32> to vector<2x1x32xf32>
    %c0_457 = arith.constant 0 : index
    %c8_458 = arith.constant 8 : index
    %c0_459 = arith.constant 0 : index
    %1068 = vector.load %arg26[%c0_457, %c8_458, %c0_459] : memref<2x16x32xf32, #tpu.memory_space<vmem>>, vector<2x1x32xf32>
    tpu.vector_store %arg26[%c0_457, %c8_458, %c0_459], %1067 {strides = array<i32>} : memref<2x16x32xf32, #tpu.memory_space<vmem>>, vector<2x1x32xf32>,
    %c0_460 = arith.constant 0 : index
    %c9_461 = arith.constant 9 : index
    %c0_462 = arith.constant 0 : index
    %1069 = vector.load %arg25[%c0_460, %c9_461, %c0_462] : memref<2x16x128xf32, #tpu.memory_space<vmem>>, vector<2x1x128xf32>
    %1070 = vector.shape_cast %1069 : vector<2x1x128xf32> to vector<2x128xf32>
    %cst_463 = arith.constant dense<0.000000e+00> : vector<2x128xf32>
    %1071 = tpu.matmul %1066, %726, %cst_463 {dimension_numbers = #tpu.dot_dimension_numbers<[1], [0], [0], [1], [0, 0, 1, 1], [], []>} : vector<2x32xf32>, vector<32x128xf32>, vector<2x128xf32> -> vector<2x128xf32>
    %1072 = arith.addf %1070, %1071 : vector<2x128xf32>
    %1073 = vector.extract_strided_slice %1072 {offsets = [0, 0], sizes = [2, 32], strides = [1, 1]} : vector<2x128xf32> to vector<2x32xf32>
    %cst_464 = arith.constant 0.000000e+00 : f32
    %1074 = vector.broadcast %cst_464 : f32 to vector<2x32xf32>
    %1075 = arith.subf %1074, %1073 : vector<2x32xf32>
    %1076 = math.exp %1075 : vector<2x32xf32>
    %cst_465 = arith.constant 1.000000e+00 : f32
    %1077 = vector.broadcast %cst_465 : f32 to vector<2x32xf32>
    %1078 = arith.addf %1077, %1076 : vector<2x32xf32>
    %cst_466 = arith.constant 1.000000e+00 : f32
    %1079 = vector.broadcast %cst_466 : f32 to vector<2x32xf32>
    %1080 = arith.divf %1079, %1078 : vector<2x32xf32>
    %1081 = vector.extract_strided_slice %1072 {offsets = [0, 32], sizes = [2, 32], strides = [1, 1]} : vector<2x128xf32> to vector<2x32xf32>
    %cst_467 = arith.constant 0.000000e+00 : f32
    %1082 = vector.broadcast %cst_467 : f32 to vector<2x32xf32>
    %1083 = arith.subf %1082, %1081 : vector<2x32xf32>
    %1084 = math.exp %1083 : vector<2x32xf32>
    %cst_468 = arith.constant 1.000000e+00 : f32
    %1085 = vector.broadcast %cst_468 : f32 to vector<2x32xf32>
    %1086 = arith.addf %1085, %1084 : vector<2x32xf32>
    %cst_469 = arith.constant 1.000000e+00 : f32
    %1087 = vector.broadcast %cst_469 : f32 to vector<2x32xf32>
    %1088 = arith.divf %1087, %1086 : vector<2x32xf32>
    %1089 = vector.extract_strided_slice %1072 {offsets = [0, 64], sizes = [2, 32], strides = [1, 1]} : vector<2x128xf32> to vector<2x32xf32>
    %1090 = math.tanh %1089 : vector<2x32xf32>
    %1091 = vector.extract_strided_slice %1072 {offsets = [0, 96], sizes = [2, 32], strides = [1, 1]} : vector<2x128xf32> to vector<2x32xf32>
    %cst_470 = arith.constant 0.000000e+00 : f32
    %1092 = vector.broadcast %cst_470 : f32 to vector<2x32xf32>
    %1093 = arith.subf %1092, %1091 : vector<2x32xf32>
    %1094 = math.exp %1093 : vector<2x32xf32>
    %cst_471 = arith.constant 1.000000e+00 : f32
    %1095 = vector.broadcast %cst_471 : f32 to vector<2x32xf32>
    %1096 = arith.addf %1095, %1094 : vector<2x32xf32>
    %cst_472 = arith.constant 1.000000e+00 : f32
    %1097 = vector.broadcast %cst_472 : f32 to vector<2x32xf32>
    %1098 = arith.divf %1097, %1096 : vector<2x32xf32>
    %1099 = arith.mulf %1088, %1064 : vector<2x32xf32>
    %1100 = arith.mulf %1080, %1090 : vector<2x32xf32>
    %1101 = arith.addf %1099, %1100 : vector<2x32xf32>
    %1102 = math.tanh %1101 : vector<2x32xf32>
    %1103 = arith.mulf %1098, %1102 : vector<2x32xf32>
    %1104 = vector.shape_cast %1103 : vector<2x32xf32> to vector<2x1x32xf32>
    %c0_473 = arith.constant 0 : index
    %c9_474 = arith.constant 9 : index
    %c0_475 = arith.constant 0 : index
    %1105 = vector.load %arg26[%c0_473, %c9_474, %c0_475] : memref<2x16x32xf32, #tpu.memory_space<vmem>>, vector<2x1x32xf32>
    tpu.vector_store %arg26[%c0_473, %c9_474, %c0_475], %1104 {strides = array<i32>} : memref<2x16x32xf32, #tpu.memory_space<vmem>>, vector<2x1x32xf32>,
    %c0_476 = arith.constant 0 : index
    %c10_477 = arith.constant 10 : index
    %c0_478 = arith.constant 0 : index
    %1106 = vector.load %arg25[%c0_476, %c10_477, %c0_478] : memref<2x16x128xf32, #tpu.memory_space<vmem>>, vector<2x1x128xf32>
    %1107 = vector.shape_cast %1106 : vector<2x1x128xf32> to vector<2x128xf32>
    %cst_479 = arith.constant dense<0.000000e+00> : vector<2x128xf32>
    %1108 = tpu.matmul %1103, %726, %cst_479 {dimension_numbers = #tpu.dot_dimension_numbers<[1], [0], [0], [1], [0, 0, 1, 1], [], []>} : vector<2x32xf32>, vector<32x128xf32>, vector<2x128xf32> -> vector<2x128xf32>
    %1109 = arith.addf %1107, %1108 : vector<2x128xf32>
    %1110 = vector.extract_strided_slice %1109 {offsets = [0, 0], sizes = [2, 32], strides = [1, 1]} : vector<2x128xf32> to vector<2x32xf32>
    %cst_480 = arith.constant 0.000000e+00 : f32
    %1111 = vector.broadcast %cst_480 : f32 to vector<2x32xf32>
    %1112 = arith.subf %1111, %1110 : vector<2x32xf32>
    %1113 = math.exp %1112 : vector<2x32xf32>
    %cst_481 = arith.constant 1.000000e+00 : f32
    %1114 = vector.broadcast %cst_481 : f32 to vector<2x32xf32>
    %1115 = arith.addf %1114, %1113 : vector<2x32xf32>
    %cst_482 = arith.constant 1.000000e+00 : f32
    %1116 = vector.broadcast %cst_482 : f32 to vector<2x32xf32>
    %1117 = arith.divf %1116, %1115 : vector<2x32xf32>
    %1118 = vector.extract_strided_slice %1109 {offsets = [0, 32], sizes = [2, 32], strides = [1, 1]} : vector<2x128xf32> to vector<2x32xf32>
    %cst_483 = arith.constant 0.000000e+00 : f32
    %1119 = vector.broadcast %cst_483 : f32 to vector<2x32xf32>
    %1120 = arith.subf %1119, %1118 : vector<2x32xf32>
    %1121 = math.exp %1120 : vector<2x32xf32>
    %cst_484 = arith.constant 1.000000e+00 : f32
    %1122 = vector.broadcast %cst_484 : f32 to vector<2x32xf32>
    %1123 = arith.addf %1122, %1121 : vector<2x32xf32>
    %cst_485 = arith.constant 1.000000e+00 : f32
    %1124 = vector.broadcast %cst_485 : f32 to vector<2x32xf32>
    %1125 = arith.divf %1124, %1123 : vector<2x32xf32>
    %1126 = vector.extract_strided_slice %1109 {offsets = [0, 64], sizes = [2, 32], strides = [1, 1]} : vector<2x128xf32> to vector<2x32xf32>
    %1127 = math.tanh %1126 : vector<2x32xf32>
    %1128 = vector.extract_strided_slice %1109 {offsets = [0, 96], sizes = [2, 32], strides = [1, 1]} : vector<2x128xf32> to vector<2x32xf32>
    %cst_486 = arith.constant 0.000000e+00 : f32
    %1129 = vector.broadcast %cst_486 : f32 to vector<2x32xf32>
    %1130 = arith.subf %1129, %1128 : vector<2x32xf32>
    %1131 = math.exp %1130 : vector<2x32xf32>
    %cst_487 = arith.constant 1.000000e+00 : f32
    %1132 = vector.broadcast %cst_487 : f32 to vector<2x32xf32>
    %1133 = arith.addf %1132, %1131 : vector<2x32xf32>
    %cst_488 = arith.constant 1.000000e+00 : f32
    %1134 = vector.broadcast %cst_488 : f32 to vector<2x32xf32>
    %1135 = arith.divf %1134, %1133 : vector<2x32xf32>
    %1136 = arith.mulf %1125, %1101 : vector<2x32xf32>
    %1137 = arith.mulf %1117, %1127 : vector<2x32xf32>
    %1138 = arith.addf %1136, %1137 : vector<2x32xf32>
    %1139 = math.tanh %1138 : vector<2x32xf32>
    %1140 = arith.mulf %1135, %1139 : vector<2x32xf32>
    %1141 = vector.shape_cast %1140 : vector<2x32xf32> to vector<2x1x32xf32>
    %c0_489 = arith.constant 0 : index
    %c10_490 = arith.constant 10 : index
    %c0_491 = arith.constant 0 : index
    %1142 = vector.load %arg26[%c0_489, %c10_490, %c0_491] : memref<2x16x32xf32, #tpu.memory_space<vmem>>, vector<2x1x32xf32>
    tpu.vector_store %arg26[%c0_489, %c10_490, %c0_491], %1141 {strides = array<i32>} : memref<2x16x32xf32, #tpu.memory_space<vmem>>, vector<2x1x32xf32>,
    %c0_492 = arith.constant 0 : index
    %c11_493 = arith.constant 11 : index
    %c0_494 = arith.constant 0 : index
    %1143 = vector.load %arg25[%c0_492, %c11_493, %c0_494] : memref<2x16x128xf32, #tpu.memory_space<vmem>>, vector<2x1x128xf32>
    %1144 = vector.shape_cast %1143 : vector<2x1x128xf32> to vector<2x128xf32>
    %cst_495 = arith.constant dense<0.000000e+00> : vector<2x128xf32>
    %1145 = tpu.matmul %1140, %726, %cst_495 {dimension_numbers = #tpu.dot_dimension_numbers<[1], [0], [0], [1], [0, 0, 1, 1], [], []>} : vector<2x32xf32>, vector<32x128xf32>, vector<2x128xf32> -> vector<2x128xf32>
    %1146 = arith.addf %1144, %1145 : vector<2x128xf32>
    %1147 = vector.extract_strided_slice %1146 {offsets = [0, 0], sizes = [2, 32], strides = [1, 1]} : vector<2x128xf32> to vector<2x32xf32>
    %cst_496 = arith.constant 0.000000e+00 : f32
    %1148 = vector.broadcast %cst_496 : f32 to vector<2x32xf32>
    %1149 = arith.subf %1148, %1147 : vector<2x32xf32>
    %1150 = math.exp %1149 : vector<2x32xf32>
    %cst_497 = arith.constant 1.000000e+00 : f32
    %1151 = vector.broadcast %cst_497 : f32 to vector<2x32xf32>
    %1152 = arith.addf %1151, %1150 : vector<2x32xf32>
    %cst_498 = arith.constant 1.000000e+00 : f32
    %1153 = vector.broadcast %cst_498 : f32 to vector<2x32xf32>
    %1154 = arith.divf %1153, %1152 : vector<2x32xf32>
    %1155 = vector.extract_strided_slice %1146 {offsets = [0, 32], sizes = [2, 32], strides = [1, 1]} : vector<2x128xf32> to vector<2x32xf32>
    %cst_499 = arith.constant 0.000000e+00 : f32
    %1156 = vector.broadcast %cst_499 : f32 to vector<2x32xf32>
    %1157 = arith.subf %1156, %1155 : vector<2x32xf32>
    %1158 = math.exp %1157 : vector<2x32xf32>
    %cst_500 = arith.constant 1.000000e+00 : f32
    %1159 = vector.broadcast %cst_500 : f32 to vector<2x32xf32>
    %1160 = arith.addf %1159, %1158 : vector<2x32xf32>
    %cst_501 = arith.constant 1.000000e+00 : f32
    %1161 = vector.broadcast %cst_501 : f32 to vector<2x32xf32>
    %1162 = arith.divf %1161, %1160 : vector<2x32xf32>
    %1163 = vector.extract_strided_slice %1146 {offsets = [0, 64], sizes = [2, 32], strides = [1, 1]} : vector<2x128xf32> to vector<2x32xf32>
    %1164 = math.tanh %1163 : vector<2x32xf32>
    %1165 = vector.extract_strided_slice %1146 {offsets = [0, 96], sizes = [2, 32], strides = [1, 1]} : vector<2x128xf32> to vector<2x32xf32>
    %cst_502 = arith.constant 0.000000e+00 : f32
    %1166 = vector.broadcast %cst_502 : f32 to vector<2x32xf32>
    %1167 = arith.subf %1166, %1165 : vector<2x32xf32>
    %1168 = math.exp %1167 : vector<2x32xf32>
    %cst_503 = arith.constant 1.000000e+00 : f32
    %1169 = vector.broadcast %cst_503 : f32 to vector<2x32xf32>
    %1170 = arith.addf %1169, %1168 : vector<2x32xf32>
    %cst_504 = arith.constant 1.000000e+00 : f32
    %1171 = vector.broadcast %cst_504 : f32 to vector<2x32xf32>
    %1172 = arith.divf %1171, %1170 : vector<2x32xf32>
    %1173 = arith.mulf %1162, %1138 : vector<2x32xf32>
    %1174 = arith.mulf %1154, %1164 : vector<2x32xf32>
    %1175 = arith.addf %1173, %1174 : vector<2x32xf32>
    %1176 = math.tanh %1175 : vector<2x32xf32>
    %1177 = arith.mulf %1172, %1176 : vector<2x32xf32>
    %1178 = vector.shape_cast %1177 : vector<2x32xf32> to vector<2x1x32xf32>
    %c0_505 = arith.constant 0 : index
    %c11_506 = arith.constant 11 : index
    %c0_507 = arith.constant 0 : index
    %1179 = vector.load %arg26[%c0_505, %c11_506, %c0_507] : memref<2x16x32xf32, #tpu.memory_space<vmem>>, vector<2x1x32xf32>
    tpu.vector_store %arg26[%c0_505, %c11_506, %c0_507], %1178 {strides = array<i32>} : memref<2x16x32xf32, #tpu.memory_space<vmem>>, vector<2x1x32xf32>,
    %c0_508 = arith.constant 0 : index
    %c12_509 = arith.constant 12 : index
    %c0_510 = arith.constant 0 : index
    %1180 = vector.load %arg25[%c0_508, %c12_509, %c0_510] : memref<2x16x128xf32, #tpu.memory_space<vmem>>, vector<2x1x128xf32>
    %1181 = vector.shape_cast %1180 : vector<2x1x128xf32> to vector<2x128xf32>
    %cst_511 = arith.constant dense<0.000000e+00> : vector<2x128xf32>
    %1182 = tpu.matmul %1177, %726, %cst_511 {dimension_numbers = #tpu.dot_dimension_numbers<[1], [0], [0], [1], [0, 0, 1, 1], [], []>} : vector<2x32xf32>, vector<32x128xf32>, vector<2x128xf32> -> vector<2x128xf32>
    %1183 = arith.addf %1181, %1182 : vector<2x128xf32>
    %1184 = vector.extract_strided_slice %1183 {offsets = [0, 0], sizes = [2, 32], strides = [1, 1]} : vector<2x128xf32> to vector<2x32xf32>
    %cst_512 = arith.constant 0.000000e+00 : f32
    %1185 = vector.broadcast %cst_512 : f32 to vector<2x32xf32>
    %1186 = arith.subf %1185, %1184 : vector<2x32xf32>
    %1187 = math.exp %1186 : vector<2x32xf32>
    %cst_513 = arith.constant 1.000000e+00 : f32
    %1188 = vector.broadcast %cst_513 : f32 to vector<2x32xf32>
    %1189 = arith.addf %1188, %1187 : vector<2x32xf32>
    %cst_514 = arith.constant 1.000000e+00 : f32
    %1190 = vector.broadcast %cst_514 : f32 to vector<2x32xf32>
    %1191 = arith.divf %1190, %1189 : vector<2x32xf32>
    %1192 = vector.extract_strided_slice %1183 {offsets = [0, 32], sizes = [2, 32], strides = [1, 1]} : vector<2x128xf32> to vector<2x32xf32>
    %cst_515 = arith.constant 0.000000e+00 : f32
    %1193 = vector.broadcast %cst_515 : f32 to vector<2x32xf32>
    %1194 = arith.subf %1193, %1192 : vector<2x32xf32>
    %1195 = math.exp %1194 : vector<2x32xf32>
    %cst_516 = arith.constant 1.000000e+00 : f32
    %1196 = vector.broadcast %cst_516 : f32 to vector<2x32xf32>
    %1197 = arith.addf %1196, %1195 : vector<2x32xf32>
    %cst_517 = arith.constant 1.000000e+00 : f32
    %1198 = vector.broadcast %cst_517 : f32 to vector<2x32xf32>
    %1199 = arith.divf %1198, %1197 : vector<2x32xf32>
    %1200 = vector.extract_strided_slice %1183 {offsets = [0, 64], sizes = [2, 32], strides = [1, 1]} : vector<2x128xf32> to vector<2x32xf32>
    %1201 = math.tanh %1200 : vector<2x32xf32>
    %1202 = vector.extract_strided_slice %1183 {offsets = [0, 96], sizes = [2, 32], strides = [1, 1]} : vector<2x128xf32> to vector<2x32xf32>
    %cst_518 = arith.constant 0.000000e+00 : f32
    %1203 = vector.broadcast %cst_518 : f32 to vector<2x32xf32>
    %1204 = arith.subf %1203, %1202 : vector<2x32xf32>
    %1205 = math.exp %1204 : vector<2x32xf32>
    %cst_519 = arith.constant 1.000000e+00 : f32
    %1206 = vector.broadcast %cst_519 : f32 to vector<2x32xf32>
    %1207 = arith.addf %1206, %1205 : vector<2x32xf32>
    %cst_520 = arith.constant 1.000000e+00 : f32
    %1208 = vector.broadcast %cst_520 : f32 to vector<2x32xf32>
    %1209 = arith.divf %1208, %1207 : vector<2x32xf32>
    %1210 = arith.mulf %1199, %1175 : vector<2x32xf32>
    %1211 = arith.mulf %1191, %1201 : vector<2x32xf32>
    %1212 = arith.addf %1210, %1211 : vector<2x32xf32>
    %1213 = math.tanh %1212 : vector<2x32xf32>
    %1214 = arith.mulf %1209, %1213 : vector<2x32xf32>
    %1215 = vector.shape_cast %1214 : vector<2x32xf32> to vector<2x1x32xf32>
    %c0_521 = arith.constant 0 : index
    %c12_522 = arith.constant 12 : index
    %c0_523 = arith.constant 0 : index
    %1216 = vector.load %arg26[%c0_521, %c12_522, %c0_523] : memref<2x16x32xf32, #tpu.memory_space<vmem>>, vector<2x1x32xf32>
    tpu.vector_store %arg26[%c0_521, %c12_522, %c0_523], %1215 {strides = array<i32>} : memref<2x16x32xf32, #tpu.memory_space<vmem>>, vector<2x1x32xf32>,
    %c0_524 = arith.constant 0 : index
    %c13_525 = arith.constant 13 : index
    %c0_526 = arith.constant 0 : index
    %1217 = vector.load %arg25[%c0_524, %c13_525, %c0_526] : memref<2x16x128xf32, #tpu.memory_space<vmem>>, vector<2x1x128xf32>
    %1218 = vector.shape_cast %1217 : vector<2x1x128xf32> to vector<2x128xf32>
    %cst_527 = arith.constant dense<0.000000e+00> : vector<2x128xf32>
    %1219 = tpu.matmul %1214, %726, %cst_527 {dimension_numbers = #tpu.dot_dimension_numbers<[1], [0], [0], [1], [0, 0, 1, 1], [], []>} : vector<2x32xf32>, vector<32x128xf32>, vector<2x128xf32> -> vector<2x128xf32>
    %1220 = arith.addf %1218, %1219 : vector<2x128xf32>
    %1221 = vector.extract_strided_slice %1220 {offsets = [0, 0], sizes = [2, 32], strides = [1, 1]} : vector<2x128xf32> to vector<2x32xf32>
    %cst_528 = arith.constant 0.000000e+00 : f32
    %1222 = vector.broadcast %cst_528 : f32 to vector<2x32xf32>
    %1223 = arith.subf %1222, %1221 : vector<2x32xf32>
    %1224 = math.exp %1223 : vector<2x32xf32>
    %cst_529 = arith.constant 1.000000e+00 : f32
    %1225 = vector.broadcast %cst_529 : f32 to vector<2x32xf32>
    %1226 = arith.addf %1225, %1224 : vector<2x32xf32>
    %cst_530 = arith.constant 1.000000e+00 : f32
    %1227 = vector.broadcast %cst_530 : f32 to vector<2x32xf32>
    %1228 = arith.divf %1227, %1226 : vector<2x32xf32>
    %1229 = vector.extract_strided_slice %1220 {offsets = [0, 32], sizes = [2, 32], strides = [1, 1]} : vector<2x128xf32> to vector<2x32xf32>
    %cst_531 = arith.constant 0.000000e+00 : f32
    %1230 = vector.broadcast %cst_531 : f32 to vector<2x32xf32>
    %1231 = arith.subf %1230, %1229 : vector<2x32xf32>
    %1232 = math.exp %1231 : vector<2x32xf32>
    %cst_532 = arith.constant 1.000000e+00 : f32
    %1233 = vector.broadcast %cst_532 : f32 to vector<2x32xf32>
    %1234 = arith.addf %1233, %1232 : vector<2x32xf32>
    %cst_533 = arith.constant 1.000000e+00 : f32
    %1235 = vector.broadcast %cst_533 : f32 to vector<2x32xf32>
    %1236 = arith.divf %1235, %1234 : vector<2x32xf32>
    %1237 = vector.extract_strided_slice %1220 {offsets = [0, 64], sizes = [2, 32], strides = [1, 1]} : vector<2x128xf32> to vector<2x32xf32>
    %1238 = math.tanh %1237 : vector<2x32xf32>
    %1239 = vector.extract_strided_slice %1220 {offsets = [0, 96], sizes = [2, 32], strides = [1, 1]} : vector<2x128xf32> to vector<2x32xf32>
    %cst_534 = arith.constant 0.000000e+00 : f32
    %1240 = vector.broadcast %cst_534 : f32 to vector<2x32xf32>
    %1241 = arith.subf %1240, %1239 : vector<2x32xf32>
    %1242 = math.exp %1241 : vector<2x32xf32>
    %cst_535 = arith.constant 1.000000e+00 : f32
    %1243 = vector.broadcast %cst_535 : f32 to vector<2x32xf32>
    %1244 = arith.addf %1243, %1242 : vector<2x32xf32>
    %cst_536 = arith.constant 1.000000e+00 : f32
    %1245 = vector.broadcast %cst_536 : f32 to vector<2x32xf32>
    %1246 = arith.divf %1245, %1244 : vector<2x32xf32>
    %1247 = arith.mulf %1236, %1212 : vector<2x32xf32>
    %1248 = arith.mulf %1228, %1238 : vector<2x32xf32>
    %1249 = arith.addf %1247, %1248 : vector<2x32xf32>
    %1250 = math.tanh %1249 : vector<2x32xf32>
    %1251 = arith.mulf %1246, %1250 : vector<2x32xf32>
    %1252 = vector.shape_cast %1251 : vector<2x32xf32> to vector<2x1x32xf32>
    %c0_537 = arith.constant 0 : index
    %c13_538 = arith.constant 13 : index
    %c0_539 = arith.constant 0 : index
    %1253 = vector.load %arg26[%c0_537, %c13_538, %c0_539] : memref<2x16x32xf32, #tpu.memory_space<vmem>>, vector<2x1x32xf32>
    tpu.vector_store %arg26[%c0_537, %c13_538, %c0_539], %1252 {strides = array<i32>} : memref<2x16x32xf32, #tpu.memory_space<vmem>>, vector<2x1x32xf32>,
    %c0_540 = arith.constant 0 : index
    %c14_541 = arith.constant 14 : index
    %c0_542 = arith.constant 0 : index
    %1254 = vector.load %arg25[%c0_540, %c14_541, %c0_542] : memref<2x16x128xf32, #tpu.memory_space<vmem>>, vector<2x1x128xf32>
    %1255 = vector.shape_cast %1254 : vector<2x1x128xf32> to vector<2x128xf32>
    %cst_543 = arith.constant dense<0.000000e+00> : vector<2x128xf32>
    %1256 = tpu.matmul %1251, %726, %cst_543 {dimension_numbers = #tpu.dot_dimension_numbers<[1], [0], [0], [1], [0, 0, 1, 1], [], []>} : vector<2x32xf32>, vector<32x128xf32>, vector<2x128xf32> -> vector<2x128xf32>
    %1257 = arith.addf %1255, %1256 : vector<2x128xf32>
    %1258 = vector.extract_strided_slice %1257 {offsets = [0, 0], sizes = [2, 32], strides = [1, 1]} : vector<2x128xf32> to vector<2x32xf32>
    %cst_544 = arith.constant 0.000000e+00 : f32
    %1259 = vector.broadcast %cst_544 : f32 to vector<2x32xf32>
    %1260 = arith.subf %1259, %1258 : vector<2x32xf32>
    %1261 = math.exp %1260 : vector<2x32xf32>
    %cst_545 = arith.constant 1.000000e+00 : f32
    %1262 = vector.broadcast %cst_545 : f32 to vector<2x32xf32>
    %1263 = arith.addf %1262, %1261 : vector<2x32xf32>
    %cst_546 = arith.constant 1.000000e+00 : f32
    %1264 = vector.broadcast %cst_546 : f32 to vector<2x32xf32>
    %1265 = arith.divf %1264, %1263 : vector<2x32xf32>
    %1266 = vector.extract_strided_slice %1257 {offsets = [0, 32], sizes = [2, 32], strides = [1, 1]} : vector<2x128xf32> to vector<2x32xf32>
    %cst_547 = arith.constant 0.000000e+00 : f32
    %1267 = vector.broadcast %cst_547 : f32 to vector<2x32xf32>
    %1268 = arith.subf %1267, %1266 : vector<2x32xf32>
    %1269 = math.exp %1268 : vector<2x32xf32>
    %cst_548 = arith.constant 1.000000e+00 : f32
    %1270 = vector.broadcast %cst_548 : f32 to vector<2x32xf32>
    %1271 = arith.addf %1270, %1269 : vector<2x32xf32>
    %cst_549 = arith.constant 1.000000e+00 : f32
    %1272 = vector.broadcast %cst_549 : f32 to vector<2x32xf32>
    %1273 = arith.divf %1272, %1271 : vector<2x32xf32>
    %1274 = vector.extract_strided_slice %1257 {offsets = [0, 64], sizes = [2, 32], strides = [1, 1]} : vector<2x128xf32> to vector<2x32xf32>
    %1275 = math.tanh %1274 : vector<2x32xf32>
    %1276 = vector.extract_strided_slice %1257 {offsets = [0, 96], sizes = [2, 32], strides = [1, 1]} : vector<2x128xf32> to vector<2x32xf32>
    %cst_550 = arith.constant 0.000000e+00 : f32
    %1277 = vector.broadcast %cst_550 : f32 to vector<2x32xf32>
    %1278 = arith.subf %1277, %1276 : vector<2x32xf32>
    %1279 = math.exp %1278 : vector<2x32xf32>
    %cst_551 = arith.constant 1.000000e+00 : f32
    %1280 = vector.broadcast %cst_551 : f32 to vector<2x32xf32>
    %1281 = arith.addf %1280, %1279 : vector<2x32xf32>
    %cst_552 = arith.constant 1.000000e+00 : f32
    %1282 = vector.broadcast %cst_552 : f32 to vector<2x32xf32>
    %1283 = arith.divf %1282, %1281 : vector<2x32xf32>
    %1284 = arith.mulf %1273, %1249 : vector<2x32xf32>
    %1285 = arith.mulf %1265, %1275 : vector<2x32xf32>
    %1286 = arith.addf %1284, %1285 : vector<2x32xf32>
    %1287 = math.tanh %1286 : vector<2x32xf32>
    %1288 = arith.mulf %1283, %1287 : vector<2x32xf32>
    %1289 = vector.shape_cast %1288 : vector<2x32xf32> to vector<2x1x32xf32>
    %c0_553 = arith.constant 0 : index
    %c14_554 = arith.constant 14 : index
    %c0_555 = arith.constant 0 : index
    %1290 = vector.load %arg26[%c0_553, %c14_554, %c0_555] : memref<2x16x32xf32, #tpu.memory_space<vmem>>, vector<2x1x32xf32>
    tpu.vector_store %arg26[%c0_553, %c14_554, %c0_555], %1289 {strides = array<i32>} : memref<2x16x32xf32, #tpu.memory_space<vmem>>, vector<2x1x32xf32>,
    %c0_556 = arith.constant 0 : index
    %c15_557 = arith.constant 15 : index
    %c0_558 = arith.constant 0 : index
    %1291 = vector.load %arg25[%c0_556, %c15_557, %c0_558] : memref<2x16x128xf32, #tpu.memory_space<vmem>>, vector<2x1x128xf32>
    %1292 = vector.shape_cast %1291 : vector<2x1x128xf32> to vector<2x128xf32>
    %cst_559 = arith.constant dense<0.000000e+00> : vector<2x128xf32>
    %1293 = tpu.matmul %1288, %726, %cst_559 {dimension_numbers = #tpu.dot_dimension_numbers<[1], [0], [0], [1], [0, 0, 1, 1], [], []>} : vector<2x32xf32>, vector<32x128xf32>, vector<2x128xf32> -> vector<2x128xf32>
    %1294 = arith.addf %1292, %1293 : vector<2x128xf32>
    %1295 = vector.extract_strided_slice %1294 {offsets = [0, 0], sizes = [2, 32], strides = [1, 1]} : vector<2x128xf32> to vector<2x32xf32>
    %cst_560 = arith.constant 0.000000e+00 : f32
    %1296 = vector.broadcast %cst_560 : f32 to vector<2x32xf32>
    %1297 = arith.subf %1296, %1295 : vector<2x32xf32>
    %1298 = math.exp %1297 : vector<2x32xf32>
    %cst_561 = arith.constant 1.000000e+00 : f32
    %1299 = vector.broadcast %cst_561 : f32 to vector<2x32xf32>
    %1300 = arith.addf %1299, %1298 : vector<2x32xf32>
    %cst_562 = arith.constant 1.000000e+00 : f32
    %1301 = vector.broadcast %cst_562 : f32 to vector<2x32xf32>
    %1302 = arith.divf %1301, %1300 : vector<2x32xf32>
    %1303 = vector.extract_strided_slice %1294 {offsets = [0, 32], sizes = [2, 32], strides = [1, 1]} : vector<2x128xf32> to vector<2x32xf32>
    %cst_563 = arith.constant 0.000000e+00 : f32
    %1304 = vector.broadcast %cst_563 : f32 to vector<2x32xf32>
    %1305 = arith.subf %1304, %1303 : vector<2x32xf32>
    %1306 = math.exp %1305 : vector<2x32xf32>
    %cst_564 = arith.constant 1.000000e+00 : f32
    %1307 = vector.broadcast %cst_564 : f32 to vector<2x32xf32>
    %1308 = arith.addf %1307, %1306 : vector<2x32xf32>
    %cst_565 = arith.constant 1.000000e+00 : f32
    %1309 = vector.broadcast %cst_565 : f32 to vector<2x32xf32>
    %1310 = arith.divf %1309, %1308 : vector<2x32xf32>
    %1311 = vector.extract_strided_slice %1294 {offsets = [0, 64], sizes = [2, 32], strides = [1, 1]} : vector<2x128xf32> to vector<2x32xf32>
    %1312 = math.tanh %1311 : vector<2x32xf32>
    %1313 = vector.extract_strided_slice %1294 {offsets = [0, 96], sizes = [2, 32], strides = [1, 1]} : vector<2x128xf32> to vector<2x32xf32>
    %cst_566 = arith.constant 0.000000e+00 : f32
    %1314 = vector.broadcast %cst_566 : f32 to vector<2x32xf32>
    %1315 = arith.subf %1314, %1313 : vector<2x32xf32>
    %1316 = math.exp %1315 : vector<2x32xf32>
    %cst_567 = arith.constant 1.000000e+00 : f32
    %1317 = vector.broadcast %cst_567 : f32 to vector<2x32xf32>
    %1318 = arith.addf %1317, %1316 : vector<2x32xf32>
    %cst_568 = arith.constant 1.000000e+00 : f32
    %1319 = vector.broadcast %cst_568 : f32 to vector<2x32xf32>
    %1320 = arith.divf %1319, %1318 : vector<2x32xf32>
    %1321 = arith.mulf %1310, %1286 : vector<2x32xf32>
    %1322 = arith.mulf %1302, %1312 : vector<2x32xf32>
    %1323 = arith.addf %1321, %1322 : vector<2x32xf32>
    %1324 = math.tanh %1323 : vector<2x32xf32>
    %1325 = arith.mulf %1320, %1324 : vector<2x32xf32>
    %1326 = vector.shape_cast %1325 : vector<2x32xf32> to vector<2x1x32xf32>
    %c0_569 = arith.constant 0 : index
    %c15_570 = arith.constant 15 : index
    %c0_571 = arith.constant 0 : index
    %1327 = vector.load %arg26[%c0_569, %c15_570, %c0_571] : memref<2x16x32xf32, #tpu.memory_space<vmem>>, vector<2x1x32xf32>
    tpu.vector_store %arg26[%c0_569, %c15_570, %c0_571], %1326 {strides = array<i32>} : memref<2x16x32xf32, #tpu.memory_space<vmem>>, vector<2x1x32xf32>,
    %c0_572 = arith.constant 0 : index
    %c0_573 = arith.constant 0 : index
    %c0_574 = arith.constant 0 : index
    %1328 = vector.load %arg26[%c0_572, %c0_573, %c0_574] : memref<2x16x32xf32, #tpu.memory_space<vmem>>, vector<2x16x32xf32>
    %c0_575 = arith.constant 0 : index
    %c0_576 = arith.constant 0 : index
    %1329 = vector.load %arg20[%c0_575, %c0_576] : memref<160x16xbf16, #tpu.memory_space<vmem>>, vector<160x16xbf16>
    %c0_577 = arith.constant 0 : index
    %c0_578 = arith.constant 0 : index
    %1330 = vector.load %arg21[%c0_577, %c0_578] : memref<1x16xf32, #tpu.memory_space<vmem>>, vector<1x16xf32>
    %c0_579 = arith.constant 0 : index
    %c0_580 = arith.constant 0 : index
    %1331 = vector.load %arg22[%c0_579, %c0_580] : memref<1x16xf32, #tpu.memory_space<vmem>>, vector<1x16xf32>
    %c0_581 = arith.constant 0 : index
    %c0_582 = arith.constant 0 : index
    %1332 = vector.load %arg23[%c0_581, %c0_582] : memref<1x16xf32, #tpu.memory_space<vmem>>, vector<1x16xf32>
    %cst_583 = arith.constant 0.000000e+00 : f32
    %1333 = vector.broadcast %cst_583 : f32 to vector<2x2x32xf32>
    %1334 = tpu.concatenate %1333, %1328, %1333 in 1 : vector<2x2x32xf32>, vector<2x16x32xf32>, vector<2x2x32xf32> -> vector<2x20x32xf32>
    %1335 = vector.extract_strided_slice %1334 {offsets = [0, 0, 0], sizes = [2, 16, 32], strides = [1, 1, 1]} : vector<2x20x32xf32> to vector<2x16x32xf32>
    %1336 = vector.extract_strided_slice %1334 {offsets = [0, 1, 0], sizes = [2, 16, 32], strides = [1, 1, 1]} : vector<2x20x32xf32> to vector<2x16x32xf32>
    %1337 = vector.extract_strided_slice %1334 {offsets = [0, 2, 0], sizes = [2, 16, 32], strides = [1, 1, 1]} : vector<2x20x32xf32> to vector<2x16x32xf32>
    %1338 = vector.extract_strided_slice %1334 {offsets = [0, 3, 0], sizes = [2, 16, 32], strides = [1, 1, 1]} : vector<2x20x32xf32> to vector<2x16x32xf32>
    %1339 = vector.extract_strided_slice %1334 {offsets = [0, 4, 0], sizes = [2, 16, 32], strides = [1, 1, 1]} : vector<2x20x32xf32> to vector<2x16x32xf32>
    %1340 = tpu.concatenate %1335, %1336, %1337, %1338, %1339 in 2 : vector<2x16x32xf32>, vector<2x16x32xf32>, vector<2x16x32xf32>, vector<2x16x32xf32>, vector<2x16x32xf32> -> vector<2x16x160xf32>
    %1341 = vector.shape_cast %1340 : vector<2x16x160xf32> to vector<32x160xf32>
    %1342 = arith.truncf %1341 : vector<32x160xf32> to vector<32x160xbf16>
    %cst_584 = arith.constant dense<0.000000e+00> : vector<32x16xf32>
    %1343 = tpu.matmul %1342, %1329, %cst_584 {dimension_numbers = #tpu.dot_dimension_numbers<[1], [0], [0], [1], [0, 0, 1, 1], [], []>} : vector<32x160xbf16>, vector<160x16xbf16>, vector<32x16xf32> -> vector<32x16xf32>
    %1344 = vector.broadcast %1330 : vector<1x16xf32> to vector<32x16xf32>
    %1345 = arith.addf %1343, %1344 : vector<32x16xf32>
    %cst_585 = arith.constant dense<0.000000e+00> : vector<32xf32>
    %1346 = vector.multi_reduction <add>, %1345, %cst_585 [1] : vector<32x16xf32> to vector<32xf32>
    %1347 = vector.shape_cast %1346 : vector<32xf32> to vector<32x1xf32>
    %cst_586 = arith.constant 1.600000e+01 : f32
    %1348 = vector.broadcast %cst_586 : f32 to vector<32x1xf32>
    %1349 = arith.divf %1347, %1348 : vector<32x1xf32>
    %1350 = vector.broadcast %1349 : vector<32x1xf32> to vector<32x16xf32>
    %1351 = arith.subf %1345, %1350 : vector<32x16xf32>
    %1352 = arith.mulf %1351, %1351 : vector<32x16xf32>
    %cst_587 = arith.constant dense<0.000000e+00> : vector<32xf32>
    %1353 = vector.multi_reduction <add>, %1352, %cst_587 [1] : vector<32x16xf32> to vector<32xf32>
    %1354 = vector.shape_cast %1353 : vector<32xf32> to vector<32x1xf32>
    %cst_588 = arith.constant 1.600000e+01 : f32
    %1355 = vector.broadcast %cst_588 : f32 to vector<32x1xf32>
    %1356 = arith.divf %1354, %1355 : vector<32x1xf32>
    %cst_589 = arith.constant 9.99999974E-6 : f32
    %1357 = vector.broadcast %cst_589 : f32 to vector<32x1xf32>
    %1358 = arith.addf %1356, %1357 : vector<32x1xf32>
    %1359 = math.rsqrt %1358 : vector<32x1xf32>
    %1360 = vector.broadcast %1331 : vector<1x16xf32> to vector<32x16xf32>
    %1361 = vector.broadcast %1359 : vector<32x1xf32> to vector<32x16xf32>
    %1362 = arith.mulf %1360, %1361 : vector<32x16xf32>
    %1363 = vector.broadcast %1349 : vector<32x1xf32> to vector<32x16xf32>
    %1364 = arith.mulf %1363, %1362 : vector<32x16xf32>
    %1365 = vector.broadcast %1332 : vector<1x16xf32> to vector<32x16xf32>
    %1366 = arith.subf %1365, %1364 : vector<32x16xf32>
    %1367 = arith.mulf %1345, %1362 : vector<32x16xf32>
    %1368 = arith.addf %1367, %1366 : vector<32x16xf32>
    %cst_590 = arith.constant 0.000000e+00 : f32
    %1369 = vector.broadcast %cst_590 : f32 to vector<32x16xf32>
    %1370 = arith.maximumf %1368, %1369 : vector<32x16xf32>
    %1371 = vector.shape_cast %1370 : vector<32x16xf32> to vector<2x16x16xf32>
    %c0_591 = arith.constant 0 : index
    %c0_592 = arith.constant 0 : index
    %c0_593 = arith.constant 0 : index
    %1372 = vector.load %arg24[%c0_591, %c0_592, %c0_593] : memref<2x16x16xf32, #tpu.memory_space<vmem>>, vector<2x16x16xf32>
    tpu.vector_store %arg24[%c0_591, %c0_592, %c0_593], %1371 {strides = array<i32>} : memref<2x16x16xf32, #tpu.memory_space<vmem>>, vector<2x16x16xf32>,
    return
  }
  func.func @transform_0(%arg0: i32) -> (i32, i32, i32) {
    %c0_i32 = arith.constant 0 : i32
    %c0_i32_0 = arith.constant 0 : i32
    %c0_i32_1 = arith.constant 0 : i32
    return %arg0, %c0_i32, %c0_i32_0 : i32, i32, i32
  }
  func.func @transform_1(%arg0: i32) -> (i32, i32) {
    %c0_i32 = arith.constant 0 : i32
    %c0_i32_0 = arith.constant 0 : i32
    %c0_i32_1 = arith.constant 0 : i32
    return %c0_i32, %c0_i32_0 : i32, i32
  }
  func.func @transform_2(%arg0: i32) -> (i32, i32) {
    %c0_i32 = arith.constant 0 : i32
    %c0_i32_0 = arith.constant 0 : i32
    %c0_i32_1 = arith.constant 0 : i32
    return %c0_i32, %c0_i32_0 : i32, i32
  }
  func.func @transform_3(%arg0: i32) -> (i32, i32) {
    %c0_i32 = arith.constant 0 : i32
    %c0_i32_0 = arith.constant 0 : i32
    %c0_i32_1 = arith.constant 0 : i32
    return %c0_i32, %c0_i32_0 : i32, i32
  }
  func.func @transform_4(%arg0: i32) -> (i32, i32) {
    %c0_i32 = arith.constant 0 : i32
    %c0_i32_0 = arith.constant 0 : i32
    %c0_i32_1 = arith.constant 0 : i32
    return %c0_i32, %c0_i32_0 : i32, i32
  }
  func.func @transform_5(%arg0: i32) -> (i32, i32) {
    %c0_i32 = arith.constant 0 : i32
    %c0_i32_0 = arith.constant 0 : i32
    %c0_i32_1 = arith.constant 0 : i32
    return %c0_i32, %c0_i32_0 : i32, i32
  }
  func.func @transform_6(%arg0: i32) -> (i32, i32) {
    %c0_i32 = arith.constant 0 : i32
    %c0_i32_0 = arith.constant 0 : i32
    %c0_i32_1 = arith.constant 0 : i32
    return %c0_i32, %c0_i32_0 : i32, i32
  }
  func.func @transform_7(%arg0: i32) -> (i32, i32) {
    %c0_i32 = arith.constant 0 : i32
    %c0_i32_0 = arith.constant 0 : i32
    %c0_i32_1 = arith.constant 0 : i32
    return %c0_i32, %c0_i32_0 : i32, i32
  }
  func.func @transform_8(%arg0: i32) -> (i32, i32) {
    %c0_i32 = arith.constant 0 : i32
    %c0_i32_0 = arith.constant 0 : i32
    %c0_i32_1 = arith.constant 0 : i32
    return %c0_i32, %c0_i32_0 : i32, i32
  }
  func.func @transform_9(%arg0: i32) -> (i32, i32) {
    %c0_i32 = arith.constant 0 : i32
    %c0_i32_0 = arith.constant 0 : i32
    %c0_i32_1 = arith.constant 0 : i32
    return %c0_i32, %c0_i32_0 : i32, i32
  }
  func.func @transform_10(%arg0: i32) -> (i32, i32) {
    %c0_i32 = arith.constant 0 : i32
    %c0_i32_0 = arith.constant 0 : i32
    %c0_i32_1 = arith.constant 0 : i32
    return %c0_i32, %c0_i32_0 : i32, i32
  }
  func.func @transform_11(%arg0: i32) -> (i32, i32) {
    %c0_i32 = arith.constant 0 : i32
    %c0_i32_0 = arith.constant 0 : i32
    %c0_i32_1 = arith.constant 0 : i32
    return %c0_i32, %c0_i32_0 : i32, i32
  }
  func.func @transform_12(%arg0: i32) -> (i32, i32) {
    %c0_i32 = arith.constant 0 : i32
    %c0_i32_0 = arith.constant 0 : i32
    %c0_i32_1 = arith.constant 0 : i32
    return %c0_i32, %c0_i32_0 : i32, i32
  }
  func.func @transform_13(%arg0: i32) -> (i32, i32) {
    %c0_i32 = arith.constant 0 : i32
    %c0_i32_0 = arith.constant 0 : i32
    %c0_i32_1 = arith.constant 0 : i32
    return %c0_i32, %c0_i32_0 : i32, i32
  }
  func.func @transform_14(%arg0: i32) -> (i32, i32) {
    %c0_i32 = arith.constant 0 : i32
    %c0_i32_0 = arith.constant 0 : i32
    %c0_i32_1 = arith.constant 0 : i32
    return %c0_i32, %c0_i32_0 : i32, i32
  }
  func.func @transform_15(%arg0: i32) -> (i32, i32) {
    %c0_i32 = arith.constant 0 : i32
    %c0_i32_0 = arith.constant 0 : i32
    %c0_i32_1 = arith.constant 0 : i32
    return %c0_i32, %c0_i32_0 : i32, i32
  }
  func.func @transform_16(%arg0: i32) -> (i32, i32) {
    %c0_i32 = arith.constant 0 : i32
    %c0_i32_0 = arith.constant 0 : i32
    %c0_i32_1 = arith.constant 0 : i32
    return %c0_i32, %c0_i32_0 : i32, i32
  }
  func.func @transform_17(%arg0: i32) -> (i32, i32) {
    %c0_i32 = arith.constant 0 : i32
    %c0_i32_0 = arith.constant 0 : i32
    %c0_i32_1 = arith.constant 0 : i32
    return %c0_i32, %c0_i32_0 : i32, i32
  }
  func.func @transform_18(%arg0: i32) -> (i32, i32) {
    %c0_i32 = arith.constant 0 : i32
    %c0_i32_0 = arith.constant 0 : i32
    %c0_i32_1 = arith.constant 0 : i32
    return %c0_i32, %c0_i32_0 : i32, i32
  }
  func.func @transform_19(%arg0: i32) -> (i32, i32) {
    %c0_i32 = arith.constant 0 : i32
    %c0_i32_0 = arith.constant 0 : i32
    %c0_i32_1 = arith.constant 0 : i32
    return %c0_i32, %c0_i32_0 : i32, i32
  }
  func.func @transform_20(%arg0: i32) -> (i32, i32) {
    %c0_i32 = arith.constant 0 : i32
    %c0_i32_0 = arith.constant 0 : i32
    %c0_i32_1 = arith.constant 0 : i32
    return %c0_i32, %c0_i32_0 : i32, i32
  }
  func.func @transform_21(%arg0: i32) -> (i32, i32) {
    %c0_i32 = arith.constant 0 : i32
    %c0_i32_0 = arith.constant 0 : i32
    %c0_i32_1 = arith.constant 0 : i32
    return %c0_i32, %c0_i32_0 : i32, i32
  }
  func.func @transform_22(%arg0: i32) -> (i32, i32) {
    %c0_i32 = arith.constant 0 : i32
    %c0_i32_0 = arith.constant 0 : i32
    %c0_i32_1 = arith.constant 0 : i32
    return %c0_i32, %c0_i32_0 : i32, i32
  }
  func.func @transform_23(%arg0: i32) -> (i32, i32, i32) {
    %c0_i32 = arith.constant 0 : i32
    %c0_i32_0 = arith.constant 0 : i32
    %c0_i32_1 = arith.constant 0 : i32
    return %arg0, %c0_i32, %c0_i32_0 : i32, i32, i32
  }
}

</mosaic_0001>

<bundles_post_ra>
// kernel: cnn_lstm_inner_model.1
= control target key start
LH: loop header
LB: loop body
LE: loop exit
PB: predicated region body
PF: predicated region fallthrough
CT: control target
= control target key end

     0   :  { %s9247_s0 = inlined_call_operand.vmem [shape: f32[2,16,16], index: 0, kind: input, shape index: {}]   ;;  %s9248_s1 = inlined_call_operand.vmem [shape: bf16[16,32], index: 1, kind: input, shape index: {}]   ;;  %s9249_s2 = inlined_call_operand.vmem [shape: f32[1,32], index: 2, kind: input, shape index: {}]   ;;  %s9250_s3 = inlined_call_operand.vmem [shape: f32[1,32], index: 3, kind: input, shape index: {}]   ;;  %s9251_s4 = inlined_call_operand.vmem [shape: f32[1,32], index: 4, kind: input, shape index: {}]   ;;  %s9252_s5 = inlined_call_operand.vmem [shape: bf16[96,48], index: 5, kind: input, shape index: {}]   ;;  %s9253_s6 = inlined_call_operand.vmem [shape: f32[1,48], index: 6, kind: input, shape index: {}]   ;;  %s9254_s7 = inlined_call_operand.vmem [shape: f32[1,48], index: 7, kind: input, shape index: {}]   ;;  %s9255_s8 = inlined_call_operand.vmem [shape: f32[1,48], index: 8, kind: input, shape index: {}]   ;;  %s9256_s9 = inlined_call_operand.vmem [shape: bf16[240,32], index: 9, kind: input, shape index: {}]   ;;  %s9257_s10 = inlined_call_operand.vmem [shape: f32[1,32], index: 10, kind: input, shape index: {}]   ;;  %s9258_s11 = inlined_call_operand.vmem [shape: f32[1,32], index: 11, kind: input, shape index: {}]   ;;  %s9259_s12 = inlined_call_operand.vmem [shape: f32[1,32], index: 12, kind: input, shape index: {}]   ;;  %s9260_s13 = inlined_call_operand.vmem [shape: f32[32,128], index: 13, kind: input, shape index: {}]   ;;  %s9261_s14 = inlined_call_operand.vmem [shape: f32[32,128], index: 14, kind: input, shape index: {}]   ;;  %s9262_s15 = inlined_call_operand.vmem [shape: f32[1,128], index: 15, kind: input, shape index: {}]   ;;  %s9263_s16 = inlined_call_operand.vmem [shape: f32[32,128], index: 16, kind: input, shape index: {}]   ;;  %s9264_s17 = inlined_call_operand.vmem [shape: f32[32,128], index: 17, kind: input, shape index: {}]   ;;  %s9265_s18 = inlined_call_operand.vmem [shape: f32[1,128], index: 18, kind: input, shape index: {}]   ;;  %s9266_s19 = inlined_call_operand.vmem [shape: bf16[160,16], index: 19, kind: input, shape index: {}]   ;;  %s9267_s20 = inlined_call_operand.vmem [shape: f32[1,16], index: 20, kind: input, shape index: {}]   ;;  %s9268_s21 = inlined_call_operand.vmem [shape: f32[1,16], index: 21, kind: input, shape index: {}]   ;;  %s9269_s22 = inlined_call_operand.vmem [shape: f32[1,16], index: 22, kind: input, shape index: {}]   ;;  %s9270_s23 = inlined_call_operand.hbm [shape: f32[2,16,16], index: 23, kind: output, shape index: {}]  }
   0x1   :  { %9273 = sst [smem:[#allocation7_spill]] %s9247_s0 }
   0x2   :  { %9274 = sst [smem:[#allocation8_spill]] %s9248_s1 }
   0x3   :  { %9275 = sst [smem:[#allocation9_spill]] %s9249_s2 }
   0x4   :  { %9276 = sst [smem:[#allocation10_spill]] %s9250_s3 }
   0x5   :  { %9277 = sst [smem:[#allocation11_spill]] %s9251_s4 }
   0x6   :  { %9278 = sst [smem:[#allocation12_spill]] %s9252_s5 }
   0x7   :  { %9279 = sst [smem:[#allocation13_spill]] %s9253_s6 }
   0x8   :  { %9280 = sst [smem:[#allocation14_spill]] %s9254_s7 }
   0x9   :  { %9281 = sst [smem:[#allocation15_spill]] %s9265_s18 }
   0xa   :  { %s9282_s24 = sld [smem:[#allocation8_spill]]  ;;  %s9283_s18 = sld [smem:[#allocation7_spill]]  ;;  %vm99_vm0 = vcmask 130048  }
  0x10   :  { %v7067_v0 = vld [vmem:[%s9282_s24] sm:$0xff]   ;;  %v77_v2 = vld [vmem:[%s9283_s18 + $0x8] sm:$0xff]  ;;  %v78_v3 = vld [vmem:[%s9283_s18 + $0x10] sm:$0xff] }
  0x11   :  { %v76_v1 = vld [vmem:[%s9283_s18] sm:$0xff]  ;;  %6355 = vmatprep.subr.bf16.mxu0 %v7067_v0  ;;  %v79_v5 = vld [vmem:[%s9283_s18 + $0x18] sm:$0xff] }
  0x12   :  { %v85_v4 = vpack.c.bf16 %v77_v2, %v76_v1  ;;  %6356 = vmatpush3.bf16.msra.mxu0 %v7067_v0  ;;  %v86_v6 = vpack.c.bf16 %v79_v5, %v78_v3 }
  0x14   :  { %6357 = vmatprep.mubr.msk.bf16.mxu0 %vm99_vm0, %v85_v4 }
  0x15   :  { %6358 = vmatmul.mubr.msk.bf16.vlgmr.msra.gmra.mrb[0].mxu0 %vm99_vm0, %v86_v6 }
  0x16   :  { %28 = vsyncpa [#allocation5], 0  ;;  %s9284_s3 = sld [smem:[#allocation9_spill]]  ;;  %vm155_vm1 = vcmask 261120   ;;  %s9285_s4 = sld [smem:[#allocation12_spill]]  ;;  %vm260_vm2 = vcmask 1040384  }
  0x17   :  { %s9286_s1 = sld [smem:[#allocation10_spill]]  ;;  %s9287_s6 = sld [smem:[#allocation11_spill]]  ;;  %vm281_vm3 = vcmask 1046528   ;;  %vm304_vm4 = vcmask 1045504   ;;  %vm331_vm5 = vcmask 523264   ;;  %vm380_vm6 = vcmask 785408  }
  0x18   :  { %s7667_s24 = smov 32   ;;  %vm436_vm7 = vcmask 392192   ;;  %s9289_s5 = sld [smem:[#allocation14_spill]]  ;;  %vm559_vm8 = vcmask 1041408   ;;  %vm624_vm9 = vcmask 1044480   ;;  %vm647_vm10 = vcmask 1043456  }
  0x19   :  { %s7670_s7 = smov 16   ;;  %s7671_s28 = smov 96   ;;  %vm786_vm11 = vcmask 916480   ;;  %vm7674_vm12 = vmmov 0   ;;  %vm1189_vm13 = vcmask 1041409   ;;  %vm1183_vm14 = vcmask 253952  }
  0x1a   :  { %s9290_s0 = sld [smem:[#allocation15_spill]] }
  0x1c   :  { %v6076_v7 = vld [vmem:[%s9284_s3] ss:$0 sm:$0xff]  ;;  %v7069_v41 = vld [vmem:[%s9285_s4 + $0x8] sm:$0xff]  }
  0x1d   :  { %v7068_v40 = vld [vmem:[%s9285_s4] sm:$0xff]  }
  0x1e   :  { %6361 = vmatprep.subr.bf16.mxu1 %v7068_v40  ;;  %v6080_v54 = vld [vmem:[%s9286_s1] ss:$0 sm:$0xff]  ;;  %s9288_s1 = sld [smem:[#allocation13_spill]] }
  0x1f   :  { %6362 = vmatpush3.bf16.msra.mxu1 %v7068_v40  ;;  %v6081_v57 = vld [vmem:[%s9287_s6] ss:$0 sm:$0xff] }
  0x20   :  { %6363 = vmatprep.subr.bf16.mxu1 %v7069_v41 }
  0x23   :  { %6364 = vmatpush3.bf16.msra.mxu1 %v7069_v41 }
  0xe8   :  { %v6359_v8 = vpop.f32.mrb[0].mxu0 }
  0xe9   :  { %v7819_v9 = vadd.f32 %v6359_v8, %v6076_v7  ;;  %v140_v10 = vpop.f32.mrb[1].mxu0 }
  0xea   :  { %v7821_v11 = vadd.f32 %v6076_v7, %v140_v10  ;;  %v6360_v12 = vpop.f32.mrb[2].mxu0 }
  0xeb   :  { %v7823_v13 = vadd.f32 %v6360_v12, %v6076_v7  ;;  %v143_v14 = vpop.f32.mrb[3].mxu0  ;;  %v162_v15 = vsel %vm155_vm1, %v7819_v9, 0.0 }
  0xec   :  { %v7827_v16 = vadd.f32 %v6076_v7, %v143_v14  ;;  %163 = vadd.xlane.f32.xlu1 %v162_v15  ;;  %v156_v17 = vsel %vm155_vm1, %v7821_v11, 0.0 }
  0xed   :  { %157 = vadd.xlane.f32.xlu0 %v156_v17  ;;  %v165_v18 = vsel %vm155_vm1, %v7823_v13, 0.0 }
  0xee   :  { %v159_v19 = vsel %vm155_vm1, %v7827_v16, 0.0 }
  0xf0   :  { %166 = vadd.xlane.f32.xlu1 %v165_v18 }
  0xf1   :  { %160 = vadd.xlane.f32.xlu0 %v159_v19 }
 0x179   :  { %v164_v20 = vpop.xlane.xlu1 %163 }
 0x17a   :  { %v171_v21 = vmul.f32 0.03125, %v164_v20  ;;  %v158_v22 = vpop.xlane.xlu0 %157 }
 0x17b   :  { %v169_v23 = vmul.f32 0.03125, %v158_v22 }
 0x17c   :  { %v175_v26 = vsub.f32 %v7819_v9, %v171_v21 }
 0x17d   :  { %v167_v24 = vpop.xlane.xlu1 %166  ;;  %v173_v25 = vsub.f32 %v7821_v11, %v169_v23 }
 0x17e   :  { %v172_v27 = vmul.f32 0.03125, %v167_v24  ;;  %v161_v28 = vpop.xlane.xlu0 %160  ;;  %v179_v32 = vmul.f32 %v175_v26, %v175_v26 }
 0x17f   :  { %v170_v29 = vmul.f32 0.03125, %v161_v28  ;;  %v177_v30 = vmul.f32 %v173_v25, %v173_v25 }
 0x180   :  { %v176_v34 = vsub.f32 %v7823_v13, %v172_v27  ;;  %v187_v36 = vsel %vm155_vm1, %v179_v32, 0.0 }
 0x181   :  { %v181_v31 = vsel %vm155_vm1, %v177_v30, 0.0  ;;  %v174_v33 = vsub.f32 %v7827_v16, %v170_v29 }
 0x182   :  { %182 = vadd.xlane.f32.xlu0 %v181_v31  ;;  %v180_v38 = vmul.f32 %v176_v34, %v176_v34  ;;  %v7072_v31 = vld [vmem:[%s9285_s4 + $0x20] sm:$0xff]  }
 0x183   :  { %v178_v35 = vmul.f32 %v174_v33, %v174_v33 }
 0x184   :  { %v190_v39 = vsel %vm155_vm1, %v180_v38, 0.0 }
 0x185   :  { %v184_v37 = vsel %vm155_vm1, %v178_v35, 0.0 }
 0x186   :  { %188 = vadd.xlane.f32.xlu0 %v187_v36  ;;  %185 = vadd.xlane.f32.xlu1 %v184_v37 }
 0x18a   :  { %191 = vadd.xlane.f32.xlu1 %v190_v39 }
 0x20f   :  { %v183_v42 = vpop.xlane.xlu0 %182 }
 0x210   :  { %v193_v43 = vmul.f32 0.03125, %v183_v42 }
 0x212   :  { %v197_v44 = vadd.f32 1e-05, %v193_v43 }
 0x213   :  { %v186_v45 = vpop.xlane.xlu1 %185  ;;  %v189_v46 = vpop.xlane.xlu0 %188 }
 0x214   :  { %7099 = vrsqrt.f32 %v197_v44  ;;  %v194_v47 = vmul.f32 0.03125, %v186_v45  ;;  %v195_v48 = vmul.f32 0.03125, %v189_v46  ;;  %v7073_v44 = vld [vmem:[%s9285_s4 + $0x28] sm:$0xff]  }
 0x216   :  { %v198_v49 = vadd.f32 1e-05, %v194_v47  ;;  %v199_v50 = vadd.f32 1e-05, %v195_v48 }
 0x217   :  { %v192_v51 = vpop.xlane.xlu1 %191 }
 0x218   :  { %7101 = vrsqrt.f32 %v198_v49  ;;  %v196_v52 = vmul.f32 0.03125, %v192_v51 }
 0x219   :  { %7103 = vrsqrt.f32 %v199_v50 }
 0x21a   :  { %v200_v53 = vadd.f32 1e-05, %v196_v52 }
 0x21c   :  { %7105 = vrsqrt.f32 %v200_v53 }
 0x21e   :  { %v7100_v55 = vpop.eup %7099 }
 0x21f   :  { %v211_v56 = vmul.f32 %v7100_v55, %v6080_v54 }
 0x221   :  { %v215_v58 = vmul.f32 %v211_v56, %v169_v23  ;;  %v229_v62 = vmul.f32 %v211_v56, %v7821_v11  ;;  %v7070_v11 = vld [vmem:[%s9285_s4 + $0x10] sm:$0xff]  }
 0x222   :  { %v7102_v59 = vpop.eup %7101  ;;  %6365 = vmatprep.subr.bf16.mxu1 %v7070_v11 }
 0x223   :  { %v7104_v60 = vpop.eup %7103  ;;  %v225_v61 = vsub.f32 %v6081_v57, %v215_v58  ;;  %v212_v63 = vmul.f32 %v7102_v59, %v6080_v54  ;;  %6366 = vmatpush3.bf16.msra.mxu1 %v7070_v11 }
 0x224   :  { %v213_v0 = vmul.f32 %v7104_v60, %v6080_v54 }
 0x225   :  { %v216_v1 = vmul.f32 %v212_v63, %v170_v29  ;;  %v7856_v2 = vadd.f32 %v229_v62, %v225_v61  ;;  %v230_v5 = vmul.f32 %v212_v63, %v7827_v16 }
 0x226   :  { %v7106_v3 = vpop.eup %7105  ;;  %v217_v4 = vmul.f32 %v213_v0, %v171_v21  ;;  %v231_v12 = vmul.f32 %v213_v0, %v7819_v9  ;;  %v7071_v21 = vld [vmem:[%s9285_s4 + $0x18] sm:$0xff]   ;;  %s7668_s4 = smov 64  }
 0x227   :  { %v214_v6 = vmul.f32 %v7106_v3, %v6080_v54  ;;  %v226_v7 = vsub.f32 %v6081_v57, %v216_v1  ;;  %v237_v8 = vmax.f32 %v7856_v2, 0.0  ;;  %6367 = vmatprep.subr.bf16.mxu1 %v7071_v21 }
 0x228   :  { %v227_v10 = vsub.f32 %v6081_v57, %v217_v4  ;;  %6368 = vmatpush3.bf16.msra.mxu1 %v7071_v21 }
 0x229   :  { %v218_v14 = vmul.f32 %v214_v6, %v172_v27  ;;  %v7864_v15 = vadd.f32 %v230_v5, %v226_v7  ;;  %v261_v17 = vrot.slane %v237_v8, 7  ;;  %v232_v16 = vmul.f32 %v214_v6, %v7823_v13  ;;  %6369 = vmatprep.subr.bf16.mxu1 %v7072_v31 }
 0x22a   :  { %v7868_v18 = vadd.f32 %v231_v12, %v227_v10 }
 0x22b   :  { %v238_v19 = vmax.f32 %v7864_v15, 0.0  ;;  %v228_v20 = vsub.f32 %v6081_v57, %v218_v14  ;;  %v273_v23 = vsel %vm260_vm2, 0.0, %v261_v17 }
 0x22c   :  { %v239_v9 = vmax.f32 %v7868_v18, 0.0  ;;  %v282_v28 = vrot.slane %v273_v23, 1  ;;  %6370 = vmatpush3.bf16.msra.mxu1 %v7072_v31  ;;  %v305_v47 = vrot.slane %v273_v23, 2  ;;  %v6113_v18 = vld [vmem:[%s9262_s15] ss:$0 sm:$0xff] }
 0x22d   :  { %v262_v22 = vrot.slane %v238_v19, 7  ;;  %v7879_v24 = vadd.f32 %v232_v16, %v228_v20  ;;  %6371 = vmatprep.subr.bf16.mxu1 %v7073_v44 }
 0x22e   :  { %v264_v13 = vrot.slane %v239_v9, 7 }
 0x22f   :  { %v263_v25 = vsel %vm260_vm2, %v261_v17, %v262_v22  ;;  %v275_v26 = vsel %vm260_vm2, %v262_v22, 0.0  ;;  %v240_v27 = vmax.f32 %v7879_v24, 0.0 }
 0x230   :  { %v283_v29 = vrot.slane %v263_v25, 1  ;;  %v285_v30 = vrot.slane %v275_v26, 1  ;;  %v274_v33 = vsel %vm260_vm2, 0.0, %v264_v13  ;;  %v306_v39 = vrot.slane %v263_v25, 2  ;;  %6372 = vmatpush3.bf16.msra.mxu1 %v7073_v44 }
 0x231   :  { %v265_v32 = vrot.slane %v240_v27, 7  ;;  %v287_v40 = vrot.slane %v274_v33, 1  ;;  %v308_v43 = vrot.slane %v275_v26, 2  ;;  %v310_v53 = vrot.slane %v274_v33, 2 }
 0x232   :  { %v284_v34 = vsel %vm281_vm3, %v282_v28, %v283_v29  ;;  %v286_v35 = vsel %vm281_vm3, %v283_v29, %v285_v30  ;;  %v307_v49 = vsel %vm304_vm4, %v305_v47, %v306_v39 }
 0x233   :  { %v6977_v36 = vpack.i.bf16 %v286_v35, %v284_v34  ;;  %v266_v37 = vsel %vm260_vm2, %v264_v13, %v265_v32  ;;  %v276_v38 = vsel %vm260_vm2, %v265_v32, 0.0  ;;  %v309_v50 = vsel %vm304_vm4, %v306_v39, %v308_v43 }
 0x234   :  { %v288_v41 = vrot.slane %v266_v37, 1  ;;  %v290_v42 = vrot.slane %v276_v38, 1  ;;  %v311_v51 = vrot.slane %v266_v37, 2  ;;  %v313_v52 = vrot.slane %v276_v38, 2 }
 0x235   :  { %6978 = vrot.lane.b32.xlu0 %v6977_v36, %s7667_s24  ;;  %v6987_v54 = vpack.i.bf16 %v309_v50, %v307_v49 }
 0x236   :  { %v289_v45 = vsel %vm281_vm3, %v287_v40, %v288_v41  ;;  %v291_v46 = vsel %vm281_vm3, %v288_v41, %v290_v42  ;;  %v312_v55 = vsel %vm304_vm4, %v310_v53, %v311_v51  ;;  %v314_v56 = vsel %vm304_vm4, %v311_v51, %v313_v52 }
 0x237   :  { %v6982_v48 = vpack.i.bf16 %v291_v46, %v289_v45  ;;  %v6992_v57 = vpack.i.bf16 %v314_v56, %v312_v55 }
 0x239   :  { %6983 = vrot.lane.b32.xlu1 %v6982_v48, %s7667_s24 }
 0x23d   :  { %6988 = vrot.lane.b32.xlu1 %v6987_v54, %s7668_s4 }
 0x241   :  { %6993 = vrot.lane.b32.xlu1 %v6992_v57, %s7668_s4  ;;  %v7074_v57 = vld [vmem:[%s9256_s9] sm:$0xff]  }
 0x2a7   :  { %v6979_v58 = vpop.permute.xlu0 %6978 }
 0x2a8   :  { %v6981_v60 = vunpack.i.h.bf16 %v6979_v58  ;;  %v6980_v61 = vunpack.i.l.bf16 %v6979_v58  ;;  %v7669_v58 = vmov 0  }
 0x2a9   :  { %793 = vmatprep.subr.bf16.mxu0 %v7669_v58 }
 0x2aa   :  { %v327_v4 = vsel %vm155_vm1, %v273_v23, %v6980_v61  ;;  %v328_v5 = vsel %vm155_vm1, %v263_v25, %v6981_v60  ;;  %v6082_v23 = vld [vmem:[%s9288_s1] ss:$0 sm:$0xff]  ;;  %794 = vmatpush1.bf16.msra.mxu0 %v7074_v57  ;;  %v7076_v60 = vld [vmem:[%s9256_s9 + $0x10] sm:$0xff]   ;;  %v7077_v61 = vld [vmem:[%s9256_s9 + $0x18] sm:$0xff]  }
 0x2ab   :  { %v6984_v59 = vpop.permute.xlu1 %6983  ;;  %795 = vmatprep.subr.bf16.mxu0 %v7669_v58 }
 0x2ac   :  { %v6986_v1 = vunpack.i.h.bf16 %v6984_v59  ;;  %v6985_v3 = vunpack.i.l.bf16 %v6984_v59  ;;  %v7075_v59 = vld [vmem:[%s9256_s9 + $0x8] sm:$0xff]  }
 0x2ae   :  { %v330_v17 = vsel %vm155_vm1, %v266_v37, %v6986_v1  ;;  %v329_v16 = vsel %vm155_vm1, %v274_v33, %v6985_v3  ;;  %796 = vmatpush1.bf16.msra.mxu0 %v7075_v59  ;;  %v7081_v1 = vld [vmem:[%s9256_s9 + $0x38] sm:$0xff]   ;;  %v7082_v3 = vld [vmem:[%s9256_s9 + $0x40] sm:$0xff]  }
 0x2af   :  { %v6989_v62 = vpop.permute.xlu1 %6988  ;;  %797 = vmatprep.subr.bf16.mxu0 %v7669_v58 }
 0x2b0   :  { %v6991_v63 = vunpack.i.h.bf16 %v6989_v62  ;;  %v6990_v0 = vunpack.i.l.bf16 %v6989_v62  ;;  %v7078_v62 = vld [vmem:[%s9256_s9 + $0x20] sm:$0xff]  }
 0x2b2   :  { %v332_v6 = vsel %vm331_vm5, %v327_v4, %v6990_v0  ;;  %v333_v7 = vsel %vm331_vm5, %v328_v5, %v6991_v63  ;;  %798 = vmatpush1.bf16.msra.mxu0 %v7076_v60  ;;  %v7079_v63 = vld [vmem:[%s9256_s9 + $0x28] sm:$0xff]   ;;  %v7080_v0 = vld [vmem:[%s9256_s9 + $0x30] sm:$0xff]  }
 0x2b3   :  { %v6994_v10 = vpop.permute.xlu1 %6993  ;;  %v336_v12 = vpack.c.bf16 %v333_v7, %v332_v6  ;;  %799 = vmatprep.subr.bf16.mxu0 %v7669_v58  ;;  %v7083_v4 = vld [vmem:[%s9256_s9 + $0x48] sm:$0xff]   ;;  %v7084_v5 = vld [vmem:[%s9256_s9 + $0x50] sm:$0xff]   ;;  %v7085_v6 = vld [vmem:[%s9256_s9 + $0x58] sm:$0xff]  }
 0x2b4   :  { %v6996_v11 = vunpack.i.h.bf16 %v6994_v10  ;;  %v6995_v14 = vunpack.i.l.bf16 %v6994_v10 }
 0x2b5   :  { %6373 = vmatprep.mubr.msk.bf16.mxu1 %vm380_vm6, %v336_v12 }
 0x2b6   :  { %v334_v20 = vsel %vm331_vm5, %v329_v16, %v6995_v14  ;;  %v335_v21 = vsel %vm331_vm5, %v330_v17, %v6996_v11  ;;  %800 = vmatpush1.bf16.msra.mxu0 %v7077_v61 }
 0x2b7   :  { %v337_v22 = vpack.c.bf16 %v335_v21, %v334_v20  ;;  %801 = vmatprep.subr.bf16.mxu0 %v7669_v58 }
 0x2b9   :  { %6374 = vmatmul.mubr.msk.bf16.vlgmr.msra.gmra.mrb[0].mxu1 %vm380_vm6, %v337_v22 }
 0x2ba   :  { %802 = vmatpush1.bf16.msra.mxu0 %v7078_v62 }
 0x2bb   :  { %803 = vmatprep.subr.bf16.mxu0 %v7669_v58 }
 0x2be   :  { %804 = vmatpush1.bf16.msra.mxu0 %v7079_v63 }
 0x2bf   :  { %805 = vmatprep.subr.bf16.mxu0 %v7669_v58 }
 0x2c2   :  { %806 = vmatpush1.bf16.msra.mxu0 %v7080_v0 }
 0x2c3   :  { %807 = vmatprep.subr.bf16.mxu0 %v7669_v58 }
 0x2c6   :  { %808 = vmatpush1.bf16.msra.mxu0 %v7081_v1 }
 0x2c7   :  { %809 = vmatprep.subr.bf16.mxu0 %v7669_v58 }
 0x2ca   :  { %810 = vmatpush1.bf16.msra.mxu0 %v7082_v3 }
 0x2cb   :  { %811 = vmatprep.subr.bf16.mxu0 %v7669_v58 }
 0x2ce   :  { %812 = vmatpush1.bf16.msra.mxu0 %v7083_v4 }
 0x2cf   :  { %813 = vmatprep.subr.bf16.mxu0 %v7669_v58 }
 0x2d2   :  { %814 = vmatpush1.bf16.msra.mxu0 %v7084_v5 }
 0x2d3   :  { %815 = vmatprep.subr.bf16.mxu0 %v7669_v58 }
 0x2d6   :  { %816 = vmatpush1.bf16.msra.mxu0 %v7085_v6 }
 0x2d7   :  { %817 = vmatprep.subr.bf16.mxu0 %v7669_v58 }
 0x38c   :  { %v6375_v13 = vpop.f32.mrb[0].mxu1 }
 0x38d   :  { %v421_v25 = vpop.f32.mrb[1].mxu1  ;;  %v7924_v30 = vadd.f32 %v6375_v13, %v6082_v23 }
 0x38e   :  { %v7922_v26 = vadd.f32 %v6082_v23, %v421_v25  ;;  %v6376_v28 = vpop.f32.mrb[2].mxu1  ;;  %v6091_v25 = vld [vmem:[%s9289_s5] ss:$0 sm:$0xff] }
 0x38f   :  { %v424_v29 = vpop.f32.mrb[3].mxu1  ;;  %v7932_v34 = vadd.f32 %v6376_v28, %v6082_v23  ;;  %v443_v35 = vsel %vm436_vm7, %v7924_v30, 0.0 }
 0x390   :  { %v7926_v31 = vadd.f32 %v6082_v23, %v424_v29  ;;  %v437_v32 = vsel %vm436_vm7, %v7922_v26, 0.0 }
 0x391   :  { %438 = vadd.xlane.f32.xlu0 %v437_v32  ;;  %v446_v36 = vsel %vm436_vm7, %v7932_v34, 0.0 }
 0x392   :  { %v440_v33 = vsel %vm436_vm7, %v7926_v31, 0.0 }
 0x393   :  { %441 = vadd.xlane.f32.xlu1 %v440_v33  ;;  %v6092_v33 = vld [vmem:[%s9255_s8] ss:$0 sm:$0xff] }
 0x395   :  { %444 = vadd.xlane.f32.xlu0 %v443_v35 }
 0x399   :  { %447 = vadd.xlane.f32.xlu0 %v446_v36 }
 0x41e   :  { %v439_v37 = vpop.xlane.xlu0 %438 }
 0x41f   :  { %v7938_v38 = vmul.f32 0.020833334, %v439_v37 }
 0x420   :  { %v442_v39 = vpop.xlane.xlu1 %441 }
 0x421   :  { %v7940_v40 = vmul.f32 0.020833334, %v442_v39  ;;  %v454_v41 = vsub.f32 %v7922_v26, %v7938_v38 }
 0x422   :  { %v445_v42 = vpop.xlane.xlu0 %444 }
 0x423   :  { %v7944_v43 = vmul.f32 0.020833334, %v445_v42  ;;  %v458_v44 = vmul.f32 %v454_v41, %v454_v41  ;;  %v455_v45 = vsub.f32 %v7926_v31, %v7940_v40 }
 0x425   :  { %v462_v46 = vsel %vm436_vm7, %v458_v44, 0.0  ;;  %v459_v47 = vmul.f32 %v455_v45, %v455_v45  ;;  %v456_v48 = vsub.f32 %v7924_v30, %v7944_v43 }
 0x426   :  { %463 = vadd.xlane.f32.xlu0 %v462_v46  ;;  %v448_v49 = vpop.xlane.xlu0 %447 }
 0x427   :  { %v7951_v50 = vmul.f32 0.020833334, %v448_v49  ;;  %v465_v51 = vsel %vm436_vm7, %v459_v47, 0.0  ;;  %v460_v52 = vmul.f32 %v456_v48, %v456_v48 }
 0x428   :  { %466 = vadd.xlane.f32.xlu1 %v465_v51 }
 0x429   :  { %v468_v53 = vsel %vm436_vm7, %v460_v52, 0.0  ;;  %v457_v54 = vsub.f32 %v7932_v34, %v7951_v50 }
 0x42a   :  { %469 = vadd.xlane.f32.xlu0 %v468_v53 }
 0x42b   :  { %v461_v55 = vmul.f32 %v457_v54, %v457_v54 }
 0x42d   :  { %v471_v56 = vsel %vm436_vm7, %v461_v55, 0.0 }
 0x42e   :  { %472 = vadd.xlane.f32.xlu1 %v471_v56 }
 0x4b3   :  { %v464_v7 = vpop.xlane.xlu0 %463 }
 0x4b4   :  { %v474_v10 = vmul.f32 0.020833334, %v464_v7 }
 0x4b5   :  { %v467_v12 = vpop.xlane.xlu1 %466 }
 0x4b6   :  { %v478_v11 = vadd.f32 1e-05, %v474_v10  ;;  %v475_v14 = vmul.f32 0.020833334, %v467_v12  ;;  %v7087_v10 = vld [vmem:[%s9256_s9 + $0x68] sm:$0xff]  }
 0x4b7   :  { %v470_v17 = vpop.xlane.xlu0 %469 }
 0x4b8   :  { %7107 = vrsqrt.f32 %v478_v11  ;;  %v479_v16 = vadd.f32 1e-05, %v475_v14  ;;  %v476_v20 = vmul.f32 0.020833334, %v470_v17 }
 0x4ba   :  { %7109 = vrsqrt.f32 %v479_v16  ;;  %v480_v21 = vadd.f32 1e-05, %v476_v20 }
 0x4bb   :  { %v473_v22 = vpop.xlane.xlu1 %472 }
 0x4bc   :  { %7111 = vrsqrt.f32 %v480_v21  ;;  %v477_v23 = vmul.f32 0.020833334, %v473_v22 }
 0x4be   :  { %v481_v13 = vadd.f32 1e-05, %v477_v23 }
 0x4c0   :  { %7113 = vrsqrt.f32 %v481_v13 }
 0x4c2   :  { %v7108_v28 = vpop.eup %7107 }
 0x4c3   :  { %v492_v29 = vmul.f32 %v7108_v28, %v6091_v25 }
 0x4c4   :  { %v7110_v32 = vpop.eup %7109 }
 0x4c5   :  { %v496_v35 = vmul.f32 %v492_v29, %v7938_v38  ;;  %v493_v36 = vmul.f32 %v7110_v32, %v6091_v25  ;;  %v510_v41 = vmul.f32 %v492_v29, %v7922_v26  ;;  %v7086_v26 = vld [vmem:[%s9256_s9 + $0x60] sm:$0xff]   ;;  %v7088_v29 = vld [vmem:[%s9256_s9 + $0x70] sm:$0xff]   ;;  %s7672_s9 = smov 48  }
 0x4c6   :  { %v7112_v37 = vpop.eup %7111  ;;  %818 = vmatpush1.bf16.msra.mxu0 %v7086_v26 }
 0x4c7   :  { %v506_v39 = vsub.f32 %v6092_v33, %v496_v35  ;;  %v497_v42 = vmul.f32 %v493_v36, %v7940_v40  ;;  %v494_v44 = vmul.f32 %v7112_v37, %v6091_v25  ;;  %v511_v47 = vmul.f32 %v493_v36, %v7926_v31  ;;  %819 = vmatprep.subr.bf16.mxu0 %v7669_v58 }
 0x4c9   :  { %v514_v45 = vadd.f32 %v510_v41, %v506_v39  ;;  %v507_v46 = vsub.f32 %v6092_v33, %v497_v42  ;;  %v498_v48 = vmul.f32 %v494_v44, %v7944_v43  ;;  %v512_v51 = vmul.f32 %v494_v44, %v7924_v30 }
 0x4ca   :  { %v7114_v49 = vpop.eup %7113  ;;  %820 = vmatpush1.bf16.msra.mxu0 %v7087_v10 }
 0x4cb   :  { %v508_v52 = vsub.f32 %v6092_v33, %v498_v48  ;;  %v495_v53 = vmul.f32 %v7114_v49, %v6091_v25  ;;  %v515_v38 = vadd.f32 %v511_v47, %v507_v46  ;;  %v518_v54 = vmax.f32 %v514_v45, 0.0  ;;  %821 = vmatprep.subr.bf16.mxu0 %v7669_v58 }
 0x4cd   :  { %v516_v55 = vadd.f32 %v512_v51, %v508_v52  ;;  %v499_v40 = vmul.f32 %v495_v53, %v7951_v50  ;;  %v519_v56 = vmax.f32 %v515_v38, 0.0  ;;  %v560_v57 = vrot.slane %v518_v54, 6 }
 0x4ce   :  { %v513_v30 = vmul.f32 %v495_v53, %v7932_v34  ;;  %822 = vmatpush1.bf16.msra.mxu0 %v7088_v29 }
 0x4cf   :  { %v509_v31 = vsub.f32 %v6092_v33, %v499_v40  ;;  %v561_v43 = vrot.slane %v519_v56, 6  ;;  %v8026_v59 = vsel %vm559_vm8, 0.0, %v560_v57  ;;  %v520_v60 = vmax.f32 %v516_v55, 0.0 }
 0x4d0   :  { %v625_v62 = vrot.slane %v8026_v59, 3  ;;  %v602_v63 = vrot.slane %v8026_v59, 2  ;;  %v580_v4 = vrot.slane %v8026_v59, 1  ;;  %v648_v35 = vrot.slane %v8026_v59, 4 }
 0x4d1   :  { %v8029_v61 = vsel %vm559_vm8, %v560_v57, %v561_v43  ;;  %v574_v50 = vsel %vm559_vm8, %v561_v43, 0.0  ;;  %v517_v7 = vadd.f32 %v513_v30, %v509_v31  ;;  %v563_v13 = vrot.slane %v520_v60, 6 }
 0x4d2   :  { %v626_v0 = vrot.slane %v8029_v61, 3  ;;  %v628_v1 = vrot.slane %v574_v50, 3  ;;  %v603_v3 = vrot.slane %v8029_v61, 2  ;;  %v605_v34 = vrot.slane %v574_v50, 2 }
 0x4d3   :  { %v581_v5 = vrot.slane %v8029_v61, 1  ;;  %v583_v6 = vrot.slane %v574_v50, 1  ;;  %v521_v23 = vmax.f32 %v517_v7, 0.0  ;;  %v649_v25 = vrot.slane %v8029_v61, 4 }
 0x4d4   :  { %v627_v12 = vsel %vm624_vm9, %v625_v62, %v626_v0  ;;  %v629_v11 = vsel %vm624_vm9, %v626_v0, %v628_v1  ;;  %v604_v14 = vsel %vm304_vm4, %v602_v63, %v603_v3  ;;  %v606_v17 = vsel %vm304_vm4, %v603_v3, %v605_v34 }
 0x4d5   :  { %v7007_v16 = vpack.i.bf16 %v629_v11, %v627_v12  ;;  %v6997_v20 = vpack.i.bf16 %v606_v17, %v604_v14  ;;  %v582_v21 = vsel %vm281_vm3, %v580_v4, %v581_v5  ;;  %v584_v22 = vsel %vm281_vm3, %v581_v5, %v583_v6 }
 0x4d6   :  { %v651_v28 = vrot.slane %v574_v50, 4  ;;  %v564_v32 = vrot.slane %v521_v23, 6  ;;  %v8055_v33 = vsel %vm559_vm8, 0.0, %v563_v13  ;;  %v7012_v36 = vpack.i.bf16 %v584_v22, %v582_v21 }
 0x4d7   :  { %7008 = vrot.lane.b32.xlu1 %v7007_v16, %s7670_s7  ;;  %6998 = vrot.lane.b32.xlu0 %v6997_v20, %s7671_s28  ;;  %v607_v37 = vrot.slane %v8055_v33, 2  ;;  %v650_v42 = vsel %vm647_vm10, %v648_v35, %v649_v25  ;;  %v630_v49 = vrot.slane %v8055_v33, 3  ;;  %v585_v26 = vrot.slane %v8055_v33, 1 }
 0x4d8   :  { %v8060_v39 = vsel %vm559_vm8, %v563_v13, %v564_v32  ;;  %v575_v41 = vsel %vm559_vm8, %v564_v32, 0.0  ;;  %v652_v44 = vsel %vm647_vm10, %v649_v25, %v651_v28  ;;  %v653_v60 = vrot.slane %v8055_v33, 4 }
 0x4d9   :  { %v608_v45 = vrot.slane %v8060_v39, 2  ;;  %v610_v46 = vrot.slane %v575_v41, 2  ;;  %v586_v47 = vrot.slane %v8060_v39, 1  ;;  %v588_v48 = vrot.slane %v575_v41, 1 }
 0x4da   :  { %v631_v51 = vrot.slane %v8060_v39, 3  ;;  %v633_v52 = vrot.slane %v575_v41, 3  ;;  %v7017_v54 = vpack.i.bf16 %v652_v44, %v650_v42  ;;  %v654_v57 = vrot.slane %v8060_v39, 4 }
 0x4db   :  { %7013 = vrot.lane.b32.xlu1 %v7012_v36, %s7672_s9  ;;  %v609_v53 = vsel %vm304_vm4, %v607_v37, %v608_v45  ;;  %v611_v38 = vsel %vm304_vm4, %v608_v45, %v610_v46  ;;  %v587_v31 = vsel %vm281_vm3, %v585_v26, %v586_v47  ;;  %v589_v43 = vsel %vm281_vm3, %v586_v47, %v588_v48 }
 0x4dc   :  { %v7002_v55 = vpack.i.bf16 %v611_v38, %v609_v53  ;;  %v632_v40 = vsel %vm624_vm9, %v630_v49, %v631_v51  ;;  %v634_v56 = vsel %vm624_vm9, %v631_v51, %v633_v52  ;;  %v656_v30 = vrot.slane %v575_v41, 4 }
 0x4dd   :  { %v7022_v50 = vpack.i.bf16 %v634_v56, %v632_v40  ;;  %v7027_v62 = vpack.i.bf16 %v589_v43, %v587_v31  ;;  %v655_v63 = vsel %vm647_vm10, %v653_v60, %v654_v57 }
 0x4de   :  { %7003 = vrot.lane.b32.xlu0 %v7002_v55, %s7671_s28  ;;  %v657_v0 = vsel %vm647_vm10, %v654_v57, %v656_v30 }
 0x4df   :  { %7018 = vrot.lane.b32.xlu1 %v7017_v54, %s7668_s4  ;;  %v7032_v1 = vpack.i.bf16 %v657_v0, %v655_v63 }
 0x4e2   :  { %7028 = vrot.lane.b32.xlu0 %v7027_v62, %s7672_s9 }
 0x4e3   :  { %7023 = vrot.lane.b32.xlu1 %v7022_v50, %s7670_s7 }
 0x4e7   :  { %7033 = vrot.lane.b32.xlu1 %v7032_v1, %s7668_s4 }
 0x549   :  { %v7009_v3 = vpop.permute.xlu1 %7008  ;;  %v6999_v34 = vpop.permute.xlu0 %6998 }
 0x54a   :  { %v7011_v7 = vunpack.i.h.bf16 %v7009_v3  ;;  %v7010_v10 = vunpack.i.l.bf16 %v7009_v3  ;;  %v7001_v12 = vunpack.i.h.bf16 %v6999_v34  ;;  %v7000_v11 = vunpack.i.l.bf16 %v6999_v34 }
 0x54c   :  { %v679_v23 = vsel %vm99_vm0, %v7001_v12, %v7011_v7  ;;  %v678_v13 = vsel %vm99_vm0, %v7000_v11, %v7010_v10 }
 0x54d   :  { %v7014_v4 = vpop.permute.xlu1 %7013 }
 0x54e   :  { %v7016_v5 = vunpack.i.h.bf16 %v7014_v4  ;;  %v7015_v6 = vunpack.i.l.bf16 %v7014_v4 }
 0x550   :  { %v671_v14 = vsel %vm436_vm7, %v8029_v61, %v7016_v5  ;;  %v670_v17 = vsel %vm436_vm7, %v8026_v59, %v7015_v6  ;;  %v7004_v20 = vpop.permute.xlu0 %7003 }
 0x551   :  { %v7019_v16 = vpop.permute.xlu1 %7018  ;;  %v674_v25 = vsel %vm380_vm6, %v670_v17, %v7000_v11  ;;  %v675_v28 = vsel %vm380_vm6, %v671_v14, %v7001_v12  ;;  %v7006_v45 = vunpack.i.h.bf16 %v7004_v20  ;;  %v7005_v46 = vunpack.i.l.bf16 %v7004_v20 }
 0x552   :  { %v7021_v21 = vunpack.i.h.bf16 %v7019_v16  ;;  %v7020_v22 = vunpack.i.l.bf16 %v7019_v16  ;;  %v686_v36 = vpack.c.bf16 %v675_v28, %v674_v25 }
 0x554   :  { %v682_v29 = vsel %vm331_vm5, %v678_v13, %v7020_v22  ;;  %v683_v32 = vsel %vm331_vm5, %v679_v23, %v7021_v21  ;;  %v7029_v59 = vpop.permute.xlu0 %7028 }
 0x555   :  { %v7024_v61 = vpop.permute.xlu1 %7023  ;;  %v687_v35 = vpack.c.bf16 %v683_v32, %v682_v29  ;;  %v7031_v37 = vunpack.i.h.bf16 %v7029_v59  ;;  %v7030_v41 = vunpack.i.l.bf16 %v7029_v59 }
 0x556   :  { %v7026_v42 = vunpack.i.h.bf16 %v7024_v61  ;;  %v7025_v44 = vunpack.i.l.bf16 %v7024_v61 }
 0x557   :  { %6109 = vmatprep.mubr.msk.bf16.mxu0 %vm786_vm11, %v687_v35  ;;  %v672_v48 = vsel %vm436_vm7, %v8055_v33, %v7030_v41  ;;  %v673_v49 = vsel %vm436_vm7, %v8060_v39, %v7031_v37  ;;  %v6093_v33 = vld [vmem:[%s9257_s10] ss:$0 sm:$0xff] }
 0x558   :  { %826 = vmatmul.mubr.bf16.vlgmr.msra.gmra.mrb[4].mxu0 %v686_v36  ;;  %v680_v53 = vsel %vm99_vm0, %v7005_v46, %v7025_v44  ;;  %v681_v38 = vsel %vm99_vm0, %v7006_v45, %v7026_v42  ;;  %v676_v54 = vsel %vm380_vm6, %v672_v48, %v7005_v46  ;;  %v677_v26 = vsel %vm380_vm6, %v673_v49, %v7006_v45  ;;  %v930_v41 = vld [vmem:[%s9260_s13] sm:$0xff]  ;;  %v931_v42 = vld [vmem:[%s9260_s13 + $0x8] sm:$0xff]  ;;  %v932_v45 = vld [vmem:[%s9260_s13 + $0x10] sm:$0xff] }
 0x559   :  { %v7034_v47 = vpop.permute.xlu1 %7033  ;;  %v688_v57 = vpack.c.bf16 %v677_v26, %v676_v54  ;;  %v6757_v44 = vpack.c.bf16 %v931_v42, %v930_v41  ;;  %v933_v46 = vld [vmem:[%s9260_s13 + $0x18] sm:$0xff]  ;;  %v934_v48 = vld [vmem:[%s9261_s14] sm:$0xff]  ;;  %v935_v49 = vld [vmem:[%s9261_s14 + $0x8] sm:$0xff]  ;;  %v7675_v26 = vmov 0.0  }
 0x55a   :  { %v7036_v51 = vunpack.i.h.bf16 %v7034_v47  ;;  %v7035_v52 = vunpack.i.l.bf16 %v7034_v47  ;;  %v6761_v47 = vpack.c.bf16 %v933_v46, %v932_v45 }
 0x55b   :  { %6758 = vmatprep.subr.bf16.mxu1 %v6757_v44 }
 0x55c   :  { %v684_v55 = vsel %vm331_vm5, %v680_v53, %v7035_v52  ;;  %v685_v40 = vsel %vm331_vm5, %v681_v38, %v7036_v51  ;;  %6760 = vmatpush3.bf16.msra.mxu1 %v6757_v44  ;;  %v7673_v51 = vmov 0.0|0.0   ;;  %v8164_v52 = vpack.c.bf16 %v935_v49, %v934_v48  ;;  %v936_v53 = vld [vmem:[%s9261_s14 + $0x10] sm:$0xff]  ;;  %v937_v38 = vld [vmem:[%s9261_s14 + $0x18] sm:$0xff] }
 0x55d   :  { %v689_v56 = vpack.c.bf16 %v685_v40, %v684_v55  ;;  %6762 = vmatprep.subr.bf16.mxu1 %v6761_v47  ;;  %6831 = vmatprep.subr.bf16.mxu0 %v7673_v51  ;;  %v8175_v54 = vpack.c.bf16 %v937_v38, %v936_v53 }
 0x55e   :  { %6833 = vmatpush3.bf16.msra.mxu0 %v8164_v52 }
 0x55f   :  { %6110 = vmatprep.mubr.msk.bf16.mxu0 %vm786_vm11, %v689_v56  ;;  %6834 = vmatprep.subr.bf16.mxu0 %v7673_v51 }
 0x560   :  { %834 = vmatmul.mubr.bf16.gmra.mrb[8].mxu0 %v688_v57  ;;  %6764 = vmatpush3.bf16.msra.mxu1 %v6761_v47 }
 0x561   :  { %6765 = vmatprep.subr.bf16.mxu1 %v7673_v51  ;;  %6520 = vmatprep.mubr.msk.f32.mxu0 %vm7674_vm12, %v7675_v26 }
 0x562   :  { %6836 = vmatpush3.bf16.msra.mxu0 %v8175_v54 }
 0x563   :  { %6843 = vmatprep.subr.bf16.mxu0 %v7673_v51 }
 0x62b   :  { %v827_v39 = vpop.f32.mrb[4].mxu0 }
 0x62c   :  { %v8109_v31 = vadd.f32 %v6093_v33, %v827_v39  ;;  %v829_v43 = vpop.f32.mrb[5].mxu0 }
 0x62d   :  { %v830_v30 = vpop.f32.mrb[6].mxu0 }
 0x62e   :  { %v8111_v60 = vadd.f32 %v6093_v33, %v830_v30  ;;  %v832_v50 = vpop.f32.mrb[7].mxu0  ;;  %v842_v62 = vsel %vm155_vm1, %v8109_v31, 0.0 }
 0x62f   :  { %843 = vadd.xlane.f32.xlu0 %v842_v62 }
 0x630   :  { %v845_v63 = vsel %vm155_vm1, %v8111_v60, 0.0 }
 0x631   :  { %846 = vadd.xlane.f32.xlu1 %v845_v63  ;;  %v6111_v63 = vld [vmem:[%s9258_s11] ss:$0 sm:$0xff] }
 0x633   :  { %v835_v0 = vpop.f32.mrb[8].mxu0 }
 0x634   :  { %v8117_v1 = vadd.f32 %v6093_v33, %v835_v0  ;;  %v837_v3 = vpop.f32.mrb[9].mxu0 }
 0x635   :  { %v838_v34 = vpop.f32.mrb[10].mxu0 }
 0x636   :  { %v8119_v4 = vadd.f32 %v6093_v33, %v838_v34  ;;  %v840_v5 = vpop.f32.mrb[11].mxu0  ;;  %v848_v6 = vsel %vm155_vm1, %v8117_v1, 0.0 }
 0x637   :  { %849 = vadd.xlane.f32.xlu0 %v848_v6 }
 0x638   :  { %v851_v7 = vsel %vm155_vm1, %v8119_v4, 0.0 }
 0x63b   :  { %852 = vadd.xlane.f32.xlu0 %v851_v7  ;;  %v6112_v7 = vld [vmem:[%s9259_s12] ss:$0 sm:$0xff] }
 0x6bc   :  { %v844_v10 = vpop.xlane.xlu0 %843 }
 0x6bd   :  { %v8125_v12 = vmul.f32 0.03125, %v844_v10 }
 0x6be   :  { %v847_v11 = vpop.xlane.xlu1 %846 }
 0x6bf   :  { %v8127_v14 = vmul.f32 0.03125, %v847_v11  ;;  %v858_v17 = vsub.f32 %v8109_v31, %v8125_v12 }
 0x6c1   :  { %v862_v16 = vmul.f32 %v858_v17, %v858_v17  ;;  %v859_v20 = vsub.f32 %v8111_v60, %v8127_v14 }
 0x6c3   :  { %v866_v21 = vsel %vm155_vm1, %v862_v16, 0.0  ;;  %v863_v22 = vmul.f32 %v859_v20, %v859_v20 }
 0x6c4   :  { %867 = vadd.xlane.f32.xlu0 %v866_v21  ;;  %v850_v23 = vpop.xlane.xlu0 %849 }
 0x6c5   :  { %v8134_v13 = vmul.f32 0.03125, %v850_v23  ;;  %v869_v25 = vsel %vm155_vm1, %v863_v22, 0.0 }
 0x6c6   :  { %870 = vadd.xlane.f32.xlu1 %v869_v25 }
 0x6c7   :  { %v860_v28 = vsub.f32 %v8117_v1, %v8134_v13 }
 0x6c8   :  { %v853_v29 = vpop.xlane.xlu0 %852 }
 0x6c9   :  { %v8139_v32 = vmul.f32 0.03125, %v853_v29  ;;  %v864_v61 = vmul.f32 %v860_v28, %v860_v28 }
 0x6cb   :  { %v872_v35 = vsel %vm155_vm1, %v864_v61, 0.0  ;;  %v861_v59 = vsub.f32 %v8119_v4, %v8139_v32 }
 0x6cc   :  { %873 = vadd.xlane.f32.xlu0 %v872_v35 }
 0x6cd   :  { %v865_v36 = vmul.f32 %v861_v59, %v861_v59 }
 0x6cf   :  { %v875_v37 = vsel %vm155_vm1, %v865_v36, 0.0 }
 0x6d0   :  { %876 = vadd.xlane.f32.xlu1 %v875_v37 }
 0x751   :  { %v868_v55 = vpop.xlane.xlu0 %867 }
 0x752   :  { %v878_v40 = vmul.f32 0.03125, %v868_v55 }
 0x753   :  { %v871_v56 = vpop.xlane.xlu1 %870 }
 0x754   :  { %v882_v57 = vadd.f32 1e-05, %v878_v40  ;;  %v879_v33 = vmul.f32 0.03125, %v871_v56 }
 0x756   :  { %7115 = vrsqrt.f32 %v882_v57  ;;  %v883_v39 = vadd.f32 1e-05, %v879_v33 }
 0x758   :  { %7117 = vrsqrt.f32 %v883_v39 }
 0x759   :  { %v874_v43 = vpop.xlane.xlu0 %873 }
 0x75a   :  { %v880_v30 = vmul.f32 0.03125, %v874_v43 }
 0x75c   :  { %v884_v50 = vadd.f32 1e-05, %v880_v30 }
 0x75d   :  { %v877_v62 = vpop.xlane.xlu1 %876 }
 0x75e   :  { %7119 = vrsqrt.f32 %v884_v50  ;;  %v881_v0 = vmul.f32 0.03125, %v877_v62 }
 0x760   :  { %v7116_v3 = vpop.eup %7115  ;;  %v885_v34 = vadd.f32 1e-05, %v881_v0 }
 0x761   :  { %v896_v5 = vmul.f32 %v7116_v3, %v6111_v63 }
 0x762   :  { %v7118_v6 = vpop.eup %7117  ;;  %7121 = vrsqrt.f32 %v885_v34 }
 0x763   :  { %v897_v10 = vmul.f32 %v7118_v6, %v6111_v63  ;;  %v900_v11 = vmul.f32 %v896_v5, %v8125_v12  ;;  %v914_v20 = vmul.f32 %v896_v5, %v8109_v31 }
 0x765   :  { %v901_v17 = vmul.f32 %v897_v10, %v8127_v14  ;;  %v910_v16 = vsub.f32 %v6112_v7, %v900_v11  ;;  %v915_v21 = vmul.f32 %v897_v10, %v8111_v60 }
 0x767   :  { %v918_v22 = vadd.f32 %v914_v20, %v910_v16  ;;  %v911_v23 = vsub.f32 %v6112_v7, %v901_v17 }
 0x768   :  { %v7120_v25 = vpop.eup %7119 }
 0x769   :  { %v898_v28 = vmul.f32 %v7120_v25, %v6111_v63  ;;  %v922_v29 = vmax.f32 %v918_v22, 0.0  ;;  %v919_v61 = vadd.f32 %v915_v21, %v911_v23 }
 0x76b   :  { %v926_v35 = vadd.f32 %v922_v29, %v237_v8  ;;  %v923_v59 = vmax.f32 %v919_v61, 0.0  ;;  %v902_v36 = vmul.f32 %v898_v28, %v8134_v13  ;;  %v916_v14 = vmul.f32 %v898_v28, %v8117_v1 }
 0x76c   :  { %v7122_v12 = vpop.eup %7121 }
 0x76d   :  { %v899_v37 = vmul.f32 %v7122_v12, %v6111_v63  ;;  %6385 = vmatprep.mubr.msk.f32.mxu1 %vm155_vm1, %v926_v35  ;;  %v927_v31 = vadd.f32 %v923_v59, %v238_v19  ;;  %v912_v60 = vsub.f32 %v6112_v7, %v902_v36 }
 0x76f   :  { %6386 = vmatmul.mubr.msk.f32.vlgmr.msra.gmra.mrb[4].mxu1 %vm155_vm1, %v927_v31  ;;  %v920_v41 = vadd.f32 %v916_v14, %v912_v60  ;;  %v903_v42 = vmul.f32 %v899_v37, %v8139_v32  ;;  %v917_v13 = vmul.f32 %v899_v37, %v8119_v4 }
 0x770   :  { %6767 = vmatpush3.bf16.msra.mxu1 %v8164_v52 }
 0x771   :  { %v924_v2 = vmax.f32 %v920_v41, 0.0  ;;  %v913_v8 = vsub.f32 %v6112_v7, %v903_v42  ;;  %6768 = vmatprep.subr.bf16.mxu1 %v7673_v51 }
 0x773   :  { %v928_v15 = vadd.f32 %v924_v2, %v239_v9  ;;  %v921_v19 = vadd.f32 %v917_v13, %v913_v8 }
 0x774   :  { %6770 = vmatpush3.bf16.msra.mxu1 %v8175_v54 }
 0x775   :  { %6388 = vmatprep.mubr.msk.f32.mxu1 %vm155_vm1, %v928_v15  ;;  %v925_v1 = vmax.f32 %v921_v19, 0.0  ;;  %6771 = vmatprep.subr.bf16.mxu1 %v7673_v51 }
 0x777   :  { %v929_v32 = vadd.f32 %v925_v1, %v240_v27 }
 0x779   :  { %6389 = vmatmul.mubr.msk.f32.gmra.mrb[6].mxu1 %vm155_vm1, %v929_v32 }
 0x77a   :  { %6399 = vmatprep.mubr.msk.f32.mxu1 %vm7674_vm12, %v7675_v26 }
 0x77d   :  { %6400 = vmatmul.mubr.f32.vlgmr.msra.gmra.mrb[8].mxu1 %v7675_v26 }
 0x77e   :  { %6773 = vmatpush3.bf16.msra.mxu1 %v8164_v52  ;;  %6410 = vmatprep.mubr.msk.f32.mxu1 %vm7674_vm12, %v7675_v26 }
 0x77f   :  { %6774 = vmatprep.subr.bf16.mxu1 %v7673_v51 }
 0x782   :  { %6776 = vmatpush3.bf16.msra.mxu1 %v8175_v54 }
 0x783   :  { %6777 = vmatprep.subr.bf16.mxu1 %v7673_v51 }
 0x842   :  { %v6387_v9 = vpop.f32.mrb[4].mxu1 }
 0x843   :  { %v1029_v24 = vadd.f32 %v6387_v9, %v6113_v18  ;;  %v1023_v27 = vpop.f32.mrb[5].mxu1 }
 0x844   :  { %v1024_v4 = vadd.f32 %v6113_v18, %v1023_v27 }
 0x845   :  { %1043 = vst [vmem:[#allocation2 + $0x8] sm:$0xff] %v1029_v24 }
 0x846   :  { %1042 = vst [vmem:[#allocation2] sm:$0xff] %v1024_v4 }
 0x84c   :  { %v6390_v44 = vpop.f32.mrb[6].mxu1 }
 0x84d   :  { %v1039_v45 = vadd.f32 %v6390_v44, %v6113_v18  ;;  %v1033_v46 = vpop.f32.mrb[7].mxu1  ;;  %v1046_v48 = vld [vmem:[#allocation2] sm:$0x1]  ;;  %v1186_v31 = vld [vmem:[#allocation2 + $0x1] sm:$0x1] }
 0x84e   :  { %v1034_v47 = vadd.f32 %v6113_v18, %v1033_v46 }
 0x84f   :  { %1045 = vst [vmem:[#allocation2 + $0x18] sm:$0xff] %v1039_v45 }
 0x850   :  { %1044 = vst [vmem:[#allocation2 + $0x10] sm:$0xff] %v1034_v47  ;;  %v1117_v49 = vpop.f32.mrb[8].mxu1 }
 0x851   :  { %v1125_v53 = vadd.f32 %v1117_v49, %v1046_v48  ;;  %v6401_v38 = vpop.f32.mrb[9].mxu1  ;;  %v1122_v55 = vrot.slane %v1117_v49, 1 }
 0x853   :  { %7123 = vtanh.f32 %v1125_v53  ;;  %v1127_v43 = vsub.f32 0.0, %v1125_v53 }
 0x855   :  { %v1129_v50 = vmul.f32 1.442695, %v1127_v43 }
 0x857   :  { %v1047_v40 = vld [vmem:[#allocation2 + $0x10] sm:$0x1]  ;;  %v1187_v2 = vld [vmem:[#allocation2 + $0x11] sm:$0x1] }
 0x858   :  { %v1126_v56 = vadd.f32 %v1122_v55, %v1047_v40 }
 0x85a   :  { %7125 = vtanh.f32 %v1126_v56  ;;  %v1128_v39 = vsub.f32 0.0, %v1126_v56 }
 0x85c   :  { %v1131_v30 = vmul.f32 1.442695, %v1128_v39 }
 0x85d   :  { %v7124_v57 = vpop.eup %7123 }
 0x85e   :  { %1145 = vrot.lane.b32.xlu1 %v7124_v57, %s7668_s4  ;;  %7127 = vpow2.f32 %v1131_v30 }
 0x85f   :  { %7129 = vpow2.f32 %v1129_v50 }
 0x864   :  { %v7126_v33 = vpop.eup %7125 }
 0x865   :  { %1147 = vrot.lane.b32.xlu0 %v7126_v33, %s7668_s4 }
 0x868   :  { %v7128_v62 = vpop.eup %7127 }
 0x869   :  { %v1134_v63 = vadd.f32 1.0, %v7128_v62  ;;  %v7130_v0 = vpop.eup %7129 }
 0x86a   :  { %v1133_v3 = vadd.f32 1.0, %v7130_v0 }
 0x86b   :  { %7131 = vrcp.f32 %v1134_v63 }
 0x86c   :  { %7133 = vrcp.f32 %v1133_v3 }
 0x875   :  { %v7132_v34 = vpop.eup %7131 }
 0x876   :  { %v7134_v10 = vpop.eup %7133  ;;  %v1142_v17 = vmul.f32 0.0, %v7132_v34 }
 0x877   :  { %v1141_v21 = vmul.f32 0.0, %v7134_v10 }
 0x8d0   :  { %v1146_v7 = vpop.permute.xlu1 %1145 }
 0x8d1   :  { %v1151_v11 = vmul.f32 %v7134_v10, %v1146_v7 }
 0x8d7   :  { %v1148_v5 = vpop.permute.xlu0 %1147 }
 0x8d8   :  { %v1152_v6 = vmul.f32 %v7132_v34, %v1148_v5 }
 0x8da   :  { %1157 = vrot.lane.b32.xlu1 %v1152_v6, %s7667_s24 }
 0x8de   :  { %1155 = vrot.lane.b32.xlu1 %v1151_v11, %s7667_s24  ;;  %v1330_v11 = vld [vmem:[#allocation2 + $0x12] sm:$0x1] }
 0x94c   :  { %v1158_v16 = vpop.permute.xlu1 %1157 }
 0x94d   :  { %v1162_v20 = vadd.f32 %v1158_v16, %v1142_v17 }
 0x94f   :  { %7135 = vtanh.f32 %v1162_v20 }
 0x950   :  { %v1156_v22 = vpop.permute.xlu1 %1155 }
 0x951   :  { %v1161_v23 = vadd.f32 %v1156_v22, %v1141_v21 }
 0x953   :  { %7137 = vtanh.f32 %v1161_v23 }
 0x959   :  { %v7136_v25 = vpop.eup %7135 }
 0x95a   :  { %1169 = vrot.lane.b32.xlu0 %v7136_v25, %s7668_s4 }
 0x95d   :  { %v7138_v28 = vpop.eup %7137 }
 0x95e   :  { %1167 = vrot.lane.b32.xlu1 %v7138_v28, %s7668_s4 }
 0x9cc   :  { %v1170_v29 = vpop.permute.xlu0 %1169 }
 0x9cd   :  { %v8229_v61 = vmul.f32 %v7132_v34, %v1170_v29  ;;  %v1329_v34 = vld [vmem:[#allocation2 + $0x2] sm:$0x1] }
 0x9cf   :  { %v1188_v59 = vrot.slane %v8229_v61, 7 }
 0x9d0   :  { %v1168_v35 = vpop.permute.xlu1 %1167 }
 0x9d1   :  { %v8232_v36 = vmul.f32 %v7134_v10, %v1168_v35 }
 0x9d3   :  { %v1190_v12 = vsel %vm1189_vm13, %v1188_v59, %v8232_v36 }
 0x9d4   :  { %1191 = vrot.lane.b32.xlu0 %v1190_v12, %s7667_s24 }
 0xa46   :  { %v1192_v37 = vpop.permute.xlu0 %1191 }
 0xa47   :  { %6411 = vmatmul.mubr.msk.f32.vlgmr.msra.gmra.mrb[10].mxu1 %vm155_vm1, %v1192_v37 }
 0xa48   :  { %6779 = vmatpush3.bf16.msra.mxu1 %v8164_v52  ;;  %6421 = vmatprep.mubr.msk.f32.mxu1 %vm7674_vm12, %v7675_v26 }
 0xa49   :  { %6780 = vmatprep.subr.bf16.mxu1 %v7673_v51 }
 0xa4c   :  { %6782 = vmatpush3.bf16.msra.mxu1 %v8175_v54 }
 0xa4d   :  { %6783 = vmatprep.subr.bf16.mxu1 %v7673_v51 }
 0xb1a   :  { %v1261_v60 = vpop.f32.mrb[10].mxu1 }
 0xb1b   :  { %v1266_v14 = vrot.slane %v1261_v60, 1  ;;  %v1269_v41 = vadd.f32 %v1261_v60, %v1186_v31  ;;  %v6412_v42 = vpop.f32.mrb[11].mxu1 }
 0xb1d   :  { %v1270_v8 = vadd.f32 %v1266_v14, %v1187_v2  ;;  %7139 = vtanh.f32 %v1269_v41  ;;  %v1271_v19 = vsub.f32 0.0, %v1269_v41 }
 0xb1f   :  { %7141 = vtanh.f32 %v1270_v8  ;;  %v1272_v1 = vsub.f32 0.0, %v1270_v8  ;;  %v1273_v32 = vmul.f32 1.442695, %v1271_v19 }
 0xb21   :  { %v1275_v18 = vmul.f32 1.442695, %v1272_v1  ;;  %7143 = vpow2.f32 %v1273_v32 }
 0xb23   :  { %7145 = vpow2.f32 %v1275_v18 }
 0xb27   :  { %v7140_v13 = vpop.eup %7139 }
 0xb28   :  { %1289 = vrot.lane.b32.xlu0 %v7140_v13, %s7668_s4 }
 0xb29   :  { %v7142_v15 = vpop.eup %7141 }
 0xb2a   :  { %1291 = vrot.lane.b32.xlu1 %v7142_v15, %s7668_s4 }
 0xb2b   :  { %v7144_v9 = vpop.eup %7143 }
 0xb2c   :  { %v1277_v27 = vadd.f32 1.0, %v7144_v9 }
 0xb2d   :  { %v7146_v24 = vpop.eup %7145 }
 0xb2e   :  { %v1278_v4 = vadd.f32 1.0, %v7146_v24  ;;  %7147 = vrcp.f32 %v1277_v27 }
 0xb30   :  { %7149 = vrcp.f32 %v1278_v4 }
 0xb38   :  { %v7148_v44 = vpop.eup %7147 }
 0xb39   :  { %v1285_v53 = vmul.f32 %v7148_v44, %v1161_v23 }
 0xb3a   :  { %v7150_v47 = vpop.eup %7149 }
 0xb3b   :  { %v1286_v40 = vmul.f32 %v7150_v47, %v1162_v20 }
 0xb9a   :  { %v1290_v45 = vpop.permute.xlu0 %1289 }
 0xb9b   :  { %v1295_v46 = vmul.f32 %v7148_v44, %v1290_v45 }
 0xb9c   :  { %v1292_v48 = vpop.permute.xlu1 %1291 }
 0xb9d   :  { %v1296_v49 = vmul.f32 %v7150_v47, %v1292_v48  ;;  %1299 = vrot.lane.b32.xlu0 %v1295_v46, %s7667_s24  ;;  %v1471_v46 = vld [vmem:[#allocation2 + $0x3] sm:$0x1] }
 0xb9f   :  { %1301 = vrot.lane.b32.xlu1 %v1296_v49, %s7667_s24 }
 0xc0f   :  { %v1300_v38 = vpop.permute.xlu0 %1299 }
 0xc10   :  { %v1305_v55 = vadd.f32 %v1300_v38, %v1285_v53  ;;  %v1472_v38 = vld [vmem:[#allocation2 + $0x13] sm:$0x1] }
 0xc11   :  { %v1302_v56 = vpop.permute.xlu1 %1301 }
 0xc12   :  { %7151 = vtanh.f32 %v1305_v55  ;;  %v1306_v57 = vadd.f32 %v1302_v56, %v1286_v40 }
 0xc14   :  { %7153 = vtanh.f32 %v1306_v57 }
 0xc1c   :  { %v7152_v33 = vpop.eup %7151 }
 0xc1d   :  { %1311 = vrot.lane.b32.xlu0 %v7152_v33, %s7668_s4 }
 0xc1e   :  { %v7154_v39 = vpop.eup %7153 }
 0xc1f   :  { %1313 = vrot.lane.b32.xlu1 %v7154_v39, %s7668_s4 }
 0xc8f   :  { %v1312_v43 = vpop.permute.xlu0 %1311 }
 0xc90   :  { %v8252_v62 = vmul.f32 %v7148_v44, %v1312_v43 }
 0xc91   :  { %v1314_v30 = vpop.permute.xlu1 %1313 }
 0xc92   :  { %v8250_v50 = vmul.f32 %v7150_v47, %v1314_v30 }
 0xc94   :  { %v1331_v63 = vrot.slane %v8250_v50, 7 }
 0xc96   :  { %v1332_v0 = vsel %vm1189_vm13, %v1331_v63, %v8252_v62 }
 0xc97   :  { %1333 = vrot.lane.b32.xlu1 %v1332_v0, %s7667_s24 }
 0xd09   :  { %v1334_v3 = vpop.permute.xlu1 %1333 }
 0xd0a   :  { %6422 = vmatmul.mubr.msk.f32.vlgmr.msra.gmra.mrb[12].mxu1 %vm155_vm1, %v1334_v3 }
 0xd0b   :  { %6785 = vmatpush3.bf16.msra.mxu1 %v8164_v52  ;;  %6432 = vmatprep.mubr.msk.f32.mxu1 %vm7674_vm12, %v7675_v26 }
 0xd0c   :  { %6786 = vmatprep.subr.bf16.mxu1 %v7673_v51 }
 0xd0f   :  { %6788 = vmatpush3.bf16.msra.mxu1 %v8175_v54 }
 0xd10   :  { %6789 = vmatprep.subr.bf16.mxu1 %v7673_v51 }
 0xddd   :  { %v1403_v5 = vpop.f32.mrb[12].mxu1 }
 0xdde   :  { %v1408_v6 = vrot.slane %v1403_v5, 1  ;;  %v1411_v7 = vadd.f32 %v1403_v5, %v1329_v34  ;;  %v6423_v10 = vpop.f32.mrb[13].mxu1 }
 0xde0   :  { %v1412_v17 = vadd.f32 %v1408_v6, %v1330_v11  ;;  %7155 = vtanh.f32 %v1411_v7  ;;  %v1413_v21 = vsub.f32 0.0, %v1411_v7 }
 0xde2   :  { %7157 = vtanh.f32 %v1412_v17  ;;  %v1414_v22 = vsub.f32 0.0, %v1412_v17  ;;  %v1415_v23 = vmul.f32 1.442695, %v1413_v21 }
 0xde4   :  { %v1417_v25 = vmul.f32 1.442695, %v1414_v22  ;;  %7159 = vpow2.f32 %v1415_v23 }
 0xde6   :  { %7161 = vpow2.f32 %v1417_v25 }
 0xdea   :  { %v7156_v16 = vpop.eup %7155 }
 0xdeb   :  { %1431 = vrot.lane.b32.xlu1 %v7156_v16, %s7668_s4 }
 0xdec   :  { %v7158_v20 = vpop.eup %7157 }
 0xded   :  { %1433 = vrot.lane.b32.xlu0 %v7158_v20, %s7668_s4 }
 0xdee   :  { %v7160_v28 = vpop.eup %7159 }
 0xdef   :  { %v1419_v35 = vadd.f32 1.0, %v7160_v28 }
 0xdf0   :  { %v7162_v29 = vpop.eup %7161 }
 0xdf1   :  { %v1420_v59 = vadd.f32 1.0, %v7162_v29  ;;  %7163 = vrcp.f32 %v1419_v35 }
 0xdf3   :  { %7165 = vrcp.f32 %v1420_v59 }
 0xdfb   :  { %v7164_v12 = vpop.eup %7163 }
 0xdfc   :  { %v1427_v42 = vmul.f32 %v7164_v12, %v1305_v55 }
 0xdfd   :  { %v7166_v60 = vpop.eup %7165 }
 0xdfe   :  { %v1428_v13 = vmul.f32 %v7166_v60, %v1306_v57 }
 0xe5d   :  { %v1432_v37 = vpop.permute.xlu1 %1431 }
 0xe5e   :  { %v1437_v31 = vmul.f32 %v7164_v12, %v1432_v37 }
 0xe5f   :  { %v1434_v14 = vpop.permute.xlu0 %1433 }
 0xe60   :  { %v1438_v41 = vmul.f32 %v7166_v60, %v1434_v14  ;;  %1441 = vrot.lane.b32.xlu1 %v1437_v31, %s7667_s24  ;;  %v1613_v14 = vld [vmem:[#allocation2 + $0x4] sm:$0x1] }
 0xe62   :  { %1443 = vrot.lane.b32.xlu0 %v1438_v41, %s7667_s24 }
 0xed2   :  { %v1442_v2 = vpop.permute.xlu1 %1441 }
 0xed3   :  { %v1447_v8 = vadd.f32 %v1442_v2, %v1427_v42 }
 0xed4   :  { %v1444_v15 = vpop.permute.xlu0 %1443 }
 0xed5   :  { %7167 = vtanh.f32 %v1447_v8  ;;  %v1448_v19 = vadd.f32 %v1444_v15, %v1428_v13  ;;  %v1614_v13 = vld [vmem:[#allocation2 + $0x14] sm:$0x1] }
 0xed7   :  { %7169 = vtanh.f32 %v1448_v19 }
 0xedf   :  { %v7168_v1 = vpop.eup %7167 }
 0xee0   :  { %1453 = vrot.lane.b32.xlu1 %v7168_v1, %s7668_s4 }
 0xee1   :  { %v7170_v32 = vpop.eup %7169 }
 0xee2   :  { %1455 = vrot.lane.b32.xlu0 %v7170_v32, %s7668_s4 }
 0xf52   :  { %v1454_v18 = vpop.permute.xlu1 %1453 }
 0xf53   :  { %v8273_v27 = vmul.f32 %v7164_v12, %v1454_v18 }
 0xf54   :  { %v1456_v9 = vpop.permute.xlu0 %1455 }
 0xf55   :  { %v8271_v24 = vmul.f32 %v7166_v60, %v1456_v9 }
 0xf57   :  { %v1473_v4 = vrot.slane %v8271_v24, 7 }
 0xf59   :  { %v1474_v44 = vsel %vm1189_vm13, %v1473_v4, %v8273_v27 }
 0xf5a   :  { %1475 = vrot.lane.b32.xlu0 %v1474_v44, %s7667_s24 }
 0xfcc   :  { %v1476_v45 = vpop.permute.xlu0 %1475 }
 0xfcd   :  { %6433 = vmatmul.mubr.msk.f32.vlgmr.msra.gmra.mrb[14].mxu1 %vm155_vm1, %v1476_v45 }
 0xfce   :  { %6791 = vmatpush3.bf16.msra.mxu1 %v8164_v52  ;;  %6443 = vmatprep.mubr.msk.f32.mxu1 %vm7674_vm12, %v7675_v26 }
 0xfcf   :  { %6792 = vmatprep.subr.bf16.mxu1 %v7673_v51 }
 0xfd2   :  { %6794 = vmatpush3.bf16.msra.mxu1 %v8175_v54 }
 0xfd3   :  { %6795 = vmatprep.subr.bf16.mxu1 %v7673_v51 }
0x10a0   :  { %v1545_v47 = vpop.f32.mrb[14].mxu1 }
0x10a1   :  { %v1550_v48 = vrot.slane %v1545_v47, 1  ;;  %v1553_v49 = vadd.f32 %v1545_v47, %v1471_v46  ;;  %v6434_v53 = vpop.f32.mrb[15].mxu1 }
0x10a3   :  { %v1554_v55 = vadd.f32 %v1550_v48, %v1472_v38  ;;  %7171 = vtanh.f32 %v1553_v49  ;;  %v1555_v57 = vsub.f32 0.0, %v1553_v49 }
0x10a5   :  { %7173 = vtanh.f32 %v1554_v55  ;;  %v1556_v33 = vsub.f32 0.0, %v1554_v55  ;;  %v1557_v39 = vmul.f32 1.442695, %v1555_v57 }
0x10a7   :  { %v1559_v43 = vmul.f32 1.442695, %v1556_v33  ;;  %7175 = vpow2.f32 %v1557_v39 }
0x10a9   :  { %7177 = vpow2.f32 %v1559_v43 }
0x10ad   :  { %v7172_v40 = vpop.eup %7171 }
0x10ae   :  { %1573 = vrot.lane.b32.xlu0 %v7172_v40, %s7668_s4 }
0x10af   :  { %v7174_v56 = vpop.eup %7173 }
0x10b0   :  { %1575 = vrot.lane.b32.xlu1 %v7174_v56, %s7668_s4 }
0x10b1   :  { %v7176_v30 = vpop.eup %7175 }
0x10b2   :  { %v1561_v0 = vadd.f32 1.0, %v7176_v30 }
0x10b3   :  { %v7178_v63 = vpop.eup %7177 }
0x10b4   :  { %v1562_v3 = vadd.f32 1.0, %v7178_v63  ;;  %7179 = vrcp.f32 %v1561_v0 }
0x10b6   :  { %7181 = vrcp.f32 %v1562_v3 }
0x10be   :  { %v7180_v34 = vpop.eup %7179 }
0x10bf   :  { %v1569_v17 = vmul.f32 %v7180_v34, %v1447_v8 }
0x10c0   :  { %v7182_v7 = vpop.eup %7181 }
0x10c1   :  { %v1570_v21 = vmul.f32 %v7182_v7, %v1448_v19 }
0x1120   :  { %v1574_v5 = vpop.permute.xlu0 %1573 }
0x1121   :  { %v1579_v6 = vmul.f32 %v7180_v34, %v1574_v5 }
0x1122   :  { %v1576_v10 = vpop.permute.xlu1 %1575 }
0x1123   :  { %v1580_v11 = vmul.f32 %v7182_v7, %v1576_v10  ;;  %1583 = vrot.lane.b32.xlu0 %v1579_v6, %s7667_s24 }
0x1125   :  { %1585 = vrot.lane.b32.xlu1 %v1580_v11, %s7667_s24 }
0x1195   :  { %v1584_v16 = vpop.permute.xlu0 %1583 }
0x1196   :  { %v1589_v20 = vadd.f32 %v1584_v16, %v1569_v17  ;;  %v1755_v17 = vld [vmem:[#allocation2 + $0x5] sm:$0x1] }
0x1197   :  { %v1586_v22 = vpop.permute.xlu1 %1585 }
0x1198   :  { %7183 = vtanh.f32 %v1589_v20  ;;  %v1590_v23 = vadd.f32 %v1586_v22, %v1570_v21 }
0x119a   :  { %7185 = vtanh.f32 %v1590_v23 }
0x11a2   :  { %v7184_v25 = vpop.eup %7183 }
0x11a3   :  { %1595 = vrot.lane.b32.xlu0 %v7184_v25, %s7668_s4 }
0x11a4   :  { %v7186_v28 = vpop.eup %7185 }
0x11a5   :  { %1597 = vrot.lane.b32.xlu1 %v7186_v28, %s7668_s4 }
0x1215   :  { %v1596_v29 = vpop.permute.xlu0 %1595 }
0x1216   :  { %v8294_v12 = vmul.f32 %v7180_v34, %v1596_v29 }
0x1217   :  { %v1598_v35 = vpop.permute.xlu1 %1597 }
0x1218   :  { %v8292_v59 = vmul.f32 %v7182_v7, %v1598_v35 }
0x121a   :  { %v1615_v37 = vrot.slane %v8292_v59, 7 }
0x121c   :  { %v1616_v31 = vsel %vm1189_vm13, %v1615_v37, %v8294_v12 }
0x121d   :  { %1617 = vrot.lane.b32.xlu1 %v1616_v31, %s7667_s24 }
0x128f   :  { %v1618_v60 = vpop.permute.xlu1 %1617 }
0x1290   :  { %6444 = vmatmul.mubr.msk.f32.vlgmr.msra.gmra.mrb[16].mxu1 %vm155_vm1, %v1618_v60 }
0x1291   :  { %6797 = vmatpush3.bf16.msra.mxu1 %v8164_v52  ;;  %6454 = vmatprep.mubr.msk.f32.mxu1 %vm7674_vm12, %v7675_v26 }
0x1292   :  { %6798 = vmatprep.subr.bf16.mxu1 %v7673_v51 }
0x1295   :  { %6800 = vmatpush3.bf16.msra.mxu1 %v8175_v54 }
0x1296   :  { %6801 = vmatprep.subr.bf16.mxu1 %v7673_v51 }
0x1363   :  { %v1687_v41 = vpop.f32.mrb[16].mxu1 }
0x1364   :  { %v1692_v42 = vrot.slane %v1687_v41, 1  ;;  %v1695_v2 = vadd.f32 %v1687_v41, %v1613_v14  ;;  %v6445_v8 = vpop.f32.mrb[17].mxu1 }
0x1366   :  { %v1696_v15 = vadd.f32 %v1692_v42, %v1614_v13  ;;  %7187 = vtanh.f32 %v1695_v2  ;;  %v1697_v32 = vsub.f32 0.0, %v1695_v2 }
0x1368   :  { %7189 = vtanh.f32 %v1696_v15  ;;  %v1698_v18 = vsub.f32 0.0, %v1696_v15  ;;  %v1699_v9 = vmul.f32 1.442695, %v1697_v32 }
0x136a   :  { %v1701_v4 = vmul.f32 1.442695, %v1698_v18  ;;  %7191 = vpow2.f32 %v1699_v9 }
0x136c   :  { %7193 = vpow2.f32 %v1701_v4 }
0x1370   :  { %v7188_v19 = vpop.eup %7187 }
0x1371   :  { %1715 = vrot.lane.b32.xlu1 %v7188_v19, %s7668_s4 }
0x1372   :  { %v7190_v1 = vpop.eup %7189 }
0x1373   :  { %1717 = vrot.lane.b32.xlu0 %v7190_v1, %s7668_s4 }
0x1374   :  { %v7192_v44 = vpop.eup %7191 }
0x1375   :  { %v1703_v46 = vadd.f32 1.0, %v7192_v44 }
0x1376   :  { %v7194_v45 = vpop.eup %7193 }
0x1377   :  { %v1704_v47 = vadd.f32 1.0, %v7194_v45  ;;  %7195 = vrcp.f32 %v1703_v46 }
0x1379   :  { %7197 = vrcp.f32 %v1704_v47 }
0x1381   :  { %v7196_v48 = vpop.eup %7195 }
0x1382   :  { %v1711_v56 = vmul.f32 %v7196_v48, %v1589_v20 }
0x1383   :  { %v7198_v38 = vpop.eup %7197 }
0x1384   :  { %v1712_v39 = vmul.f32 %v7198_v38, %v1590_v23  ;;  %v1756_v23 = vld [vmem:[#allocation2 + $0x15] sm:$0x1] }
0x13e3   :  { %v1716_v49 = vpop.permute.xlu1 %1715 }
0x13e4   :  { %v1721_v53 = vmul.f32 %v7196_v48, %v1716_v49 }
0x13e5   :  { %v1718_v55 = vpop.permute.xlu0 %1717 }
0x13e6   :  { %v1722_v40 = vmul.f32 %v7198_v38, %v1718_v55  ;;  %1725 = vrot.lane.b32.xlu1 %v1721_v53, %s7667_s24 }
0x13e8   :  { %1727 = vrot.lane.b32.xlu0 %v1722_v40, %s7667_s24 }
0x1458   :  { %v1726_v57 = vpop.permute.xlu1 %1725 }
0x1459   :  { %v1731_v33 = vadd.f32 %v1726_v57, %v1711_v56 }
0x145a   :  { %v1728_v43 = vpop.permute.xlu0 %1727 }
0x145b   :  { %7199 = vtanh.f32 %v1731_v33  ;;  %v1732_v30 = vadd.f32 %v1728_v43, %v1712_v39 }
0x145d   :  { %7201 = vtanh.f32 %v1732_v30 }
0x1465   :  { %v7200_v63 = vpop.eup %7199 }
0x1466   :  { %1737 = vrot.lane.b32.xlu1 %v7200_v63, %s7668_s4 }
0x1467   :  { %v7202_v0 = vpop.eup %7201 }
0x1468   :  { %1739 = vrot.lane.b32.xlu0 %v7202_v0, %s7668_s4  ;;  %v1898_v0 = vld [vmem:[#allocation2 + $0x16] sm:$0x1] }
0x14d8   :  { %v1738_v3 = vpop.permute.xlu1 %1737 }
0x14d9   :  { %v8315_v6 = vmul.f32 %v7196_v48, %v1738_v3 }
0x14da   :  { %v1740_v34 = vpop.permute.xlu0 %1739 }
0x14db   :  { %v8313_v5 = vmul.f32 %v7198_v38, %v1740_v34 }
0x14dd   :  { %v1757_v7 = vrot.slane %v8313_v5, 7 }
0x14df   :  { %v1758_v10 = vsel %vm1189_vm13, %v1757_v7, %v8315_v6 }
0x14e0   :  { %1759 = vrot.lane.b32.xlu0 %v1758_v10, %s7667_s24 }
0x1552   :  { %v1760_v11 = vpop.permute.xlu0 %1759 }
0x1553   :  { %6455 = vmatmul.mubr.msk.f32.vlgmr.msra.gmra.mrb[18].mxu1 %vm155_vm1, %v1760_v11 }
0x1554   :  { %6803 = vmatpush3.bf16.msra.mxu1 %v8164_v52  ;;  %6465 = vmatprep.mubr.msk.f32.mxu1 %vm7674_vm12, %v7675_v26 }
0x1555   :  { %6804 = vmatprep.subr.bf16.mxu1 %v7673_v51 }
0x1558   :  { %6806 = vmatpush3.bf16.msra.mxu1 %v8175_v54 }
0x1559   :  { %6807 = vmatprep.subr.bf16.mxu1 %v7673_v51 }
0x1626   :  { %v1829_v16 = vpop.f32.mrb[18].mxu1 }
0x1627   :  { %v1834_v20 = vrot.slane %v1829_v16, 1  ;;  %v1837_v21 = vadd.f32 %v1829_v16, %v1755_v17  ;;  %v6456_v22 = vpop.f32.mrb[19].mxu1 }
0x1629   :  { %v1838_v25 = vadd.f32 %v1834_v20, %v1756_v23  ;;  %7203 = vtanh.f32 %v1837_v21  ;;  %v1839_v35 = vsub.f32 0.0, %v1837_v21 }
0x162b   :  { %7205 = vtanh.f32 %v1838_v25  ;;  %v1840_v37 = vsub.f32 0.0, %v1838_v25  ;;  %v1841_v31 = vmul.f32 1.442695, %v1839_v35 }
0x162d   :  { %v1843_v60 = vmul.f32 1.442695, %v1840_v37  ;;  %7207 = vpow2.f32 %v1841_v31 }
0x162f   :  { %7209 = vpow2.f32 %v1843_v60 }
0x1633   :  { %v7204_v28 = vpop.eup %7203 }
0x1634   :  { %1857 = vrot.lane.b32.xlu0 %v7204_v28, %s7668_s4 }
0x1635   :  { %v7206_v29 = vpop.eup %7205 }
0x1636   :  { %1859 = vrot.lane.b32.xlu1 %v7206_v29, %s7668_s4 }
0x1637   :  { %v7208_v14 = vpop.eup %7207 }
0x1638   :  { %v1845_v42 = vadd.f32 1.0, %v7208_v14 }
0x1639   :  { %v7210_v41 = vpop.eup %7209 }
0x163a   :  { %v1846_v2 = vadd.f32 1.0, %v7210_v41  ;;  %7211 = vrcp.f32 %v1845_v42 }
0x163c   :  { %7213 = vrcp.f32 %v1846_v2 }
0x1644   :  { %v7212_v8 = vpop.eup %7211 }
0x1645   :  { %v1853_v18 = vmul.f32 %v7212_v8, %v1731_v33  ;;  %v1897_v33 = vld [vmem:[#allocation2 + $0x6] sm:$0x1] }
0x1646   :  { %v7214_v19 = vpop.eup %7213 }
0x1647   :  { %v1854_v44 = vmul.f32 %v7214_v19, %v1732_v30 }
0x16a6   :  { %v1858_v13 = vpop.permute.xlu0 %1857 }
0x16a7   :  { %v1863_v15 = vmul.f32 %v7212_v8, %v1858_v13 }
0x16a8   :  { %v1860_v1 = vpop.permute.xlu1 %1859 }
0x16a9   :  { %v1864_v32 = vmul.f32 %v7214_v19, %v1860_v1  ;;  %1867 = vrot.lane.b32.xlu0 %v1863_v15, %s7667_s24 }
0x16ab   :  { %1869 = vrot.lane.b32.xlu1 %v1864_v32, %s7667_s24 }
0x171b   :  { %v1868_v9 = vpop.permute.xlu0 %1867 }
0x171c   :  { %v1873_v4 = vadd.f32 %v1868_v9, %v1853_v18 }
0x171d   :  { %v1870_v45 = vpop.permute.xlu1 %1869 }
0x171e   :  { %7215 = vtanh.f32 %v1873_v4  ;;  %v1874_v46 = vadd.f32 %v1870_v45, %v1854_v44  ;;  %v2039_v45 = vld [vmem:[#allocation2 + $0x7] sm:$0x1] }
0x1720   :  { %7217 = vtanh.f32 %v1874_v46 }
0x1728   :  { %v7216_v47 = vpop.eup %7215 }
0x1729   :  { %1879 = vrot.lane.b32.xlu0 %v7216_v47, %s7668_s4 }
0x172a   :  { %v7218_v48 = vpop.eup %7217 }
0x172b   :  { %1881 = vrot.lane.b32.xlu1 %v7218_v48, %s7668_s4 }
0x179b   :  { %v1880_v49 = vpop.permute.xlu0 %1879 }
0x179c   :  { %v8336_v55 = vmul.f32 %v7212_v8, %v1880_v49 }
0x179d   :  { %v1882_v53 = vpop.permute.xlu1 %1881 }
0x179e   :  { %v8334_v38 = vmul.f32 %v7214_v19, %v1882_v53  ;;  %v2040_v53 = vld [vmem:[#allocation2 + $0x17] sm:$0x1] }
0x17a0   :  { %v1899_v40 = vrot.slane %v8334_v38, 7 }
0x17a2   :  { %v1900_v56 = vsel %vm1189_vm13, %v1899_v40, %v8336_v55 }
0x17a3   :  { %1901 = vrot.lane.b32.xlu1 %v1900_v56, %s7667_s24 }
0x1815   :  { %v1902_v57 = vpop.permute.xlu1 %1901 }
0x1816   :  { %6466 = vmatmul.mubr.msk.f32.vlgmr.msra.gmra.mrb[20].mxu1 %vm155_vm1, %v1902_v57 }
0x1817   :  { %6809 = vmatpush3.bf16.msra.mxu1 %v8164_v52  ;;  %6476 = vmatprep.mubr.msk.f32.mxu1 %vm7674_vm12, %v7675_v26 }
0x1818   :  { %6810 = vmatprep.subr.bf16.mxu1 %v7673_v51 }
0x181b   :  { %6812 = vmatpush3.bf16.msra.mxu1 %v8175_v54 }
0x181c   :  { %6813 = vmatprep.subr.bf16.mxu1 %v7673_v51 }
0x18e9   :  { %v1971_v39 = vpop.f32.mrb[20].mxu1 }
0x18ea   :  { %v1976_v43 = vrot.slane %v1971_v39, 1  ;;  %v1979_v30 = vadd.f32 %v1971_v39, %v1897_v33  ;;  %v6467_v63 = vpop.f32.mrb[21].mxu1 }
0x18ec   :  { %v1980_v3 = vadd.f32 %v1976_v43, %v1898_v0  ;;  %7219 = vtanh.f32 %v1979_v30  ;;  %v1981_v10 = vsub.f32 0.0, %v1979_v30 }
0x18ee   :  { %7221 = vtanh.f32 %v1980_v3  ;;  %v1982_v11 = vsub.f32 0.0, %v1980_v3  ;;  %v1983_v17 = vmul.f32 1.442695, %v1981_v10 }
0x18f0   :  { %v1985_v16 = vmul.f32 1.442695, %v1982_v11  ;;  %7223 = vpow2.f32 %v1983_v17 }
0x18f2   :  { %7225 = vpow2.f32 %v1985_v16 }
0x18f6   :  { %v7220_v34 = vpop.eup %7219 }
0x18f7   :  { %1999 = vrot.lane.b32.xlu1 %v7220_v34, %s7668_s4 }
0x18f8   :  { %v7222_v7 = vpop.eup %7221 }
0x18f9   :  { %2001 = vrot.lane.b32.xlu0 %v7222_v7, %s7668_s4 }
0x18fa   :  { %v7224_v20 = vpop.eup %7223 }
0x18fb   :  { %v1987_v22 = vadd.f32 1.0, %v7224_v20 }
0x18fc   :  { %v7226_v21 = vpop.eup %7225 }
0x18fd   :  { %v1988_v23 = vadd.f32 1.0, %v7226_v21  ;;  %7227 = vrcp.f32 %v1987_v22 }
0x18ff   :  { %7229 = vrcp.f32 %v1988_v23 }
0x1907   :  { %v7228_v25 = vpop.eup %7227 }
0x1908   :  { %v1995_v60 = vmul.f32 %v7228_v25, %v1873_v4 }
0x1909   :  { %v7230_v35 = vpop.eup %7229 }
0x190a   :  { %v1996_v42 = vmul.f32 %v7230_v35, %v1874_v46 }
0x1969   :  { %v2000_v28 = vpop.permute.xlu1 %1999 }
0x196a   :  { %v2005_v29 = vmul.f32 %v7228_v25, %v2000_v28 }
0x196b   :  { %v2002_v37 = vpop.permute.xlu0 %2001 }
0x196c   :  { %v2006_v31 = vmul.f32 %v7230_v35, %v2002_v37  ;;  %2009 = vrot.lane.b32.xlu1 %v2005_v29, %s7667_s24 }
0x196e   :  { %2011 = vrot.lane.b32.xlu0 %v2006_v31, %s7667_s24 }
0x19de   :  { %v2010_v14 = vpop.permute.xlu1 %2009 }
0x19df   :  { %v2015_v41 = vadd.f32 %v2010_v14, %v1995_v60 }
0x19e0   :  { %v2012_v2 = vpop.permute.xlu0 %2011 }
0x19e1   :  { %7231 = vtanh.f32 %v2015_v41  ;;  %v2016_v8 = vadd.f32 %v2012_v2, %v1996_v42 }
0x19e3   :  { %7233 = vtanh.f32 %v2016_v8 }
0x19eb   :  { %v7232_v13 = vpop.eup %7231 }
0x19ec   :  { %2021 = vrot.lane.b32.xlu1 %v7232_v13, %s7668_s4  ;;  %v2181_v13 = vld [vmem:[#allocation2 + $0x8] sm:$0x1] }
0x19ed   :  { %v7234_v15 = vpop.eup %7233 }
0x19ee   :  { %2023 = vrot.lane.b32.xlu0 %v7234_v15, %s7668_s4 }
0x1a5e   :  { %v2022_v19 = vpop.permute.xlu1 %2021 }
0x1a5f   :  { %v8357_v18 = vmul.f32 %v7228_v25, %v2022_v19 }
0x1a60   :  { %v2024_v1 = vpop.permute.xlu0 %2023 }
0x1a61   :  { %v8355_v32 = vmul.f32 %v7230_v35, %v2024_v1 }
0x1a63   :  { %v2041_v9 = vrot.slane %v8355_v32, 7 }
0x1a65   :  { %v2042_v4 = vsel %vm1189_vm13, %v2041_v9, %v8357_v18 }
0x1a66   :  { %2043 = vrot.lane.b32.xlu0 %v2042_v4, %s7667_s24  ;;  %v2182_v4 = vld [vmem:[#allocation2 + $0x18] sm:$0x1] }
0x1ad8   :  { %v2044_v44 = vpop.permute.xlu0 %2043 }
0x1ad9   :  { %6477 = vmatmul.mubr.msk.f32.vlgmr.msra.gmra.mrb[22].mxu1 %vm155_vm1, %v2044_v44 }
0x1ada   :  { %6815 = vmatpush3.bf16.msra.mxu1 %v8164_v52  ;;  %6487 = vmatprep.mubr.msk.f32.mxu1 %vm7674_vm12, %v7675_v26 }
0x1adb   :  { %6816 = vmatprep.subr.bf16.mxu1 %v7673_v51 }
0x1ade   :  { %6818 = vmatpush3.bf16.msra.mxu1 %v8175_v54 }
0x1adf   :  { %6819 = vmatprep.subr.bf16.mxu1 %v7673_v51 }
0x1bac   :  { %v2113_v46 = vpop.f32.mrb[22].mxu1 }
0x1bad   :  { %v2118_v47 = vrot.slane %v2113_v46, 1  ;;  %v2121_v48 = vadd.f32 %v2113_v46, %v2039_v45  ;;  %v6478_v49 = vpop.f32.mrb[23].mxu1 }
0x1baf   :  { %v2122_v40 = vadd.f32 %v2118_v47, %v2040_v53  ;;  %7235 = vtanh.f32 %v2121_v48  ;;  %v2123_v33 = vsub.f32 0.0, %v2121_v48 }
0x1bb1   :  { %7237 = vtanh.f32 %v2122_v40  ;;  %v2124_v39 = vsub.f32 0.0, %v2122_v40  ;;  %v2125_v43 = vmul.f32 1.442695, %v2123_v33 }
0x1bb3   :  { %v2127_v30 = vmul.f32 1.442695, %v2124_v39  ;;  %7239 = vpow2.f32 %v2125_v43 }
0x1bb5   :  { %7241 = vpow2.f32 %v2127_v30 }
0x1bb9   :  { %v7236_v56 = vpop.eup %7235 }
0x1bba   :  { %2141 = vrot.lane.b32.xlu0 %v7236_v56, %s7668_s4 }
0x1bbb   :  { %v7238_v57 = vpop.eup %7237 }
0x1bbc   :  { %2143 = vrot.lane.b32.xlu1 %v7238_v57, %s7668_s4 }
0x1bbd   :  { %v7240_v63 = vpop.eup %7239 }
0x1bbe   :  { %v2129_v3 = vadd.f32 1.0, %v7240_v63 }
0x1bbf   :  { %v7242_v0 = vpop.eup %7241 }
0x1bc0   :  { %v2130_v34 = vadd.f32 1.0, %v7242_v0  ;;  %7243 = vrcp.f32 %v2129_v3 }
0x1bc2   :  { %7245 = vrcp.f32 %v2130_v34 }
0x1bca   :  { %v7244_v7 = vpop.eup %7243 }
0x1bcb   :  { %v2137_v21 = vmul.f32 %v7244_v7, %v2015_v41 }
0x1bcc   :  { %v7246_v17 = vpop.eup %7245 }
0x1bcd   :  { %v2138_v25 = vmul.f32 %v7246_v17, %v2016_v8 }
0x1c2c   :  { %v2142_v10 = vpop.permute.xlu0 %2141 }
0x1c2d   :  { %v2147_v11 = vmul.f32 %v7244_v7, %v2142_v10 }
0x1c2e   :  { %v2144_v16 = vpop.permute.xlu1 %2143 }
0x1c2f   :  { %v2148_v20 = vmul.f32 %v7246_v17, %v2144_v16  ;;  %2151 = vrot.lane.b32.xlu0 %v2147_v11, %s7667_s24 }
0x1c31   :  { %2153 = vrot.lane.b32.xlu1 %v2148_v20, %s7667_s24 }
0x1ca1   :  { %v2152_v22 = vpop.permute.xlu0 %2151 }
0x1ca2   :  { %v2157_v23 = vadd.f32 %v2152_v22, %v2137_v21 }
0x1ca3   :  { %v2154_v28 = vpop.permute.xlu1 %2153 }
0x1ca4   :  { %7247 = vtanh.f32 %v2157_v23  ;;  %v2158_v29 = vadd.f32 %v2154_v28, %v2138_v25 }
0x1ca6   :  { %7249 = vtanh.f32 %v2158_v29 }
0x1cae   :  { %v7248_v35 = vpop.eup %7247 }
0x1caf   :  { %2163 = vrot.lane.b32.xlu0 %v7248_v35, %s7668_s4 }
0x1cb0   :  { %v7250_v37 = vpop.eup %7249 }
0x1cb1   :  { %2165 = vrot.lane.b32.xlu1 %v7250_v37, %s7668_s4 }
0x1d21   :  { %v2164_v31 = vpop.permute.xlu0 %2163 }
0x1d22   :  { %v8378_v42 = vmul.f32 %v7244_v7, %v2164_v31  ;;  %v2323_v31 = vld [vmem:[#allocation2 + $0x9] sm:$0x1] }
0x1d23   :  { %v2166_v60 = vpop.permute.xlu1 %2165 }
0x1d24   :  { %v8376_v14 = vmul.f32 %v7246_v17, %v2166_v60 }
0x1d26   :  { %v2183_v41 = vrot.slane %v8376_v14, 7 }
0x1d28   :  { %v2184_v2 = vsel %vm1189_vm13, %v2183_v41, %v8378_v42 }
0x1d29   :  { %2185 = vrot.lane.b32.xlu1 %v2184_v2, %s7667_s24 }
0x1d9b   :  { %v2186_v8 = vpop.permute.xlu1 %2185 }
0x1d9c   :  { %6488 = vmatmul.mubr.msk.f32.vlgmr.msra.gmra.mrb[24].mxu1 %vm155_vm1, %v2186_v8 }
0x1d9d   :  { %6821 = vmatpush3.bf16.msra.mxu1 %v8164_v52  ;;  %6498 = vmatprep.mubr.msk.f32.mxu1 %vm7674_vm12, %v7675_v26 }
0x1d9e   :  { %6822 = vmatprep.subr.bf16.mxu1 %v7673_v51 }
0x1da1   :  { %6824 = vmatpush3.bf16.msra.mxu1 %v8175_v54 }
0x1da2   :  { %6825 = vmatprep.subr.bf16.mxu1 %v7673_v51 }
0x1e6f   :  { %v2255_v15 = vpop.f32.mrb[24].mxu1 }
0x1e70   :  { %v2260_v19 = vrot.slane %v2255_v15, 1  ;;  %v2263_v1 = vadd.f32 %v2255_v15, %v2181_v13  ;;  %v6489_v9 = vpop.f32.mrb[25].mxu1  ;;  %v2324_v13 = vld [vmem:[#allocation2 + $0x19] sm:$0x1] }
0x1e72   :  { %v2264_v44 = vadd.f32 %v2260_v19, %v2182_v4  ;;  %7251 = vtanh.f32 %v2263_v1  ;;  %v2265_v47 = vsub.f32 0.0, %v2263_v1 }
0x1e74   :  { %7253 = vtanh.f32 %v2264_v44  ;;  %v2266_v48 = vsub.f32 0.0, %v2264_v44  ;;  %v2267_v49 = vmul.f32 1.442695, %v2265_v47 }
0x1e76   :  { %v2269_v53 = vmul.f32 1.442695, %v2266_v48  ;;  %7255 = vpow2.f32 %v2267_v49 }
0x1e78   :  { %7257 = vpow2.f32 %v2269_v53 }
0x1e7c   :  { %v7252_v45 = vpop.eup %7251 }
0x1e7d   :  { %2283 = vrot.lane.b32.xlu1 %v7252_v45, %s7668_s4 }
0x1e7e   :  { %v7254_v46 = vpop.eup %7253 }
0x1e7f   :  { %2285 = vrot.lane.b32.xlu0 %v7254_v46, %s7668_s4 }
0x1e80   :  { %v7256_v40 = vpop.eup %7255 }
0x1e81   :  { %v2271_v57 = vadd.f32 1.0, %v7256_v40 }
0x1e82   :  { %v7258_v56 = vpop.eup %7257 }
0x1e83   :  { %v2272_v33 = vadd.f32 1.0, %v7258_v56  ;;  %7259 = vrcp.f32 %v2271_v57 }
0x1e85   :  { %7261 = vrcp.f32 %v2272_v33 }
0x1e8d   :  { %v7260_v39 = vpop.eup %7259 }
0x1e8e   :  { %v2279_v34 = vmul.f32 %v7260_v39, %v2157_v23 }
0x1e8f   :  { %v7262_v63 = vpop.eup %7261 }
0x1e90   :  { %v2280_v11 = vmul.f32 %v7262_v63, %v2158_v29 }
0x1eef   :  { %v2284_v43 = vpop.permute.xlu1 %2283 }
0x1ef0   :  { %v2289_v30 = vmul.f32 %v7260_v39, %v2284_v43 }
0x1ef1   :  { %v2286_v0 = vpop.permute.xlu0 %2285 }
0x1ef2   :  { %v2290_v3 = vmul.f32 %v7262_v63, %v2286_v0  ;;  %2293 = vrot.lane.b32.xlu1 %v2289_v30, %s7667_s24 }
0x1ef4   :  { %2295 = vrot.lane.b32.xlu0 %v2290_v3, %s7667_s24 }
0x1f64   :  { %v2294_v7 = vpop.permute.xlu1 %2293 }
0x1f65   :  { %v2299_v10 = vadd.f32 %v2294_v7, %v2279_v34 }
0x1f66   :  { %v2296_v17 = vpop.permute.xlu0 %2295 }
0x1f67   :  { %7263 = vtanh.f32 %v2299_v10  ;;  %v2300_v16 = vadd.f32 %v2296_v17, %v2280_v11 }
0x1f69   :  { %7265 = vtanh.f32 %v2300_v16 }
0x1f71   :  { %v7264_v20 = vpop.eup %7263 }
0x1f72   :  { %2305 = vrot.lane.b32.xlu1 %v7264_v20, %s7668_s4 }
0x1f73   :  { %v7266_v21 = vpop.eup %7265 }
0x1f74   :  { %2307 = vrot.lane.b32.xlu0 %v7266_v21, %s7668_s4 }
0x1fe4   :  { %v2306_v22 = vpop.permute.xlu1 %2305 }
0x1fe5   :  { %v8399_v35 = vmul.f32 %v7260_v39, %v2306_v22 }
0x1fe6   :  { %v2308_v25 = vpop.permute.xlu0 %2307 }
0x1fe7   :  { %v8397_v28 = vmul.f32 %v7262_v63, %v2308_v25 }
0x1fe9   :  { %v2325_v23 = vrot.slane %v8397_v28, 7 }
0x1feb   :  { %v2326_v29 = vsel %vm1189_vm13, %v2325_v23, %v8399_v35  ;;  %v2465_v23 = vld [vmem:[#allocation2 + $0xa] sm:$0x1] }
0x1fec   :  { %2327 = vrot.lane.b32.xlu0 %v2326_v29, %s7667_s24 }
0x205e   :  { %v2328_v37 = vpop.permute.xlu0 %2327 }
0x205f   :  { %6499 = vmatmul.mubr.msk.f32.vlgmr.msra.gmra.mrb[26].mxu1 %vm155_vm1, %v2328_v37 }
0x2060   :  { %6827 = vmatpush3.bf16.msra.mxu1 %v8164_v52  ;;  %6509 = vmatprep.mubr.msk.f32.mxu1 %vm7674_vm12, %v7675_v26 }
0x2061   :  { %6828 = vmatprep.subr.bf16.mxu1 %v7673_v51 }
0x2064   :  { %6830 = vmatpush3.bf16.msra.mxu1 %v8175_v54 }
0x2065   :  { %6837 = vmatprep.subr.bf16.mxu1 %v7673_v51 }
0x2132   :  { %v2397_v60 = vpop.f32.mrb[26].mxu1 }
0x2133   :  { %v2402_v41 = vrot.slane %v2397_v60, 1  ;;  %v2405_v2 = vadd.f32 %v2397_v60, %v2323_v31  ;;  %v6500_v8 = vpop.f32.mrb[27].mxu1 }
0x2135   :  { %v2406_v15 = vadd.f32 %v2402_v41, %v2324_v13  ;;  %7267 = vtanh.f32 %v2405_v2  ;;  %v2407_v9 = vsub.f32 0.0, %v2405_v2  ;;  %v2466_v41 = vld [vmem:[#allocation2 + $0x1a] sm:$0x1] }
0x2137   :  { %7269 = vtanh.f32 %v2406_v15  ;;  %v2408_v4 = vsub.f32 0.0, %v2406_v15  ;;  %v2409_v44 = vmul.f32 1.442695, %v2407_v9 }
0x2139   :  { %v2411_v45 = vmul.f32 1.442695, %v2408_v4  ;;  %7271 = vpow2.f32 %v2409_v44 }
0x213b   :  { %7273 = vpow2.f32 %v2411_v45 }
0x213f   :  { %v7268_v19 = vpop.eup %7267 }
0x2140   :  { %2425 = vrot.lane.b32.xlu0 %v7268_v19, %s7668_s4 }
0x2141   :  { %v7270_v1 = vpop.eup %7269 }
0x2142   :  { %2427 = vrot.lane.b32.xlu1 %v7270_v1, %s7668_s4 }
0x2143   :  { %v7272_v46 = vpop.eup %7271 }
0x2144   :  { %v2413_v48 = vadd.f32 1.0, %v7272_v46 }
0x2145   :  { %v7274_v47 = vpop.eup %7273 }
0x2146   :  { %v2414_v49 = vadd.f32 1.0, %v7274_v47  ;;  %7275 = vrcp.f32 %v2413_v48 }
0x2148   :  { %7277 = vrcp.f32 %v2414_v49 }
0x2150   :  { %v7276_v53 = vpop.eup %7275 }
0x2151   :  { %v2421_v43 = vmul.f32 %v7276_v53, %v2299_v10 }
0x2152   :  { %v7278_v57 = vpop.eup %7277 }
0x2153   :  { %v2422_v0 = vmul.f32 %v7278_v57, %v2300_v16 }
0x21b2   :  { %v2426_v40 = vpop.permute.xlu0 %2425 }
0x21b3   :  { %v2431_v56 = vmul.f32 %v7276_v53, %v2426_v40 }
0x21b4   :  { %v2428_v33 = vpop.permute.xlu1 %2427 }
0x21b5   :  { %v2432_v39 = vmul.f32 %v7278_v57, %v2428_v33  ;;  %2435 = vrot.lane.b32.xlu0 %v2431_v56, %s7667_s24 }
0x21b7   :  { %2437 = vrot.lane.b32.xlu1 %v2432_v39, %s7667_s24 }
0x2227   :  { %v2436_v30 = vpop.permute.xlu0 %2435 }
0x2228   :  { %v2441_v63 = vadd.f32 %v2436_v30, %v2421_v43 }
0x2229   :  { %v2438_v3 = vpop.permute.xlu1 %2437 }
0x222a   :  { %7279 = vtanh.f32 %v2441_v63  ;;  %v2442_v34 = vadd.f32 %v2438_v3, %v2422_v0 }
0x222c   :  { %7281 = vtanh.f32 %v2442_v34 }
0x2234   :  { %v7280_v7 = vpop.eup %7279 }
0x2235   :  { %2447 = vrot.lane.b32.xlu0 %v7280_v7, %s7668_s4 }
0x2236   :  { %v7282_v11 = vpop.eup %7281 }
0x2237   :  { %2449 = vrot.lane.b32.xlu1 %v7282_v11, %s7668_s4 }
0x22a7   :  { %v2448_v17 = vpop.permute.xlu0 %2447 }
0x22a8   :  { %v8420_v22 = vmul.f32 %v7276_v53, %v2448_v17 }
0x22a9   :  { %v2450_v20 = vpop.permute.xlu1 %2449 }
0x22aa   :  { %v8418_v21 = vmul.f32 %v7278_v57, %v2450_v20 }
0x22ac   :  { %v2467_v10 = vrot.slane %v8418_v21, 7 }
0x22ae   :  { %v2468_v16 = vsel %vm1189_vm13, %v2467_v10, %v8420_v22 }
0x22af   :  { %2469 = vrot.lane.b32.xlu1 %v2468_v16, %s7667_s24 }
0x2321   :  { %v2470_v25 = vpop.permute.xlu1 %2469 }
0x2322   :  { %6510 = vmatmul.mubr.msk.f32.vlgmr.msra.gmra.mrb[28].mxu1 %vm155_vm1, %v2470_v25  ;;  %v2607_v25 = vld [vmem:[#allocation2 + $0xb] sm:$0x1] }
0x2323   :  { %6839 = vmatpush3.bf16.msra.mxu1 %v8164_v52  ;;  %6531 = vmatprep.mubr.msk.f32.mxu1 %vm7674_vm12, %v7675_v26 }
0x2324   :  { %6840 = vmatprep.subr.bf16.mxu1 %v7673_v51 }
0x2327   :  { %6842 = vmatpush3.bf16.msra.mxu1 %v8175_v54 }
0x2328   :  { %6849 = vmatprep.subr.bf16.mxu1 %v7673_v51 }
0x23f5   :  { %v2539_v29 = vpop.f32.mrb[28].mxu1 }
0x23f6   :  { %v2544_v37 = vrot.slane %v2539_v29, 1  ;;  %v2547_v31 = vadd.f32 %v2539_v29, %v2465_v23  ;;  %v6511_v60 = vpop.f32.mrb[29].mxu1 }
0x23f7   :  { %v2608_v60 = vld [vmem:[#allocation2 + $0x1b] sm:$0x1] }
0x23f8   :  { %v2548_v2 = vadd.f32 %v2544_v37, %v2466_v41  ;;  %7283 = vtanh.f32 %v2547_v31  ;;  %v2549_v15 = vsub.f32 0.0, %v2547_v31 }
0x23fa   :  { %7285 = vtanh.f32 %v2548_v2  ;;  %v2550_v19 = vsub.f32 0.0, %v2548_v2  ;;  %v2551_v1 = vmul.f32 1.442695, %v2549_v15 }
0x23fc   :  { %v2553_v9 = vmul.f32 1.442695, %v2550_v19  ;;  %7287 = vpow2.f32 %v2551_v1 }
0x23fe   :  { %7289 = vpow2.f32 %v2553_v9 }
0x2402   :  { %v7284_v8 = vpop.eup %7283 }
0x2403   :  { %2567 = vrot.lane.b32.xlu1 %v7284_v8, %s7668_s4 }
0x2404   :  { %v7286_v13 = vpop.eup %7285 }
0x2405   :  { %2569 = vrot.lane.b32.xlu0 %v7286_v13, %s7668_s4 }
0x2406   :  { %v7288_v4 = vpop.eup %7287 }
0x2407   :  { %v2555_v45 = vadd.f32 1.0, %v7288_v4 }
0x2408   :  { %v7290_v44 = vpop.eup %7289 }
0x2409   :  { %v2556_v46 = vadd.f32 1.0, %v7290_v44  ;;  %7291 = vrcp.f32 %v2555_v45 }
0x240b   :  { %7293 = vrcp.f32 %v2556_v46 }
0x2413   :  { %v7292_v47 = vpop.eup %7291 }
0x2414   :  { %v2563_v57 = vmul.f32 %v7292_v47, %v2441_v63 }
0x2415   :  { %v7294_v53 = vpop.eup %7293 }
0x2416   :  { %v2564_v43 = vmul.f32 %v7294_v53, %v2442_v34 }
0x2475   :  { %v2568_v48 = vpop.permute.xlu1 %2567 }
0x2476   :  { %v2573_v49 = vmul.f32 %v7292_v47, %v2568_v48 }
0x2477   :  { %v2570_v40 = vpop.permute.xlu0 %2569 }
0x2478   :  { %v2574_v56 = vmul.f32 %v7294_v53, %v2570_v40  ;;  %2577 = vrot.lane.b32.xlu1 %v2573_v49, %s7667_s24 }
0x247a   :  { %2579 = vrot.lane.b32.xlu0 %v2574_v56, %s7667_s24 }
0x24ea   :  { %v2578_v33 = vpop.permute.xlu1 %2577 }
0x24eb   :  { %v2583_v39 = vadd.f32 %v2578_v33, %v2563_v57 }
0x24ec   :  { %v2580_v30 = vpop.permute.xlu0 %2579 }
0x24ed   :  { %7295 = vtanh.f32 %v2583_v39  ;;  %v2584_v0 = vadd.f32 %v2580_v30, %v2564_v43 }
0x24ef   :  { %7297 = vtanh.f32 %v2584_v0 }
0x24f7   :  { %v7296_v3 = vpop.eup %7295 }
0x24f8   :  { %2589 = vrot.lane.b32.xlu1 %v7296_v3, %s7668_s4 }
0x24f9   :  { %v7298_v7 = vpop.eup %7297 }
0x24fa   :  { %2591 = vrot.lane.b32.xlu0 %v7298_v7, %s7668_s4 }
0x256a   :  { %v2590_v11 = vpop.permute.xlu1 %2589 }
0x256b   :  { %v8441_v10 = vmul.f32 %v7292_v47, %v2590_v11 }
0x256c   :  { %v2592_v17 = vpop.permute.xlu0 %2591 }
0x256d   :  { %v8439_v20 = vmul.f32 %v7294_v53, %v2592_v17 }
0x256f   :  { %v2609_v63 = vrot.slane %v8439_v20, 7 }
0x2571   :  { %v2610_v34 = vsel %vm1189_vm13, %v2609_v63, %v8441_v10 }
0x2572   :  { %2611 = vrot.lane.b32.xlu0 %v2610_v34, %s7667_s24 }
0x25e4   :  { %v2612_v16 = vpop.permute.xlu0 %2611 }
0x25e5   :  { %6521 = vmatmul.mubr.msk.f32.vlgmr.msra.gmra.mrb[12].mxu0 %vm155_vm1, %v2612_v16 }
0x25e6   :  { %6845 = vmatpush3.bf16.msra.mxu0 %v8164_v52  ;;  %6542 = vmatprep.mubr.msk.f32.mxu0 %vm7674_vm12, %v7675_v26 }
0x25e7   :  { %6846 = vmatprep.subr.bf16.mxu0 %v7673_v51 }
0x25ea   :  { %6848 = vmatpush3.bf16.msra.mxu0 %v8175_v54 }
0x25eb   :  { %6855 = vmatprep.subr.bf16.mxu0 %v7673_v51 }
0x26b8   :  { %v2681_v23 = vpop.f32.mrb[12].mxu0 }
0x26b9   :  { %v2686_v29 = vrot.slane %v2681_v23, 1  ;;  %v2689_v37 = vadd.f32 %v2681_v23, %v2607_v25  ;;  %v6522_v31 = vpop.f32.mrb[13].mxu0  ;;  %v2749_v23 = vld [vmem:[#allocation2 + $0xc] sm:$0x1] }
0x26bb   :  { %v2690_v41 = vadd.f32 %v2686_v29, %v2608_v60  ;;  %7299 = vtanh.f32 %v2689_v37  ;;  %v2691_v13 = vsub.f32 0.0, %v2689_v37 }
0x26bd   :  { %7301 = vtanh.f32 %v2690_v41  ;;  %v2692_v15 = vsub.f32 0.0, %v2690_v41  ;;  %v2693_v19 = vmul.f32 1.442695, %v2691_v13  ;;  %v2750_v41 = vld [vmem:[#allocation2 + $0x1c] sm:$0x1] }
0x26bf   :  { %v2695_v1 = vmul.f32 1.442695, %v2692_v15  ;;  %7303 = vpow2.f32 %v2693_v19 }
0x26c1   :  { %7305 = vpow2.f32 %v2695_v1 }
0x26c5   :  { %v7300_v2 = vpop.eup %7299 }
0x26c6   :  { %2709 = vrot.lane.b32.xlu0 %v7300_v2, %s7668_s4 }
0x26c7   :  { %v7302_v8 = vpop.eup %7301 }
0x26c8   :  { %2711 = vrot.lane.b32.xlu1 %v7302_v8, %s7668_s4 }
0x26c9   :  { %v7304_v9 = vpop.eup %7303 }
0x26ca   :  { %v2697_v44 = vadd.f32 1.0, %v7304_v9 }
0x26cb   :  { %v7306_v4 = vpop.eup %7305 }
0x26cc   :  { %v2698_v45 = vadd.f32 1.0, %v7306_v4  ;;  %7307 = vrcp.f32 %v2697_v44 }
0x26ce   :  { %7309 = vrcp.f32 %v2698_v45 }
0x26d6   :  { %v7308_v46 = vpop.eup %7307 }
0x26d7   :  { %v2705_v56 = vmul.f32 %v7308_v46, %v2583_v39 }
0x26d8   :  { %v7310_v49 = vpop.eup %7309 }
0x26d9   :  { %v2706_v43 = vmul.f32 %v7310_v49, %v2584_v0 }
0x2738   :  { %v2710_v47 = vpop.permute.xlu0 %2709 }
0x2739   :  { %v2715_v48 = vmul.f32 %v7308_v46, %v2710_v47 }
0x273a   :  { %v2712_v53 = vpop.permute.xlu1 %2711 }
0x273b   :  { %v2716_v40 = vmul.f32 %v7310_v49, %v2712_v53  ;;  %2719 = vrot.lane.b32.xlu0 %v2715_v48, %s7667_s24 }
0x273d   :  { %2721 = vrot.lane.b32.xlu1 %v2716_v40, %s7667_s24 }
0x27ad   :  { %v2720_v57 = vpop.permute.xlu0 %2719 }
0x27ae   :  { %v2725_v33 = vadd.f32 %v2720_v57, %v2705_v56 }
0x27af   :  { %v2722_v30 = vpop.permute.xlu1 %2721 }
0x27b0   :  { %7311 = vtanh.f32 %v2725_v33  ;;  %v2726_v3 = vadd.f32 %v2722_v30, %v2706_v43 }
0x27b2   :  { %7313 = vtanh.f32 %v2726_v3 }
0x27ba   :  { %v7312_v7 = vpop.eup %7311 }
0x27bb   :  { %2731 = vrot.lane.b32.xlu0 %v7312_v7, %s7668_s4 }
0x27bc   :  { %v7314_v11 = vpop.eup %7313 }
0x27bd   :  { %2733 = vrot.lane.b32.xlu1 %v7314_v11, %s7668_s4 }
0x282d   :  { %v2732_v17 = vpop.permute.xlu0 %2731 }
0x282e   :  { %v8462_v16 = vmul.f32 %v7308_v46, %v2732_v17 }
0x282f   :  { %v2734_v63 = vpop.permute.xlu1 %2733 }
0x2830   :  { %v8460_v34 = vmul.f32 %v7310_v49, %v2734_v63 }
0x2832   :  { %v2751_v39 = vrot.slane %v8460_v34, 7 }
0x2834   :  { %v2752_v0 = vsel %vm1189_vm13, %v2751_v39, %v8462_v16 }
0x2835   :  { %2753 = vrot.lane.b32.xlu1 %v2752_v0, %s7667_s24 }
0x28a7   :  { %v2754_v25 = vpop.permute.xlu1 %2753 }
0x28a8   :  { %6532 = vmatmul.mubr.msk.f32.vlgmr.msra.gmra.mrb[30].mxu1 %vm155_vm1, %v2754_v25 }
0x28a9   :  { %6851 = vmatpush3.bf16.msra.mxu1 %v8164_v52  ;;  %6553 = vmatprep.mubr.msk.f32.mxu1 %vm7674_vm12, %v7675_v26 }
0x28aa   :  { %6852 = vmatprep.subr.bf16.mxu1 %v7673_v51 }
0x28ad   :  { %6854 = vmatpush3.bf16.msra.mxu1 %v8175_v54 }
0x297b   :  { %v2823_v29 = vpop.f32.mrb[30].mxu1 }
0x297c   :  { %v2828_v37 = vrot.slane %v2823_v29, 1  ;;  %v2831_v31 = vadd.f32 %v2823_v29, %v2749_v23  ;;  %v6533_v60 = vpop.f32.mrb[31].mxu1 }
0x297e   :  { %v2832_v2 = vadd.f32 %v2828_v37, %v2750_v41  ;;  %7315 = vtanh.f32 %v2831_v31  ;;  %v2833_v15 = vsub.f32 0.0, %v2831_v31  ;;  %v2891_v31 = vld [vmem:[#allocation2 + $0xd] sm:$0x1] }
0x2980   :  { %7317 = vtanh.f32 %v2832_v2  ;;  %v2834_v19 = vsub.f32 0.0, %v2832_v2  ;;  %v2835_v1 = vmul.f32 1.442695, %v2833_v15 }
0x2982   :  { %v2837_v9 = vmul.f32 1.442695, %v2834_v19  ;;  %7319 = vpow2.f32 %v2835_v1 }
0x2984   :  { %7321 = vpow2.f32 %v2837_v9 }
0x2988   :  { %v7316_v8 = vpop.eup %7315 }
0x2989   :  { %2851 = vrot.lane.b32.xlu1 %v7316_v8, %s7668_s4 }
0x298a   :  { %v7318_v13 = vpop.eup %7317 }
0x298b   :  { %2853 = vrot.lane.b32.xlu0 %v7318_v13, %s7668_s4  ;;  %v2892_v13 = vld [vmem:[#allocation2 + $0x1d] sm:$0x1] }
0x298c   :  { %v7320_v4 = vpop.eup %7319 }
0x298d   :  { %v2839_v45 = vadd.f32 1.0, %v7320_v4 }
0x298e   :  { %v7322_v44 = vpop.eup %7321 }
0x298f   :  { %v2840_v46 = vadd.f32 1.0, %v7322_v44  ;;  %7323 = vrcp.f32 %v2839_v45 }
0x2991   :  { %7325 = vrcp.f32 %v2840_v46 }
0x2999   :  { %v7324_v47 = vpop.eup %7323 }
0x299a   :  { %v2847_v57 = vmul.f32 %v7324_v47, %v2725_v33 }
0x299b   :  { %v7326_v53 = vpop.eup %7325 }
0x299c   :  { %v2848_v7 = vmul.f32 %v7326_v53, %v2726_v3 }
0x29fb   :  { %v2852_v48 = vpop.permute.xlu1 %2851 }
0x29fc   :  { %v2857_v49 = vmul.f32 %v7324_v47, %v2852_v48 }
0x29fd   :  { %v2854_v40 = vpop.permute.xlu0 %2853 }
0x29fe   :  { %v2858_v56 = vmul.f32 %v7326_v53, %v2854_v40  ;;  %2861 = vrot.lane.b32.xlu1 %v2857_v49, %s7667_s24 }
0x2a00   :  { %2863 = vrot.lane.b32.xlu0 %v2858_v56, %s7667_s24 }
0x2a70   :  { %v2862_v43 = vpop.permute.xlu1 %2861 }
0x2a71   :  { %v2867_v30 = vadd.f32 %v2862_v43, %v2847_v57 }
0x2a72   :  { %v2864_v11 = vpop.permute.xlu0 %2863 }
0x2a73   :  { %7327 = vtanh.f32 %v2867_v30  ;;  %v2868_v17 = vadd.f32 %v2864_v11, %v2848_v7 }
0x2a75   :  { %7329 = vtanh.f32 %v2868_v17 }
0x2a7d   :  { %v7328_v63 = vpop.eup %7327 }
0x2a7e   :  { %2873 = vrot.lane.b32.xlu1 %v7328_v63, %s7668_s4 }
0x2a7f   :  { %v7330_v39 = vpop.eup %7329 }
0x2a80   :  { %2875 = vrot.lane.b32.xlu0 %v7330_v39, %s7668_s4 }
0x2af0   :  { %v2874_v0 = vpop.permute.xlu1 %2873 }
0x2af1   :  { %v8482_v29 = vmul.f32 %v7324_v47, %v2874_v0 }
0x2af2   :  { %v2876_v25 = vpop.permute.xlu0 %2875 }
0x2af3   :  { %v8480_v23 = vmul.f32 %v7326_v53, %v2876_v25 }
0x2af5   :  { %v2893_v33 = vrot.slane %v8480_v23, 7 }
0x2af7   :  { %v2894_v3 = vsel %vm1189_vm13, %v2893_v33, %v8482_v29 }
0x2af8   :  { %2895 = vrot.lane.b32.xlu0 %v2894_v3, %s7667_s24 }
0x2b6a   :  { %v2896_v37 = vpop.permute.xlu0 %2895 }
0x2b6b   :  { %6543 = vmatmul.mubr.msk.f32.vlgmr.msra.gmra.mrb[14].mxu0 %vm155_vm1, %v2896_v37 }
0x2b6c   :  { %6857 = vmatpush3.bf16.msra.mxu0 %v8164_v52  ;;  %6564 = vmatprep.mubr.msk.f32.mxu0 %vm7674_vm12, %v7675_v26 }
0x2b6d   :  { %6858 = vmatprep.subr.bf16.mxu0 %v7673_v51 }
0x2b70   :  { %6860 = vmatpush3.bf16.msra.mxu0 %v8175_v54 }
0x2b71   :  { %6869 = vmatprep.subr.bf16.mxu0 %v7673_v51 }
0x2c3e   :  { %v2965_v60 = vpop.f32.mrb[14].mxu0 }
0x2c3f   :  { %v2970_v41 = vrot.slane %v2965_v60, 1  ;;  %v2973_v2 = vadd.f32 %v2965_v60, %v2891_v31  ;;  %v6544_v8 = vpop.f32.mrb[15].mxu0 }
0x2c41   :  { %v2974_v15 = vadd.f32 %v2970_v41, %v2892_v13  ;;  %7331 = vtanh.f32 %v2973_v2  ;;  %v2975_v1 = vsub.f32 0.0, %v2973_v2  ;;  %v3033_v2 = vld [vmem:[#allocation2 + $0xe] sm:$0x1] }
0x2c43   :  { %7333 = vtanh.f32 %v2974_v15  ;;  %v2976_v9 = vsub.f32 0.0, %v2974_v15  ;;  %v2977_v54 = vmul.f32 1.442695, %v2975_v1 }
0x2c45   :  { %v2979_v4 = vmul.f32 1.442695, %v2976_v9  ;;  %7335 = vpow2.f32 %v2977_v54 }
0x2c47   :  { %7337 = vpow2.f32 %v2979_v4 }
0x2c4b   :  { %v7332_v19 = vpop.eup %7331 }
0x2c4c   :  { %2993 = vrot.lane.b32.xlu0 %v7332_v19, %s7668_s4 }
0x2c4d   :  { %v7334_v52 = vpop.eup %7333 }
0x2c4e   :  { %2995 = vrot.lane.b32.xlu1 %v7334_v52, %s7668_s4  ;;  %v3034_v52 = vld [vmem:[#allocation2 + $0x1e] sm:$0x1] }
0x2c4f   :  { %v7336_v44 = vpop.eup %7335 }
0x2c50   :  { %v2981_v46 = vadd.f32 1.0, %v7336_v44 }
0x2c51   :  { %v7338_v45 = vpop.eup %7337 }
0x2c52   :  { %v2982_v47 = vadd.f32 1.0, %v7338_v45  ;;  %7339 = vrcp.f32 %v2981_v46 }
0x2c54   :  { %7341 = vrcp.f32 %v2982_v47 }
0x2c5c   :  { %v7340_v48 = vpop.eup %7339 }
0x2c5d   :  { %v2989_v43 = vmul.f32 %v7340_v48, %v2867_v30 }
0x2c5e   :  { %v7342_v40 = vpop.eup %7341 }
0x2c5f   :  { %v2990_v63 = vmul.f32 %v7342_v40, %v2868_v17 }
0x2cbe   :  { %v2994_v49 = vpop.permute.xlu0 %2993 }
0x2cbf   :  { %v2999_v53 = vmul.f32 %v7340_v48, %v2994_v49 }
0x2cc0   :  { %v2996_v56 = vpop.permute.xlu1 %2995 }
0x2cc1   :  { %v3000_v57 = vmul.f32 %v7342_v40, %v2996_v56  ;;  %3003 = vrot.lane.b32.xlu0 %v2999_v53, %s7667_s24 }
0x2cc3   :  { %3005 = vrot.lane.b32.xlu1 %v3000_v57, %s7667_s24 }
0x2d33   :  { %v3004_v7 = vpop.permute.xlu0 %3003 }
0x2d34   :  { %v3009_v11 = vadd.f32 %v3004_v7, %v2989_v43 }
0x2d35   :  { %v3006_v39 = vpop.permute.xlu1 %3005 }
0x2d36   :  { %7343 = vtanh.f32 %v3009_v11  ;;  %v3010_v0 = vadd.f32 %v3006_v39, %v2990_v63 }
0x2d38   :  { %7345 = vtanh.f32 %v3010_v0 }
0x2d40   :  { %v7344_v25 = vpop.eup %7343 }
0x2d41   :  { %3015 = vrot.lane.b32.xlu0 %v7344_v25, %s7668_s4 }
0x2d42   :  { %v7346_v33 = vpop.eup %7345 }
0x2d43   :  { %3017 = vrot.lane.b32.xlu1 %v7346_v33, %s7668_s4 }
0x2db3   :  { %v3016_v3 = vpop.permute.xlu0 %3015 }
0x2db4   :  { %v8503_v60 = vmul.f32 %v7340_v48, %v3016_v3 }
0x2db5   :  { %v3018_v37 = vpop.permute.xlu1 %3017 }
0x2db6   :  { %v8501_v31 = vmul.f32 %v7342_v40, %v3018_v37 }
0x2db8   :  { %v3035_v30 = vrot.slane %v8501_v31, 7 }
0x2dba   :  { %v3036_v17 = vsel %vm1189_vm13, %v3035_v30, %v8503_v60 }
0x2dbb   :  { %3037 = vrot.lane.b32.xlu1 %v3036_v17, %s7667_s24 }
0x2e2d   :  { %v3038_v41 = vpop.permute.xlu1 %3037 }
0x2e2e   :  { %6554 = vmatmul.mubr.msk.f32.vlgmr.msra.gmra.mrb[32].mxu1 %vm155_vm1, %v3038_v41 }
0x2f01   :  { %v3107_v8 = vpop.f32.mrb[32].mxu1 }
0x2f02   :  { %v3112_v13 = vrot.slane %v3107_v8, 1  ;;  %v3115_v15 = vadd.f32 %v3107_v8, %v3033_v2  ;;  %v6555_v19 = vpop.f32.mrb[33].mxu1 }
0x2f04   :  { %v3116_v1 = vadd.f32 %v3112_v13, %v3034_v52  ;;  %7347 = vtanh.f32 %v3115_v15  ;;  %v3117_v4 = vsub.f32 0.0, %v3115_v15  ;;  %v3175_v52 = vld [vmem:[#allocation2 + $0xf] sm:$0x1] }
0x2f06   :  { %7349 = vtanh.f32 %v3116_v1  ;;  %v3118_v44 = vsub.f32 0.0, %v3116_v1  ;;  %v3119_v45 = vmul.f32 1.442695, %v3117_v4 }
0x2f08   :  { %v3121_v46 = vmul.f32 1.442695, %v3118_v44  ;;  %7351 = vpow2.f32 %v3119_v45  ;;  %v3176_v44 = vld [vmem:[#allocation2 + $0x1f] sm:$0x1] }
0x2f0a   :  { %7353 = vpow2.f32 %v3121_v46 }
0x2f0e   :  { %v7348_v9 = vpop.eup %7347 }
0x2f0f   :  { %3135 = vrot.lane.b32.xlu1 %v7348_v9, %s7668_s4 }
0x2f10   :  { %v7350_v54 = vpop.eup %7349 }
0x2f11   :  { %3137 = vrot.lane.b32.xlu0 %v7350_v54, %s7668_s4 }
0x2f12   :  { %v7352_v47 = vpop.eup %7351 }
0x2f13   :  { %v3123_v49 = vadd.f32 1.0, %v7352_v47 }
0x2f14   :  { %v7354_v48 = vpop.eup %7353 }
0x2f15   :  { %v3124_v53 = vadd.f32 1.0, %v7354_v48  ;;  %7355 = vrcp.f32 %v3123_v49 }
0x2f17   :  { %7357 = vrcp.f32 %v3124_v53 }
0x2f1f   :  { %v7356_v40 = vpop.eup %7355 }
0x2f20   :  { %v3131_v39 = vmul.f32 %v7356_v40, %v3009_v11 }
0x2f21   :  { %v7358_v43 = vpop.eup %7357 }
0x2f22   :  { %v3132_v3 = vmul.f32 %v7358_v43, %v3010_v0 }
0x2f81   :  { %v3136_v56 = vpop.permute.xlu1 %3135 }
0x2f82   :  { %v3141_v57 = vmul.f32 %v7356_v40, %v3136_v56 }
0x2f83   :  { %v3138_v7 = vpop.permute.xlu0 %3137 }
0x2f84   :  { %v3142_v63 = vmul.f32 %v7358_v43, %v3138_v7  ;;  %3145 = vrot.lane.b32.xlu1 %v3141_v57, %s7667_s24 }
0x2f86   :  { %3147 = vrot.lane.b32.xlu0 %v3142_v63, %s7667_s24 }
0x2ff6   :  { %v3146_v25 = vpop.permute.xlu1 %3145 }
0x2ff7   :  { %v3151_v33 = vadd.f32 %v3146_v25, %v3131_v39 }
0x2ff8   :  { %v3148_v37 = vpop.permute.xlu0 %3147 }
0x2ff9   :  { %7359 = vtanh.f32 %v3151_v33  ;;  %v3152_v30 = vadd.f32 %v3148_v37, %v3132_v3 }
0x2ffb   :  { %7361 = vtanh.f32 %v3152_v30 }
0x3003   :  { %v7360_v17 = vpop.eup %7359 }
0x3004   :  { %3157 = vrot.lane.b32.xlu1 %v7360_v17, %s7668_s4 }
0x3005   :  { %v7362_v41 = vpop.eup %7361 }
0x3006   :  { %3159 = vrot.lane.b32.xlu0 %v7362_v41, %s7668_s4 }
0x3076   :  { %v3158_v2 = vpop.permute.xlu1 %3157 }
0x3077   :  { %v8518_v15 = vmul.f32 %v7356_v40, %v3158_v2 }
0x3078   :  { %v3160_v8 = vpop.permute.xlu0 %3159 }
0x3079   :  { %v8516_v13 = vmul.f32 %v7358_v43, %v3160_v8 }
0x307b   :  { %v3177_v11 = vrot.slane %v8516_v13, 7 }
0x307d   :  { %v3178_v0 = vsel %vm1189_vm13, %v3177_v11, %v8518_v15 }
0x307e   :  { %3179 = vrot.lane.b32.xlu0 %v3178_v0, %s7667_s24 }
0x30f0   :  { %v3180_v19 = vpop.permute.xlu0 %3179 }
0x30f1   :  { %6565 = vmatmul.mubr.msk.f32.vlgmr.msra.gmra.mrb[16].mxu0 %vm155_vm1, %v3180_v19 }
0x30f2   :  { %6589 = vmatprep.mubr.msk.f32.mxu0 %vm7674_vm12, %v7675_v26 }
0x31c4   :  { %v3249_v1 = vpop.f32.mrb[16].mxu0 }
0x31c5   :  { %v3254_v9 = vrot.slane %v3249_v1, 1  ;;  %v3257_v54 = vadd.f32 %v3249_v1, %v3175_v52  ;;  %v6566_v4 = vpop.f32.mrb[17].mxu0 }
0x31c7   :  { %v3258_v45 = vadd.f32 %v3254_v9, %v3176_v44  ;;  %7363 = vtanh.f32 %v3257_v54  ;;  %v3259_v48 = vsub.f32 0.0, %v3257_v54 }
0x31c9   :  { %7365 = vtanh.f32 %v3258_v45  ;;  %v3260_v49 = vsub.f32 0.0, %v3258_v45  ;;  %v3261_v53 = vmul.f32 1.442695, %v3259_v48 }
0x31cb   :  { %v3263_v40 = vmul.f32 1.442695, %v3260_v49  ;;  %7367 = vpow2.f32 %v3261_v53 }
0x31cd   :  { %7369 = vpow2.f32 %v3263_v40 }
0x31d1   :  { %v7364_v46 = vpop.eup %7363 }
0x31d2   :  { %3277 = vrot.lane.b32.xlu1 %v7364_v46, %s7668_s4 }
0x31d3   :  { %v7366_v47 = vpop.eup %7365 }
0x31d4   :  { %3279 = vrot.lane.b32.xlu0 %v7366_v47, %s7668_s4 }
0x31d5   :  { %v7368_v56 = vpop.eup %7367 }
0x31d6   :  { %v3265_v43 = vadd.f32 1.0, %v7368_v56 }
0x31d7   :  { %v7370_v57 = vpop.eup %7369 }
0x31d8   :  { %v3266_v7 = vadd.f32 1.0, %v7370_v57  ;;  %7371 = vrcp.f32 %v3265_v43 }
0x31da   :  { %7373 = vrcp.f32 %v3266_v7 }
0x31e2   :  { %v8529_v63 = vpop.eup %7371 }
0x31e3   :  { %v3273_v41 = vmul.f32 %v8529_v63, %v3151_v33 }
0x31e4   :  { %v8532_v3 = vpop.eup %7373 }
0x31e5   :  { %v3274_v11 = vmul.f32 %v8532_v3, %v3152_v30 }
0x3244   :  { %v3278_v39 = vpop.permute.xlu1 %3277 }
0x3245   :  { %v3283_v25 = vmul.f32 %v8529_v63, %v3278_v39 }
0x3246   :  { %v3280_v37 = vpop.permute.xlu0 %3279 }
0x3247   :  { %v3284_v17 = vmul.f32 %v8532_v3, %v3280_v37  ;;  %3287 = vrot.lane.b32.xlu1 %v3283_v25, %s7667_s24 }
0x3249   :  { %3289 = vrot.lane.b32.xlu0 %v3284_v17, %s7667_s24 }
0x324d   :  { %1321 = vrot.lane.b32.xlu0 %v8252_v62, %s7667_s24  ;;  %v3323_v62 = vld [vmem:[%s9263_s16 + $0x10] sm:$0xff] }
0x32b9   :  { %v3288_v2 = vpop.permute.xlu1 %3287 }
0x32ba   :  { %v3293_v8 = vadd.f32 %v3288_v2, %v3273_v41  ;;  %v6133_v2 = vld [vmem:[%s9290_s0] ss:$0 sm:$0xff] }
0x32bb   :  { %v3290_v0 = vpop.permute.xlu0 %3289 }
0x32bc   :  { %7375 = vtanh.f32 %v3293_v8  ;;  %v3294_v19 = vadd.f32 %v3290_v0, %v3274_v11 }
0x32be   :  { %7377 = vtanh.f32 %v3294_v19 }
0x32bf   :  { %v1322_v52 = vpop.permute.xlu0 %1321 }
0x32c0   :  { %1327 = vst.msk [vmem:[#allocation3 + $0x1] sm:$0x1] %vm1183_vm14, %v1322_v52 }
0x32c6   :  { %v7376_v1 = vpop.eup %7375 }
0x32c7   :  { %3299 = vrot.lane.b32.xlu1 %v7376_v1, %s7668_s4 }
0x32c8   :  { %v7378_v9 = vpop.eup %7377 }
0x32c9   :  { %3301 = vrot.lane.b32.xlu0 %v7378_v9, %s7668_s4 }
0x32cb   :  { %1177 = vrot.lane.b32.xlu1 %v8232_v36, %s7667_s24  ;;  %v3322_v36 = vld [vmem:[%s9263_s16 + $0x8] sm:$0xff] }
0x32cd   :  { %1605 = vrot.lane.b32.xlu0 %v8294_v12, %s7667_s24 }
0x32cf   :  { %1463 = vrot.lane.b32.xlu1 %v8273_v27, %s7667_s24 }
0x32d1   :  { %1889 = vrot.lane.b32.xlu0 %v8336_v55, %s7667_s24  ;;  %v3327_v55 = vld [vmem:[%s9264_s17 + $0x10] sm:$0xff] }
0x32d3   :  { %1747 = vrot.lane.b32.xlu1 %v8315_v6, %s7667_s24  ;;  %v3325_v6 = vld [vmem:[%s9264_s17] sm:$0xff] }
0x32d5   :  { %2173 = vrot.lane.b32.xlu0 %v8378_v42, %s7667_s24 }
0x32d7   :  { %2031 = vrot.lane.b32.xlu1 %v8357_v18, %s7667_s24  ;;  %v3328_v18 = vld [vmem:[%s9264_s17 + $0x18] sm:$0xff] }
0x32d9   :  { %2457 = vrot.lane.b32.xlu0 %v8420_v22, %s7667_s24 }
0x32db   :  { %2315 = vrot.lane.b32.xlu1 %v8399_v35, %s7667_s24 }
0x32dd   :  { %2741 = vrot.lane.b32.xlu0 %v8462_v16, %s7667_s24 }
0x32df   :  { %2599 = vrot.lane.b32.xlu1 %v8441_v10, %s7667_s24 }
0x32e1   :  { %3025 = vrot.lane.b32.xlu0 %v8503_v60, %s7667_s24 }
0x32e3   :  { %2883 = vrot.lane.b32.xlu1 %v8482_v29, %s7667_s24 }
0x32e5   :  { %1323 = vrot.lane.b32.xlu0 %v8250_v50, %s7667_s24 }
0x32e7   :  { %3167 = vrot.lane.b32.xlu1 %v8518_v15, %s7667_s24 }
0x32e9   :  { %1607 = vrot.lane.b32.xlu0 %v8292_v59, %s7667_s24 }
0x32eb   :  { %1179 = vrot.lane.b32.xlu1 %v8229_v61, %s7667_s24  ;;  %v3321_v61 = vld [vmem:[%s9263_s16] sm:$0xff] }
0x32ec   :  { %v6861_v50 = vpack.c.bf16 %v3322_v36, %v3321_v61 }
0x32ed   :  { %1891 = vrot.lane.b32.xlu0 %v8334_v38, %s7667_s24  ;;  %v3326_v38 = vld [vmem:[%s9264_s17 + $0x8] sm:$0xff] }
0x32ee   :  { %6862 = vmatprep.subr.bf16.mxu1 %v6861_v50 }
0x32ef   :  { %1465 = vrot.lane.b32.xlu1 %v8271_v24, %s7667_s24  ;;  %6864 = vmatpush3.bf16.msra.mxu1 %v6861_v50  ;;  %v3324_v24 = vld [vmem:[%s9263_s16 + $0x18] sm:$0xff] }
0x32f0   :  { %v6865_v27 = vpack.c.bf16 %v3324_v24, %v3323_v62 }
0x32f1   :  { %2175 = vrot.lane.b32.xlu0 %v8376_v14, %s7667_s24 }
0x32f2   :  { %6866 = vmatprep.subr.bf16.mxu1 %v6865_v27 }
0x32f3   :  { %1749 = vrot.lane.b32.xlu1 %v8313_v5, %s7667_s24  ;;  %6868 = vmatpush3.bf16.msra.mxu1 %v6865_v27 }
0x32f4   :  { %6875 = vmatprep.subr.bf16.mxu1 %v7673_v51 }
0x32f5   :  { %2459 = vrot.lane.b32.xlu0 %v8418_v21, %s7667_s24 }
0x32f7   :  { %2033 = vrot.lane.b32.xlu1 %v8355_v32, %s7667_s24  ;;  %v8626_v32 = vpack.c.bf16 %v3326_v38, %v3325_v6 }
0x32f9   :  { %2743 = vrot.lane.b32.xlu0 %v8460_v34, %s7667_s24  ;;  %6871 = vmatpush3.bf16.msra.mxu0 %v8626_v32 }
0x32fa   :  { %6872 = vmatprep.subr.bf16.mxu0 %v7673_v51 }
0x32fb   :  { %2317 = vrot.lane.b32.xlu1 %v8397_v28, %s7667_s24  ;;  %v8634_v28 = vpack.c.bf16 %v3328_v18, %v3327_v55 }
0x32fd   :  { %3027 = vrot.lane.b32.xlu0 %v8501_v31, %s7667_s24  ;;  %6874 = vmatpush3.bf16.msra.mxu0 %v8634_v28 }
0x32fe   :  { %6881 = vmatprep.subr.bf16.mxu0 %v7673_v51 }
0x32ff   :  { %2601 = vrot.lane.b32.xlu1 %v8439_v20, %s7667_s24 }
0x3300   :  { %6590 = vmatmul.mubr.f32.vlgmr.msra.gmra.mrb[18].mxu0 %v7675_v26 }
0x3301   :  { %6883 = vmatpush3.bf16.msra.mxu0 %v8626_v32  ;;  %6611 = vmatprep.mubr.msk.f32.mxu0 %vm7674_vm12, %v7675_v26 }
0x3302   :  { %6884 = vmatprep.subr.bf16.mxu0 %v7673_v51 }
0x3303   :  { %2885 = vrot.lane.b32.xlu1 %v8480_v23, %s7667_s24 }
0x3305   :  { %6886 = vmatpush3.bf16.msra.mxu0 %v8634_v28 }
0x3306   :  { %6893 = vmatprep.subr.bf16.mxu0 %v7673_v51 }
0x3307   :  { %3169 = vrot.lane.b32.xlu1 %v8516_v13, %s7667_s24 }
0x3339   :  { %v3300_v59 = vpop.permute.xlu1 %3299 }
0x333a   :  { %v3305_v12 = vmul.f32 %v8529_v63, %v3300_v59 }
0x333b   :  { %v3302_v5 = vpop.permute.xlu0 %3301 }
0x333c   :  { %3309 = vrot.lane.b32.xlu0 %v3305_v12, %s7667_s24  ;;  %v3306_v42 = vmul.f32 %v8532_v3, %v3302_v5 }
0x333d   :  { %v1178_v14 = vpop.permute.xlu1 %1177 }
0x333e   :  { %1184 = vst.msk [vmem:[#allocation3] sm:$0x1] %vm1183_vm14, %v1178_v14 }
0x333f   :  { %v1606_v35 = vpop.permute.xlu0 %1605 }
0x3340   :  { %1611 = vst.msk [vmem:[#allocation3 + $0x3] sm:$0x1] %vm1183_vm14, %v1606_v35  ;;  %3311 = vrot.lane.b32.xlu0 %v3306_v42, %s7667_s24 }
0x3341   :  { %v1464_v21 = vpop.permute.xlu1 %1463 }
0x3342   :  { %1469 = vst.msk [vmem:[#allocation3 + $0x2] sm:$0x1] %vm1183_vm14, %v1464_v21 }
0x3343   :  { %v1890_v22 = vpop.permute.xlu0 %1889 }
0x3344   :  { %1895 = vst.msk [vmem:[#allocation3 + $0x5] sm:$0x1] %vm1183_vm14, %v1890_v22 }
0x3345   :  { %v1748_v20 = vpop.permute.xlu1 %1747 }
0x3346   :  { %1753 = vst.msk [vmem:[#allocation3 + $0x4] sm:$0x1] %vm1183_vm14, %v1748_v20 }
0x3347   :  { %v2174_v10 = vpop.permute.xlu0 %2173 }
0x3348   :  { %2179 = vst.msk [vmem:[#allocation3 + $0x7] sm:$0x1] %vm1183_vm14, %v2174_v10 }
0x3349   :  { %v2032_v34 = vpop.permute.xlu1 %2031 }
0x334a   :  { %2037 = vst.msk [vmem:[#allocation3 + $0x6] sm:$0x1] %vm1183_vm14, %v2032_v34 }
0x334b   :  { %v2458_v16 = vpop.permute.xlu0 %2457 }
0x334c   :  { %2463 = vst.msk [vmem:[#allocation3 + $0x9] sm:$0x1] %vm1183_vm14, %v2458_v16 }
0x334d   :  { %v2316_v23 = vpop.permute.xlu1 %2315 }
0x334e   :  { %2321 = vst.msk [vmem:[#allocation3 + $0x8] sm:$0x1] %vm1183_vm14, %v2316_v23 }
0x334f   :  { %v2742_v29 = vpop.permute.xlu0 %2741 }
0x3350   :  { %2747 = vst.msk [vmem:[#allocation3 + $0xb] sm:$0x1] %vm1183_vm14, %v2742_v29 }
0x3351   :  { %v2600_v31 = vpop.permute.xlu1 %2599  ;;  %v3317_v60 = vld [vmem:[#allocation3] sm:$0xff] }
0x3352   :  { %2605 = vst.msk [vmem:[#allocation3 + $0xa] sm:$0x1] %vm1183_vm14, %v2600_v31  ;;  %6575 = vmatprep.mubr.msk.f32.mxu1 %vm155_vm1, %v3317_v60 }
0x3353   :  { %v3026_v33 = vpop.permute.xlu0 %3025 }
0x3354   :  { %3031 = vst.msk [vmem:[#allocation3 + $0xd] sm:$0x1] %vm1183_vm14, %v3026_v33 }
0x3355   :  { %v2884_v30 = vpop.permute.xlu1 %2883 }
0x3356   :  { %2889 = vst.msk [vmem:[#allocation3 + $0xc] sm:$0x1] %vm1183_vm14, %v2884_v30 }
0x3357   :  { %v1324_v13 = vpop.permute.xlu0 %1323 }
0x3358   :  { %1328 = vst.msk [vmem:[#allocation3 + $0x11] sm:$0x1] %vm1183_vm14, %v1324_v13 }
0x3359   :  { %v3168_v15 = vpop.permute.xlu1 %3167 }
0x335a   :  { %3173 = vst.msk [vmem:[#allocation3 + $0xe] sm:$0x1] %vm1183_vm14, %v3168_v15 }
0x335b   :  { %v1608_v54 = vpop.permute.xlu0 %1607 }
0x335c   :  { %1612 = vst.msk [vmem:[#allocation3 + $0x13] sm:$0x1] %vm1183_vm14, %v1608_v54 }
0x335d   :  { %v1180_v4 = vpop.permute.xlu1 %1179 }
0x335e   :  { %1185 = vst.msk [vmem:[#allocation3 + $0x10] sm:$0x1] %vm1183_vm14, %v1180_v4 }
0x335f   :  { %v1892_v44 = vpop.permute.xlu0 %1891 }
0x3360   :  { %1896 = vst.msk [vmem:[#allocation3 + $0x15] sm:$0x1] %vm1183_vm14, %v1892_v44 }
0x3361   :  { %v1466_v45 = vpop.permute.xlu1 %1465 }
0x3362   :  { %1470 = vst.msk [vmem:[#allocation3 + $0x12] sm:$0x1] %vm1183_vm14, %v1466_v45 }
0x3363   :  { %v2176_v46 = vpop.permute.xlu0 %2175 }
0x3364   :  { %2180 = vst.msk [vmem:[#allocation3 + $0x17] sm:$0x1] %vm1183_vm14, %v2176_v46 }
0x3365   :  { %v1750_v47 = vpop.permute.xlu1 %1749 }
0x3366   :  { %1754 = vst.msk [vmem:[#allocation3 + $0x14] sm:$0x1] %vm1183_vm14, %v1750_v47 }
0x3367   :  { %v2460_v48 = vpop.permute.xlu0 %2459 }
0x3368   :  { %2464 = vst.msk [vmem:[#allocation3 + $0x19] sm:$0x1] %vm1183_vm14, %v2460_v48 }
0x3369   :  { %v2034_v49 = vpop.permute.xlu1 %2033 }
0x336a   :  { %2038 = vst.msk [vmem:[#allocation3 + $0x16] sm:$0x1] %vm1183_vm14, %v2034_v49 }
0x336b   :  { %v2744_v53 = vpop.permute.xlu0 %2743 }
0x336c   :  { %2748 = vst.msk [vmem:[#allocation3 + $0x1b] sm:$0x1] %vm1183_vm14, %v2744_v53 }
0x336d   :  { %v2318_v40 = vpop.permute.xlu1 %2317 }
0x336e   :  { %2322 = vst.msk [vmem:[#allocation3 + $0x18] sm:$0x1] %vm1183_vm14, %v2318_v40 }
0x336f   :  { %v3028_v56 = vpop.permute.xlu0 %3027 }
0x3370   :  { %3032 = vst.msk [vmem:[#allocation3 + $0x1d] sm:$0x1] %vm1183_vm14, %v3028_v56 }
0x3371   :  { %v2602_v57 = vpop.permute.xlu1 %2601  ;;  %v3319_v3 = vld [vmem:[#allocation3 + $0x10] sm:$0xff] }
0x3372   :  { %2606 = vst.msk [vmem:[#allocation3 + $0x1a] sm:$0x1] %vm1183_vm14, %v2602_v57 }
0x3375   :  { %v2886_v43 = vpop.permute.xlu1 %2885 }
0x3376   :  { %2890 = vst.msk [vmem:[#allocation3 + $0x1c] sm:$0x1] %vm1183_vm14, %v2886_v43 }
0x3379   :  { %v3170_v7 = vpop.permute.xlu1 %3169 }
0x337a   :  { %3174 = vst.msk [vmem:[#allocation3 + $0x1e] sm:$0x1] %vm1183_vm14, %v3170_v7 }
0x33ae   :  { %v3310_v63 = vpop.permute.xlu0 %3309 }
0x33af   :  { %3315 = vst.msk [vmem:[#allocation3 + $0xf] sm:$0x1] %vm1183_vm14, %v3310_v63 }
0x33b2   :  { %v3312_v39 = vpop.permute.xlu0 %3311 }
0x33b3   :  { %3316 = vst.msk [vmem:[#allocation3 + $0x1f] sm:$0x1] %vm1183_vm14, %v3312_v39 }
0x33b6   :  { %v3318_v25 = vld [vmem:[#allocation3 + $0x8] sm:$0xff] }
0x33b7   :  { %6576 = vmatmul.mubr.msk.f32.vlgmr.msra.gmra.mrb[34].mxu1 %vm155_vm1, %v3318_v25 }
0x33b8   :  { %6578 = vmatprep.mubr.msk.f32.mxu1 %vm155_vm1, %v3319_v3  ;;  %6877 = vmatpush3.bf16.msra.mxu1 %v8626_v32 }
0x33b9   :  { %6878 = vmatprep.subr.bf16.mxu1 %v7673_v51 }
0x33ba   :  { %v3320_v37 = vld [vmem:[#allocation3 + $0x18] sm:$0xff] }
0x33bb   :  { %6579 = vmatmul.mubr.msk.f32.gmra.mrb[36].mxu1 %vm155_vm1, %v3320_v37 }
0x33bc   :  { %6880 = vmatpush3.bf16.msra.mxu1 %v8634_v28  ;;  %6600 = vmatprep.mubr.msk.f32.mxu1 %vm7674_vm12, %v7675_v26 }
0x33bd   :  { %6887 = vmatprep.subr.bf16.mxu1 %v7673_v51 }
0x33d3   :  { %v3505_v17 = vpop.f32.mrb[18].mxu0 }
0x33d4   :  { %v6591_v41 = vpop.f32.mrb[19].mxu0  ;;  %v3510_v50 = vrot.slane %v3505_v17, 1 }
0x348a   :  { %v6577_v8 = vpop.f32.mrb[34].mxu1 }
0x348b   :  { %v3420_v11 = vadd.f32 %v6577_v8, %v6133_v2  ;;  %v3414_v0 = vpop.f32.mrb[35].mxu1 }
0x348c   :  { %v3415_v19 = vadd.f32 %v6133_v2, %v3414_v0 }
0x348d   :  { %3434 = vst [vmem:[#allocation2 + $0x8] sm:$0xff] %v3420_v11 }
0x348e   :  { %3433 = vst [vmem:[#allocation2] sm:$0xff] %v3415_v19  ;;  %v6580_v52 = vpop.f32.mrb[36].mxu1 }
0x348f   :  { %v3430_v1 = vadd.f32 %v6580_v52, %v6133_v2  ;;  %v3424_v9 = vpop.f32.mrb[37].mxu1 }
0x3490   :  { %v3425_v61 = vadd.f32 %v6133_v2, %v3424_v9 }
0x3491   :  { %3436 = vst [vmem:[#allocation2 + $0x18] sm:$0xff] %v3430_v1 }
0x3492   :  { %3435 = vst [vmem:[#allocation2 + $0x10] sm:$0xff] %v3425_v61 }
0x3495   :  { %v3437_v36 = vld [vmem:[#allocation2] sm:$0x1]  ;;  %v3573_v49 = vld [vmem:[#allocation2 + $0x1] sm:$0x1] }
0x3496   :  { %v3513_v62 = vadd.f32 %v3505_v17, %v3437_v36 }
0x3498   :  { %7379 = vtanh.f32 %v3513_v62  ;;  %v3515_v5 = vsub.f32 0.0, %v3513_v62 }
0x3499   :  { %v3438_v24 = vld [vmem:[#allocation2 + $0x10] sm:$0x1]  ;;  %v3574_v43 = vld [vmem:[#allocation2 + $0x11] sm:$0x1] }
0x349a   :  { %v3514_v27 = vadd.f32 %v3510_v50, %v3438_v24  ;;  %v3517_v6 = vmul.f32 1.442695, %v3515_v5 }
0x349c   :  { %7381 = vtanh.f32 %v3514_v27  ;;  %v3516_v38 = vsub.f32 0.0, %v3514_v27 }
0x349d   :  { %7383 = vpow2.f32 %v3517_v6 }
0x349e   :  { %v3519_v55 = vmul.f32 1.442695, %v3516_v38 }
0x34a0   :  { %7385 = vpow2.f32 %v3519_v55 }
0x34a2   :  { %v7380_v59 = vpop.eup %7379 }
0x34a3   :  { %3533 = vrot.lane.b32.xlu0 %v7380_v59, %s7668_s4 }
0x34a6   :  { %v7382_v12 = vpop.eup %7381 }
0x34a7   :  { %3535 = vrot.lane.b32.xlu1 %v7382_v12, %s7668_s4  ;;  %v7384_v18 = vpop.eup %7383 }
0x34a8   :  { %v3521_v14 = vadd.f32 1.0, %v7384_v18 }
0x34aa   :  { %v7386_v42 = vpop.eup %7385  ;;  %7387 = vrcp.f32 %v3521_v14 }
0x34ab   :  { %v3522_v35 = vadd.f32 1.0, %v7386_v42 }
0x34ad   :  { %7389 = vrcp.f32 %v3522_v35 }
0x34b4   :  { %v7388_v21 = vpop.eup %7387 }
0x34b5   :  { %v3529_v23 = vmul.f32 0.0, %v7388_v21 }
0x34b7   :  { %v7390_v10 = vpop.eup %7389 }
0x34b8   :  { %v3530_v60 = vmul.f32 0.0, %v7390_v10 }
0x3515   :  { %v3534_v22 = vpop.permute.xlu0 %3533 }
0x3516   :  { %v3539_v20 = vmul.f32 %v7388_v21, %v3534_v22 }
0x3518   :  { %3543 = vrot.lane.b32.xlu0 %v3539_v20, %s7667_s24 }
0x3519   :  { %v3536_v34 = vpop.permute.xlu1 %3535 }
0x351a   :  { %v3540_v16 = vmul.f32 %v7390_v10, %v3536_v34 }
0x351c   :  { %3545 = vrot.lane.b32.xlu1 %v3540_v16, %s7667_s24  ;;  %v3716_v16 = vld [vmem:[#allocation2 + $0x12] sm:$0x1] }
0x358a   :  { %v3544_v29 = vpop.permute.xlu0 %3543 }
0x358b   :  { %v3549_v31 = vadd.f32 %v3544_v29, %v3529_v23 }
0x358d   :  { %7391 = vtanh.f32 %v3549_v31 }
0x358e   :  { %v3546_v33 = vpop.permute.xlu1 %3545 }
0x358f   :  { %v3550_v30 = vadd.f32 %v3546_v33, %v3530_v60 }
0x3591   :  { %7393 = vtanh.f32 %v3550_v30 }
0x3597   :  { %v7392_v13 = vpop.eup %7391 }
0x3598   :  { %3555 = vrot.lane.b32.xlu0 %v7392_v13, %s7668_s4 }
0x359b   :  { %v7394_v15 = vpop.eup %7393 }
0x359c   :  { %3557 = vrot.lane.b32.xlu1 %v7394_v15, %s7668_s4 }
0x360a   :  { %v3556_v54 = vpop.permute.xlu0 %3555 }
0x360b   :  { %v8698_v45 = vmul.f32 %v7388_v21, %v3556_v54  ;;  %v3715_v21 = vld [vmem:[#allocation2 + $0x2] sm:$0x1] }
0x360e   :  { %v3558_v4 = vpop.permute.xlu1 %3557 }
0x360f   :  { %v8696_v44 = vmul.f32 %v7390_v10, %v3558_v4 }
0x3611   :  { %v3575_v46 = vrot.slane %v8696_v44, 7 }
0x3613   :  { %v3576_v47 = vsel %vm1189_vm13, %v3575_v46, %v8698_v45 }
0x3614   :  { %3577 = vrot.lane.b32.xlu1 %v3576_v47, %s7667_s24 }
0x3686   :  { %v3578_v48 = vpop.permute.xlu1 %3577 }
0x3687   :  { %6601 = vmatmul.mubr.msk.f32.vlgmr.msra.gmra.mrb[38].mxu1 %vm155_vm1, %v3578_v48 }
0x3688   :  { %6889 = vmatpush3.bf16.msra.mxu1 %v8626_v32  ;;  %6622 = vmatprep.mubr.msk.f32.mxu1 %vm7674_vm12, %v7675_v26 }
0x3689   :  { %6890 = vmatprep.subr.bf16.mxu1 %v7673_v51 }
0x368c   :  { %6892 = vmatpush3.bf16.msra.mxu1 %v8634_v28 }
0x368d   :  { %6899 = vmatprep.subr.bf16.mxu1 %v7673_v51 }
0x375a   :  { %v3647_v53 = vpop.f32.mrb[38].mxu1 }
0x375b   :  { %v3652_v40 = vrot.slane %v3647_v53, 1  ;;  %v3655_v56 = vadd.f32 %v3647_v53, %v3573_v49  ;;  %v6602_v57 = vpop.f32.mrb[39].mxu1 }
0x375d   :  { %v3656_v7 = vadd.f32 %v3652_v40, %v3574_v43  ;;  %7395 = vtanh.f32 %v3655_v56  ;;  %v3657_v25 = vsub.f32 0.0, %v3655_v56 }
0x375f   :  { %7397 = vtanh.f32 %v3656_v7  ;;  %v3658_v3 = vsub.f32 0.0, %v3656_v7  ;;  %v3659_v37 = vmul.f32 1.442695, %v3657_v25 }
0x3761   :  { %v3661_v17 = vmul.f32 1.442695, %v3658_v3  ;;  %7399 = vpow2.f32 %v3659_v37 }
0x3763   :  { %7401 = vpow2.f32 %v3661_v17 }
0x3767   :  { %v7396_v63 = vpop.eup %7395 }
0x3768   :  { %3675 = vrot.lane.b32.xlu1 %v7396_v63, %s7668_s4 }
0x3769   :  { %v7398_v39 = vpop.eup %7397 }
0x376a   :  { %3677 = vrot.lane.b32.xlu0 %v7398_v39, %s7668_s4 }
0x376b   :  { %v7400_v41 = vpop.eup %7399 }
0x376c   :  { %v3663_v8 = vadd.f32 1.0, %v7400_v41 }
0x376d   :  { %v7402_v2 = vpop.eup %7401 }
0x376e   :  { %v3664_v11 = vadd.f32 1.0, %v7402_v2  ;;  %7403 = vrcp.f32 %v3663_v8 }
0x3770   :  { %7405 = vrcp.f32 %v3664_v11 }
0x3778   :  { %v7404_v0 = vpop.eup %7403 }
0x3779   :  { %v3671_v36 = vmul.f32 %v7404_v0, %v3549_v31 }
0x377a   :  { %v7406_v1 = vpop.eup %7405 }
0x377b   :  { %v3672_v24 = vmul.f32 %v7406_v1, %v3550_v30 }
0x37da   :  { %v3676_v19 = vpop.permute.xlu1 %3675 }
0x37db   :  { %v3681_v52 = vmul.f32 %v7404_v0, %v3676_v19 }
0x37dc   :  { %v3678_v9 = vpop.permute.xlu0 %3677 }
0x37dd   :  { %v3682_v61 = vmul.f32 %v7406_v1, %v3678_v9  ;;  %3685 = vrot.lane.b32.xlu1 %v3681_v52, %s7667_s24  ;;  %v3857_v52 = vld [vmem:[#allocation2 + $0x3] sm:$0x1] }
0x37df   :  { %3687 = vrot.lane.b32.xlu0 %v3682_v61, %s7667_s24 }
0x384f   :  { %v3686_v50 = vpop.permute.xlu1 %3685 }
0x3850   :  { %v3691_v62 = vadd.f32 %v3686_v50, %v3671_v36  ;;  %v3858_v50 = vld [vmem:[#allocation2 + $0x13] sm:$0x1] }
0x3851   :  { %v3688_v27 = vpop.permute.xlu0 %3687 }
0x3852   :  { %7407 = vtanh.f32 %v3691_v62  ;;  %v3692_v59 = vadd.f32 %v3688_v27, %v3672_v24 }
0x3854   :  { %7409 = vtanh.f32 %v3692_v59 }
0x385c   :  { %v7408_v12 = vpop.eup %7407 }
0x385d   :  { %3697 = vrot.lane.b32.xlu1 %v7408_v12, %s7668_s4 }
0x385e   :  { %v7410_v5 = vpop.eup %7409 }
0x385f   :  { %3699 = vrot.lane.b32.xlu0 %v7410_v5, %s7668_s4 }
0x38cf   :  { %v3698_v6 = vpop.permute.xlu1 %3697 }
0x38d0   :  { %v8719_v18 = vmul.f32 %v7404_v0, %v3698_v6 }
0x38d1   :  { %v3700_v38 = vpop.permute.xlu0 %3699 }
0x38d2   :  { %v8717_v55 = vmul.f32 %v7406_v1, %v3700_v38 }
0x38d4   :  { %v3717_v14 = vrot.slane %v8717_v55, 7 }
0x38d6   :  { %v3718_v42 = vsel %vm1189_vm13, %v3717_v14, %v8719_v18 }
0x38d7   :  { %3719 = vrot.lane.b32.xlu0 %v3718_v42, %s7667_s24 }
0x3949   :  { %v3720_v35 = vpop.permute.xlu0 %3719 }
0x394a   :  { %6612 = vmatmul.mubr.msk.f32.vlgmr.msra.gmra.mrb[20].mxu0 %vm155_vm1, %v3720_v35 }
0x394b   :  { %6895 = vmatpush3.bf16.msra.mxu0 %v8626_v32  ;;  %6633 = vmatprep.mubr.msk.f32.mxu0 %vm7674_vm12, %v7675_v26 }
0x394c   :  { %6896 = vmatprep.subr.bf16.mxu0 %v7673_v51 }
0x394f   :  { %6898 = vmatpush3.bf16.msra.mxu0 %v8634_v28 }
0x3950   :  { %6905 = vmatprep.subr.bf16.mxu0 %v7673_v51 }
0x3a1d   :  { %v3789_v22 = vpop.f32.mrb[20].mxu0 }
0x3a1e   :  { %v3794_v20 = vrot.slane %v3789_v22, 1  ;;  %v3797_v10 = vadd.f32 %v3789_v22, %v3715_v21  ;;  %v6613_v34 = vpop.f32.mrb[21].mxu0 }
0x3a20   :  { %v3798_v23 = vadd.f32 %v3794_v20, %v3716_v16  ;;  %7411 = vtanh.f32 %v3797_v10  ;;  %v3799_v60 = vsub.f32 0.0, %v3797_v10 }
0x3a22   :  { %7413 = vtanh.f32 %v3798_v23  ;;  %v3800_v33 = vsub.f32 0.0, %v3798_v23  ;;  %v3801_v30 = vmul.f32 1.442695, %v3799_v60 }
0x3a24   :  { %v3803_v13 = vmul.f32 1.442695, %v3800_v33  ;;  %7415 = vpow2.f32 %v3801_v30 }
0x3a26   :  { %7417 = vpow2.f32 %v3803_v13 }
0x3a2a   :  { %v7412_v29 = vpop.eup %7411 }
0x3a2b   :  { %3817 = vrot.lane.b32.xlu0 %v7412_v29, %s7668_s4 }
0x3a2c   :  { %v7414_v31 = vpop.eup %7413 }
0x3a2d   :  { %3819 = vrot.lane.b32.xlu1 %v7414_v31, %s7668_s4 }
0x3a2e   :  { %v7416_v15 = vpop.eup %7415 }
0x3a2f   :  { %v3805_v4 = vadd.f32 1.0, %v7416_v15 }
0x3a30   :  { %v7418_v54 = vpop.eup %7417 }
0x3a31   :  { %v3806_v46 = vadd.f32 1.0, %v7418_v54  ;;  %7419 = vrcp.f32 %v3805_v4 }
0x3a33   :  { %7421 = vrcp.f32 %v3806_v46 }
0x3a3b   :  { %v7420_v47 = vpop.eup %7419 }
0x3a3c   :  { %v3813_v57 = vmul.f32 %v7420_v47, %v3691_v62 }
0x3a3d   :  { %v7422_v53 = vpop.eup %7421 }
0x3a3e   :  { %v3814_v63 = vmul.f32 %v7422_v53, %v3692_v59 }
0x3a9d   :  { %v3818_v48 = vpop.permute.xlu0 %3817 }
0x3a9e   :  { %v3823_v49 = vmul.f32 %v7420_v47, %v3818_v48 }
0x3a9f   :  { %v3820_v40 = vpop.permute.xlu1 %3819 }
0x3aa0   :  { %v3824_v56 = vmul.f32 %v7422_v53, %v3820_v40  ;;  %3827 = vrot.lane.b32.xlu0 %v3823_v49, %s7667_s24  ;;  %v3999_v40 = vld [vmem:[#allocation2 + $0x4] sm:$0x1] }
0x3aa2   :  { %3829 = vrot.lane.b32.xlu1 %v3824_v56, %s7667_s24 }
0x3b12   :  { %v3828_v43 = vpop.permute.xlu0 %3827 }
0x3b13   :  { %v3833_v7 = vadd.f32 %v3828_v43, %v3813_v57 }
0x3b14   :  { %v3830_v39 = vpop.permute.xlu1 %3829 }
0x3b15   :  { %7423 = vtanh.f32 %v3833_v7  ;;  %v3834_v25 = vadd.f32 %v3830_v39, %v3814_v63  ;;  %v4000_v63 = vld [vmem:[#allocation2 + $0x14] sm:$0x1] }
0x3b17   :  { %7425 = vtanh.f32 %v3834_v25 }
0x3b1f   :  { %v7424_v3 = vpop.eup %7423 }
0x3b20   :  { %3839 = vrot.lane.b32.xlu0 %v7424_v3, %s7668_s4 }
0x3b21   :  { %v7426_v37 = vpop.eup %7425 }
0x3b22   :  { %3841 = vrot.lane.b32.xlu1 %v7426_v37, %s7668_s4 }
0x3b92   :  { %v3840_v17 = vpop.permute.xlu0 %3839 }
0x3b93   :  { %v8740_v8 = vmul.f32 %v7420_v47, %v3840_v17 }
0x3b94   :  { %v3842_v41 = vpop.permute.xlu1 %3841 }
0x3b95   :  { %v8738_v2 = vmul.f32 %v7422_v53, %v3842_v41 }
0x3b97   :  { %v3859_v11 = vrot.slane %v8738_v2, 7 }
0x3b99   :  { %v3860_v0 = vsel %vm1189_vm13, %v3859_v11, %v8740_v8 }
0x3b9a   :  { %3861 = vrot.lane.b32.xlu1 %v3860_v0, %s7667_s24 }
0x3c0c   :  { %v3862_v19 = vpop.permute.xlu1 %3861 }
0x3c0d   :  { %6623 = vmatmul.mubr.msk.f32.vlgmr.msra.gmra.mrb[40].mxu1 %vm155_vm1, %v3862_v19 }
0x3c0e   :  { %6901 = vmatpush3.bf16.msra.mxu1 %v8626_v32  ;;  %6644 = vmatprep.mubr.msk.f32.mxu1 %vm7674_vm12, %v7675_v26 }
0x3c0f   :  { %6902 = vmatprep.subr.bf16.mxu1 %v7673_v51 }
0x3c12   :  { %6904 = vmatpush3.bf16.msra.mxu1 %v8634_v28 }
0x3c13   :  { %6911 = vmatprep.subr.bf16.mxu1 %v7673_v51 }
0x3ce0   :  { %v3931_v1 = vpop.f32.mrb[40].mxu1 }
0x3ce1   :  { %v3936_v9 = vrot.slane %v3931_v1, 1  ;;  %v3939_v61 = vadd.f32 %v3931_v1, %v3857_v52  ;;  %v6624_v36 = vpop.f32.mrb[41].mxu1 }
0x3ce3   :  { %v3940_v62 = vadd.f32 %v3936_v9, %v3858_v50  ;;  %7427 = vtanh.f32 %v3939_v61  ;;  %v3941_v59 = vsub.f32 0.0, %v3939_v61 }
0x3ce5   :  { %7429 = vtanh.f32 %v3940_v62  ;;  %v3942_v12 = vsub.f32 0.0, %v3940_v62  ;;  %v3943_v5 = vmul.f32 1.442695, %v3941_v59 }
0x3ce7   :  { %v3945_v6 = vmul.f32 1.442695, %v3942_v12  ;;  %7431 = vpow2.f32 %v3943_v5 }
0x3ce9   :  { %7433 = vpow2.f32 %v3945_v6 }
0x3ced   :  { %v7428_v24 = vpop.eup %7427 }
0x3cee   :  { %3959 = vrot.lane.b32.xlu1 %v7428_v24, %s7668_s4 }
0x3cef   :  { %v7430_v27 = vpop.eup %7429 }
0x3cf0   :  { %3961 = vrot.lane.b32.xlu0 %v7430_v27, %s7668_s4 }
0x3cf1   :  { %v7432_v38 = vpop.eup %7431 }
0x3cf2   :  { %v3947_v42 = vadd.f32 1.0, %v7432_v38 }
0x3cf3   :  { %v7434_v14 = vpop.eup %7433 }
0x3cf4   :  { %v3948_v35 = vadd.f32 1.0, %v7434_v14  ;;  %7435 = vrcp.f32 %v3947_v42 }
0x3cf6   :  { %7437 = vrcp.f32 %v3948_v35 }
0x3cfe   :  { %v7436_v21 = vpop.eup %7435 }
0x3cff   :  { %v3955_v23 = vmul.f32 %v7436_v21, %v3833_v7 }
0x3d00   :  { %v7438_v10 = vpop.eup %7437 }
0x3d01   :  { %v3956_v60 = vmul.f32 %v7438_v10, %v3834_v25 }
0x3d60   :  { %v3960_v22 = vpop.permute.xlu1 %3959 }
0x3d61   :  { %v3965_v20 = vmul.f32 %v7436_v21, %v3960_v22 }
0x3d62   :  { %v3962_v34 = vpop.permute.xlu0 %3961 }
0x3d63   :  { %v3966_v16 = vmul.f32 %v7438_v10, %v3962_v34  ;;  %3969 = vrot.lane.b32.xlu1 %v3965_v20, %s7667_s24 }
0x3d65   :  { %3971 = vrot.lane.b32.xlu0 %v3966_v16, %s7667_s24 }
0x3dd5   :  { %v3970_v29 = vpop.permute.xlu1 %3969 }
0x3dd6   :  { %v3975_v31 = vadd.f32 %v3970_v29, %v3955_v23  ;;  %v4141_v23 = vld [vmem:[#allocation2 + $0x5] sm:$0x1] }
0x3dd7   :  { %v3972_v33 = vpop.permute.xlu0 %3971 }
0x3dd8   :  { %7439 = vtanh.f32 %v3975_v31  ;;  %v3976_v30 = vadd.f32 %v3972_v33, %v3956_v60 }
0x3dda   :  { %7441 = vtanh.f32 %v3976_v30 }
0x3de2   :  { %v7440_v13 = vpop.eup %7439 }
0x3de3   :  { %3981 = vrot.lane.b32.xlu1 %v7440_v13, %s7668_s4 }
0x3de4   :  { %v7442_v15 = vpop.eup %7441 }
0x3de5   :  { %3983 = vrot.lane.b32.xlu0 %v7442_v15, %s7668_s4 }
0x3e55   :  { %v3982_v54 = vpop.permute.xlu1 %3981 }
0x3e56   :  { %v8761_v47 = vmul.f32 %v7436_v21, %v3982_v54 }
0x3e57   :  { %v3984_v4 = vpop.permute.xlu0 %3983 }
0x3e58   :  { %v8759_v46 = vmul.f32 %v7438_v10, %v3984_v4 }
0x3e5a   :  { %v4001_v48 = vrot.slane %v8759_v46, 7 }
0x3e5c   :  { %v4002_v49 = vsel %vm1189_vm13, %v4001_v48, %v8761_v47 }
0x3e5d   :  { %4003 = vrot.lane.b32.xlu0 %v4002_v49, %s7667_s24 }
0x3ecf   :  { %v4004_v53 = vpop.permute.xlu0 %4003 }
0x3ed0   :  { %6634 = vmatmul.mubr.msk.f32.vlgmr.msra.gmra.mrb[22].mxu0 %vm155_vm1, %v4004_v53 }
0x3ed1   :  { %6907 = vmatpush3.bf16.msra.mxu0 %v8626_v32  ;;  %6655 = vmatprep.mubr.msk.f32.mxu0 %vm7674_vm12, %v7675_v26 }
0x3ed2   :  { %6908 = vmatprep.subr.bf16.mxu0 %v7673_v51 }
0x3ed5   :  { %6910 = vmatpush3.bf16.msra.mxu0 %v8634_v28 }
0x3ed6   :  { %6917 = vmatprep.subr.bf16.mxu0 %v7673_v51 }
0x3fa3   :  { %v4073_v56 = vpop.f32.mrb[22].mxu0 }
0x3fa4   :  { %v4078_v57 = vrot.slane %v4073_v56, 1  ;;  %v4081_v43 = vadd.f32 %v4073_v56, %v3999_v40  ;;  %v6635_v7 = vpop.f32.mrb[23].mxu0 }
0x3fa6   :  { %v4082_v39 = vadd.f32 %v4078_v57, %v4000_v63  ;;  %7443 = vtanh.f32 %v4081_v43  ;;  %v4083_v37 = vsub.f32 0.0, %v4081_v43 }
0x3fa8   :  { %7445 = vtanh.f32 %v4082_v39  ;;  %v4084_v17 = vsub.f32 0.0, %v4082_v39  ;;  %v4085_v41 = vmul.f32 1.442695, %v4083_v37 }
0x3faa   :  { %v4087_v11 = vmul.f32 1.442695, %v4084_v17  ;;  %7447 = vpow2.f32 %v4085_v41 }
0x3fac   :  { %7449 = vpow2.f32 %v4087_v11 }
0x3fb0   :  { %v7444_v25 = vpop.eup %7443 }
0x3fb1   :  { %4101 = vrot.lane.b32.xlu0 %v7444_v25, %s7668_s4 }
0x3fb2   :  { %v7446_v3 = vpop.eup %7445 }
0x3fb3   :  { %4103 = vrot.lane.b32.xlu1 %v7446_v3, %s7668_s4 }
0x3fb4   :  { %v7448_v0 = vpop.eup %7447 }
0x3fb5   :  { %v4089_v52 = vadd.f32 1.0, %v7448_v0 }
0x3fb6   :  { %v7450_v19 = vpop.eup %7449 }
0x3fb7   :  { %v4090_v1 = vadd.f32 1.0, %v7450_v19  ;;  %7451 = vrcp.f32 %v4089_v52 }
0x3fb9   :  { %7453 = vrcp.f32 %v4090_v1 }
0x3fc1   :  { %v7452_v9 = vpop.eup %7451 }
0x3fc2   :  { %v4097_v27 = vmul.f32 %v7452_v9, %v3975_v31 }
0x3fc3   :  { %v7454_v50 = vpop.eup %7453 }
0x3fc4   :  { %v4098_v5 = vmul.f32 %v7454_v50, %v3976_v30  ;;  %v4142_v30 = vld [vmem:[#allocation2 + $0x15] sm:$0x1] }
0x4023   :  { %v4102_v61 = vpop.permute.xlu0 %4101 }
0x4024   :  { %v4107_v36 = vmul.f32 %v7452_v9, %v4102_v61 }
0x4025   :  { %v4104_v62 = vpop.permute.xlu1 %4103 }
0x4026   :  { %v4108_v24 = vmul.f32 %v7454_v50, %v4104_v62  ;;  %4111 = vrot.lane.b32.xlu0 %v4107_v36, %s7667_s24 }
0x4028   :  { %4113 = vrot.lane.b32.xlu1 %v4108_v24, %s7667_s24 }
0x4098   :  { %v4112_v59 = vpop.permute.xlu0 %4111 }
0x4099   :  { %v4117_v12 = vadd.f32 %v4112_v59, %v4097_v27 }
0x409a   :  { %v4114_v6 = vpop.permute.xlu1 %4113 }
0x409b   :  { %7455 = vtanh.f32 %v4117_v12  ;;  %v4118_v38 = vadd.f32 %v4114_v6, %v4098_v5 }
0x409d   :  { %7457 = vtanh.f32 %v4118_v38 }
0x40a5   :  { %v7456_v14 = vpop.eup %7455 }
0x40a6   :  { %4123 = vrot.lane.b32.xlu0 %v7456_v14, %s7668_s4 }
0x40a7   :  { %v7458_v42 = vpop.eup %7457 }
0x40a8   :  { %4125 = vrot.lane.b32.xlu1 %v7458_v42, %s7668_s4  ;;  %v4284_v42 = vld [vmem:[#allocation2 + $0x16] sm:$0x1] }
0x4118   :  { %v4124_v35 = vpop.permute.xlu0 %4123 }
0x4119   :  { %v8782_v20 = vmul.f32 %v7452_v9, %v4124_v35 }
0x411a   :  { %v4126_v21 = vpop.permute.xlu1 %4125 }
0x411b   :  { %v8780_v22 = vmul.f32 %v7454_v50, %v4126_v21 }
0x411d   :  { %v4143_v10 = vrot.slane %v8780_v22, 7 }
0x411f   :  { %v4144_v34 = vsel %vm1189_vm13, %v4143_v10, %v8782_v20 }
0x4120   :  { %4145 = vrot.lane.b32.xlu1 %v4144_v34, %s7667_s24 }
0x4192   :  { %v4146_v16 = vpop.permute.xlu1 %4145 }
0x4193   :  { %6645 = vmatmul.mubr.msk.f32.vlgmr.msra.gmra.mrb[42].mxu1 %vm155_vm1, %v4146_v16 }
0x4194   :  { %6913 = vmatpush3.bf16.msra.mxu1 %v8626_v32  ;;  %6666 = vmatprep.mubr.msk.f32.mxu1 %vm7674_vm12, %v7675_v26 }
0x4195   :  { %6914 = vmatprep.subr.bf16.mxu1 %v7673_v51 }
0x4198   :  { %6916 = vmatpush3.bf16.msra.mxu1 %v8634_v28 }
0x4199   :  { %6923 = vmatprep.subr.bf16.mxu1 %v7673_v51 }
0x4266   :  { %v4215_v29 = vpop.f32.mrb[42].mxu1 }
0x4267   :  { %v4220_v31 = vrot.slane %v4215_v29, 1  ;;  %v4223_v60 = vadd.f32 %v4215_v29, %v4141_v23  ;;  %v6646_v33 = vpop.f32.mrb[43].mxu1 }
0x4269   :  { %v4224_v13 = vadd.f32 %v4220_v31, %v4142_v30  ;;  %7459 = vtanh.f32 %v4223_v60  ;;  %v4225_v4 = vsub.f32 0.0, %v4223_v60 }
0x426b   :  { %7461 = vtanh.f32 %v4224_v13  ;;  %v4226_v48 = vsub.f32 0.0, %v4224_v13  ;;  %v4227_v49 = vmul.f32 1.442695, %v4225_v4 }
0x426d   :  { %v4229_v53 = vmul.f32 1.442695, %v4226_v48  ;;  %7463 = vpow2.f32 %v4227_v49 }
0x426f   :  { %7465 = vpow2.f32 %v4229_v53 }
0x4273   :  { %v7460_v15 = vpop.eup %7459 }
0x4274   :  { %4243 = vrot.lane.b32.xlu1 %v7460_v15, %s7668_s4 }
0x4275   :  { %v7462_v54 = vpop.eup %7461 }
0x4276   :  { %4245 = vrot.lane.b32.xlu0 %v7462_v54, %s7668_s4 }
0x4277   :  { %v7464_v40 = vpop.eup %7463 }
0x4278   :  { %v4231_v57 = vadd.f32 1.0, %v7464_v40 }
0x4279   :  { %v7466_v56 = vpop.eup %7465 }
0x427a   :  { %v4232_v43 = vadd.f32 1.0, %v7466_v56  ;;  %7467 = vrcp.f32 %v4231_v57 }
0x427c   :  { %7469 = vrcp.f32 %v4232_v43 }
0x4284   :  { %v7468_v7 = vpop.eup %7467 }
0x4285   :  { %v4239_v17 = vmul.f32 %v7468_v7, %v4117_v12  ;;  %v4283_v12 = vld [vmem:[#allocation2 + $0x6] sm:$0x1] }
0x4286   :  { %v7470_v25 = vpop.eup %7469 }
0x4287   :  { %v4240_v0 = vmul.f32 %v7470_v25, %v4118_v38 }
0x42e6   :  { %v4244_v63 = vpop.permute.xlu1 %4243 }
0x42e7   :  { %v4249_v39 = vmul.f32 %v7468_v7, %v4244_v63 }
0x42e8   :  { %v4246_v3 = vpop.permute.xlu0 %4245 }
0x42e9   :  { %v4250_v37 = vmul.f32 %v7470_v25, %v4246_v3  ;;  %4253 = vrot.lane.b32.xlu1 %v4249_v39, %s7667_s24 }
0x42eb   :  { %4255 = vrot.lane.b32.xlu0 %v4250_v37, %s7667_s24 }
0x435b   :  { %v4254_v41 = vpop.permute.xlu1 %4253 }
0x435c   :  { %v4259_v11 = vadd.f32 %v4254_v41, %v4239_v17 }
0x435d   :  { %v4256_v19 = vpop.permute.xlu0 %4255 }
0x435e   :  { %7471 = vtanh.f32 %v4259_v11  ;;  %v4260_v52 = vadd.f32 %v4256_v19, %v4240_v0  ;;  %v4425_v19 = vld [vmem:[#allocation2 + $0x7] sm:$0x1] }
0x4360   :  { %7473 = vtanh.f32 %v4260_v52 }
0x4368   :  { %v7472_v1 = vpop.eup %7471 }
0x4369   :  { %4265 = vrot.lane.b32.xlu1 %v7472_v1, %s7668_s4 }
0x436a   :  { %v7474_v9 = vpop.eup %7473 }
0x436b   :  { %4267 = vrot.lane.b32.xlu0 %v7474_v9, %s7668_s4 }
0x43db   :  { %v4266_v61 = vpop.permute.xlu1 %4265 }
0x43dc   :  { %v8803_v62 = vmul.f32 %v7468_v7, %v4266_v61 }
0x43dd   :  { %v4268_v36 = vpop.permute.xlu0 %4267 }
0x43de   :  { %v8801_v50 = vmul.f32 %v7470_v25, %v4268_v36  ;;  %v4426_v36 = vld [vmem:[#allocation2 + $0x17] sm:$0x1] }
0x43e0   :  { %v4285_v24 = vrot.slane %v8801_v50, 7 }
0x43e2   :  { %v4286_v27 = vsel %vm1189_vm13, %v4285_v24, %v8803_v62 }
0x43e3   :  { %4287 = vrot.lane.b32.xlu0 %v4286_v27, %s7667_s24 }
0x4455   :  { %v4288_v59 = vpop.permute.xlu0 %4287 }
0x4456   :  { %6656 = vmatmul.mubr.msk.f32.vlgmr.msra.gmra.mrb[24].mxu0 %vm155_vm1, %v4288_v59 }
0x4457   :  { %6919 = vmatpush3.bf16.msra.mxu0 %v8626_v32  ;;  %6677 = vmatprep.mubr.msk.f32.mxu0 %vm7674_vm12, %v7675_v26 }
0x4458   :  { %6920 = vmatprep.subr.bf16.mxu0 %v7673_v51 }
0x445b   :  { %6922 = vmatpush3.bf16.msra.mxu0 %v8634_v28 }
0x445c   :  { %6929 = vmatprep.subr.bf16.mxu0 %v7673_v51 }
0x4529   :  { %v4357_v5 = vpop.f32.mrb[24].mxu0 }
0x452a   :  { %v4362_v6 = vrot.slane %v4357_v5, 1  ;;  %v4365_v38 = vadd.f32 %v4357_v5, %v4283_v12  ;;  %v6657_v14 = vpop.f32.mrb[25].mxu0 }
0x452c   :  { %v4366_v35 = vadd.f32 %v4362_v6, %v4284_v42  ;;  %7475 = vtanh.f32 %v4365_v38  ;;  %v4367_v34 = vsub.f32 0.0, %v4365_v38 }
0x452e   :  { %7477 = vtanh.f32 %v4366_v35  ;;  %v4368_v16 = vsub.f32 0.0, %v4366_v35  ;;  %v4369_v23 = vmul.f32 1.442695, %v4367_v34 }
0x4530   :  { %v4371_v29 = vmul.f32 1.442695, %v4368_v16  ;;  %7479 = vpow2.f32 %v4369_v23 }
0x4532   :  { %7481 = vpow2.f32 %v4371_v29 }
0x4536   :  { %v7476_v21 = vpop.eup %7475 }
0x4537   :  { %4385 = vrot.lane.b32.xlu0 %v7476_v21, %s7668_s4 }
0x4538   :  { %v7478_v10 = vpop.eup %7477 }
0x4539   :  { %4387 = vrot.lane.b32.xlu1 %v7478_v10, %s7668_s4 }
0x453a   :  { %v7480_v31 = vpop.eup %7479 }
0x453b   :  { %v4373_v33 = vadd.f32 1.0, %v7480_v31 }
0x453c   :  { %v7482_v60 = vpop.eup %7481 }
0x453d   :  { %v4374_v30 = vadd.f32 1.0, %v7482_v60  ;;  %7483 = vrcp.f32 %v4373_v33 }
0x453f   :  { %7485 = vrcp.f32 %v4374_v30 }
0x4547   :  { %v7484_v13 = vpop.eup %7483 }
0x4548   :  { %v4381_v53 = vmul.f32 %v7484_v13, %v4259_v11 }
0x4549   :  { %v7486_v4 = vpop.eup %7485 }
0x454a   :  { %v4382_v57 = vmul.f32 %v7486_v4, %v4260_v52 }
0x45a9   :  { %v4386_v15 = vpop.permute.xlu0 %4385 }
0x45aa   :  { %v4391_v54 = vmul.f32 %v7484_v13, %v4386_v15 }
0x45ab   :  { %v4388_v48 = vpop.permute.xlu1 %4387 }
0x45ac   :  { %v4392_v49 = vmul.f32 %v7486_v4, %v4388_v48  ;;  %4395 = vrot.lane.b32.xlu0 %v4391_v54, %s7667_s24 }
0x45ae   :  { %4397 = vrot.lane.b32.xlu1 %v4392_v49, %s7667_s24 }
0x461e   :  { %v4396_v40 = vpop.permute.xlu0 %4395 }
0x461f   :  { %v4401_v56 = vadd.f32 %v4396_v40, %v4381_v53 }
0x4620   :  { %v4398_v43 = vpop.permute.xlu1 %4397 }
0x4621   :  { %7487 = vtanh.f32 %v4401_v56  ;;  %v4402_v7 = vadd.f32 %v4398_v43, %v4382_v57 }
0x4623   :  { %7489 = vtanh.f32 %v4402_v7 }
0x462b   :  { %v7488_v63 = vpop.eup %7487 }
0x462c   :  { %4407 = vrot.lane.b32.xlu0 %v7488_v63, %s7668_s4  ;;  %v4567_v63 = vld [vmem:[#allocation2 + $0x8] sm:$0x1] }
0x462d   :  { %v7490_v39 = vpop.eup %7489 }
0x462e   :  { %4409 = vrot.lane.b32.xlu1 %v7490_v39, %s7668_s4 }
0x469e   :  { %v4408_v25 = vpop.permute.xlu0 %4407 }
0x469f   :  { %v8824_v17 = vmul.f32 %v7484_v13, %v4408_v25 }
0x46a0   :  { %v4410_v3 = vpop.permute.xlu1 %4409 }
0x46a1   :  { %v8822_v37 = vmul.f32 %v7486_v4, %v4410_v3 }
0x46a3   :  { %v4427_v41 = vrot.slane %v8822_v37, 7 }
0x46a5   :  { %v4428_v11 = vsel %vm1189_vm13, %v4427_v41, %v8824_v17 }
0x46a6   :  { %4429 = vrot.lane.b32.xlu1 %v4428_v11, %s7667_s24  ;;  %v4568_v11 = vld [vmem:[#allocation2 + $0x18] sm:$0x1] }
0x4718   :  { %v4430_v0 = vpop.permute.xlu1 %4429 }
0x4719   :  { %6667 = vmatmul.mubr.msk.f32.vlgmr.msra.gmra.mrb[44].mxu1 %vm155_vm1, %v4430_v0 }
0x471a   :  { %6925 = vmatpush3.bf16.msra.mxu1 %v8626_v32  ;;  %6688 = vmatprep.mubr.msk.f32.mxu1 %vm7674_vm12, %v7675_v26 }
0x471b   :  { %6926 = vmatprep.subr.bf16.mxu1 %v7673_v51 }
0x471e   :  { %6928 = vmatpush3.bf16.msra.mxu1 %v8634_v28 }
0x471f   :  { %6935 = vmatprep.subr.bf16.mxu1 %v7673_v51 }
0x47ec   :  { %v4499_v52 = vpop.f32.mrb[44].mxu1 }
0x47ed   :  { %v4504_v1 = vrot.slane %v4499_v52, 1  ;;  %v4507_v9 = vadd.f32 %v4499_v52, %v4425_v19  ;;  %v6668_v61 = vpop.f32.mrb[45].mxu1 }
0x47ef   :  { %v4508_v24 = vadd.f32 %v4504_v1, %v4426_v36  ;;  %7491 = vtanh.f32 %v4507_v9  ;;  %v4509_v12 = vsub.f32 0.0, %v4507_v9 }
0x47f1   :  { %7493 = vtanh.f32 %v4508_v24  ;;  %v4510_v5 = vsub.f32 0.0, %v4508_v24  ;;  %v4511_v6 = vmul.f32 1.442695, %v4509_v12 }
0x47f3   :  { %v4513_v38 = vmul.f32 1.442695, %v4510_v5  ;;  %7495 = vpow2.f32 %v4511_v6 }
0x47f5   :  { %7497 = vpow2.f32 %v4513_v38 }
0x47f9   :  { %v7492_v27 = vpop.eup %7491 }
0x47fa   :  { %4527 = vrot.lane.b32.xlu1 %v7492_v27, %s7668_s4 }
0x47fb   :  { %v7494_v59 = vpop.eup %7493 }
0x47fc   :  { %4529 = vrot.lane.b32.xlu0 %v7494_v59, %s7668_s4 }
0x47fd   :  { %v7496_v14 = vpop.eup %7495 }
0x47fe   :  { %v4515_v35 = vadd.f32 1.0, %v7496_v14 }
0x47ff   :  { %v7498_v42 = vpop.eup %7497 }
0x4800   :  { %v4516_v21 = vadd.f32 1.0, %v7498_v42  ;;  %7499 = vrcp.f32 %v4515_v35 }
0x4802   :  { %7501 = vrcp.f32 %v4516_v21 }
0x480a   :  { %v7500_v10 = vpop.eup %7499 }
0x480b   :  { %v4523_v60 = vmul.f32 %v7500_v10, %v4401_v56 }
0x480c   :  { %v7502_v23 = vpop.eup %7501 }
0x480d   :  { %v4524_v13 = vmul.f32 %v7502_v23, %v4402_v7 }
0x486c   :  { %v4528_v34 = vpop.permute.xlu1 %4527 }
0x486d   :  { %v4533_v16 = vmul.f32 %v7500_v10, %v4528_v34 }
0x486e   :  { %v4530_v29 = vpop.permute.xlu0 %4529 }
0x486f   :  { %v4534_v31 = vmul.f32 %v7502_v23, %v4530_v29  ;;  %4537 = vrot.lane.b32.xlu1 %v4533_v16, %s7667_s24 }
0x4871   :  { %4539 = vrot.lane.b32.xlu0 %v4534_v31, %s7667_s24 }
0x48e1   :  { %v4538_v33 = vpop.permute.xlu1 %4537 }
0x48e2   :  { %v4543_v30 = vadd.f32 %v4538_v33, %v4523_v60 }
0x48e3   :  { %v4540_v15 = vpop.permute.xlu0 %4539 }
0x48e4   :  { %7503 = vtanh.f32 %v4543_v30  ;;  %v4544_v54 = vadd.f32 %v4540_v15, %v4524_v13 }
0x48e6   :  { %7505 = vtanh.f32 %v4544_v54 }
0x48ee   :  { %v7504_v4 = vpop.eup %7503 }
0x48ef   :  { %4549 = vrot.lane.b32.xlu1 %v7504_v4, %s7668_s4 }
0x48f0   :  { %v7506_v48 = vpop.eup %7505 }
0x48f1   :  { %4551 = vrot.lane.b32.xlu0 %v7506_v48, %s7668_s4 }
0x4961   :  { %v4550_v49 = vpop.permute.xlu1 %4549 }
0x4962   :  { %v8845_v57 = vmul.f32 %v7500_v10, %v4550_v49  ;;  %v4709_v49 = vld [vmem:[#allocation2 + $0x9] sm:$0x1] }
0x4963   :  { %v4552_v53 = vpop.permute.xlu0 %4551 }
0x4964   :  { %v8843_v40 = vmul.f32 %v7502_v23, %v4552_v53 }
0x4966   :  { %v4569_v56 = vrot.slane %v8843_v40, 7 }
0x4968   :  { %v4570_v43 = vsel %vm1189_vm13, %v4569_v56, %v8845_v57 }
0x4969   :  { %4571 = vrot.lane.b32.xlu0 %v4570_v43, %s7667_s24 }
0x49db   :  { %v4572_v7 = vpop.permute.xlu0 %4571 }
0x49dc   :  { %6678 = vmatmul.mubr.msk.f32.vlgmr.msra.gmra.mrb[26].mxu0 %vm155_vm1, %v4572_v7 }
0x49dd   :  { %6931 = vmatpush3.bf16.msra.mxu0 %v8626_v32  ;;  %6699 = vmatprep.mubr.msk.f32.mxu0 %vm7674_vm12, %v7675_v26 }
0x49de   :  { %6932 = vmatprep.subr.bf16.mxu0 %v7673_v51 }
0x49e1   :  { %6934 = vmatpush3.bf16.msra.mxu0 %v8634_v28 }
0x49e2   :  { %6941 = vmatprep.subr.bf16.mxu0 %v7673_v51 }
0x4aaf   :  { %v4641_v39 = vpop.f32.mrb[26].mxu0 }
0x4ab0   :  { %v4646_v25 = vrot.slane %v4641_v39, 1  ;;  %v4649_v3 = vadd.f32 %v4641_v39, %v4567_v63  ;;  %v6679_v41 = vpop.f32.mrb[27].mxu0  ;;  %v4710_v63 = vld [vmem:[#allocation2 + $0x19] sm:$0x1] }
0x4ab2   :  { %v4650_v0 = vadd.f32 %v4646_v25, %v4568_v11  ;;  %7507 = vtanh.f32 %v4649_v3  ;;  %v4651_v1 = vsub.f32 0.0, %v4649_v3 }
0x4ab4   :  { %7509 = vtanh.f32 %v4650_v0  ;;  %v4652_v9 = vsub.f32 0.0, %v4650_v0  ;;  %v4653_v61 = vmul.f32 1.442695, %v4651_v1 }
0x4ab6   :  { %v4655_v36 = vmul.f32 1.442695, %v4652_v9  ;;  %7511 = vpow2.f32 %v4653_v61 }
0x4ab8   :  { %7513 = vpow2.f32 %v4655_v36 }
0x4abc   :  { %v7508_v19 = vpop.eup %7507 }
0x4abd   :  { %4669 = vrot.lane.b32.xlu0 %v7508_v19, %s7668_s4 }
0x4abe   :  { %v7510_v52 = vpop.eup %7509 }
0x4abf   :  { %4671 = vrot.lane.b32.xlu1 %v7510_v52, %s7668_s4 }
0x4ac0   :  { %v7512_v24 = vpop.eup %7511 }
0x4ac1   :  { %v4657_v59 = vadd.f32 1.0, %v7512_v24 }
0x4ac2   :  { %v7514_v27 = vpop.eup %7513 }
0x4ac3   :  { %v4658_v12 = vadd.f32 1.0, %v7514_v27  ;;  %7515 = vrcp.f32 %v4657_v59 }
0x4ac5   :  { %7517 = vrcp.f32 %v4658_v12 }
0x4acd   :  { %v7516_v5 = vpop.eup %7515 }
0x4ace   :  { %v4665_v21 = vmul.f32 %v7516_v5, %v4543_v30 }
0x4acf   :  { %v7518_v14 = vpop.eup %7517 }
0x4ad0   :  { %v4666_v16 = vmul.f32 %v7518_v14, %v4544_v54 }
0x4b2f   :  { %v4670_v6 = vpop.permute.xlu0 %4669 }
0x4b30   :  { %v4675_v38 = vmul.f32 %v7516_v5, %v4670_v6 }
0x4b31   :  { %v4672_v42 = vpop.permute.xlu1 %4671 }
0x4b32   :  { %v4676_v35 = vmul.f32 %v7518_v14, %v4672_v42  ;;  %4679 = vrot.lane.b32.xlu0 %v4675_v38, %s7667_s24 }
0x4b34   :  { %4681 = vrot.lane.b32.xlu1 %v4676_v35, %s7667_s24 }
0x4ba4   :  { %v4680_v10 = vpop.permute.xlu0 %4679 }
0x4ba5   :  { %v4685_v34 = vadd.f32 %v4680_v10, %v4665_v21 }
0x4ba6   :  { %v4682_v23 = vpop.permute.xlu1 %4681 }
0x4ba7   :  { %7519 = vtanh.f32 %v4685_v34  ;;  %v4686_v29 = vadd.f32 %v4682_v23, %v4666_v16 }
0x4ba9   :  { %7521 = vtanh.f32 %v4686_v29 }
0x4bb1   :  { %v7520_v31 = vpop.eup %7519 }
0x4bb2   :  { %4691 = vrot.lane.b32.xlu0 %v7520_v31, %s7668_s4 }
0x4bb3   :  { %v7522_v60 = vpop.eup %7521 }
0x4bb4   :  { %4693 = vrot.lane.b32.xlu1 %v7522_v60, %s7668_s4 }
0x4c24   :  { %v4692_v33 = vpop.permute.xlu0 %4691 }
0x4c25   :  { %v8866_v4 = vmul.f32 %v7516_v5, %v4692_v33 }
0x4c26   :  { %v4694_v13 = vpop.permute.xlu1 %4693 }
0x4c27   :  { %v8864_v15 = vmul.f32 %v7518_v14, %v4694_v13 }
0x4c29   :  { %v4711_v30 = vrot.slane %v8864_v15, 7 }
0x4c2b   :  { %v4712_v54 = vsel %vm1189_vm13, %v4711_v30, %v8866_v4  ;;  %v4851_v30 = vld [vmem:[#allocation2 + $0xa] sm:$0x1] }
0x4c2c   :  { %4713 = vrot.lane.b32.xlu1 %v4712_v54, %s7667_s24 }
0x4c9e   :  { %v4714_v48 = vpop.permute.xlu1 %4713 }
0x4c9f   :  { %6689 = vmatmul.mubr.msk.f32.vlgmr.msra.gmra.mrb[46].mxu1 %vm155_vm1, %v4714_v48 }
0x4ca0   :  { %6937 = vmatpush3.bf16.msra.mxu1 %v8626_v32  ;;  %6710 = vmatprep.mubr.msk.f32.mxu1 %vm7674_vm12, %v7675_v26 }
0x4ca1   :  { %6938 = vmatprep.subr.bf16.mxu1 %v7673_v51 }
0x4ca4   :  { %6940 = vmatpush3.bf16.msra.mxu1 %v8634_v28 }
0x4ca5   :  { %6947 = vmatprep.subr.bf16.mxu1 %v7673_v51 }
0x4d72   :  { %v4783_v53 = vpop.f32.mrb[46].mxu1 }
0x4d73   :  { %v4788_v56 = vrot.slane %v4783_v53, 1  ;;  %v4791_v43 = vadd.f32 %v4783_v53, %v4709_v49  ;;  %v6690_v7 = vpop.f32.mrb[47].mxu1 }
0x4d75   :  { %v4792_v39 = vadd.f32 %v4788_v56, %v4710_v63  ;;  %7523 = vtanh.f32 %v4791_v43  ;;  %v4793_v41 = vsub.f32 0.0, %v4791_v43  ;;  %v4852_v56 = vld [vmem:[#allocation2 + $0x1a] sm:$0x1] }
0x4d77   :  { %7525 = vtanh.f32 %v4792_v39  ;;  %v4794_v11 = vsub.f32 0.0, %v4792_v39  ;;  %v4795_v0 = vmul.f32 1.442695, %v4793_v41 }
0x4d79   :  { %v4797_v19 = vmul.f32 1.442695, %v4794_v11  ;;  %7527 = vpow2.f32 %v4795_v0 }
0x4d7b   :  { %7529 = vpow2.f32 %v4797_v19 }
0x4d7f   :  { %v7524_v25 = vpop.eup %7523 }
0x4d80   :  { %4811 = vrot.lane.b32.xlu1 %v7524_v25, %s7668_s4 }
0x4d81   :  { %v7526_v3 = vpop.eup %7525 }
0x4d82   :  { %4813 = vrot.lane.b32.xlu0 %v7526_v3, %s7668_s4 }
0x4d83   :  { %v7528_v52 = vpop.eup %7527 }
0x4d84   :  { %v4799_v9 = vadd.f32 1.0, %v7528_v52 }
0x4d85   :  { %v7530_v1 = vpop.eup %7529 }
0x4d86   :  { %v4800_v61 = vadd.f32 1.0, %v7530_v1  ;;  %7531 = vrcp.f32 %v4799_v9 }
0x4d88   :  { %7533 = vrcp.f32 %v4800_v61 }
0x4d90   :  { %v7532_v36 = vpop.eup %7531 }
0x4d91   :  { %v4807_v6 = vmul.f32 %v7532_v36, %v4685_v34 }
0x4d92   :  { %v7534_v59 = vpop.eup %7533 }
0x4d93   :  { %v4808_v42 = vmul.f32 %v7534_v59, %v4686_v29 }
0x4df2   :  { %v4812_v24 = vpop.permute.xlu1 %4811 }
0x4df3   :  { %v4817_v27 = vmul.f32 %v7532_v36, %v4812_v24 }
0x4df4   :  { %v4814_v12 = vpop.permute.xlu0 %4813 }
0x4df5   :  { %v4818_v5 = vmul.f32 %v7534_v59, %v4814_v12  ;;  %4821 = vrot.lane.b32.xlu1 %v4817_v27, %s7667_s24 }
0x4df7   :  { %4823 = vrot.lane.b32.xlu0 %v4818_v5, %s7667_s24 }
0x4e67   :  { %v4822_v38 = vpop.permute.xlu1 %4821 }
0x4e68   :  { %v4827_v14 = vadd.f32 %v4822_v38, %v4807_v6 }
0x4e69   :  { %v4824_v35 = vpop.permute.xlu0 %4823 }
0x4e6a   :  { %7535 = vtanh.f32 %v4827_v14  ;;  %v4828_v21 = vadd.f32 %v4824_v35, %v4808_v42 }
0x4e6c   :  { %7537 = vtanh.f32 %v4828_v21 }
0x4e74   :  { %v7536_v10 = vpop.eup %7535 }
0x4e75   :  { %4833 = vrot.lane.b32.xlu1 %v7536_v10, %s7668_s4 }
0x4e76   :  { %v7538_v16 = vpop.eup %7537 }
0x4e77   :  { %4835 = vrot.lane.b32.xlu0 %v7538_v16, %s7668_s4 }
0x4ee7   :  { %v4834_v23 = vpop.permute.xlu1 %4833 }
0x4ee8   :  { %v8887_v33 = vmul.f32 %v7532_v36, %v4834_v23 }
0x4ee9   :  { %v4836_v31 = vpop.permute.xlu0 %4835 }
0x4eea   :  { %v8885_v60 = vmul.f32 %v7534_v59, %v4836_v31 }
0x4eec   :  { %v4853_v34 = vrot.slane %v8885_v60, 7 }
0x4eee   :  { %v4854_v29 = vsel %vm1189_vm13, %v4853_v34, %v8887_v33 }
0x4eef   :  { %4855 = vrot.lane.b32.xlu0 %v4854_v29, %s7667_s24 }
0x4f61   :  { %v4856_v13 = vpop.permute.xlu0 %4855 }
0x4f62   :  { %6700 = vmatmul.mubr.msk.f32.vlgmr.msra.gmra.mrb[28].mxu0 %vm155_vm1, %v4856_v13  ;;  %v4993_v13 = vld [vmem:[#allocation2 + $0xb] sm:$0x1] }
0x4f63   :  { %6943 = vmatpush3.bf16.msra.mxu0 %v8626_v32  ;;  %6721 = vmatprep.mubr.msk.f32.mxu0 %vm7674_vm12, %v7675_v26 }
0x4f64   :  { %6944 = vmatprep.subr.bf16.mxu0 %v7673_v51 }
0x4f67   :  { %6946 = vmatpush3.bf16.msra.mxu0 %v8634_v28 }
0x4f68   :  { %6953 = vmatprep.subr.bf16.mxu0 %v7673_v51 }
0x5035   :  { %v4925_v54 = vpop.f32.mrb[28].mxu0 }
0x5036   :  { %v4930_v48 = vrot.slane %v4925_v54, 1  ;;  %v4933_v49 = vadd.f32 %v4925_v54, %v4851_v30  ;;  %v6701_v53 = vpop.f32.mrb[29].mxu0 }
0x5037   :  { %v4994_v53 = vld [vmem:[#allocation2 + $0x1b] sm:$0x1] }
0x5038   :  { %v4934_v43 = vadd.f32 %v4930_v48, %v4852_v56  ;;  %7539 = vtanh.f32 %v4933_v49  ;;  %v4935_v39 = vsub.f32 0.0, %v4933_v49 }
0x503a   :  { %7541 = vtanh.f32 %v4934_v43  ;;  %v4936_v25 = vsub.f32 0.0, %v4934_v43  ;;  %v4937_v3 = vmul.f32 1.442695, %v4935_v39 }
0x503c   :  { %v4939_v41 = vmul.f32 1.442695, %v4936_v25  ;;  %7543 = vpow2.f32 %v4937_v3 }
0x503e   :  { %7545 = vpow2.f32 %v4939_v41 }
0x5042   :  { %v7540_v7 = vpop.eup %7539 }
0x5043   :  { %4953 = vrot.lane.b32.xlu0 %v7540_v7, %s7668_s4 }
0x5044   :  { %v7542_v63 = vpop.eup %7541 }
0x5045   :  { %4955 = vrot.lane.b32.xlu1 %v7542_v63, %s7668_s4 }
0x5046   :  { %v7544_v11 = vpop.eup %7543 }
0x5047   :  { %v4941_v19 = vadd.f32 1.0, %v7544_v11 }
0x5048   :  { %v7546_v0 = vpop.eup %7545 }
0x5049   :  { %v4942_v52 = vadd.f32 1.0, %v7546_v0  ;;  %7547 = vrcp.f32 %v4941_v19 }
0x504b   :  { %7549 = vrcp.f32 %v4942_v52 }
0x5053   :  { %v7548_v1 = vpop.eup %7547 }
0x5054   :  { %v4949_v59 = vmul.f32 %v7548_v1, %v4827_v14 }
0x5055   :  { %v7550_v36 = vpop.eup %7549 }
0x5056   :  { %v4950_v6 = vmul.f32 %v7550_v36, %v4828_v21 }
0x50b5   :  { %v4954_v9 = vpop.permute.xlu0 %4953 }
0x50b6   :  { %v4959_v61 = vmul.f32 %v7548_v1, %v4954_v9 }
0x50b7   :  { %v4956_v24 = vpop.permute.xlu1 %4955 }
0x50b8   :  { %v4960_v27 = vmul.f32 %v7550_v36, %v4956_v24  ;;  %4963 = vrot.lane.b32.xlu0 %v4959_v61, %s7667_s24 }
0x50ba   :  { %4965 = vrot.lane.b32.xlu1 %v4960_v27, %s7667_s24 }
0x512a   :  { %v4964_v12 = vpop.permute.xlu0 %4963 }
0x512b   :  { %v4969_v5 = vadd.f32 %v4964_v12, %v4949_v59 }
0x512c   :  { %v4966_v38 = vpop.permute.xlu1 %4965 }
0x512d   :  { %7551 = vtanh.f32 %v4969_v5  ;;  %v4970_v42 = vadd.f32 %v4966_v38, %v4950_v6 }
0x512f   :  { %7553 = vtanh.f32 %v4970_v42 }
0x5137   :  { %v7552_v35 = vpop.eup %7551 }
0x5138   :  { %4975 = vrot.lane.b32.xlu0 %v7552_v35, %s7668_s4 }
0x5139   :  { %v7554_v10 = vpop.eup %7553 }
0x513a   :  { %4977 = vrot.lane.b32.xlu1 %v7554_v10, %s7668_s4 }
0x51aa   :  { %v4976_v16 = vpop.permute.xlu0 %4975 }
0x51ab   :  { %v8908_v34 = vmul.f32 %v7548_v1, %v4976_v16 }
0x51ac   :  { %v4978_v23 = vpop.permute.xlu1 %4977 }
0x51ad   :  { %v8906_v31 = vmul.f32 %v7550_v36, %v4978_v23 }
0x51af   :  { %v4995_v14 = vrot.slane %v8906_v31, 7 }
0x51b1   :  { %v4996_v21 = vsel %vm1189_vm13, %v4995_v14, %v8908_v34 }
0x51b2   :  { %4997 = vrot.lane.b32.xlu1 %v4996_v21, %s7667_s24 }
0x5224   :  { %v4998_v29 = vpop.permute.xlu1 %4997 }
0x5225   :  { %6711 = vmatmul.mubr.msk.f32.vlgmr.msra.gmra.mrb[48].mxu1 %vm155_vm1, %v4998_v29 }
0x5226   :  { %6949 = vmatpush3.bf16.msra.mxu1 %v8626_v32  ;;  %6732 = vmatprep.mubr.msk.f32.mxu1 %vm7674_vm12, %v7675_v26 }
0x5227   :  { %6950 = vmatprep.subr.bf16.mxu1 %v7673_v51 }
0x522a   :  { %6952 = vmatpush3.bf16.msra.mxu1 %v8634_v28 }
0x522b   :  { %6959 = vmatprep.subr.bf16.mxu1 %v7673_v51 }
0x52f8   :  { %v5067_v30 = vpop.f32.mrb[48].mxu1 }
0x52f9   :  { %v5072_v54 = vrot.slane %v5067_v30, 1  ;;  %v5075_v48 = vadd.f32 %v5067_v30, %v4993_v13  ;;  %v6712_v49 = vpop.f32.mrb[49].mxu1  ;;  %v5135_v30 = vld [vmem:[#allocation2 + $0xc] sm:$0x1] }
0x52fb   :  { %v5076_v56 = vadd.f32 %v5072_v54, %v4994_v53  ;;  %7555 = vtanh.f32 %v5075_v48  ;;  %v5077_v63 = vsub.f32 0.0, %v5075_v48 }
0x52fd   :  { %7557 = vtanh.f32 %v5076_v56  ;;  %v5078_v39 = vsub.f32 0.0, %v5076_v56  ;;  %v5079_v25 = vmul.f32 1.442695, %v5077_v63  ;;  %v5136_v56 = vld [vmem:[#allocation2 + $0x1c] sm:$0x1] }
0x52ff   :  { %v5081_v3 = vmul.f32 1.442695, %v5078_v39  ;;  %7559 = vpow2.f32 %v5079_v25 }
0x5301   :  { %7561 = vpow2.f32 %v5081_v3 }
0x5305   :  { %v7556_v43 = vpop.eup %7555 }
0x5306   :  { %5095 = vrot.lane.b32.xlu1 %v7556_v43, %s7668_s4 }
0x5307   :  { %v7558_v7 = vpop.eup %7557 }
0x5308   :  { %5097 = vrot.lane.b32.xlu0 %v7558_v7, %s7668_s4 }
0x5309   :  { %v7560_v41 = vpop.eup %7559 }
0x530a   :  { %v5083_v0 = vadd.f32 1.0, %v7560_v41 }
0x530b   :  { %v7562_v11 = vpop.eup %7561 }
0x530c   :  { %v5084_v19 = vadd.f32 1.0, %v7562_v11  ;;  %7563 = vrcp.f32 %v5083_v0 }
0x530e   :  { %7565 = vrcp.f32 %v5084_v19 }
0x5316   :  { %v7564_v52 = vpop.eup %7563 }
0x5317   :  { %v5091_v27 = vmul.f32 %v7564_v52, %v4969_v5 }
0x5318   :  { %v7566_v61 = vpop.eup %7565 }
0x5319   :  { %v5092_v6 = vmul.f32 %v7566_v61, %v4970_v42 }
0x5378   :  { %v5096_v1 = vpop.permute.xlu1 %5095 }
0x5379   :  { %v5101_v9 = vmul.f32 %v7564_v52, %v5096_v1 }
0x537a   :  { %v5098_v36 = vpop.permute.xlu0 %5097 }
0x537b   :  { %v5102_v24 = vmul.f32 %v7566_v61, %v5098_v36  ;;  %5105 = vrot.lane.b32.xlu1 %v5101_v9, %s7667_s24 }
0x537d   :  { %5107 = vrot.lane.b32.xlu0 %v5102_v24, %s7667_s24 }
0x53ed   :  { %v5106_v59 = vpop.permute.xlu1 %5105 }
0x53ee   :  { %v5111_v12 = vadd.f32 %v5106_v59, %v5091_v27 }
0x53ef   :  { %v5108_v38 = vpop.permute.xlu0 %5107 }
0x53f0   :  { %7567 = vtanh.f32 %v5111_v12  ;;  %v5112_v35 = vadd.f32 %v5108_v38, %v5092_v6 }
0x53f2   :  { %7569 = vtanh.f32 %v5112_v35 }
0x53fa   :  { %v7568_v10 = vpop.eup %7567 }
0x53fb   :  { %5117 = vrot.lane.b32.xlu1 %v7568_v10, %s7668_s4 }
0x53fc   :  { %v7570_v16 = vpop.eup %7569 }
0x53fd   :  { %5119 = vrot.lane.b32.xlu0 %v7570_v16, %s7668_s4 }
0x546d   :  { %v5118_v23 = vpop.permute.xlu1 %5117 }
0x546e   :  { %v8929_v29 = vmul.f32 %v7564_v52, %v5118_v23 }
0x546f   :  { %v5120_v14 = vpop.permute.xlu0 %5119 }
0x5470   :  { %v8927_v21 = vmul.f32 %v7566_v61, %v5120_v14 }
0x5472   :  { %v5137_v5 = vrot.slane %v8927_v21, 7 }
0x5474   :  { %v5138_v42 = vsel %vm1189_vm13, %v5137_v5, %v8929_v29 }
0x5475   :  { %5139 = vrot.lane.b32.xlu0 %v5138_v42, %s7667_s24 }
0x54e7   :  { %v5140_v13 = vpop.permute.xlu0 %5139 }
0x54e8   :  { %6722 = vmatmul.mubr.msk.f32.vlgmr.msra.gmra.mrb[30].mxu0 %vm155_vm1, %v5140_v13 }
0x54e9   :  { %6955 = vmatpush3.bf16.msra.mxu0 %v8626_v32  ;;  %6743 = vmatprep.mubr.msk.f32.mxu0 %vm7674_vm12, %v7675_v26 }
0x54ea   :  { %6956 = vmatprep.subr.bf16.mxu0 %v7673_v51 }
0x54ed   :  { %6958 = vmatpush3.bf16.msra.mxu0 %v8634_v28 }
0x54ee   :  { %5922 = vmatprep.subr.bf16.mxu0 %v7669_v58 }
0x55bb   :  { %v5209_v54 = vpop.f32.mrb[30].mxu0 }
0x55bc   :  { %v5214_v48 = vrot.slane %v5209_v54, 1  ;;  %v5217_v49 = vadd.f32 %v5209_v54, %v5135_v30  ;;  %v6723_v53 = vpop.f32.mrb[31].mxu0 }
0x55be   :  { %v5218_v43 = vadd.f32 %v5214_v48, %v5136_v56  ;;  %7571 = vtanh.f32 %v5217_v49  ;;  %v5219_v39 = vsub.f32 0.0, %v5217_v49  ;;  %v5277_v49 = vld [vmem:[#allocation2 + $0xd] sm:$0x1] }
0x55c0   :  { %7573 = vtanh.f32 %v5218_v43  ;;  %v5220_v25 = vsub.f32 0.0, %v5218_v43  ;;  %v5221_v3 = vmul.f32 1.442695, %v5219_v39 }
0x55c2   :  { %v5223_v41 = vmul.f32 1.442695, %v5220_v25  ;;  %7575 = vpow2.f32 %v5221_v3 }
0x55c4   :  { %7577 = vpow2.f32 %v5223_v41 }
0x55c8   :  { %v7572_v7 = vpop.eup %7571 }
0x55c9   :  { %5237 = vrot.lane.b32.xlu0 %v7572_v7, %s7668_s4 }
0x55ca   :  { %v7574_v63 = vpop.eup %7573 }
0x55cb   :  { %5239 = vrot.lane.b32.xlu1 %v7574_v63, %s7668_s4  ;;  %v5278_v63 = vld [vmem:[#allocation2 + $0x1d] sm:$0x1] }
0x55cc   :  { %v7576_v11 = vpop.eup %7575 }
0x55cd   :  { %v5225_v19 = vadd.f32 1.0, %v7576_v11 }
0x55ce   :  { %v7578_v0 = vpop.eup %7577 }
0x55cf   :  { %v5226_v52 = vadd.f32 1.0, %v7578_v0  ;;  %7579 = vrcp.f32 %v5225_v19 }
0x55d1   :  { %7581 = vrcp.f32 %v5226_v52 }
0x55d9   :  { %v7580_v1 = vpop.eup %7579 }
0x55da   :  { %v5233_v59 = vmul.f32 %v7580_v1, %v5111_v12 }
0x55db   :  { %v7582_v36 = vpop.eup %7581 }
0x55dc   :  { %v5234_v10 = vmul.f32 %v7582_v36, %v5112_v35 }
0x563b   :  { %v5238_v9 = vpop.permute.xlu0 %5237 }
0x563c   :  { %v5243_v61 = vmul.f32 %v7580_v1, %v5238_v9 }
0x563d   :  { %v5240_v24 = vpop.permute.xlu1 %5239 }
0x563e   :  { %v5244_v27 = vmul.f32 %v7582_v36, %v5240_v24  ;;  %5247 = vrot.lane.b32.xlu0 %v5243_v61, %s7667_s24 }
0x5640   :  { %5249 = vrot.lane.b32.xlu1 %v5244_v27, %s7667_s24 }
0x56b0   :  { %v5248_v6 = vpop.permute.xlu0 %5247 }
0x56b1   :  { %v5253_v38 = vadd.f32 %v5248_v6, %v5233_v59 }
0x56b2   :  { %v5250_v16 = vpop.permute.xlu1 %5249 }
0x56b3   :  { %7583 = vtanh.f32 %v5253_v38  ;;  %v5254_v23 = vadd.f32 %v5250_v16, %v5234_v10 }
0x56b5   :  { %7585 = vtanh.f32 %v5254_v23 }
0x56bd   :  { %v7584_v14 = vpop.eup %7583 }
0x56be   :  { %5259 = vrot.lane.b32.xlu0 %v7584_v14, %s7668_s4 }
0x56bf   :  { %v7586_v5 = vpop.eup %7585 }
0x56c0   :  { %5261 = vrot.lane.b32.xlu1 %v7586_v5, %s7668_s4 }
0x5730   :  { %v5260_v42 = vpop.permute.xlu0 %5259 }
0x5731   :  { %v8950_v54 = vmul.f32 %v7580_v1, %v5260_v42 }
0x5732   :  { %v5262_v13 = vpop.permute.xlu1 %5261 }
0x5733   :  { %v8948_v30 = vmul.f32 %v7582_v36, %v5262_v13 }
0x5735   :  { %v5279_v12 = vrot.slane %v8948_v30, 7 }
0x5737   :  { %v5280_v35 = vsel %vm1189_vm13, %v5279_v12, %v8950_v54 }
0x5738   :  { %5281 = vrot.lane.b32.xlu1 %v5280_v35, %s7667_s24 }
0x57aa   :  { %v5282_v48 = vpop.permute.xlu1 %5281 }
0x57ab   :  { %6733 = vmatmul.mubr.msk.f32.vlgmr.msra.gmra.mrb[50].mxu1 %vm155_vm1, %v5282_v48 }
0x57ac   :  { %6961 = vmatpush3.bf16.msra.mxu1 %v8626_v32  ;;  %6754 = vmatprep.mubr.msk.f32.mxu1 %vm7674_vm12, %v7675_v26 }
0x57ad   :  { %6962 = vmatprep.subr.bf16.mxu1 %v7673_v51 }
0x57b0   :  { %6964 = vmatpush3.bf16.msra.mxu1 %v8634_v28 }
0x587e   :  { %v5351_v53 = vpop.f32.mrb[50].mxu1 }
0x587f   :  { %v5356_v56 = vrot.slane %v5351_v53, 1  ;;  %v5359_v43 = vadd.f32 %v5351_v53, %v5277_v49  ;;  %v6734_v7 = vpop.f32.mrb[51].mxu1  ;;  %v5419_v53 = vld [vmem:[#allocation2 + $0xe] sm:$0x1] }
0x5881   :  { %v5360_v39 = vadd.f32 %v5356_v56, %v5278_v63  ;;  %7587 = vtanh.f32 %v5359_v43  ;;  %v5361_v26 = vsub.f32 0.0, %v5359_v43 }
0x5883   :  { %7589 = vtanh.f32 %v5360_v39  ;;  %v5362_v3 = vsub.f32 0.0, %v5360_v39  ;;  %v5363_v51 = vmul.f32 1.442695, %v5361_v26  ;;  %v5420_v39 = vld [vmem:[#allocation2 + $0x1e] sm:$0x1] }
0x5885   :  { %v5365_v41 = vmul.f32 1.442695, %v5362_v3  ;;  %7591 = vpow2.f32 %v5363_v51 }
0x5887   :  { %7593 = vpow2.f32 %v5365_v41 }
0x588b   :  { %v7588_v25 = vpop.eup %7587 }
0x588c   :  { %5379 = vrot.lane.b32.xlu1 %v7588_v25, %s7668_s4 }
0x588d   :  { %v7590_v32 = vpop.eup %7589 }
0x588e   :  { %5381 = vrot.lane.b32.xlu0 %v7590_v32, %s7668_s4 }
0x588f   :  { %v7592_v28 = vpop.eup %7591 }
0x5890   :  { %v5367_v0 = vadd.f32 1.0, %v7592_v28 }
0x5891   :  { %v7594_v11 = vpop.eup %7593 }
0x5892   :  { %v5368_v19 = vadd.f32 1.0, %v7594_v11  ;;  %7595 = vrcp.f32 %v5367_v0 }
0x5894   :  { %7597 = vrcp.f32 %v5368_v19 }
0x589c   :  { %v7596_v52 = vpop.eup %7595 }
0x589d   :  { %v5375_v27 = vmul.f32 %v7596_v52, %v5253_v38 }
0x589e   :  { %v7598_v61 = vpop.eup %7597 }
0x589f   :  { %v5376_v10 = vmul.f32 %v7598_v61, %v5254_v23 }
0x58fe   :  { %v5380_v1 = vpop.permute.xlu1 %5379 }
0x58ff   :  { %v5385_v9 = vmul.f32 %v7596_v52, %v5380_v1 }
0x5900   :  { %v5382_v36 = vpop.permute.xlu0 %5381 }
0x5901   :  { %v5386_v24 = vmul.f32 %v7598_v61, %v5382_v36  ;;  %5389 = vrot.lane.b32.xlu1 %v5385_v9, %s7667_s24 }
0x5903   :  { %5391 = vrot.lane.b32.xlu0 %v5386_v24, %s7667_s24 }
0x5973   :  { %v5390_v59 = vpop.permute.xlu1 %5389 }
0x5974   :  { %v5395_v6 = vadd.f32 %v5390_v59, %v5375_v27 }
0x5975   :  { %v5392_v16 = vpop.permute.xlu0 %5391 }
0x5976   :  { %7599 = vtanh.f32 %v5395_v6  ;;  %v5396_v14 = vadd.f32 %v5392_v16, %v5376_v10 }
0x5978   :  { %7601 = vtanh.f32 %v5396_v14 }
0x5980   :  { %v7600_v5 = vpop.eup %7599 }
0x5981   :  { %5401 = vrot.lane.b32.xlu1 %v7600_v5, %s7668_s4 }
0x5982   :  { %v7602_v42 = vpop.eup %7601 }
0x5983   :  { %5403 = vrot.lane.b32.xlu0 %v7602_v42, %s7668_s4 }
0x59f3   :  { %v5402_v13 = vpop.permute.xlu1 %5401 }
0x59f4   :  { %v8970_v48 = vmul.f32 %v7596_v52, %v5402_v13 }
0x59f5   :  { %v5404_v12 = vpop.permute.xlu0 %5403 }
0x59f6   :  { %v8968_v35 = vmul.f32 %v7598_v61, %v5404_v12 }
0x59f8   :  { %v5421_v38 = vrot.slane %v8968_v35, 7 }
0x59fa   :  { %v5422_v23 = vsel %vm1189_vm13, %v5421_v38, %v8970_v48 }
0x59fb   :  { %5423 = vrot.lane.b32.xlu0 %v5422_v23, %s7667_s24 }
0x5a6d   :  { %v5424_v49 = vpop.permute.xlu0 %5423 }
0x5a6e   :  { %6744 = vmatmul.mubr.msk.f32.vlgmr.msra.gmra.mrb[32].mxu0 %vm155_vm1, %v5424_v49 }
0x5b41   :  { %v5493_v56 = vpop.f32.mrb[32].mxu0 }
0x5b42   :  { %v5498_v43 = vrot.slane %v5493_v56, 1  ;;  %v5501_v7 = vadd.f32 %v5493_v56, %v5419_v53  ;;  %v6745_v63 = vpop.f32.mrb[33].mxu0 }
0x5b44   :  { %v5502_v25 = vadd.f32 %v5498_v43, %v5420_v39  ;;  %7603 = vtanh.f32 %v5501_v7  ;;  %v5503_v3 = vsub.f32 0.0, %v5501_v7  ;;  %v5561_v7 = vld [vmem:[#allocation2 + $0xf] sm:$0x1] }
0x5b46   :  { %7605 = vtanh.f32 %v5502_v25  ;;  %v5504_v51 = vsub.f32 0.0, %v5502_v25  ;;  %v5505_v41 = vmul.f32 1.442695, %v5503_v3 }
0x5b48   :  { %v5507_v28 = vmul.f32 1.442695, %v5504_v51  ;;  %7607 = vpow2.f32 %v5505_v41 }
0x5b4a   :  { %7609 = vpow2.f32 %v5507_v28 }
0x5b4e   :  { %v7604_v32 = vpop.eup %7603 }
0x5b4f   :  { %5521 = vrot.lane.b32.xlu0 %v7604_v32, %s7668_s4 }
0x5b50   :  { %v7606_v26 = vpop.eup %7605 }
0x5b51   :  { %5523 = vrot.lane.b32.xlu1 %v7606_v26, %s7668_s4  ;;  %v5562_v26 = vld [vmem:[#allocation2 + $0x1f] sm:$0x1] }
0x5b52   :  { %v7608_v11 = vpop.eup %7607 }
0x5b53   :  { %v5509_v19 = vadd.f32 1.0, %v7608_v11 }
0x5b54   :  { %v7610_v0 = vpop.eup %7609 }
0x5b55   :  { %v5510_v52 = vadd.f32 1.0, %v7610_v0  ;;  %7611 = vrcp.f32 %v5509_v19 }
0x5b57   :  { %7613 = vrcp.f32 %v5510_v52 }
0x5b5f   :  { %v7612_v1 = vpop.eup %7611 }
0x5b60   :  { %v5517_v59 = vmul.f32 %v7612_v1, %v5395_v6 }
0x5b61   :  { %v7614_v36 = vpop.eup %7613 }
0x5b62   :  { %v5518_v5 = vmul.f32 %v7614_v36, %v5396_v14 }
0x5bc1   :  { %v5522_v9 = vpop.permute.xlu0 %5521 }
0x5bc2   :  { %v5527_v61 = vmul.f32 %v7612_v1, %v5522_v9 }
0x5bc3   :  { %v5524_v24 = vpop.permute.xlu1 %5523 }
0x5bc4   :  { %v5528_v27 = vmul.f32 %v7614_v36, %v5524_v24  ;;  %5531 = vrot.lane.b32.xlu0 %v5527_v61, %s7667_s24 }
0x5bc6   :  { %5533 = vrot.lane.b32.xlu1 %v5528_v27, %s7667_s24 }
0x5c36   :  { %v5532_v10 = vpop.permute.xlu0 %5531 }
0x5c37   :  { %v5537_v16 = vadd.f32 %v5532_v10, %v5517_v59 }
0x5c38   :  { %v5534_v42 = vpop.permute.xlu1 %5533 }
0x5c39   :  { %7615 = vtanh.f32 %v5537_v16  ;;  %v5538_v13 = vadd.f32 %v5534_v42, %v5518_v5 }
0x5c3b   :  { %7617 = vtanh.f32 %v5538_v13 }
0x5c43   :  { %v7616_v12 = vpop.eup %7615 }
0x5c44   :  { %5543 = vrot.lane.b32.xlu0 %v7616_v12, %s7668_s4 }
0x5c45   :  { %v7618_v38 = vpop.eup %7617 }
0x5c46   :  { %5545 = vrot.lane.b32.xlu1 %v7618_v38, %s7668_s4 }
0x5cb6   :  { %v5544_v23 = vpop.permute.xlu0 %5543 }
0x5cb7   :  { %v8985_v56 = vmul.f32 %v7612_v1, %v5544_v23 }
0x5cb8   :  { %v5546_v49 = vpop.permute.xlu1 %5545 }
0x5cb9   :  { %v8983_v53 = vmul.f32 %v7614_v36, %v5546_v49 }
0x5cbb   :  { %v5563_v6 = vrot.slane %v8983_v53, 7 }
0x5cbd   :  { %v5564_v14 = vsel %vm1189_vm13, %v5563_v6, %v8985_v56 }
0x5cbe   :  { %5565 = vrot.lane.b32.xlu1 %v5564_v14, %s7667_s24 }
0x5d30   :  { %v5566_v43 = vpop.permute.xlu1 %5565 }
0x5d31   :  { %6755 = vmatmul.mubr.msk.f32.vlgmr.msra.gmra.mrb[52].mxu1 %vm155_vm1, %v5566_v43 }
0x5e04   :  { %v5635_v63 = vpop.f32.mrb[52].mxu1 }
0x5e05   :  { %v5640_v39 = vrot.slane %v5635_v63, 1  ;;  %v5643_v25 = vadd.f32 %v5635_v63, %v5561_v7  ;;  %v6756_v32 = vpop.f32.mrb[53].mxu1  ;;  %v7096_v63 = vld [vmem:[%s9266_s19 + $0x38] sm:$0xff]  }
0x5e07   :  { %v5644_v3 = vadd.f32 %v5640_v39, %v5562_v26  ;;  %7619 = vtanh.f32 %v5643_v25  ;;  %v5645_v28 = vsub.f32 0.0, %v5643_v25 }
0x5e09   :  { %7621 = vtanh.f32 %v5644_v3  ;;  %v5646_v11 = vsub.f32 0.0, %v5644_v3  ;;  %v5647_v0 = vmul.f32 1.442695, %v5645_v28 }
0x5e0b   :  { %v5649_v19 = vmul.f32 1.442695, %v5646_v11  ;;  %7623 = vpow2.f32 %v5647_v0 }
0x5e0d   :  { %7625 = vpow2.f32 %v5649_v19 }
0x5e11   :  { %v7620_v51 = vpop.eup %7619 }
0x5e12   :  { %5663 = vrot.lane.b32.xlu0 %v7620_v51, %s7668_s4 }
0x5e13   :  { %v7622_v41 = vpop.eup %7621 }
0x5e14   :  { %5665 = vrot.lane.b32.xlu1 %v7622_v41, %s7668_s4 }
0x5e15   :  { %v7624_v52 = vpop.eup %7623 }
0x5e16   :  { %v5651_v9 = vadd.f32 1.0, %v7624_v52 }
0x5e17   :  { %v7626_v1 = vpop.eup %7625 }
0x5e18   :  { %v5652_v61 = vadd.f32 1.0, %v7626_v1  ;;  %7627 = vrcp.f32 %v5651_v9 }
0x5e1a   :  { %7629 = vrcp.f32 %v5652_v61 }
0x5e22   :  { %v7628_v36 = vpop.eup %7627 }
0x5e23   :  { %v5659_v42 = vmul.f32 %v7628_v36, %v5537_v16 }
0x5e24   :  { %v7630_v59 = vpop.eup %7629 }
0x5e25   :  { %v5660_v23 = vmul.f32 %v7630_v59, %v5538_v13  ;;  %v7095_v13 = vld [vmem:[%s9266_s19 + $0x30] sm:$0xff]  }
0x5e84   :  { %v5664_v24 = vpop.permute.xlu0 %5663 }
0x5e85   :  { %v5669_v27 = vmul.f32 %v7628_v36, %v5664_v24  ;;  %v7097_v24 = vld [vmem:[%s9266_s19 + $0x40] sm:$0xff]  }
0x5e86   :  { %v5666_v10 = vpop.permute.xlu1 %5665 }
0x5e87   :  { %v5670_v5 = vmul.f32 %v7630_v59, %v5666_v10  ;;  %5673 = vrot.lane.b32.xlu0 %v5669_v27, %s7667_s24 }
0x5e89   :  { %5675 = vrot.lane.b32.xlu1 %v5670_v5, %s7667_s24 }
0x5e8d   :  { %3707 = vrot.lane.b32.xlu1 %v8719_v18, %s7667_s24 }
0x5ef9   :  { %v5674_v12 = vpop.permute.xlu0 %5673 }
0x5efa   :  { %v5679_v38 = vadd.f32 %v5674_v12, %v5659_v42 }
0x5efb   :  { %v5676_v49 = vpop.permute.xlu1 %5675 }
0x5efc   :  { %7631 = vtanh.f32 %v5679_v38  ;;  %v5680_v6 = vadd.f32 %v5676_v49, %v5660_v23 }
0x5efe   :  { %7633 = vtanh.f32 %v5680_v6 }
0x5eff   :  { %v3708_v14 = vpop.permute.xlu1 %3707 }
0x5f00   :  { %3713 = vst.msk [vmem:[#allocation3 + $0x1] sm:$0x1] %vm1183_vm14, %v3708_v14 }
0x5f06   :  { %v7632_v43 = vpop.eup %7631 }
0x5f07   :  { %5685 = vrot.lane.b32.xlu0 %v7632_v43, %s7668_s4 }
0x5f08   :  { %v7634_v7 = vpop.eup %7633 }
0x5f09   :  { %5687 = vrot.lane.b32.xlu1 %v7634_v7, %s7668_s4  ;;  %v7098_v7 = vld [vmem:[%s9266_s19 + $0x48] sm:$0xff]  }
0x5f0b   :  { %3565 = vrot.lane.b32.xlu0 %v8698_v45, %s7667_s24 }
0x5f0d   :  { %3991 = vrot.lane.b32.xlu1 %v8761_v47, %s7667_s24 }
0x5f0f   :  { %3849 = vrot.lane.b32.xlu0 %v8740_v8, %s7667_s24 }
0x5f11   :  { %4275 = vrot.lane.b32.xlu1 %v8803_v62, %s7667_s24 }
0x5f13   :  { %4133 = vrot.lane.b32.xlu0 %v8782_v20, %s7667_s24 }
0x5f15   :  { %4559 = vrot.lane.b32.xlu1 %v8845_v57, %s7667_s24 }
0x5f17   :  { %4417 = vrot.lane.b32.xlu0 %v8824_v17, %s7667_s24 }
0x5f19   :  { %4843 = vrot.lane.b32.xlu1 %v8887_v33, %s7667_s24 }
0x5f1b   :  { %4701 = vrot.lane.b32.xlu0 %v8866_v4, %s7667_s24  ;;  %v7091_v4 = vld [vmem:[%s9266_s19 + $0x10] sm:$0xff]  }
0x5f1d   :  { %5127 = vrot.lane.b32.xlu1 %v8929_v29, %s7667_s24  ;;  %v7093_v29 = vld [vmem:[%s9266_s19 + $0x20] sm:$0xff]  }
0x5f1f   :  { %4985 = vrot.lane.b32.xlu0 %v8908_v34, %s7667_s24 }
0x5f21   :  { %5411 = vrot.lane.b32.xlu1 %v8970_v48, %s7667_s24 }
0x5f23   :  { %5269 = vrot.lane.b32.xlu0 %v8950_v54, %s7667_s24 }
0x5f25   :  { %3709 = vrot.lane.b32.xlu1 %v8717_v55, %s7667_s24 }
0x5f27   :  { %5553 = vrot.lane.b32.xlu0 %v8985_v56, %s7667_s24 }
0x5f29   :  { %3993 = vrot.lane.b32.xlu1 %v8759_v46, %s7667_s24 }
0x5f2b   :  { %3567 = vrot.lane.b32.xlu0 %v8696_v44, %s7667_s24 }
0x5f2d   :  { %4277 = vrot.lane.b32.xlu1 %v8801_v50, %s7667_s24 }
0x5f2f   :  { %3851 = vrot.lane.b32.xlu0 %v8738_v2, %s7667_s24 }
0x5f31   :  { %4561 = vrot.lane.b32.xlu1 %v8843_v40, %s7667_s24  ;;  %v7090_v40 = vld [vmem:[%s9266_s19 + $0x8] sm:$0xff]  }
0x5f33   :  { %4135 = vrot.lane.b32.xlu0 %v8780_v22, %s7667_s24 }
0x5f35   :  { %4845 = vrot.lane.b32.xlu1 %v8885_v60, %s7667_s24 }
0x5f37   :  { %4419 = vrot.lane.b32.xlu0 %v8822_v37, %s7667_s24  ;;  %v7089_v37 = vld [vmem:[%s9266_s19] sm:$0xff]  }
0x5f38   :  { %5923 = vmatpush1.bf16.msra.mxu0 %v7089_v37 }
0x5f39   :  { %5129 = vrot.lane.b32.xlu1 %v8927_v21, %s7667_s24  ;;  %5924 = vmatprep.subr.bf16.mxu0 %v7669_v58 }
0x5f3b   :  { %4703 = vrot.lane.b32.xlu0 %v8864_v15, %s7667_s24 }
0x5f3c   :  { %5925 = vmatpush1.bf16.msra.mxu0 %v7090_v40 }
0x5f3d   :  { %5926 = vmatprep.subr.bf16.mxu0 %v7669_v58 }
0x5f3f   :  { %4987 = vrot.lane.b32.xlu0 %v8906_v31, %s7667_s24  ;;  %v7092_v31 = vld [vmem:[%s9266_s19 + $0x18] sm:$0xff]  }
0x5f40   :  { %5927 = vmatpush1.bf16.msra.mxu0 %v7091_v4 }
0x5f41   :  { %5928 = vmatprep.subr.bf16.mxu0 %v7669_v58 }
0x5f43   :  { %5271 = vrot.lane.b32.xlu0 %v8948_v30, %s7667_s24 }
0x5f44   :  { %5929 = vmatpush1.bf16.msra.mxu0 %v7092_v31 }
0x5f45   :  { %5930 = vmatprep.subr.bf16.mxu0 %v7669_v58 }
0x5f47   :  { %5555 = vrot.lane.b32.xlu0 %v8983_v53, %s7667_s24 }
0x5f48   :  { %5931 = vmatpush1.bf16.msra.mxu0 %v7093_v29 }
0x5f49   :  { %5932 = vmatprep.subr.bf16.mxu0 %v7669_v58 }
0x5f79   :  { %v5686_v44 = vpop.permute.xlu0 %5685 }
0x5f7a   :  { %v5691_v45 = vmul.f32 %v7628_v36, %v5686_v44 }
0x5f7b   :  { %v5688_v55 = vpop.permute.xlu1 %5687 }
0x5f7c   :  { %5695 = vrot.lane.b32.xlu1 %v5691_v45, %s7667_s24  ;;  %v5692_v46 = vmul.f32 %v7630_v59, %v5688_v55 }
0x5f7d   :  { %v3566_v18 = vpop.permute.xlu0 %3565 }
0x5f7e   :  { %3571 = vst.msk [vmem:[#allocation3] sm:$0x1] %vm1183_vm14, %v3566_v18 }
0x5f7f   :  { %v3992_v2 = vpop.permute.xlu1 %3991 }
0x5f80   :  { %3997 = vst.msk [vmem:[#allocation3 + $0x3] sm:$0x1] %vm1183_vm14, %v3992_v2  ;;  %5413 = vrot.lane.b32.xlu1 %v8968_v35, %s7667_s24  ;;  %v7094_v35 = vld [vmem:[%s9266_s19 + $0x28] sm:$0xff]  }
0x5f81   :  { %v3850_v8 = vpop.permute.xlu0 %3849  ;;  %5933 = vmatpush1.bf16.msra.mxu0 %v7094_v35 }
0x5f82   :  { %3855 = vst.msk [vmem:[#allocation3 + $0x2] sm:$0x1] %vm1183_vm14, %v3850_v8  ;;  %5934 = vmatprep.subr.bf16.mxu0 %v7669_v58 }
0x5f83   :  { %v4276_v47 = vpop.permute.xlu1 %4275 }
0x5f84   :  { %4281 = vst.msk [vmem:[#allocation3 + $0x5] sm:$0x1] %vm1183_vm14, %v4276_v47  ;;  %5697 = vrot.lane.b32.xlu1 %v5692_v46, %s7667_s24 }
0x5f85   :  { %v4134_v22 = vpop.permute.xlu0 %4133  ;;  %5935 = vmatpush1.bf16.msra.mxu0 %v7095_v13 }
0x5f86   :  { %4139 = vst.msk [vmem:[#allocation3 + $0x4] sm:$0x1] %vm1183_vm14, %v4134_v22  ;;  %5936 = vmatprep.subr.bf16.mxu0 %v7669_v58 }
0x5f87   :  { %v4560_v20 = vpop.permute.xlu1 %4559 }
0x5f88   :  { %4565 = vst.msk [vmem:[#allocation3 + $0x7] sm:$0x1] %vm1183_vm14, %v4560_v20 }
0x5f89   :  { %v4418_v50 = vpop.permute.xlu0 %4417  ;;  %5937 = vmatpush1.bf16.msra.mxu0 %v7096_v63 }
0x5f8a   :  { %4423 = vst.msk [vmem:[#allocation3 + $0x6] sm:$0x1] %vm1183_vm14, %v4418_v50  ;;  %5938 = vmatprep.subr.bf16.mxu0 %v7669_v58 }
0x5f8b   :  { %v4844_v62 = vpop.permute.xlu1 %4843 }
0x5f8c   :  { %4849 = vst.msk [vmem:[#allocation3 + $0x9] sm:$0x1] %vm1183_vm14, %v4844_v62 }
0x5f8d   :  { %v4702_v17 = vpop.permute.xlu0 %4701  ;;  %5939 = vmatpush1.bf16.msra.mxu0 %v7097_v24 }
0x5f8e   :  { %4707 = vst.msk [vmem:[#allocation3 + $0x8] sm:$0x1] %vm1183_vm14, %v4702_v17  ;;  %5940 = vmatprep.subr.bf16.mxu0 %v7669_v58 }
0x5f8f   :  { %v5128_v57 = vpop.permute.xlu1 %5127 }
0x5f90   :  { %5133 = vst.msk [vmem:[#allocation3 + $0xb] sm:$0x1] %vm1183_vm14, %v5128_v57 }
0x5f91   :  { %v4986_v15 = vpop.permute.xlu0 %4985  ;;  %v5703_v11 = vld [vmem:[#allocation3] sm:$0xff]  ;;  %5941 = vmatpush1.bf16.msra.mxu0 %v7098_v7 }
0x5f92   :  { %4991 = vst.msk [vmem:[#allocation3 + $0xa] sm:$0x1] %vm1183_vm14, %v4986_v15  ;;  %v5734_v0 = vrot.slane %v5703_v11, 6 }
0x5f93   :  { %v5412_v60 = vpop.permute.xlu1 %5411 }
0x5f94   :  { %5417 = vst.msk [vmem:[#allocation3 + $0xd] sm:$0x1] %vm1183_vm14, %v5412_v60  ;;  %v9124_v1 = vsel %vm559_vm8, 0.0, %v5734_v0 }
0x5f95   :  { %v5270_v33 = vpop.permute.xlu0 %5269  ;;  %v5820_v59 = vrot.slane %v9124_v1, 4  ;;  %v5776_v10 = vrot.slane %v9124_v1, 2  ;;  %v5754_v5 = vrot.slane %v9124_v1, 1  ;;  %v5798_v38 = vrot.slane %v9124_v1, 3 }
0x5f96   :  { %5275 = vst.msk [vmem:[#allocation3 + $0xc] sm:$0x1] %vm1183_vm14, %v5270_v33 }
0x5f97   :  { %v3710_v34 = vpop.permute.xlu1 %3709 }
0x5f98   :  { %3714 = vst.msk [vmem:[#allocation3 + $0x11] sm:$0x1] %vm1183_vm14, %v3710_v34 }
0x5f99   :  { %v5554_v21 = vpop.permute.xlu0 %5553 }
0x5f9a   :  { %5559 = vst.msk [vmem:[#allocation3 + $0xe] sm:$0x1] %vm1183_vm14, %v5554_v21 }
0x5f9b   :  { %v3994_v30 = vpop.permute.xlu1 %3993 }
0x5f9c   :  { %3998 = vst.msk [vmem:[#allocation3 + $0x13] sm:$0x1] %vm1183_vm14, %v3994_v30 }
0x5f9d   :  { %v3568_v54 = vpop.permute.xlu0 %3567 }
0x5f9e   :  { %3572 = vst.msk [vmem:[#allocation3 + $0x10] sm:$0x1] %vm1183_vm14, %v3568_v54 }
0x5f9f   :  { %v4278_v48 = vpop.permute.xlu1 %4277 }
0x5fa0   :  { %4282 = vst.msk [vmem:[#allocation3 + $0x15] sm:$0x1] %vm1183_vm14, %v4278_v48 }
0x5fa1   :  { %v3852_v16 = vpop.permute.xlu0 %3851 }
0x5fa2   :  { %3856 = vst.msk [vmem:[#allocation3 + $0x12] sm:$0x1] %vm1183_vm14, %v3852_v16 }
0x5fa3   :  { %v4562_v53 = vpop.permute.xlu1 %4561 }
0x5fa4   :  { %4566 = vst.msk [vmem:[#allocation3 + $0x17] sm:$0x1] %vm1183_vm14, %v4562_v53 }
0x5fa5   :  { %v4136_v56 = vpop.permute.xlu0 %4135 }
0x5fa6   :  { %4140 = vst.msk [vmem:[#allocation3 + $0x14] sm:$0x1] %vm1183_vm14, %v4136_v56 }
0x5fa7   :  { %v4846_v39 = vpop.permute.xlu1 %4845 }
0x5fa8   :  { %4850 = vst.msk [vmem:[#allocation3 + $0x19] sm:$0x1] %vm1183_vm14, %v4846_v39 }
0x5fa9   :  { %v4420_v25 = vpop.permute.xlu0 %4419 }
0x5faa   :  { %4424 = vst.msk [vmem:[#allocation3 + $0x16] sm:$0x1] %vm1183_vm14, %v4420_v25 }
0x5fab   :  { %v5130_v32 = vpop.permute.xlu1 %5129 }
0x5fac   :  { %5134 = vst.msk [vmem:[#allocation3 + $0x1b] sm:$0x1] %vm1183_vm14, %v5130_v32 }
0x5fad   :  { %v4704_v26 = vpop.permute.xlu0 %4703 }
0x5fae   :  { %4708 = vst.msk [vmem:[#allocation3 + $0x18] sm:$0x1] %vm1183_vm14, %v4704_v26 }
0x5fb1   :  { %v4988_v3 = vpop.permute.xlu0 %4987  ;;  %v5705_v52 = vld [vmem:[#allocation3 + $0x10] sm:$0xff] }
0x5fb2   :  { %4992 = vst.msk [vmem:[#allocation3 + $0x1a] sm:$0x1] %vm1183_vm14, %v4988_v3  ;;  %v5737_v9 = vrot.slane %v5705_v52, 6 }
0x5fb4   :  { %v9139_v23 = vsel %vm559_vm8, 0.0, %v5737_v9 }
0x5fb5   :  { %v5272_v51 = vpop.permute.xlu0 %5271  ;;  %v5781_v15 = vrot.slane %v9139_v23, 2  ;;  %v5759_v31 = vrot.slane %v9139_v23, 1  ;;  %v5803_v54 = vrot.slane %v9139_v23, 3  ;;  %v5825_v24 = vrot.slane %v9139_v23, 4 }
0x5fb6   :  { %5276 = vst.msk [vmem:[#allocation3 + $0x1c] sm:$0x1] %vm1183_vm14, %v5272_v51 }
0x5fb9   :  { %v5556_v41 = vpop.permute.xlu0 %5555 }
0x5fba   :  { %5560 = vst.msk [vmem:[#allocation3 + $0x1e] sm:$0x1] %vm1183_vm14, %v5556_v41 }
0x5fee   :  { %v5696_v28 = vpop.permute.xlu1 %5695 }
0x5fef   :  { %5701 = vst.msk [vmem:[#allocation3 + $0xf] sm:$0x1] %vm1183_vm14, %v5696_v28 }
0x5ff2   :  { %v5414_v19 = vpop.permute.xlu1 %5413 }
0x5ff3   :  { %5418 = vst.msk [vmem:[#allocation3 + $0x1d] sm:$0x1] %vm1183_vm14, %v5414_v19 }
0x5ff6   :  { %v5698_v61 = vpop.permute.xlu1 %5697  ;;  %v5704_v36 = vld [vmem:[#allocation3 + $0x8] sm:$0xff] }
0x5ff7   :  { %5702 = vst.msk [vmem:[#allocation3 + $0x1f] sm:$0x1] %vm1183_vm14, %v5698_v61  ;;  %v5735_v27 = vrot.slane %v5704_v36, 6 }
0x5ff9   :  { %v9134_v42 = vsel %vm559_vm8, %v5734_v0, %v5735_v27  ;;  %v5748_v12 = vsel %vm559_vm8, %v5735_v27, 0.0 }
0x5ffa   :  { %v5821_v49 = vrot.slane %v9134_v42, 4  ;;  %v5823_v6 = vrot.slane %v5748_v12, 4  ;;  %v5777_v14 = vrot.slane %v9134_v42, 2  ;;  %v5779_v43 = vrot.slane %v5748_v12, 2 }
0x5ffb   :  { %v5755_v44 = vrot.slane %v9134_v42, 1  ;;  %v5757_v45 = vrot.slane %v5748_v12, 1  ;;  %v5799_v55 = vrot.slane %v9134_v42, 3  ;;  %v5801_v18 = vrot.slane %v5748_v12, 3 }
0x5ffc   :  { %v5822_v2 = vsel %vm647_vm10, %v5820_v59, %v5821_v49  ;;  %v5824_v58 = vsel %vm647_vm10, %v5821_v49, %v5823_v6  ;;  %v5778_v8 = vsel %vm304_vm4, %v5776_v10, %v5777_v14  ;;  %v5780_v46 = vsel %vm304_vm4, %v5777_v14, %v5779_v43 }
0x5ffd   :  { %v5847_v47 = vpack.c.bf16 %v5824_v58, %v5822_v2  ;;  %v7042_v22 = vpack.i.bf16 %v5780_v46, %v5778_v8  ;;  %v5756_v20 = vsel %vm281_vm3, %v5754_v5, %v5755_v44  ;;  %v5758_v50 = vsel %vm281_vm3, %v5755_v44, %v5757_v45 }
0x5ffe   :  { %v7037_v62 = vpack.i.bf16 %v5758_v50, %v5756_v20  ;;  %v5800_v37 = vsel %vm624_vm9, %v5798_v38, %v5799_v55  ;;  %v5802_v17 = vsel %vm624_vm9, %v5799_v55, %v5801_v18  ;;  %v5706_v40 = vld [vmem:[#allocation3 + $0x18] sm:$0xff] }
0x5fff   :  { %6164 = vmatprep.mubr.msk.bf16.mxu0 %vm155_vm1, %v5847_v47  ;;  %7043 = vrot.lane.b32.xlu1 %v7042_v22, %s7668_s4  ;;  %v5738_v57 = vrot.slane %v5706_v40, 6  ;;  %v7047_v4 = vpack.i.bf16 %v5802_v17, %v5800_v37 }
0x6000   :  { %7038 = vrot.lane.b32.xlu0 %v7037_v62, %s7667_s24 }
0x6001   :  { %v5739_v60 = vsel %vm559_vm8, %v5737_v9, %v5738_v57  ;;  %v5749_v33 = vsel %vm559_vm8, %v5738_v57, 0.0 }
0x6002   :  { %v5782_v34 = vrot.slane %v5739_v60, 2  ;;  %v5784_v21 = vrot.slane %v5749_v33, 2  ;;  %v5760_v29 = vrot.slane %v5739_v60, 1  ;;  %v5762_v30 = vrot.slane %v5749_v33, 1 }
0x6003   :  { %v5804_v35 = vrot.slane %v5739_v60, 3  ;;  %v5806_v48 = vrot.slane %v5749_v33, 3  ;;  %v5826_v19 = vrot.slane %v5739_v60, 4  ;;  %v5828_v52 = vrot.slane %v5749_v33, 4 }
0x6004   :  { %7048 = vrot.lane.b32.xlu0 %v7047_v4, %s7671_s28  ;;  %v5783_v16 = vsel %vm304_vm4, %v5781_v15, %v5782_v34  ;;  %v5785_v13 = vsel %vm304_vm4, %v5782_v34, %v5784_v21  ;;  %v5761_v53 = vsel %vm281_vm3, %v5759_v31, %v5760_v29  ;;  %v5763_v56 = vsel %vm281_vm3, %v5760_v29, %v5762_v30 }
0x6005   :  { %v7057_v63 = vpack.i.bf16 %v5785_v13, %v5783_v16  ;;  %v7052_v39 = vpack.i.bf16 %v5763_v56, %v5761_v53  ;;  %v5805_v25 = vsel %vm624_vm9, %v5803_v54, %v5804_v35  ;;  %v5807_v32 = vsel %vm624_vm9, %v5804_v35, %v5806_v48 }
0x6006   :  { %v7062_v26 = vpack.i.bf16 %v5807_v32, %v5805_v25  ;;  %v5827_v12 = vsel %vm647_vm10, %v5825_v24, %v5826_v19  ;;  %v5829_v38 = vsel %vm647_vm10, %v5826_v19, %v5828_v52 }
0x6007   :  { %7053 = vrot.lane.b32.xlu1 %v7052_v39, %s7667_s24  ;;  %v5849_v55 = vpack.c.bf16 %v5829_v38, %v5827_v12 }
0x6008   :  { %7058 = vrot.lane.b32.xlu0 %v7057_v63, %s7668_s4 }
0x600b   :  { %7063 = vrot.lane.b32.xlu1 %v7062_v26, %s7671_s28 }
0x6071   :  { %v7044_v3 = vpop.permute.xlu1 %7043 }
0x6072   :  { %v7039_v51 = vpop.permute.xlu0 %7038  ;;  %v7046_v11 = vunpack.i.h.bf16 %v7044_v3  ;;  %v7045_v0 = vunpack.i.l.bf16 %v7044_v3 }
0x6073   :  { %v7041_v41 = vunpack.i.h.bf16 %v7039_v51  ;;  %v7040_v28 = vunpack.i.l.bf16 %v7039_v51 }
0x6075   :  { %v5835_v9 = vsel %vm155_vm1, %v9134_v42, %v7041_v41  ;;  %v5834_v61 = vsel %vm155_vm1, %v9124_v1, %v7040_v28 }
0x6076   :  { %v7049_v36 = vpop.permute.xlu0 %7048  ;;  %v5839_v10 = vsel %vm331_vm5, %v5835_v9, %v7046_v11  ;;  %v5838_v5 = vsel %vm331_vm5, %v5834_v61, %v7045_v0 }
0x6077   :  { %v7051_v27 = vunpack.i.h.bf16 %v7049_v36  ;;  %v7050_v59 = vunpack.i.l.bf16 %v7049_v36 }
0x6079   :  { %v5842_v49 = vsel %vm380_vm6, %v5838_v5, %v7050_v59  ;;  %v5843_v42 = vsel %vm380_vm6, %v5839_v10, %v7051_v27  ;;  %v7054_v6 = vpop.permute.xlu1 %7053 }
0x607a   :  { %v5846_v14 = vpack.c.bf16 %v5843_v42, %v5842_v49  ;;  %v7059_v1 = vpop.permute.xlu0 %7058  ;;  %v7056_v43 = vunpack.i.h.bf16 %v7054_v6  ;;  %v7055_v7 = vunpack.i.l.bf16 %v7054_v6 }
0x607b   :  { %v7061_v44 = vunpack.i.h.bf16 %v7059_v1  ;;  %v7060_v45 = vunpack.i.l.bf16 %v7059_v1 }
0x607c   :  { %v5837_v18 = vsel %vm155_vm1, %v5739_v60, %v7056_v43  ;;  %v5836_v2 = vsel %vm155_vm1, %v9139_v23, %v7055_v7  ;;  %5955 = vmatmul.mubr.bf16.vlgmr.msra.gmra.mrb[36].mxu0 %v5846_v14  ;;  %v6153_v23 = vld [vmem:[%s9267_s20] ss:$0 sm:$0xff] }
0x607d   :  { %6165 = vmatprep.mubr.msk.bf16.mxu0 %vm155_vm1, %v5849_v55  ;;  %v7064_v58 = vpop.permute.xlu1 %7063  ;;  %v5840_v47 = vsel %vm331_vm5, %v5836_v2, %v7060_v45  ;;  %v5841_v22 = vsel %vm331_vm5, %v5837_v18, %v7061_v44  ;;  %v6166_v14 = vld [vmem:[%s9268_s21] ss:$0 sm:$0xff]  ;;  %s7676_s21 = smov [#allocation4]  }
0x607e   :  { %v7066_v8 = vunpack.i.h.bf16 %v7064_v58  ;;  %v7065_v46 = vunpack.i.l.bf16 %v7064_v58  ;;  %v6167_v55 = vld [vmem:[%s9269_s22] ss:$0 sm:$0xff]  ;;  %s6065_s22 = sshll.u32 %s7676_s21, 4  ;;  %s6066_s22 = int_to_ptr.vmem [resolvable:$true] %s6065_s22 }
0x607f   :  { %s7643_s14 = scalar_lea.vmem %s6066_s22, 512  ;;  %p7648_p1 = scmp.lt.s32.totalorder %s6066_s22, %s6066_s22 }
0x6080   :  { %v5844_v20 = vsel %vm380_vm6, %v5840_v47, %v7065_v46  ;;  %v5845_v50 = vsel %vm380_vm6, %v5841_v22, %v7066_v8  ;;  %p7644_p0 = scmp.ne.s32.totalorder %s6066_s22, %s7643_s14  ;;  %p7649_p2 = scmp.lt.s32.totalorder %s7643_s14, %s7643_s14 }
0x6081   :  { %v5848_v62 = vpack.c.bf16 %v5845_v50, %v5844_v20 }
0x6082   :  { %p7650_p3 = por %p7649_p2, %p7648_p1 }
0x6084   :  { %5963 = vmatmul.mubr.bf16.gmra.mrb[40].mxu0 %v5848_v62  ;;  %p7651_p4 = pnand %p7650_p3, %p7644_p0 }
0x614f   :  { %v5956_v37 = vpop.f32.mrb[36].mxu0 }
0x6150   :  { %v9197_v17 = vadd.f32 %v6153_v23, %v5956_v37  ;;  %v5958_v40 = vpop.f32.mrb[37].mxu0 }
0x6151   :  { %v5959_v57 = vpop.f32.mrb[38].mxu0 }
0x6152   :  { %v9199_v15 = vadd.f32 %v6153_v23, %v5959_v57  ;;  %v5961_v4 = vpop.f32.mrb[39].mxu0  ;;  %v5971_v60 = vsel %vm99_vm0, %v9197_v17, 0.0 }
0x6153   :  { %5972 = vadd.xlane.f32.xlu0 %v5971_v60 }
0x6154   :  { %v5974_v33 = vsel %vm99_vm0, %v9199_v15, 0.0 }
0x6155   :  { %5975 = vadd.xlane.f32.xlu1 %v5974_v33 }
0x6157   :  { %v5964_v31 = vpop.f32.mrb[40].mxu0 }
0x6158   :  { %v9205_v34 = vadd.f32 %v6153_v23, %v5964_v31  ;;  %v5966_v21 = vpop.f32.mrb[41].mxu0 }
0x6159   :  { %v5967_v29 = vpop.f32.mrb[42].mxu0 }
0x615a   :  { %v9207_v30 = vadd.f32 %v6153_v23, %v5967_v29  ;;  %v5969_v54 = vpop.f32.mrb[43].mxu0  ;;  %v5977_v35 = vsel %vm99_vm0, %v9205_v34, 0.0 }
0x615b   :  { %5978 = vadd.xlane.f32.xlu0 %v5977_v35 }
0x615c   :  { %v5980_v48 = vsel %vm99_vm0, %v9207_v30, 0.0 }
0x615f   :  { %5981 = vadd.xlane.f32.xlu0 %v5980_v48 }
0x61e0   :  { %v5973_v16 = vpop.xlane.xlu0 %5972 }
0x61e1   :  { %v5984_v13 = vmul.f32 0.0625, %v5973_v16 }
0x61e2   :  { %v5976_v53 = vpop.xlane.xlu1 %5975 }
0x61e3   :  { %v5988_v56 = vsub.f32 %v9197_v17, %v5984_v13  ;;  %v5985_v63 = vmul.f32 0.0625, %v5976_v53 }
0x61e5   :  { %v5992_v39 = vmul.f32 %v5988_v56, %v5988_v56  ;;  %v5989_v25 = vsub.f32 %v9199_v15, %v5985_v63 }
0x61e7   :  { %v5993_v32 = vmul.f32 %v5989_v25, %v5989_v25  ;;  %v5996_v26 = vsel %vm99_vm0, %v5992_v39, 0.0 }
0x61e8   :  { %5997 = vadd.xlane.f32.xlu0 %v5996_v26  ;;  %v5979_v3 = vpop.xlane.xlu0 %5978 }
0x61e9   :  { %v5986_v51 = vmul.f32 0.0625, %v5979_v3  ;;  %v5999_v41 = vsel %vm99_vm0, %v5993_v32, 0.0 }
0x61ea   :  { %6000 = vadd.xlane.f32.xlu1 %v5999_v41 }
0x61eb   :  { %v5990_v28 = vsub.f32 %v9205_v34, %v5986_v51 }
0x61ec   :  { %v5982_v11 = vpop.xlane.xlu0 %5981 }
0x61ed   :  { %v5994_v0 = vmul.f32 %v5990_v28, %v5990_v28  ;;  %v5987_v19 = vmul.f32 0.0625, %v5982_v11 }
0x61ef   :  { %v5991_v52 = vsub.f32 %v9207_v30, %v5987_v19  ;;  %v6002_v9 = vsel %vm99_vm0, %v5994_v0, 0.0 }
0x61f0   :  { %6003 = vadd.xlane.f32.xlu0 %v6002_v9 }
0x61f1   :  { %v5995_v61 = vmul.f32 %v5991_v52, %v5991_v52 }
0x61f3   :  { %v6005_v36 = vsel %vm99_vm0, %v5995_v61, 0.0 }
0x61f4   :  { %6006 = vadd.xlane.f32.xlu1 %v6005_v36 }
0x6275   :  { %v5998_v24 = vpop.xlane.xlu0 %5997 }
0x6276   :  { %v6008_v27 = vmul.f32 0.0625, %v5998_v24 }
0x6277   :  { %v6001_v59 = vpop.xlane.xlu1 %6000 }
0x6278   :  { %v6012_v10 = vadd.f32 1e-05, %v6008_v27  ;;  %v6009_v5 = vmul.f32 0.0625, %v6001_v59 }
0x627a   :  { %7635 = vrsqrt.f32 %v6012_v10  ;;  %v6013_v12 = vadd.f32 1e-05, %v6009_v5 }
0x627c   :  { %7637 = vrsqrt.f32 %v6013_v12 }
0x627d   :  { %v6004_v38 = vpop.xlane.xlu0 %6003 }
0x627e   :  { %v6010_v49 = vmul.f32 0.0625, %v6004_v38 }
0x6280   :  { %v6014_v42 = vadd.f32 1e-05, %v6010_v49 }
0x6281   :  { %v6007_v6 = vpop.xlane.xlu1 %6006 }
0x6282   :  { %7639 = vrsqrt.f32 %v6014_v42  ;;  %v6011_v1 = vmul.f32 0.0625, %v6007_v6 }
0x6284   :  { %v7636_v43 = vpop.eup %7635  ;;  %v6015_v7 = vadd.f32 1e-05, %v6011_v1 }
0x6285   :  { %v6026_v44 = vmul.f32 %v7636_v43, %v6166_v14 }
0x6286   :  { %v7638_v45 = vpop.eup %7637  ;;  %7641 = vrsqrt.f32 %v6015_v7 }
0x6287   :  { %v6030_v18 = vmul.f32 %v6026_v44, %v5984_v13  ;;  %v6027_v2 = vmul.f32 %v7638_v45, %v6166_v14  ;;  %v6044_v8 = vmul.f32 %v6026_v44, %v9197_v17 }
0x6289   :  { %v6040_v58 = vsub.f32 %v6167_v55, %v6030_v18  ;;  %v6031_v46 = vmul.f32 %v6027_v2, %v5985_v63  ;;  %v6045_v20 = vmul.f32 %v6027_v2, %v9199_v15 }
0x628b   :  { %v6048_v47 = vadd.f32 %v6044_v8, %v6040_v58  ;;  %v6041_v22 = vsub.f32 %v6167_v55, %v6031_v46 }
0x628c   :  { %v7640_v50 = vpop.eup %7639 }
0x628d   :  { %v6052_v62 = vmax.f32 %v6048_v47, 0.0  ;;  %v6049_v23 = vadd.f32 %v6045_v20, %v6041_v22  ;;  %v6028_v37 = vmul.f32 %v7640_v50, %v6166_v14 }
0x628f   :  { %6056 = vst.msk [vmem:[#allocation4] sm:$0xff] %vm99_vm0, %v6052_v62  ;;  %v6053_v40 = vmax.f32 %v6049_v23, 0.0  ;;  %v6032_v57 = vmul.f32 %v6028_v37, %v5986_v51  ;;  %v6046_v33 = vmul.f32 %v6028_v37, %v9205_v34 }
0x6290   :  { %v7642_v4 = vpop.eup %7641 }
0x6291   :  { %6057 = vst.msk [vmem:[#allocation4 + $0x8] sm:$0xff] %vm99_vm0, %v6053_v40  ;;  %v6042_v60 = vsub.f32 %v6167_v55, %v6032_v57  ;;  %v6029_v17 = vmul.f32 %v7642_v4, %v6166_v14 }
0x6293   :  { %v6050_v31 = vadd.f32 %v6046_v33, %v6042_v60  ;;  %v6033_v21 = vmul.f32 %v6029_v17, %v5987_v19  ;;  %v6047_v15 = vmul.f32 %v6029_v17, %v9207_v30 }
0x6295   :  { %v6054_v29 = vmax.f32 %v6050_v31, 0.0  ;;  %v6043_v54 = vsub.f32 %v6167_v55, %v6033_v21 }
0x6297   :  { %6058 = vst.msk [vmem:[#allocation4 + $0x10] sm:$0xff] %vm99_vm0, %v6054_v29  ;;  %v6051_v35 = vadd.f32 %v6047_v15, %v6043_v54 }
0x6299   :  { %v6055_v48 = vmax.f32 %v6051_v35, 0.0 }
0x629b   :  { %6059 = vst.msk [vmem:[#allocation4 + $0x18] sm:$0xff] %vm99_vm0, %v6055_v48 }
0x629c   :  { %7654 = shalt.err (!%p7651_p4)
}
0x629d   :  { %s7655_s30 = scalar_lea.hbm %s9270_s23, 512 }
0x629e   :  { %p7656_p5 = scmp.ne.s32.totalorder %s9270_s23, %s7655_s30  ;;  %p7659_p6 = scmp.lt.u32.totalorder %s7655_s30, %s9270_s23 }
0x62a0   :  { %p7661_p7 = pnand %p7659_p6, %p7656_p5 }
0x62a2   :  { %7664 = shalt.err (!%p7661_p7)
}
0x62a3   :  { %s7677_s5 = smov 128   ;;  %s7678_s1 = smov 8  }
0x62a4   :  { %6071 = dma.vmem_to_hbm [thread:$0]  %s6066_s22, 512, %s9270_s23, [#allocation5], %s7677_s5, %s7677_s5, %s7678_s1  }
0x62a5   :  { %7665 = dma.done.wait [#allocation5], 512  }
0x62a6   :  { %7666 = vsyncadd [#allocation5], 4294966784 }
0x62a7   :  { %6075 = vsyncpa [#allocation5], 1 }

</bundles_post_ra>
